<compile_context>
chip_gen: v5e
topology: v5e:2x2
jax: 0.10.0
libtpu: 0.0.40
codegen_flags: <defaults>
</compile_context>

<pallas_src>
import jax
import jax.numpy as jnp
from jax.experimental import pallas as pl
from jax.experimental.pallas import tpu as pltpu

BN_EPS = 1e-5


def _make_basic_block_kernel(H, W, C):
    """Fused BasicBlock forward for one batch element.

    Inputs (per grid step):
      x_ref  : (1, H, W, C)  bf16   unpadded activations (also the residual)
      w1_ref : (9C, C)       bf16   conv1 weights with BN1 scale folded in
      b1_ref : (1, C)        f32    effective bias 1 (= beta1 + s1*(b1 - m1))
      w2_ref : (9C, C)       bf16   conv2 weights with BN2 scale folded in
      b2_ref : (1, C)        f32    effective bias 2
      o_ref  : (1, H, W, C)  f32    block output
    Scratch:
      xp_scr  : (H+2, W+2, C) bf16  zero-padded activation (reused for conv2)
      lhs_scr : (H*W, 9C)     bf16  packed im2col LHS (reused for conv2)
    """

    def im2col(xp_scr, lhs_scr):
        # Pack the 9 taps into a lane-contiguous (H*W, 9C) LHS once, so each
        # conv is a single K=9C matmul on the MXU.
        for dy in range(3):
            for dx in range(3):
                t = dy * 3 + dx
                win = xp_scr[dy:dy + H, dx:dx + W, :]          # (H, W, C) bf16
                lhs_scr[:, t * C:(t + 1) * C] = win.reshape(H * W, C)

    def kernel(x_ref, w1_ref, b1_ref, w2_ref, b2_ref, o_ref, xp_scr, lhs_scr):
        x0 = x_ref[0]                                          # (H, W, C) bf16

        # ---- zero-pad conv1 input in VMEM (no HBM pad materialization) ----
        xp_scr[...] = jnp.zeros_like(xp_scr)
        xp_scr[1:H + 1, 1:W + 1, :] = x0

        # ---- conv1 (BN1 scale folded into weights) + bias + ReLU ----
        im2col(xp_scr, lhs_scr)
        h1 = jnp.dot(lhs_scr[...], w1_ref[...],
                     preferred_element_type=jnp.float32)       # (H*W, C), K=9C
        h1 = jnp.maximum(h1 + b1_ref[...], 0.0)

        # ---- intermediate stays in VMEM: overwrite padded interior ----
        # (border is still zero from the memset above)
        xp_scr[1:H + 1, 1:W + 1, :] = h1.astype(jnp.bfloat16).reshape(H, W, C)

        # ---- conv2 (BN2 scale folded) + bias + identity + ReLU ----
        im2col(xp_scr, lhs_scr)
        h2 = jnp.dot(lhs_scr[...], w2_ref[...],
                     preferred_element_type=jnp.float32)       # (H*W, C), K=9C
        out = h2 + b2_ref[...] + x0.reshape(H * W, C).astype(jnp.float32)
        out = jnp.maximum(out, 0.0)
        o_ref[...] = out.reshape(1, H, W, C).astype(o_ref.dtype)

    return kernel


def basic_block_forward(x_nchw, params):
    """BasicBlock forward (inference-mode BN folded into the conv weights/bias)."""
    (w1, b1, g1, be1, m1, v1), (w2, b2, g2, be2, m2, v2) = params

    x = jnp.transpose(x_nchw, (0, 2, 3, 1))                    # NCHW -> NHWC
    n, h, w, c = x.shape
    assert w1.shape == (3, 3, c, c) and w2.shape == (3, 3, c, c)

    # Fold BN scale into conv weights (scale in f32, then cast to bf16) and
    # pre-reshape to (9C, C) matching the im2col tap order (dy, dx, cin).
    s1 = g1 / jnp.sqrt(v1 + BN_EPS)
    s2 = g2 / jnp.sqrt(v2 + BN_EPS)
    w1_eff = (w1 * s1[None, None, None, :]).reshape(9 * c, c).astype(jnp.bfloat16)
    w2_eff = (w2 * s2[None, None, None, :]).reshape(9 * c, c).astype(jnp.bfloat16)
    bias1 = (be1 + s1 * (b1 - m1)).reshape(1, c).astype(jnp.float32)
    bias2 = (be2 + s2 * (b2 - m2)).reshape(1, c).astype(jnp.float32)

    # bf16 activations: halves input DMA bytes; the same tile is the residual.
    x_bf16 = x.astype(jnp.bfloat16)

    kernel = _make_basic_block_kernel(h, w, c)

    out = pl.pallas_call(
        kernel,
        out_shape=jax.ShapeDtypeStruct((n, h, w, c), jnp.float32),
        grid_spec=pltpu.PrefetchScalarGridSpec(
            num_scalar_prefetch=0,
            grid=(n,),
            in_specs=[
                pl.BlockSpec((1, h, w, c), lambda i: (i, 0, 0, 0)),   # activations / residual
                pl.BlockSpec((9 * c, c), lambda i: (0, 0)),           # conv1 weights (VMEM-resident)
                pl.BlockSpec((1, c), lambda i: (0, 0)),               # bias1
                pl.BlockSpec((9 * c, c), lambda i: (0, 0)),           # conv2 weights (VMEM-resident)
                pl.BlockSpec((1, c), lambda i: (0, 0)),               # bias2
            ],
            out_specs=pl.BlockSpec((1, h, w, c), lambda i: (i, 0, 0, 0)),
            scratch_shapes=[
                pltpu.VMEM((h + 2, w + 2, c), jnp.bfloat16),          # padded activation
                pltpu.VMEM((h * w, 9 * c), jnp.bfloat16),             # packed im2col LHS
            ],
        ),
        compiler_params=pltpu.CompilerParams(
            dimension_semantics=("parallel",),
        ),
    )(x_bf16, w1_eff, bias1, w2_eff, bias2)

    return jnp.transpose(out, (0, 3, 1, 2))                    # NHWC -> NCHW


def basic_block_reference(x_nchw, params):
    """Pure-JAX (lax conv, f32) reference for correctness checking."""
    (w1, b1, g1, be1, m1, v1), (w2, b2, g2, be2, m2, v2) = params
    x = jnp.transpose(x_nchw, (0, 2, 3, 1))

    def conv_bn(h, w, b, g, be, m, v):
        y = jax.lax.conv_general_dilated(
            h, w, window_strides=(1, 1), padding=((1, 1), (1, 1)),
            dimension_numbers=("NHWC", "HWIO", "NHWC"))
        y = y + b
        return g * (y - m) / jnp.sqrt(v + BN_EPS) + be

    y = jnp.maximum(conv_bn(x, w1, b1, g1, be1, m1, v1), 0.0)
    y = conv_bn(y, w2, b2, g2, be2, m2, v2) + x
    y = jnp.maximum(y, 0.0)
    return jnp.transpose(y, (0, 3, 1, 2))


def init_params(key, c=64):
    """Deterministic synthetic conv + BN parameters for both stages."""
    keys = jax.random.split(key, 12)

    def conv_bn_params(ks):
        kw, kb, kg, kbeta, km, kv = ks
        std = (2.0 / (9 * c)) ** 0.5
        w = std * jax.random.normal(kw, (3, 3, c, c), jnp.float32)
        b = 0.01 * jax.random.normal(kb, (c,), jnp.float32)
        gamma = 1.0 + 0.1 * jax.random.normal(kg, (c,), jnp.float32)
        beta = 0.1 * jax.random.normal(kbeta, (c,), jnp.float32)
        mean = 0.1 * jax.random.normal(km, (c,), jnp.float32)
        var = 1.0 + 0.1 * jax.random.uniform(kv, (c,), jnp.float32)
        return (w, b, gamma, beta, mean, var)

    return (conv_bn_params(keys[0:6]), conv_bn_params(keys[6:12]))


if __name__ == "__main__":
    key = jax.random.PRNGKey(0)
    pkey, xkey = jax.random.split(key)

    C = 64  # BasicBlock default num_filters
    params = init_params(pkey, C)
    x = jax.random.normal(xkey, (2, C, 16, 16), jnp.float32)   # NCHW

    out = jax.block_until_ready(jax.jit(basic_block_forward)(x, params))
    assert out.shape == (2, C, 16, 16), out.shape

    ref = jax.block_until_ready(jax.jit(basic_block_reference)(x, params))
    rel_err = float(jnp.max(jnp.abs(out - ref)) / (jnp.max(jnp.abs(ref)) + 1e-6))
    # bf16 MXU operands / bf16 VMEM intermediate / bf16 residual with f32
    # accumulation + f32 epilogue: expect ~1e-3..1e-2 max-normalized error.
    assert rel_err < 2e-2, f"mismatch vs reference: rel err {rel_err}"

    print("KERNEL_OK")
</pallas_src>

<mosaic_0001>
module attributes {stable_mosaic.version = 11 : i64} {
  func.func @kernel(%arg0: i32, %arg1: memref<1x16x16x64xbf16, #tpu.memory_space<vmem>>, %arg2: memref<576x64xbf16, #tpu.memory_space<vmem>>, %arg3: memref<1x64xf32, #tpu.memory_space<vmem>>, %arg4: memref<576x64xbf16, #tpu.memory_space<vmem>>, %arg5: memref<1x64xf32, #tpu.memory_space<vmem>>, %arg6: memref<1x16x16x64xf32, #tpu.memory_space<vmem>>, %arg7: memref<18x18x64xbf16, #tpu.memory_space<vmem>>, %arg8: memref<256x576xbf16, #tpu.memory_space<vmem>>) attributes {dimension_semantics = [#tpu.dimension_semantics<parallel>], iteration_bounds = array<i64: 2>, scalar_prefetch = 0 : i64, scratch_operands = 2 : i64, tpu.core_type = #tpu.core_type<tc>, window_params = [{transform_indices = @transform_0, window_bounds = array<i64: 1, 16, 16, 64>}, {pipeline_mode = #tpu.pipeline_mode<synchronous>, transform_indices = @transform_1, window_bounds = array<i64: 576, 64>}, {pipeline_mode = #tpu.pipeline_mode<synchronous>, transform_indices = @transform_2, window_bounds = array<i64: 1, 64>}, {pipeline_mode = #tpu.pipeline_mode<synchronous>, transform_indices = @transform_3, window_bounds = array<i64: 576, 64>}, {pipeline_mode = #tpu.pipeline_mode<synchronous>, transform_indices = @transform_4, window_bounds = array<i64: 1, 64>}, {transform_indices = @transform_5, window_bounds = array<i64: 1, 16, 16, 64>}]} {
    %c0 = arith.constant 0 : index
    %c0_0 = arith.constant 0 : index
    %c0_1 = arith.constant 0 : index
    %c0_2 = arith.constant 0 : index
    %0 = vector.load %arg1[%c0, %c0_0, %c0_1, %c0_2] : memref<1x16x16x64xbf16, #tpu.memory_space<vmem>>, vector<1x16x16x64xbf16>
    %1 = vector.shape_cast %0 : vector<1x16x16x64xbf16> to vector<16x16x64xbf16>
    %cst = arith.constant 0.000000e+00 : bf16
    %2 = vector.broadcast %cst : bf16 to vector<18x18x64xbf16>
    %c0_3 = arith.constant 0 : index
    %c0_4 = arith.constant 0 : index
    %c0_5 = arith.constant 0 : index
    %3 = vector.load %arg7[%c0_3, %c0_4, %c0_5] : memref<18x18x64xbf16, #tpu.memory_space<vmem>>, vector<18x18x64xbf16>
    tpu.vector_store %arg7[%c0_3, %c0_4, %c0_5], %2 {strides = array<i32>} : memref<18x18x64xbf16, #tpu.memory_space<vmem>>, vector<18x18x64xbf16>,
    %c1 = arith.constant 1 : index
    %c1_6 = arith.constant 1 : index
    %c0_7 = arith.constant 0 : index
    %4 = vector.load %arg7[%c1, %c1_6, %c0_7] : memref<18x18x64xbf16, #tpu.memory_space<vmem>>, vector<16x16x64xbf16>
    tpu.vector_store %arg7[%c1, %c1_6, %c0_7], %1 {strides = array<i32>} : memref<18x18x64xbf16, #tpu.memory_space<vmem>>, vector<16x16x64xbf16>,
    %c0_8 = arith.constant 0 : index
    %c0_9 = arith.constant 0 : index
    %c0_10 = arith.constant 0 : index
    %5 = vector.load %arg7[%c0_8, %c0_9, %c0_10] : memref<18x18x64xbf16, #tpu.memory_space<vmem>>, vector<16x16x64xbf16>
    %6 = vector.shape_cast %5 : vector<16x16x64xbf16> to vector<256x64xbf16>
    %c0_11 = arith.constant 0 : index
    %c0_12 = arith.constant 0 : index
    %7 = vector.load %arg8[%c0_11, %c0_12] : memref<256x576xbf16, #tpu.memory_space<vmem>>, vector<256x64xbf16>
    tpu.vector_store %arg8[%c0_11, %c0_12], %6 {strides = array<i32>} : memref<256x576xbf16, #tpu.memory_space<vmem>>, vector<256x64xbf16>,
    %c0_13 = arith.constant 0 : index
    %c1_14 = arith.constant 1 : index
    %c0_15 = arith.constant 0 : index
    %8 = vector.load %arg7[%c0_13, %c1_14, %c0_15] : memref<18x18x64xbf16, #tpu.memory_space<vmem>>, vector<16x16x64xbf16>
    %9 = vector.shape_cast %8 : vector<16x16x64xbf16> to vector<256x64xbf16>
    %c0_16 = arith.constant 0 : index
    %c64 = arith.constant 64 : index
    %10 = vector.load %arg8[%c0_16, %c64] : memref<256x576xbf16, #tpu.memory_space<vmem>>, vector<256x64xbf16>
    tpu.vector_store %arg8[%c0_16, %c64], %9 {strides = array<i32>} : memref<256x576xbf16, #tpu.memory_space<vmem>>, vector<256x64xbf16>,
    %c0_17 = arith.constant 0 : index
    %c2 = arith.constant 2 : index
    %c0_18 = arith.constant 0 : index
    %11 = vector.load %arg7[%c0_17, %c2, %c0_18] : memref<18x18x64xbf16, #tpu.memory_space<vmem>>, vector<16x16x64xbf16>
    %12 = vector.shape_cast %11 : vector<16x16x64xbf16> to vector<256x64xbf16>
    %c0_19 = arith.constant 0 : index
    %c128 = arith.constant 128 : index
    %13 = vector.load %arg8[%c0_19, %c128] : memref<256x576xbf16, #tpu.memory_space<vmem>>, vector<256x64xbf16>
    tpu.vector_store %arg8[%c0_19, %c128], %12 {strides = array<i32>} : memref<256x576xbf16, #tpu.memory_space<vmem>>, vector<256x64xbf16>,
    %c1_20 = arith.constant 1 : index
    %c0_21 = arith.constant 0 : index
    %c0_22 = arith.constant 0 : index
    %14 = vector.load %arg7[%c1_20, %c0_21, %c0_22] : memref<18x18x64xbf16, #tpu.memory_space<vmem>>, vector<16x16x64xbf16>
    %15 = vector.shape_cast %14 : vector<16x16x64xbf16> to vector<256x64xbf16>
    %c0_23 = arith.constant 0 : index
    %c192 = arith.constant 192 : index
    %16 = vector.load %arg8[%c0_23, %c192] : memref<256x576xbf16, #tpu.memory_space<vmem>>, vector<256x64xbf16>
    tpu.vector_store %arg8[%c0_23, %c192], %15 {strides = array<i32>} : memref<256x576xbf16, #tpu.memory_space<vmem>>, vector<256x64xbf16>,
    %c1_24 = arith.constant 1 : index
    %c1_25 = arith.constant 1 : index
    %c0_26 = arith.constant 0 : index
    %17 = vector.load %arg7[%c1_24, %c1_25, %c0_26] : memref<18x18x64xbf16, #tpu.memory_space<vmem>>, vector<16x16x64xbf16>
    %18 = vector.shape_cast %17 : vector<16x16x64xbf16> to vector<256x64xbf16>
    %c0_27 = arith.constant 0 : index
    %c256 = arith.constant 256 : index
    %19 = vector.load %arg8[%c0_27, %c256] : memref<256x576xbf16, #tpu.memory_space<vmem>>, vector<256x64xbf16>
    tpu.vector_store %arg8[%c0_27, %c256], %18 {strides = array<i32>} : memref<256x576xbf16, #tpu.memory_space<vmem>>, vector<256x64xbf16>,
    %c1_28 = arith.constant 1 : index
    %c2_29 = arith.constant 2 : index
    %c0_30 = arith.constant 0 : index
    %20 = vector.load %arg7[%c1_28, %c2_29, %c0_30] : memref<18x18x64xbf16, #tpu.memory_space<vmem>>, vector<16x16x64xbf16>
    %21 = vector.shape_cast %20 : vector<16x16x64xbf16> to vector<256x64xbf16>
    %c0_31 = arith.constant 0 : index
    %c320 = arith.constant 320 : index
    %22 = vector.load %arg8[%c0_31, %c320] : memref<256x576xbf16, #tpu.memory_space<vmem>>, vector<256x64xbf16>
    tpu.vector_store %arg8[%c0_31, %c320], %21 {strides = array<i32>} : memref<256x576xbf16, #tpu.memory_space<vmem>>, vector<256x64xbf16>,
    %c2_32 = arith.constant 2 : index
    %c0_33 = arith.constant 0 : index
    %c0_34 = arith.constant 0 : index
    %23 = vector.load %arg7[%c2_32, %c0_33, %c0_34] : memref<18x18x64xbf16, #tpu.memory_space<vmem>>, vector<16x16x64xbf16>
    %24 = vector.shape_cast %23 : vector<16x16x64xbf16> to vector<256x64xbf16>
    %c0_35 = arith.constant 0 : index
    %c384 = arith.constant 384 : index
    %25 = vector.load %arg8[%c0_35, %c384] : memref<256x576xbf16, #tpu.memory_space<vmem>>, vector<256x64xbf16>
    tpu.vector_store %arg8[%c0_35, %c384], %24 {strides = array<i32>} : memref<256x576xbf16, #tpu.memory_space<vmem>>, vector<256x64xbf16>,
    %c2_36 = arith.constant 2 : index
    %c1_37 = arith.constant 1 : index
    %c0_38 = arith.constant 0 : index
    %26 = vector.load %arg7[%c2_36, %c1_37, %c0_38] : memref<18x18x64xbf16, #tpu.memory_space<vmem>>, vector<16x16x64xbf16>
    %27 = vector.shape_cast %26 : vector<16x16x64xbf16> to vector<256x64xbf16>
    %c0_39 = arith.constant 0 : index
    %c448 = arith.constant 448 : index
    %28 = vector.load %arg8[%c0_39, %c448] : memref<256x576xbf16, #tpu.memory_space<vmem>>, vector<256x64xbf16>
    tpu.vector_store %arg8[%c0_39, %c448], %27 {strides = array<i32>} : memref<256x576xbf16, #tpu.memory_space<vmem>>, vector<256x64xbf16>,
    %c2_40 = arith.constant 2 : index
    %c2_41 = arith.constant 2 : index
    %c0_42 = arith.constant 0 : index
    %29 = vector.load %arg7[%c2_40, %c2_41, %c0_42] : memref<18x18x64xbf16, #tpu.memory_space<vmem>>, vector<16x16x64xbf16>
    %30 = vector.shape_cast %29 : vector<16x16x64xbf16> to vector<256x64xbf16>
    %c0_43 = arith.constant 0 : index
    %c512 = arith.constant 512 : index
    %31 = vector.load %arg8[%c0_43, %c512] : memref<256x576xbf16, #tpu.memory_space<vmem>>, vector<256x64xbf16>
    tpu.vector_store %arg8[%c0_43, %c512], %30 {strides = array<i32>} : memref<256x576xbf16, #tpu.memory_space<vmem>>, vector<256x64xbf16>,
    %c0_44 = arith.constant 0 : index
    %c0_45 = arith.constant 0 : index
    %32 = vector.load %arg8[%c0_44, %c0_45] : memref<256x576xbf16, #tpu.memory_space<vmem>>, vector<256x576xbf16>
    %c0_46 = arith.constant 0 : index
    %c0_47 = arith.constant 0 : index
    %33 = vector.load %arg2[%c0_46, %c0_47] : memref<576x64xbf16, #tpu.memory_space<vmem>>, vector<576x64xbf16>
    %cst_48 = arith.constant dense<0.000000e+00> : vector<256x64xf32>
    %34 = tpu.matmul %32, %33, %cst_48 {dimension_numbers = #tpu.dot_dimension_numbers<[1], [0], [0], [1], [0, 0, 1, 1], [], []>} : vector<256x576xbf16>, vector<576x64xbf16>, vector<256x64xf32> -> vector<256x64xf32>
    %c0_49 = arith.constant 0 : index
    %c0_50 = arith.constant 0 : index
    %35 = vector.load %arg3[%c0_49, %c0_50] : memref<1x64xf32, #tpu.memory_space<vmem>>, vector<1x64xf32>
    %36 = vector.broadcast %35 : vector<1x64xf32> to vector<256x64xf32>
    %37 = arith.addf %34, %36 : vector<256x64xf32>
    %cst_51 = arith.constant 0.000000e+00 : f32
    %38 = vector.broadcast %cst_51 : f32 to vector<256x64xf32>
    %39 = arith.maximumf %37, %38 : vector<256x64xf32>
    %40 = arith.truncf %39 : vector<256x64xf32> to vector<256x64xbf16>
    %41 = vector.shape_cast %40 : vector<256x64xbf16> to vector<16x16x64xbf16>
    %c1_52 = arith.constant 1 : index
    %c1_53 = arith.constant 1 : index
    %c0_54 = arith.constant 0 : index
    %42 = vector.load %arg7[%c1_52, %c1_53, %c0_54] : memref<18x18x64xbf16, #tpu.memory_space<vmem>>, vector<16x16x64xbf16>
    tpu.vector_store %arg7[%c1_52, %c1_53, %c0_54], %41 {strides = array<i32>} : memref<18x18x64xbf16, #tpu.memory_space<vmem>>, vector<16x16x64xbf16>,
    %c0_55 = arith.constant 0 : index
    %c0_56 = arith.constant 0 : index
    %c0_57 = arith.constant 0 : index
    %43 = vector.load %arg7[%c0_55, %c0_56, %c0_57] : memref<18x18x64xbf16, #tpu.memory_space<vmem>>, vector<16x16x64xbf16>
    %44 = vector.shape_cast %43 : vector<16x16x64xbf16> to vector<256x64xbf16>
    %c0_58 = arith.constant 0 : index
    %c0_59 = arith.constant 0 : index
    %45 = vector.load %arg8[%c0_58, %c0_59] : memref<256x576xbf16, #tpu.memory_space<vmem>>, vector<256x64xbf16>
    tpu.vector_store %arg8[%c0_58, %c0_59], %44 {strides = array<i32>} : memref<256x576xbf16, #tpu.memory_space<vmem>>, vector<256x64xbf16>,
    %c0_60 = arith.constant 0 : index
    %c1_61 = arith.constant 1 : index
    %c0_62 = arith.constant 0 : index
    %46 = vector.load %arg7[%c0_60, %c1_61, %c0_62] : memref<18x18x64xbf16, #tpu.memory_space<vmem>>, vector<16x16x64xbf16>
    %47 = vector.shape_cast %46 : vector<16x16x64xbf16> to vector<256x64xbf16>
    %c0_63 = arith.constant 0 : index
    %c64_64 = arith.constant 64 : index
    %48 = vector.load %arg8[%c0_63, %c64_64] : memref<256x576xbf16, #tpu.memory_space<vmem>>, vector<256x64xbf16>
    tpu.vector_store %arg8[%c0_63, %c64_64], %47 {strides = array<i32>} : memref<256x576xbf16, #tpu.memory_space<vmem>>, vector<256x64xbf16>,
    %c0_65 = arith.constant 0 : index
    %c2_66 = arith.constant 2 : index
    %c0_67 = arith.constant 0 : index
    %49 = vector.load %arg7[%c0_65, %c2_66, %c0_67] : memref<18x18x64xbf16, #tpu.memory_space<vmem>>, vector<16x16x64xbf16>
    %50 = vector.shape_cast %49 : vector<16x16x64xbf16> to vector<256x64xbf16>
    %c0_68 = arith.constant 0 : index
    %c128_69 = arith.constant 128 : index
    %51 = vector.load %arg8[%c0_68, %c128_69] : memref<256x576xbf16, #tpu.memory_space<vmem>>, vector<256x64xbf16>
    tpu.vector_store %arg8[%c0_68, %c128_69], %50 {strides = array<i32>} : memref<256x576xbf16, #tpu.memory_space<vmem>>, vector<256x64xbf16>,
    %c1_70 = arith.constant 1 : index
    %c0_71 = arith.constant 0 : index
    %c0_72 = arith.constant 0 : index
    %52 = vector.load %arg7[%c1_70, %c0_71, %c0_72] : memref<18x18x64xbf16, #tpu.memory_space<vmem>>, vector<16x16x64xbf16>
    %53 = vector.shape_cast %52 : vector<16x16x64xbf16> to vector<256x64xbf16>
    %c0_73 = arith.constant 0 : index
    %c192_74 = arith.constant 192 : index
    %54 = vector.load %arg8[%c0_73, %c192_74] : memref<256x576xbf16, #tpu.memory_space<vmem>>, vector<256x64xbf16>
    tpu.vector_store %arg8[%c0_73, %c192_74], %53 {strides = array<i32>} : memref<256x576xbf16, #tpu.memory_space<vmem>>, vector<256x64xbf16>,
    %c1_75 = arith.constant 1 : index
    %c1_76 = arith.constant 1 : index
    %c0_77 = arith.constant 0 : index
    %55 = vector.load %arg7[%c1_75, %c1_76, %c0_77] : memref<18x18x64xbf16, #tpu.memory_space<vmem>>, vector<16x16x64xbf16>
    %56 = vector.shape_cast %55 : vector<16x16x64xbf16> to vector<256x64xbf16>
    %c0_78 = arith.constant 0 : index
    %c256_79 = arith.constant 256 : index
    %57 = vector.load %arg8[%c0_78, %c256_79] : memref<256x576xbf16, #tpu.memory_space<vmem>>, vector<256x64xbf16>
    tpu.vector_store %arg8[%c0_78, %c256_79], %56 {strides = array<i32>} : memref<256x576xbf16, #tpu.memory_space<vmem>>, vector<256x64xbf16>,
    %c1_80 = arith.constant 1 : index
    %c2_81 = arith.constant 2 : index
    %c0_82 = arith.constant 0 : index
    %58 = vector.load %arg7[%c1_80, %c2_81, %c0_82] : memref<18x18x64xbf16, #tpu.memory_space<vmem>>, vector<16x16x64xbf16>
    %59 = vector.shape_cast %58 : vector<16x16x64xbf16> to vector<256x64xbf16>
    %c0_83 = arith.constant 0 : index
    %c320_84 = arith.constant 320 : index
    %60 = vector.load %arg8[%c0_83, %c320_84] : memref<256x576xbf16, #tpu.memory_space<vmem>>, vector<256x64xbf16>
    tpu.vector_store %arg8[%c0_83, %c320_84], %59 {strides = array<i32>} : memref<256x576xbf16, #tpu.memory_space<vmem>>, vector<256x64xbf16>,
    %c2_85 = arith.constant 2 : index
    %c0_86 = arith.constant 0 : index
    %c0_87 = arith.constant 0 : index
    %61 = vector.load %arg7[%c2_85, %c0_86, %c0_87] : memref<18x18x64xbf16, #tpu.memory_space<vmem>>, vector<16x16x64xbf16>
    %62 = vector.shape_cast %61 : vector<16x16x64xbf16> to vector<256x64xbf16>
    %c0_88 = arith.constant 0 : index
    %c384_89 = arith.constant 384 : index
    %63 = vector.load %arg8[%c0_88, %c384_89] : memref<256x576xbf16, #tpu.memory_space<vmem>>, vector<256x64xbf16>
    tpu.vector_store %arg8[%c0_88, %c384_89], %62 {strides = array<i32>} : memref<256x576xbf16, #tpu.memory_space<vmem>>, vector<256x64xbf16>,
    %c2_90 = arith.constant 2 : index
    %c1_91 = arith.constant 1 : index
    %c0_92 = arith.constant 0 : index
    %64 = vector.load %arg7[%c2_90, %c1_91, %c0_92] : memref<18x18x64xbf16, #tpu.memory_space<vmem>>, vector<16x16x64xbf16>
    %65 = vector.shape_cast %64 : vector<16x16x64xbf16> to vector<256x64xbf16>
    %c0_93 = arith.constant 0 : index
    %c448_94 = arith.constant 448 : index
    %66 = vector.load %arg8[%c0_93, %c448_94] : memref<256x576xbf16, #tpu.memory_space<vmem>>, vector<256x64xbf16>
    tpu.vector_store %arg8[%c0_93, %c448_94], %65 {strides = array<i32>} : memref<256x576xbf16, #tpu.memory_space<vmem>>, vector<256x64xbf16>,
    %c2_95 = arith.constant 2 : index
    %c2_96 = arith.constant 2 : index
    %c0_97 = arith.constant 0 : index
    %67 = vector.load %arg7[%c2_95, %c2_96, %c0_97] : memref<18x18x64xbf16, #tpu.memory_space<vmem>>, vector<16x16x64xbf16>
    %68 = vector.shape_cast %67 : vector<16x16x64xbf16> to vector<256x64xbf16>
    %c0_98 = arith.constant 0 : index
    %c512_99 = arith.constant 512 : index
    %69 = vector.load %arg8[%c0_98, %c512_99] : memref<256x576xbf16, #tpu.memory_space<vmem>>, vector<256x64xbf16>
    tpu.vector_store %arg8[%c0_98, %c512_99], %68 {strides = array<i32>} : memref<256x576xbf16, #tpu.memory_space<vmem>>, vector<256x64xbf16>,
    %c0_100 = arith.constant 0 : index
    %c0_101 = arith.constant 0 : index
    %70 = vector.load %arg8[%c0_100, %c0_101] : memref<256x576xbf16, #tpu.memory_space<vmem>>, vector<256x576xbf16>
    %c0_102 = arith.constant 0 : index
    %c0_103 = arith.constant 0 : index
    %71 = vector.load %arg4[%c0_102, %c0_103] : memref<576x64xbf16, #tpu.memory_space<vmem>>, vector<576x64xbf16>
    %cst_104 = arith.constant dense<0.000000e+00> : vector<256x64xf32>
    %72 = tpu.matmul %70, %71, %cst_104 {dimension_numbers = #tpu.dot_dimension_numbers<[1], [0], [0], [1], [0, 0, 1, 1], [], []>} : vector<256x576xbf16>, vector<576x64xbf16>, vector<256x64xf32> -> vector<256x64xf32>
    %c0_105 = arith.constant 0 : index
    %c0_106 = arith.constant 0 : index
    %73 = vector.load %arg5[%c0_105, %c0_106] : memref<1x64xf32, #tpu.memory_space<vmem>>, vector<1x64xf32>
    %74 = vector.broadcast %73 : vector<1x64xf32> to vector<256x64xf32>
    %75 = arith.addf %72, %74 : vector<256x64xf32>
    %76 = vector.shape_cast %1 : vector<16x16x64xbf16> to vector<256x64xbf16>
    %77 = arith.extf %76 : vector<256x64xbf16> to vector<256x64xf32>
    %78 = arith.addf %75, %77 : vector<256x64xf32>
    %cst_107 = arith.constant 0.000000e+00 : f32
    %79 = vector.broadcast %cst_107 : f32 to vector<256x64xf32>
    %80 = arith.maximumf %78, %79 : vector<256x64xf32>
    %81 = vector.shape_cast %80 : vector<256x64xf32> to vector<1x16x16x64xf32>
    %c0_108 = arith.constant 0 : index
    %c0_109 = arith.constant 0 : index
    %c0_110 = arith.constant 0 : index
    %c0_111 = arith.constant 0 : index
    %82 = vector.load %arg6[%c0_108, %c0_109, %c0_110, %c0_111] : memref<1x16x16x64xf32, #tpu.memory_space<vmem>>, vector<1x16x16x64xf32>
    tpu.vector_store %arg6[%c0_108, %c0_109, %c0_110, %c0_111], %81 {strides = array<i32>} : memref<1x16x16x64xf32, #tpu.memory_space<vmem>>, vector<1x16x16x64xf32>,
    return
  }
  func.func @transform_0(%arg0: i32) -> (i32, i32, i32, i32) {
    %c0_i32 = arith.constant 0 : i32
    %c0_i32_0 = arith.constant 0 : i32
    %c0_i32_1 = arith.constant 0 : i32
    %c0_i32_2 = arith.constant 0 : i32
    return %arg0, %c0_i32, %c0_i32_0, %c0_i32_1 : i32, i32, i32, i32
  }
  func.func @transform_1(%arg0: i32) -> (i32, i32) {
    %c0_i32 = arith.constant 0 : i32
    %c0_i32_0 = arith.constant 0 : i32
    %c0_i32_1 = arith.constant 0 : i32
    return %c0_i32, %c0_i32_0 : i32, i32
  }
  func.func @transform_2(%arg0: i32) -> (i32, i32) {
    %c0_i32 = arith.constant 0 : i32
    %c0_i32_0 = arith.constant 0 : i32
    %c0_i32_1 = arith.constant 0 : i32
    return %c0_i32, %c0_i32_0 : i32, i32
  }
  func.func @transform_3(%arg0: i32) -> (i32, i32) {
    %c0_i32 = arith.constant 0 : i32
    %c0_i32_0 = arith.constant 0 : i32
    %c0_i32_1 = arith.constant 0 : i32
    return %c0_i32, %c0_i32_0 : i32, i32
  }
  func.func @transform_4(%arg0: i32) -> (i32, i32) {
    %c0_i32 = arith.constant 0 : i32
    %c0_i32_0 = arith.constant 0 : i32
    %c0_i32_1 = arith.constant 0 : i32
    return %c0_i32, %c0_i32_0 : i32, i32
  }
  func.func @transform_5(%arg0: i32) -> (i32, i32, i32, i32) {
    %c0_i32 = arith.constant 0 : i32
    %c0_i32_0 = arith.constant 0 : i32
    %c0_i32_1 = arith.constant 0 : i32
    %c0_i32_2 = arith.constant 0 : i32
    return %arg0, %c0_i32, %c0_i32_0, %c0_i32_1 : i32, i32, i32, i32
  }
}

</mosaic_0001>

<bundles_post_ra>
// kernel: basic_block_forward.1
= control target key start
LH: loop header
LB: loop body
LE: loop exit
PB: predicated region body
PF: predicated region fallthrough
CT: control target
= control target key end

     0   :  { %10 = vsyncpa [#allocation5], 0  ;;  %s15028_s0 = inlined_call_operand.vmem [shape: bf16[2,16,16,64], index: 0, kind: input, shape index: {}]   ;;  %s15029_s1 = inlined_call_operand.vmem [shape: bf16[576,64], index: 1, kind: input, shape index: {}]   ;;  %s15030_s2 = inlined_call_operand.vmem [shape: f32[1,64], index: 2, kind: input, shape index: {}]   ;;  %s15031_s3 = inlined_call_operand.vmem [shape: bf16[576,64], index: 3, kind: input, shape index: {}]   ;;  %s15032_s4 = inlined_call_operand.vmem [shape: f32[1,64], index: 4, kind: input, shape index: {}]   ;;  %s15033_s5 = inlined_call_operand.hbm [shape: f32[2,16,16,64], index: 5, kind: output, shape index: {}]  }
   0x1   :  { %12 = vsyncpa [#allocation5 + $0x1], 0  ;;  %s11154_s18 = smov 0   ;;  %s11156_s19 = smov 0  }
   0x2   :  { %s11158_s20 = smov 0   ;;  %s11160_s21 = smov 0  }
   0x3 LB: > { %s11175_s22 = sadd.s32 4294967295, %s11118_s21   ;;  %s9658_s23 = sadd.s32 4294967294, %s11118_s21   ;;  %s11118_s21 = sphi %s11160_s21, %s15079_s21   ;;  %s11114_s20 = sphi %s11158_s20, %s15078_s20   ;;  %s11110_s19 = sphi %s11156_s19, %s15077_s19   ;;  %s11106_s18 = sphi %s11154_s18, %s15076_s18  }
   0x4   : > { %s11179_s24 = sadd.s32 1, %s11118_s21   ;;  %s135_s25 = sadd.s32 1, %s11114_s20 }
   0x5   : > { %s132_s26 = ssub.s32 %s11118_s21, %s11179_s24  ;;  %p145_p0 = scmp.ne.s32.totalorder %s11114_s20, %s11110_s19 }
   0x6   : > { %p133_p1 = scmp.eq.s32.totalorder %s132_s26, 0  ;;  %p146_p2 = scmp.eq.s32.totalorder %s11175_s22, 1 }
   0x7   : > { %p151_p3 = scmp.ne.s32.totalorder %s11110_s19, %s11106_s18  ;;  %p152_p4 = scmp.eq.s32.totalorder %s9658_s23, 1 }
   0x8   : > { %s11190_s27 = scalar_select %p133_p1, %s11114_s20, %s135_s25  }
   0x9   : > { %p11192_p5 = por %p146_p2, %p145_p0  ;;  %p11196_p6 = por %p152_p4, %p151_p3 }
   0xa   : > { %p9661_p7 = scmp.ge.s32.totalorder %s11118_s21, 1  ;;  %p190_p8 = scmp.lt.s32.totalorder %s11118_s21, 3 }
   0xc   : > { %p191_p9 = pnand %p9661_p7, %p190_p8 }
   0xe   : > { %194 = sbr.rel (%p191_p9) target bundleno = 1359 (0x54f), region = 40 }
  0x13   : > { %p218_p10 = scmp.lt.s32.totalorder %s11175_s22, 1  ;;  %vm256_vm0 = vcmask 519168   ;;  %v11120_v0 = vmov 0   ;;  %vm637_vm1 = vsmask.f32 7938  ;;  %s11121_s10 = smov 64  }
  0x14   : > { %285 = vst.msk [vmem:[#allocation2 + $0x6c] sm:$0xf] %vm256_vm0, %v11120_v0  ;;  %vm11229_vm2 = vmand %vm256_vm0, %vm637_vm1  ;;  %vm312_vm3 = vsmask.f32 256  ;;  %vm313_vm4 = vsmask.f32 4368 }
  0x15   : > { %s219_s30 = scalar_select %p218_p10, %s11175_s22, 1  ;;  %257 = vst.msk [vmem:[#allocation2] sm:$0xf] %vm256_vm0, %v11120_v0  ;;  %vm11297_vm5 = vmor %vm312_vm3, %vm313_vm4  ;;  %vm865_vm6 = vsmask.f32 3328  ;;  %vm259_vm7 = vcmask 516096  }
  0x16   : > { %258 = vst.msk [vmem:[#allocation2 + $0x4] sm:$0xf] %vm256_vm0, %v11120_v0  ;;  %vm866_vm8 = vsmask.f32 7440  ;;  %vm11362_vm10 = vmand %vm259_vm7, %vm312_vm3  ;;  %vm1348_vm11 = vcmask 1043968   ;;  %vm1477_vm12 = vcmask 1042432  }
  0x17   : > { %s10726_s6 = sshll.u32 %s219_s30, 7  ;;  %261 = vst.msk [vmem:[#allocation2 + $0xc] sm:$0xf] %vm256_vm0, %v11120_v0  ;;  %vm11345_vm9 = vmor %vm865_vm6, %vm866_vm8  ;;  %vm1478_vm13 = vcmask 1046532   ;;  %vm4365_vm15 = vcmask 523264   ;;  %s215_s7 = sand.u32 1, %s11110_s19  }
  0x18   : > { %s11215_s9 = scalar_lea.vmem %s15028_s0, %s10726_s6  ;;  %262 = vst.msk [vmem:[#allocation2 + $0x10] sm:$0xf] %vm256_vm0, %v11120_v0  ;;  %vm11775_vm14 = vmor %vm1477_vm12, %vm1478_vm13  ;;  %s10959_s13 = sshll.u32 %s11175_s22, 8 }
  0x19   : > { %v240_v1 = vld [vmem:[%s11215_s9 + $0x40] sm:$0xf]  ;;  %264 = vst.msk [vmem:[#allocation2 + $0x18] sm:$0xf] %vm256_vm0, %v11120_v0  ;;  %v241_v9 = vld [vmem:[%s11215_s9 + $0x44] sm:$0xf]  ;;  %s9592_s16 = scalar_lea.hbm %s15033_s5, %s10959_s13 }
  0x1a   : > { %v452_v2 = vshrl.u32 %v240_v1, 16  ;;  %v455_v3 = vshll.u32 %v240_v1, 16  ;;  %265 = vst.msk [vmem:[#allocation2 + $0x1c] sm:$0xf] %vm256_vm0, %v11120_v0  ;;  %v238_v11 = vld [vmem:[%s11215_s9 + $0x38] sm:$0xf] }
  0x1b   : > { %267 = vst.msk [vmem:[#allocation2 + $0x24] sm:$0xf] %vm256_vm0, %v11120_v0  ;;  %v697_v6 = vld [vmem:[#allocation2 + $0x6c] sm:$0xf]  ;;  %v239_v12 = vld [vmem:[%s11215_s9 + $0x3c] sm:$0xf] }
  0x1c   : > { %v454_v4 = vrot.slane %v452_v2, 7  ;;  %268 = vst.msk [vmem:[#allocation2 + $0x28] sm:$0xf] %vm256_vm0, %v11120_v0  ;;  %v460_v13 = vshrl.u32 %v241_v9, 16  ;;  %v435_v14 = vshrl.u32 %v238_v11, 16  ;;  %v443_v15 = vshrl.u32 %v239_v12, 16 }
  0x1d   : > { %270 = vst.msk [vmem:[#allocation2 + $0x30] sm:$0xf] %vm256_vm0, %v11120_v0  ;;  %v463_v17 = vshll.u32 %v241_v9, 16  ;;  %v438_v19 = vshll.u32 %v238_v11, 16  ;;  %v446_v21 = vshll.u32 %v239_v12, 16  ;;  %s9595_s22 = sshll.u32 %s9592_s16, 4  ;;  %s9596_s22 = int_to_ptr.hbm [resolvable:$true] %s9595_s22 }
  0x1e   : > { %v457_v7 = vor.u32 %v455_v3, %v454_v4  ;;  %271 = vst.msk [vmem:[#allocation2 + $0x34] sm:$0xf] %vm256_vm0, %v11120_v0  ;;  %v11273_v16 = vrot.slane %v460_v13, 7  ;;  %v437_v18 = vrot.slane %v435_v14, 7  ;;  %v11279_v20 = vrot.slane %v443_v15, 7  ;;  %s9581_s23 = scalar_lea.sflag [#allocation5], %s215_s7 }
  0x1f   : > { %273 = vst.msk [vmem:[#allocation2 + $0x3c] sm:$0xf] %vm256_vm0, %v11120_v0  ;;  %v458_v22 = vrot.slane %v454_v4, 4  ;;  %v11289_v25 = vld [vmem:[%s11215_s9] sm:$0xf]  ;;  %s11070_s25 = sshra.s32 %s9596_s22, 4  ;;  %s11071_s25 = int_to_ptr.hbm [resolvable:$true] %s11070_s25 }
  0x20   : > { %v698_v8 = vsel %vm11229_vm2, %v457_v7, %v697_v6  ;;  %274 = vst.msk [vmem:[#allocation2 + $0x40] sm:$0xf] %vm256_vm0, %v11120_v0  ;;  %v465_v23 = vor.u32 %v463_v17, %v11273_v16  ;;  %v440_v24 = vor.u32 %v438_v19, %v437_v18  ;;  %v441_v26 = vrot.slane %v437_v18, 4  ;;  %v11307_v32 = vld [vmem:[%s11215_s9 + $0x4] sm:$0xf]  ;;  %s11072_s26 = scalar_lea.hbm %s11071_s25, 256  ;;  %p11077_p0 = scmp.lt.s32.totalorder %s11071_s25, %s15033_s5 }
  0x21   : > { %699 = vst [vmem:[#allocation2 + $0x6c] sm:$0xf] %v698_v8  ;;  %v448_v27 = vor.u32 %v446_v21, %v11279_v20  ;;  %v467_v31 = vrot.slane %v11273_v16, 4  ;;  %v316_v33 = vshrl.u32 %v11289_v25, 16  ;;  %v817_v35 = vld [vmem:[#allocation2] sm:$0xf]  ;;  %p11073_p11 = scmp.ne.s32.totalorder %s11071_s25, %s11072_s26 }
  0x22   : > { %276 = vst.msk [vmem:[#allocation2 + $0x48] sm:$0xf] %vm256_vm0, %v11120_v0  ;;  %v466_v30 = vsel %vm11297_vm5, %v458_v22, %v465_v23  ;;  %v11315_v36 = vld [vmem:[%s11215_s9 + $0x48] sm:$0xf]  ;;  %v869_v38 = vshrl.u32 %v817_v35, 16  ;;  %v872_v39 = vshll.u32 %v817_v35, 16 }
  0x23   : > { %277 = vst.msk [vmem:[#allocation2 + $0x4c] sm:$0xf] %vm256_vm0, %v11120_v0  ;;  %v449_v37 = vsel %vm11297_vm5, %v441_v26, %v448_v27  ;;  %v11322_v40 = vld [vmem:[%s11215_s9 + $0x4c] sm:$0xf]  ;;  %v324_v41 = vshrl.u32 %v11307_v32, 16  ;;  %v469_v45 = vshrl.u32 %v11315_v36, 16  ;;  %p11074_p12 = pnand %p11073_p11, %p11192_p5 }
  0x24   : > { %279 = vst.msk [vmem:[#allocation2 + $0x54] sm:$0xf] %vm256_vm0, %v11120_v0  ;;  %v871_v42 = vrot.slane %v869_v38, 4  ;;  %v874_v43 = vrot.slane %v872_v39, 5  ;;  %v818_v44 = vld [vmem:[#allocation2 + $0x4] sm:$0xf] }
  0x25   : > { %280 = vst.msk [vmem:[#allocation2 + $0x58] sm:$0xf] %vm256_vm0, %v11120_v0  ;;  %v477_v46 = vshrl.u32 %v11322_v40, 16  ;;  %v878_v48 = vshll.u32 %v818_v44, 16  ;;  %v11331_v49 = vrot.slane %v316_v33, 7  ;;  %v450_v51 = vrot.slane %v11279_v20, 4  ;;  %p11075_p13 = pneg %p11074_p12 }
  0x26   : > { %282 = vst.msk [vmem:[#allocation2 + $0x60] sm:$0xf] %vm256_vm0, %v11120_v0  ;;  %v875_v47 = vor.u32 %v874_v43, %v871_v42  ;;  %v882_v52 = vshrl.u32 %v818_v44, 16  ;;  %v319_v53 = vshll.u32 %v11289_v25, 16  ;;  %v11337_v54 = vrot.slane %v324_v41, 7  ;;  %s11076_s6 = scalar_lea.hbm %s15033_s5, 512 }
  0x27   : > { %283 = vst.msk [vmem:[#allocation2 + $0x64] sm:$0xf] %vm256_vm0, %v11120_v0  ;;  %v880_v56 = vrot.slane %v878_v48, 5  ;;  %v322_v57 = vrot.slane %v11331_v49, 4  ;;  %v327_v58 = vshll.u32 %v11307_v32, 16  ;;  %v11351_v62 = vrot.slane %v469_v45, 7  ;;  %p11078_p1 = scmp.lt.s32.totalorder %s11076_s6, %s11072_s26 }
  0x28   : > { %v1672_v10 = vld [vmem:[#allocation2 + $0x6c] sm:$0xf]  ;;  %286 = vst.msk [vmem:[#allocation2 + $0x70] sm:$0xf] %vm256_vm0, %v11120_v0  ;;  %v876_v55 = vrot.slane %v875_v47, 4  ;;  %v884_v60 = vrot.slane %v882_v52, 4  ;;  %v11381_v21 = vor.u32 %v319_v53, %v11331_v49 }
  0x29   : > { %1752 = vrot.lane.b32.xlu1 %v1672_v10, %s11121_s10  ;;  %288 = vst.msk [vmem:[#allocation2 + $0x78] sm:$0xf] %vm256_vm0, %v11120_v0  ;;  %v844_v50 = vld [vmem:[#allocation2 + $0x6c] sm:$0xf]  ;;  %v11353_v63 = vrot.slane %v477_v46, 7  ;;  %v329_v25 = vor.u32 %v327_v58, %v11337_v54  ;;  %v480_v35 = vshll.u32 %v11322_v40, 16  ;;  %p11079_p2 = por %p11078_p1, %p11077_p0 }
  0x2a   : > { %289 = vst.msk [vmem:[#allocation2 + $0x7c] sm:$0xf] %vm256_vm0, %v11120_v0  ;;  %v1085_v61 = vshrl.u32 %v844_v50, 16  ;;  %v881_v3 = vsel %vm11345_vm9, %v876_v55, %v880_v56  ;;  %v1088_v14 = vshll.u32 %v844_v50, 16  ;;  %v11372_v15 = vld [vmem:[%s11215_s9 + $0x8] sm:$0xf]  ;;  %v885_v27 = vor.u32 %v884_v60, %v880_v56 }
  0x2b   : > { %291 = vst.msk [vmem:[#allocation2 + $0x84] sm:$0xf] %vm256_vm0, %v11120_v0  ;;  %1252 = vrot.lane.b32.xlu2 %v881_v3, %s11121_s10  ;;  %v11384_v22 = vld [vmem:[%s11215_s9 + $0xc] sm:$0xf]  ;;  %v472_v40 = vshll.u32 %v11315_v36, 16  ;;  %v336_v50 = vshll.u32 %v11372_v15, 16  ;;  %v482_v60 = vor.u32 %v480_v35, %v11353_v63  ;;  %p11080_p3 = pnand %p11079_p2, %p11075_p13 }
  0x2c   : > { %292 = vst.msk [vmem:[#allocation2 + $0x88] sm:$0xf] %vm256_vm0, %v11120_v0  ;;  %v639_v32 = vld [vmem:[#allocation2 + $0xc] sm:$0xf]  ;;  %v886_v33 = vrot.slane %v885_v27, 4  ;;  %v11401_v39 = vrot.slane %v1085_v61, 4 }
  0x2d   : > { %294 = vst.msk [vmem:[#allocation2 + $0x90] sm:$0xf] %vm256_vm0, %v11120_v0  ;;  %v690_v28 = vld [vmem:[#allocation2 + $0x60] sm:$0xf]  ;;  %v1090_v41 = vrot.slane %v1088_v14, 5  ;;  %v341_v45 = vshrl.u32 %v11384_v22, 16  ;;  %v640_v58 = vsel %vm11229_vm2, %v11381_v21, %v639_v32 }
  0x2e   : > { %295 = vst.msk [vmem:[#allocation2 + $0x94] sm:$0xf] %vm256_vm0, %v11120_v0  ;;  %v691_v34 = vsel %vm11229_vm2, %v440_v24, %v690_v28  ;;  %v11417_v52 = vld [vmem:[%s11215_s9 + $0x50] sm:$0xf]  ;;  %v344_v36 = vshll.u32 %v11384_v22, 16 }
  0x2f   : > { %297 = vst.msk [vmem:[#allocation2 + $0x9c] sm:$0xf] %vm256_vm0, %v11120_v0  ;;  %v245_v53 = vld [vmem:[%s11215_s9 + $0x54] sm:$0xf]  ;;  %v486_v55 = vshrl.u32 %v11417_v52, 16  ;;  %v11432_v61 = vrot.slane %v341_v45, 7  ;;  %v1091_v49 = vor.u32 %v1090_v41, %v11401_v39 }
  0x30   : > { %298 = vst.msk [vmem:[#allocation2 + $0xa0] sm:$0xf] %vm256_vm0, %v11120_v0  ;;  %v228_v22 = vld [vmem:[%s11215_s9 + $0x10] sm:$0xf] }
  0x31   : > { %300 = vst.msk [vmem:[#allocation2 + $0xa8] sm:$0xf] %vm256_vm0, %v11120_v0  ;;  %v353_v39 = vshll.u32 %v228_v22, 16 }
  0x32   : > { %301 = vst.msk [vmem:[#allocation2 + $0xac] sm:$0xf] %vm256_vm0, %v11120_v0 }
  0x33   : > { %303 = vst.msk [vmem:[#allocation2 + $0xb4] sm:$0xf] %vm256_vm0, %v11120_v0 }
  0x34   : > { %304 = vst.msk [vmem:[#allocation2 + $0xb8] sm:$0xf] %vm256_vm0, %v11120_v0 }
  0x35   : > { %306 = vst.msk [vmem:[#allocation2 + $0xc0] sm:$0xf] %vm256_vm0, %v11120_v0 }
  0x36   : > { %307 = vst.msk [vmem:[#allocation2 + $0xc4] sm:$0xf] %vm256_vm0, %v11120_v0 }
  0x37   : > { %309 = vst.msk [vmem:[#allocation2 + $0xcc] sm:$0xf] %vm256_vm0, %v11120_v0 }
  0x38   : > { %310 = vst.msk [vmem:[#allocation2 + $0xd0] sm:$0xf] %vm256_vm0, %v11120_v0 }
  0x39   : > { %700 = vst.msk [vmem:[#allocation2 + $0x70] sm:$0xf] %vm256_vm0, %v466_v30 }
  0x3a   : > { %692 = vst [vmem:[#allocation2 + $0x60] sm:$0xf] %v691_v34  ;;  %v475_v34 = vrot.slane %v11351_v62, 4 }
  0x3b   : > { %693 = vst.msk [vmem:[#allocation2 + $0x64] sm:$0xf] %vm256_vm0, %v449_v37  ;;  %v484_v37 = vrot.slane %v11353_v63, 4  ;;  %v330_v63 = vsel %vm11297_vm5, %v322_v57, %v329_v25 }
  0x3c   : > { %287 = vst.msk [vmem:[#allocation2 + $0x74] sm:$0x1] %vm259_vm7, %v11120_v0  ;;  %v483_v57 = vsel %vm11297_vm5, %v475_v34, %v482_v60  ;;  %v11494_v60 = vld [vmem:[%s11215_s9 + $0x5c] sm:$0xf] }
  0x3d   : > { %260 = vst.msk [vmem:[#allocation2 + $0x8] sm:$0x1] %vm259_vm7, %v11120_v0 }
  0x3e   : > { %263 = vst.msk [vmem:[#allocation2 + $0x14] sm:$0x1] %vm259_vm7, %v11120_v0 }
  0x3f   : > { %266 = vst.msk [vmem:[#allocation2 + $0x20] sm:$0x1] %vm259_vm7, %v11120_v0 }
  0x40   : > { %v1673_v1 = vld [vmem:[#allocation2 + $0x70] sm:$0xf]  ;;  %269 = vst.msk [vmem:[#allocation2 + $0x2c] sm:$0x1] %vm259_vm7, %v11120_v0 }
  0x41   : > { %v845_v2 = vld [vmem:[#allocation2 + $0x70] sm:$0xf]  ;;  %1754 = vrot.lane.b32.xlu1 %v1673_v1, %s11121_s10  ;;  %v841_v4 = vld [vmem:[#allocation2 + $0x60] sm:$0xf]  ;;  %272 = vst.msk [vmem:[#allocation2 + $0x38] sm:$0x1] %vm259_vm7, %v11120_v0 }
  0x42   : > { %v1094_v7 = vshll.u32 %v845_v2, 16  ;;  %v1098_v8 = vshrl.u32 %v845_v2, 16  ;;  %v842_v9 = vld [vmem:[#allocation2 + $0x64] sm:$0xf]  ;;  %v1061_v10 = vshrl.u32 %v841_v4, 16  ;;  %v1064_v11 = vshll.u32 %v841_v4, 16 }
  0x43   : > { %275 = vst.msk [vmem:[#allocation2 + $0x44] sm:$0x1] %vm259_vm7, %v11120_v0  ;;  %v1070_v12 = vshll.u32 %v842_v9, 16  ;;  %v701_v13 = vld [vmem:[#allocation2 + $0x74] sm:$0x1]  ;;  %v1074_v44 = vshrl.u32 %v842_v9, 16 }
  0x44   : > { %v1063_v17 = vrot.slane %v1061_v10, 4  ;;  %v1066_v18 = vrot.slane %v1064_v11, 5  ;;  %v702_v19 = vsel %vm11362_vm10, %v467_v31, %v701_v13  ;;  %278 = vst.msk [vmem:[#allocation2 + $0x50] sm:$0x1] %vm259_vm7, %v11120_v0  ;;  %v11386_v23 = vrot.slane %v1094_v7, 5 }
  0x45   : > { %703 = vst [vmem:[#allocation2 + $0x74] sm:$0x1] %v702_v19  ;;  %v1100_v24 = vrot.slane %v1098_v8, 4  ;;  %v819_v26 = vld [vmem:[#allocation2 + $0x8] sm:$0x1]  ;;  %v11389_v28 = vrot.slane %v1070_v12, 5  ;;  %v474_v10 = vor.u32 %v472_v40, %v11351_v62 }
  0x46   : > { %v1067_v16 = vor.u32 %v1066_v18, %v1063_v17  ;;  %281 = vst.msk [vmem:[#allocation2 + $0x5c] sm:$0x1] %vm259_vm7, %v11120_v0  ;;  %v888_v30 = vshll.u32 %v819_v26, 16  ;;  %v333_v31 = vshrl.u32 %v11372_v15, 16  ;;  %v494_v1 = vshrl.u32 %v245_v53, 16 }
  0x47   : > { %284 = vst.msk [vmem:[#allocation2 + $0x68] sm:$0x1] %vm259_vm7, %v11120_v0  ;;  %v1101_v43 = vor.u32 %v1100_v24, %v11386_v23  ;;  %v1076_v4 = vrot.slane %v1074_v44, 4  ;;  %v704_v7 = vld [vmem:[#allocation2 + $0x78] sm:$0xf]  ;;  %v488_v8 = vrot.slane %v486_v55, 7  ;;  %v346_v18 = vor.u32 %v344_v36, %v11432_v61 }
  0x48   : > { %v1068_v38 = vrot.slane %v1067_v16, 4  ;;  %290 = vst.msk [vmem:[#allocation2 + $0x80] sm:$0x1] %vm259_vm7, %v11120_v0  ;;  %v890_v42 = vrot.slane %v888_v30, 5  ;;  %v335_v48 = vrot.slane %v333_v31, 7  ;;  %v496_v11 = vrot.slane %v494_v1, 7 }
  0x49   : > { %293 = vst.msk [vmem:[#allocation2 + $0x8c] sm:$0x1] %vm259_vm7, %v11120_v0  ;;  %v1102_v2 = vrot.slane %v1101_v43, 4  ;;  %v497_v12 = vshll.u32 %v245_v53, 16  ;;  %v648_v19 = vld [vmem:[#allocation2 + $0x18] sm:$0xf]  ;;  %v1077_v21 = vor.u32 %v1076_v4, %v11389_v28  ;;  %v705_v25 = vsel %vm11229_vm2, %v474_v10, %v704_v7 }
  0x4a   : > { %v1073_v46 = vsel %vm11345_vm9, %v1068_v38, %v11389_v28  ;;  %296 = vst.msk [vmem:[#allocation2 + $0x98] sm:$0x1] %vm259_vm7, %v11120_v0  ;;  %v891_v47 = vsel %vm11345_vm9, %v886_v33, %v890_v42  ;;  %v338_v17 = vor.u32 %v336_v50, %v335_v48  ;;  %v339_v62 = vrot.slane %v335_v48, 4  ;;  %v229_v24 = vld [vmem:[%s11215_s9 + $0x14] sm:$0xf] }
  0x4b   : > { %1284 = vrot.lane.b32.xlu0 %v1073_v46, %s11121_s10  ;;  %299 = vst.msk [vmem:[#allocation2 + $0xa4] sm:$0x1] %vm259_vm7, %v11120_v0  ;;  %1254 = vrot.lane.b32.xlu2 %v891_v47, %s11121_s10  ;;  %v645_v26 = vld [vmem:[#allocation2 + $0x14] sm:$0x1]  ;;  %v499_v27 = vor.u32 %v497_v12, %v496_v11  ;;  %v350_v16 = vshrl.u32 %v228_v22, 16  ;;  %v11465_v30 = vrot.slane %v1091_v49, 4 }
  0x4c   : > { %v846_v56 = vld [vmem:[#allocation2 + $0x74] sm:$0x1]  ;;  %302 = vst.msk [vmem:[#allocation2 + $0xb0] sm:$0x1] %vm259_vm7, %v11120_v0  ;;  %v649_v28 = vsel %vm11229_vm2, %v338_v17, %v648_v19  ;;  %v347_v31 = vsel %vm11297_vm5, %v339_v62, %v346_v18  ;;  %v501_v32 = vrot.slane %v496_v11, 4  ;;  %v358_v34 = vshrl.u32 %v229_v24, 16 }
  0x4d   : > { %v1104_v3 = vshll.u32 %v846_v56, 16  ;;  %305 = vst.msk [vmem:[#allocation2 + $0xbc] sm:$0x1] %vm259_vm7, %v11120_v0  ;;  %v11475_v38 = vrot.slane %v350_v16, 7  ;;  %v1078_v41 = vrot.slane %v1077_v21, 4  ;;  %v361_v43 = vshll.u32 %v229_v24, 16 }
  0x4e   : > { %308 = vst.msk [vmem:[#allocation2 + $0xc8] sm:$0x1] %vm259_vm7, %v11120_v0  ;;  %v694_v9 = vld [vmem:[#allocation2 + $0x68] sm:$0x1]  ;;  %v11481_v40 = vld [vmem:[%s11215_s9 + $0x58] sm:$0xf]  ;;  %v1097_v47 = vsel %vm11345_vm9, %v11465_v30, %v11386_v23 }
  0x4f   : > { %v1106_v13 = vrot.slane %v1104_v3, 5  ;;  %311 = vst.msk [vmem:[#allocation2 + $0xd4] sm:$0x1] %vm259_vm7, %v11120_v0  ;;  %v695_v14 = vsel %vm11362_vm10, %v450_v51, %v694_v9  ;;  %v708_v15 = vld [vmem:[#allocation2 + $0x80] sm:$0x1]  ;;  %v331_v0 = vrot.slane %v11337_v54, 4 }
  0x50   : > { %696 = vst [vmem:[#allocation2 + $0x68] sm:$0x1] %v695_v14  ;;  %v709_v51 = vsel %vm11362_vm10, %v484_v37, %v708_v15  ;;  %v492_v54 = vrot.slane %v488_v8, 4  ;;  %v715_v33 = vld [vmem:[#allocation2 + $0x8c] sm:$0x1]  ;;  %v489_v37 = vshll.u32 %v11417_v52, 16 }
  0x51   : > { %v1107_v20 = vsel %vm11345_vm9, %v1102_v2, %v1106_v13  ;;  %641 = vst [vmem:[#allocation2 + $0xc] sm:$0xf] %v640_v58  ;;  %v646_v35 = vsel %vm11362_vm10, %v331_v0, %v645_v26  ;;  %v716_v48 = vsel %vm11362_vm10, %v501_v32, %v715_v33  ;;  %v11489_v50 = vrot.slane %v358_v34, 7  ;;  %v711_v56 = vld [vmem:[#allocation2 + $0x84] sm:$0xf] }
  0x52   : > { %1290 = vrot.lane.b32.xlu1 %v1107_v20, %s11121_s10  ;;  %642 = vst.msk [vmem:[#allocation2 + $0x10] sm:$0xf] %vm256_vm0, %v330_v63  ;;  %v500_v42 = vsel %vm11297_vm5, %v492_v54, %v499_v27  ;;  %v491_v55 = vor.u32 %v489_v37, %v488_v8  ;;  %v355_v58 = vor.u32 %v353_v39, %v11475_v38  ;;  %v356_v4 = vrot.slane %v11475_v38, 4  ;;  %v655_v13 = vld [vmem:[#allocation2 + $0x24] sm:$0xf] }
  0x53   : > { %707 = vst.msk [vmem:[#allocation2 + $0x7c] sm:$0xf] %vm256_vm0, %v483_v57  ;;  %v503_v7 = vshrl.u32 %v11481_v40, 16  ;;  %v363_v57 = vor.u32 %v361_v43, %v11489_v50  ;;  %v511_v24 = vshrl.u32 %v11494_v60, 16  ;;  %v514_v16 = vshll.u32 %v11494_v60, 16 }
  0x54   : > { %710 = vst [vmem:[#allocation2 + $0x80] sm:$0x1] %v709_v51  ;;  %v712_v22 = vsel %vm11229_vm2, %v491_v55, %v711_v56  ;;  %v656_v32 = vsel %vm11229_vm2, %v355_v58, %v655_v13 }
  0x55   : > { %706 = vst [vmem:[#allocation2 + $0x78] sm:$0xf] %v705_v25  ;;  %v505_v33 = vrot.slane %v503_v7, 7 }
  0x56   : > { %650 = vst [vmem:[#allocation2 + $0x18] sm:$0xf] %v649_v28 }
  0x57   : > { %v843_v44 = vld [vmem:[#allocation2 + $0x68] sm:$0x1]  ;;  %651 = vst.msk [vmem:[#allocation2 + $0x1c] sm:$0xf] %vm256_vm0, %v347_v31 }
  0x58   : > { %v1080_v45 = vshll.u32 %v843_v44, 16  ;;  %v820_v46 = vld [vmem:[#allocation2 + $0xc] sm:$0xf]  ;;  %647 = vst [vmem:[#allocation2 + $0x14] sm:$0x1] %v646_v35 }
  0x59   : > { %v821_v52 = vld [vmem:[#allocation2 + $0x10] sm:$0xf]  ;;  %v893_v36 = vshrl.u32 %v820_v46, 16  ;;  %v896_v53 = vshll.u32 %v820_v46, 16  ;;  %714 = vst.msk [vmem:[#allocation2 + $0x88] sm:$0xf] %vm256_vm0, %v500_v42 }
  0x5a   : > { %v1082_v1 = vrot.slane %v1080_v45, 5  ;;  %v902_v2 = vshll.u32 %v821_v52, 16  ;;  %v848_v3 = vld [vmem:[#allocation2 + $0x7c] sm:$0xf]  ;;  %v906_v31 = vshrl.u32 %v821_v52, 16 }
  0x5b   : > { %v895_v9 = vrot.slane %v893_v36, 4  ;;  %v898_v63 = vrot.slane %v896_v53, 5  ;;  %v849_v10 = vld [vmem:[#allocation2 + $0x80] sm:$0x1]  ;;  %v1118_v11 = vshll.u32 %v848_v3, 16  ;;  %v1122_v12 = vshrl.u32 %v848_v3, 16 }
  0x5c   : > { %v1083_v8 = vsel %vm11345_vm9, %v1078_v41, %v1082_v1  ;;  %v904_v14 = vrot.slane %v902_v2, 5  ;;  %v1128_v49 = vshll.u32 %v849_v10, 16  ;;  %v1674_v15 = vld [vmem:[#allocation2 + $0x78] sm:$0xf]  ;;  %717 = vst [vmem:[#allocation2 + $0x8c] sm:$0x1] %v716_v48  ;;  %v364_v41 = vsel %vm11297_vm5, %v356_v4, %v363_v57 }
  0x5d   : > { %v847_v17 = vld [vmem:[#allocation2 + $0x78] sm:$0xf]  ;;  %1286 = vrot.lane.b32.xlu0 %v1083_v8, %s11121_s10  ;;  %v899_v62 = vor.u32 %v898_v63, %v895_v9  ;;  %v11502_v18 = vrot.slane %v1118_v11, 5  ;;  %v1124_v19 = vrot.slane %v1122_v12, 4  ;;  %1756 = vrot.lane.b32.xlu2 %v1674_v15, %s11121_s10  ;;  %v908_v44 = vrot.slane %v906_v31, 4 }
  0x5e   : > { %v823_v0 = vld [vmem:[#allocation2 + $0x18] sm:$0xf]  ;;  %v1109_v20 = vshrl.u32 %v847_v17, 16  ;;  %v1112_v54 = vshll.u32 %v847_v17, 16  ;;  %v1130_v28 = vrot.slane %v1128_v49, 5  ;;  %v348_v36 = vrot.slane %v11432_v61, 4 }
  0x5f   : > { %v917_v21 = vshrl.u32 %v823_v0, 16  ;;  %v920_v51 = vshll.u32 %v823_v0, 16  ;;  %v900_v25 = vrot.slane %v899_v62, 4  ;;  %v1125_v26 = vor.u32 %v1124_v19, %v11502_v18  ;;  %v822_v27 = vld [vmem:[#allocation2 + $0x14] sm:$0x1] }
  0x60   : > { %v824_v35 = vld [vmem:[#allocation2 + $0x1c] sm:$0xf]  ;;  %v1111_v37 = vrot.slane %v1109_v20, 4  ;;  %v912_v38 = vshll.u32 %v822_v27, 16  ;;  %v851_v39 = vld [vmem:[#allocation2 + $0x88] sm:$0xf]  ;;  %v909_v55 = vor.u32 %v908_v44, %v904_v14 }
  0x61   : > { %v905_v34 = vsel %vm11345_vm9, %v900_v25, %v904_v14  ;;  %v919_v42 = vrot.slane %v917_v21, 4  ;;  %v922_v43 = vrot.slane %v920_v51, 5  ;;  %v1142_v45 = vshll.u32 %v851_v39, 16  ;;  %713 = vst [vmem:[#allocation2 + $0x84] sm:$0xf] %v712_v22 }
  0x62   : > { %1256 = vrot.lane.b32.xlu1 %v905_v34, %s11121_s10  ;;  %v1126_v46 = vrot.slane %v1125_v26, 4  ;;  %v1114_v48 = vrot.slane %v1112_v54, 5  ;;  %v1146_v52 = vshrl.u32 %v851_v39, 16  ;;  %657 = vst [vmem:[#allocation2 + $0x24] sm:$0xf] %v656_v32  ;;  %v926_v53 = vshll.u32 %v824_v35, 16 }
  0x63   : > { %v914_v56 = vrot.slane %v912_v38, 5  ;;  %v11518_v58 = vrot.slane %v1142_v45, 5  ;;  %658 = vst.msk [vmem:[#allocation2 + $0x28] sm:$0xf] %vm256_vm0, %v364_v41  ;;  %v652_v1 = vld [vmem:[#allocation2 + $0x20] sm:$0x1]  ;;  %v923_v4 = vor.u32 %v922_v43, %v919_v42 }
  0x64   : > { %v1148_v60 = vrot.slane %v1146_v52, 4  ;;  %v930_v2 = vshrl.u32 %v824_v35, 16  ;;  %v509_v3 = vrot.slane %v505_v33, 4  ;;  %v513_v61 = vrot.slane %v511_v24, 7  ;;  %v722_v63 = vld [vmem:[#allocation2 + $0x98] sm:$0x1] }
  0x65   : > { %1288 = vrot.lane.b32.xlu0 %v1097_v47, %s11121_s10  ;;  %v910_v7 = vrot.slane %v909_v55, 4  ;;  %v653_v9 = vsel %vm11362_vm10, %v348_v36, %v652_v1  ;;  %v1131_v10 = vsel %vm11345_vm9, %v1126_v46, %v1130_v28  ;;  %v1115_v11 = vor.u32 %v1114_v48, %v1111_v37  ;;  %v852_v12 = vld [vmem:[#allocation2 + $0x8c] sm:$0x1]  ;;  %v1675_v47 = vld [vmem:[#allocation2 + $0x7c] sm:$0xf] }
  0x66   : > { %654 = vst [vmem:[#allocation2 + $0x20] sm:$0x1] %v653_v9  ;;  %v516_v23 = vor.u32 %v514_v16, %v513_v61  ;;  %v518_v30 = vrot.slane %v513_v61, 4  ;;  %v1149_v8 = vor.u32 %v1148_v60, %v11518_v58  ;;  %v506_v14 = vshll.u32 %v11481_v40, 16  ;;  %v230_v49 = vld [vmem:[%s11215_s9 + $0x18] sm:$0xf] }
  0x67   : > { %v915_v13 = vsel %vm11345_vm9, %v910_v7, %v914_v56  ;;  %v928_v15 = vrot.slane %v926_v53, 5  ;;  %v1152_v17 = vshll.u32 %v852_v12, 16  ;;  %v932_v62 = vrot.slane %v930_v2, 4  ;;  %v718_v22 = vld [vmem:[#allocation2 + $0x90] sm:$0xf] }
  0x68   : > { %1258 = vrot.lane.b32.xlu2 %v915_v13, %s11121_s10  ;;  %v850_v57 = vld [vmem:[#allocation2 + $0x84] sm:$0xf]  ;;  %v517_v19 = vsel %vm11297_vm5, %v509_v3, %v516_v23  ;;  %v924_v0 = vrot.slane %v923_v4, 4  ;;  %v723_v51 = vsel %vm11362_vm10, %v518_v30, %v722_v63  ;;  %v508_v40 = vor.u32 %v506_v14, %v505_v33  ;;  %v231_v28 = vld [vmem:[%s11215_s9 + $0x1c] sm:$0xf] }
  0x69   : > { %v826_v20 = vld [vmem:[#allocation2 + $0x24] sm:$0xf]  ;;  %v1133_v21 = vshrl.u32 %v850_v57, 16  ;;  %v1116_v24 = vrot.slane %v1115_v11, 4  ;;  %v1136_v26 = vshll.u32 %v850_v57, 16  ;;  %v367_v54 = vshrl.u32 %v230_v49, 16 }
  0x6a   : > { %1294 = vrot.lane.b32.xlu1 %v1131_v10, %s11121_s10  ;;  %v941_v25 = vshrl.u32 %v826_v20, 16  ;;  %v11542_v27 = vrot.slane %v1149_v8, 4  ;;  %v944_v16 = vshll.u32 %v826_v20, 16  ;;  %721 = vst.msk [vmem:[#allocation2 + $0x94] sm:$0xf] %vm256_vm0, %v517_v19  ;;  %v11547_v31 = vrot.slane %v1152_v17, 5 }
  0x6b   : > { %v1676_v32 = vld [vmem:[#allocation2 + $0x84] sm:$0xf]  ;;  %v933_v34 = vor.u32 %v932_v62, %v928_v15  ;;  %724 = vst [vmem:[#allocation2 + $0x98] sm:$0x1] %v723_v51  ;;  %v719_v33 = vsel %vm11229_vm2, %v508_v40, %v718_v22  ;;  %v369_v35 = vrot.slane %v367_v54, 7  ;;  %v929_v37 = vsel %vm11345_vm9, %v924_v0, %v928_v15 }
  0x6c   : > { %v827_v38 = vld [vmem:[#allocation2 + $0x28] sm:$0xf]  ;;  %v1135_v39 = vrot.slane %v1133_v21, 4  ;;  %720 = vst [vmem:[#allocation2 + $0x90] sm:$0xf] %v719_v33  ;;  %v370_v42 = vshll.u32 %v230_v49, 16  ;;  %v1121_v4 = vsel %vm11345_vm9, %v1116_v24, %v11502_v18  ;;  %v1155_v63 = vsel %vm11345_vm9, %v11542_v27, %v11547_v31 }
  0x6d   : > { %1758 = vrot.lane.b32.xlu0 %v1675_v47, %s11121_s10  ;;  %v825_v41 = vld [vmem:[#allocation2 + $0x20] sm:$0x1]  ;;  %v943_v43 = vrot.slane %v941_v25, 4  ;;  %v1138_v44 = vrot.slane %v1136_v26, 5  ;;  %v375_v46 = vshrl.u32 %v231_v28, 16  ;;  %v946_v52 = vrot.slane %v944_v16, 5 }
  0x6e   : > { %v936_v45 = vshll.u32 %v825_v41, 16  ;;  %v662_v48 = vld [vmem:[#allocation2 + $0x30] sm:$0xf]  ;;  %v372_v36 = vor.u32 %v370_v42, %v369_v35  ;;  %v378_v53 = vshll.u32 %v231_v28, 16  ;;  %v365_v55 = vrot.slane %v11489_v50, 4 }
  0x6f   : > { %v659_v56 = vld [vmem:[#allocation2 + $0x2c] sm:$0x1]  ;;  %v934_v60 = vrot.slane %v933_v34, 4  ;;  %v373_v2 = vrot.slane %v369_v35, 4  ;;  %v11555_v3 = vrot.slane %v375_v46, 7  ;;  %v950_v10 = vshll.u32 %v827_v38, 16 }
  0x70   : > { %1760 = vrot.lane.b32.xlu2 %v1676_v32, %s11121_s10  ;;  %v938_v1 = vrot.slane %v936_v45, 5  ;;  %v11558_v61 = vld [vmem:[%s11215_s9 + $0x60] sm:$0xf]  ;;  %v663_v7 = vsel %vm11229_vm2, %v372_v36, %v662_v48  ;;  %v660_v50 = vsel %vm11362_vm10, %v365_v55, %v659_v56  ;;  %v249_v9 = vld [vmem:[%s11215_s9 + $0x64] sm:$0xf]  ;;  %v947_v18 = vor.u32 %v946_v52, %v943_v43 }
  0x71   : > { %v854_v11 = vld [vmem:[#allocation2 + $0x94] sm:$0xf]  ;;  %v380_v12 = vor.u32 %v378_v53, %v11555_v3  ;;  %664 = vst [vmem:[#allocation2 + $0x30] sm:$0xf] %v663_v7  ;;  %v520_v23 = vshrl.u32 %v11558_v61, 16  ;;  %v1139_v30 = vor.u32 %v1138_v44, %v1135_v39  ;;  %v954_v57 = vshrl.u32 %v827_v38, 16 }
  0x72   : > { %1260 = vrot.lane.b32.xlu1 %v929_v37, %s11121_s10  ;;  %v855_v47 = vld [vmem:[#allocation2 + $0x98] sm:$0x1]  ;;  %v1166_v13 = vshll.u32 %v854_v11, 16  ;;  %v1170_v8 = vshrl.u32 %v854_v11, 16  ;;  %661 = vst [vmem:[#allocation2 + $0x2c] sm:$0x1] %v660_v50  ;;  %v939_v14 = vsel %vm11345_vm9, %v934_v60, %v938_v1 }
  0x73   : > { %v1176_v49 = vshll.u32 %v855_v47, 16  ;;  %v381_v15 = vsel %vm11297_vm5, %v373_v2, %v380_v12  ;;  %v853_v17 = vld [vmem:[#allocation2 + $0x90] sm:$0xf]  ;;  %v952_v21 = vrot.slane %v950_v10, 5  ;;  %v956_v51 = vrot.slane %v954_v57, 4 }
  0x74   : > { %v11580_v62 = vrot.slane %v1166_v13, 5  ;;  %v1172_v19 = vrot.slane %v1170_v8, 4  ;;  %665 = vst.msk [vmem:[#allocation2 + $0x34] sm:$0xf] %vm256_vm0, %v381_v15  ;;  %v1157_v0 = vshrl.u32 %v853_v17, 16  ;;  %v1160_v20 = vshll.u32 %v853_v17, 16 }
  0x75   : > { %1292 = vrot.lane.b32.xlu0 %v1121_v4, %s11121_s10  ;;  %v522_v40 = vrot.slane %v520_v23, 7  ;;  %v528_v22 = vshrl.u32 %v249_v9, 16  ;;  %v1677_v24 = vld [vmem:[#allocation2 + $0x88] sm:$0xf]  ;;  %v11583_v25 = vrot.slane %v1139_v30, 4  ;;  %v531_v54 = vshll.u32 %v249_v9, 16 }
  0x76   : > { %v1173_v26 = vor.u32 %v1172_v19, %v11580_v62  ;;  %v232_v27 = vld [vmem:[%s11215_s9 + $0x20] sm:$0xf]  ;;  %v957_v16 = vor.u32 %v956_v51, %v952_v21  ;;  %v729_v32 = vld [vmem:[#allocation2 + $0xa4] sm:$0x1]  ;;  %v523_v34 = vshll.u32 %v11558_v61, 16  ;;  %v948_v33 = vrot.slane %v947_v18, 4 }
  0x77   : > { %v526_v28 = vrot.slane %v522_v40, 4  ;;  %v530_v31 = vrot.slane %v528_v22, 7  ;;  %v11590_v35 = vrot.slane %v1176_v49, 5  ;;  %v1159_v38 = vrot.slane %v1157_v0, 4  ;;  %v725_v44 = vld [vmem:[#allocation2 + $0x9c] sm:$0xf] }
  0x78   : > { %1262 = vrot.lane.b32.xlu2 %v939_v14, %s11121_s10  ;;  %v829_v37 = vld [vmem:[#allocation2 + $0x30] sm:$0xf]  ;;  %v1162_v39 = vrot.slane %v1160_v20, 5  ;;  %v11592_v41 = vrot.slane %v1173_v26, 4  ;;  %v384_v45 = vshrl.u32 %v232_v27, 16  ;;  %v387_v53 = vshll.u32 %v232_v27, 16 }
  0x79   : > { %v828_v42 = vld [vmem:[#allocation2 + $0x2c] sm:$0x1]  ;;  %v533_v43 = vor.u32 %v531_v54, %v530_v31  ;;  %v965_v46 = vshrl.u32 %v829_v37, 16  ;;  %v968_v48 = vshll.u32 %v829_v37, 16  ;;  %v535_v52 = vrot.slane %v530_v31, 4 }
  0x7a   : > { %1298 = vrot.lane.b32.xlu1 %v1155_v63, %s11121_s10  ;;  %v233_v36 = vld [vmem:[%s11215_s9 + $0x24] sm:$0xf]  ;;  %v1678_v55 = vld [vmem:[#allocation2 + $0x90] sm:$0xf]  ;;  %v11596_v56 = vrot.slane %v957_v16, 4  ;;  %v960_v60 = vshll.u32 %v828_v42, 16  ;;  %v525_v2 = vor.u32 %v523_v34, %v522_v40  ;;  %v953_v61 = vsel %vm11345_vm9, %v948_v33, %v952_v21 }
  0x7b   : > { %v534_v1 = vsel %vm11297_vm5, %v526_v28, %v533_v43  ;;  %v1145_v4 = vsel %vm11345_vm9, %v11583_v25, %v11518_v58  ;;  %v830_v7 = vld [vmem:[#allocation2 + $0x34] sm:$0xf]  ;;  %v1163_v50 = vor.u32 %v1162_v39, %v1159_v38  ;;  %v730_v9 = vsel %vm11362_vm10, %v535_v52, %v729_v32  ;;  %v669_v63 = vld [vmem:[#allocation2 + $0x3c] sm:$0xf]  ;;  %v666_v10 = vld [vmem:[#allocation2 + $0x38] sm:$0x1] }
  0x7c   : > { %728 = vst.msk [vmem:[#allocation2 + $0xa0] sm:$0xf] %vm256_vm0, %v534_v1  ;;  %v250_v11 = vld [vmem:[%s11215_s9 + $0x68] sm:$0xf]  ;;  %v1179_v12 = vsel %vm11345_vm9, %v11592_v41, %v11590_v35  ;;  %v726_v23 = vsel %vm11229_vm2, %v525_v2, %v725_v44  ;;  %v386_v58 = vrot.slane %v384_v45, 7  ;;  %v392_v18 = vshrl.u32 %v233_v36, 16 }
  0x7d   : > { %1762 = vrot.lane.b32.xlu0 %v1677_v24, %s11121_s10  ;;  %731 = vst [vmem:[#allocation2 + $0xa4] sm:$0x1] %v730_v9  ;;  %v251_v30 = vld [vmem:[%s11215_s9 + $0x6c] sm:$0xf]  ;;  %v11617_v47 = vrot.slane %v965_v46, 4  ;;  %v970_v13 = vrot.slane %v968_v48, 5 }
  0x7e   : > { %727 = vst [vmem:[#allocation2 + $0x9c] sm:$0xf] %v726_v23  ;;  %v395_v8 = vshll.u32 %v233_v36, 16  ;;  %v382_v14 = vrot.slane %v11555_v3, 4  ;;  %v962_v49 = vrot.slane %v960_v60, 5  ;;  %v389_v15 = vor.u32 %v387_v53, %v386_v58 }
  0x7f   : > { %v390_v17 = vrot.slane %v386_v58, 4  ;;  %v11621_v57 = vrot.slane %v392_v18, 7  ;;  %v537_v0 = vshrl.u32 %v250_v11, 16  ;;  %v545_v20 = vshrl.u32 %v251_v30, 16  ;;  %v234_v24 = vld [vmem:[%s11215_s9 + $0x28] sm:$0xf] }
  0x80   : > { %1764 = vrot.lane.b32.xlu2 %v1678_v55, %s11121_s10  ;;  %v667_v19 = vsel %vm11362_vm10, %v382_v14, %v666_v10  ;;  %v548_v21 = vshll.u32 %v251_v30, 16  ;;  %v974_v51 = vshll.u32 %v830_v7, 16  ;;  %v670_v3 = vsel %vm11229_vm2, %v389_v15, %v669_v63  ;;  %v732_v33 = vld [vmem:[#allocation2 + $0xa8] sm:$0xf]  ;;  %v736_v55 = vld [vmem:[#allocation2 + $0xb0] sm:$0x1] }
  0x81   : > { %v397_v40 = vor.u32 %v395_v8, %v11621_v57  ;;  %668 = vst [vmem:[#allocation2 + $0x38] sm:$0x1] %v667_v19  ;;  %v978_v22 = vshrl.u32 %v830_v7, 16  ;;  %v11630_v25 = vrot.slane %v1163_v50, 4  ;;  %v539_v26 = vrot.slane %v537_v0, 7  ;;  %v10822_v19 = vld [vmem:[%s15029_s1 + $0x78] sm:$0xff] }
  0x82   : > { %1264 = vrot.lane.b32.xlu1 %v953_v61, %s11121_s10  ;;  %671 = vst [vmem:[#allocation2 + $0x3c] sm:$0xf] %v670_v3  ;;  %v547_v54 = vrot.slane %v545_v20, 7  ;;  %v540_v27 = vshll.u32 %v250_v11, 16  ;;  %v971_v16 = vor.u32 %v970_v13, %v11617_v47  ;;  %v963_v28 = vsel %vm11345_vm9, %v11596_v56, %v962_v49  ;;  %v1679_v56 = vld [vmem:[#allocation2 + $0x94] sm:$0xf]  ;;  %10968 = vmatpush.bf16.msra.mxu3 %v10822_v19 }
  0x83   : > { %v857_v31 = vld [vmem:[#allocation2 + $0xa0] sm:$0xf]  ;;  %v398_v32 = vsel %vm11297_vm5, %v390_v17, %v397_v40  ;;  %v980_v34 = vrot.slane %v978_v22, 4  ;;  %v11640_v42 = vrot.slane %v974_v51, 5  ;;  %v543_v44 = vrot.slane %v539_v26, 4  ;;  %v10814_v17 = vld [vmem:[%s15029_s1 + $0x38] sm:$0xff]  ;;  %4503 = vmatpush.bf16.msra.mxu1 %v10822_v19 }
  0x84   : > { %v858_v35 = vld [vmem:[#allocation2 + $0xa4] sm:$0x1]  ;;  %v1190_v37 = vshll.u32 %v857_v31, 16  ;;  %v1194_v38 = vshrl.u32 %v857_v31, 16  ;;  %672 = vst.msk [vmem:[#allocation2 + $0x40] sm:$0xf] %vm256_vm0, %v398_v32  ;;  %v550_v39 = vor.u32 %v548_v21, %v547_v54  ;;  %v542_v41 = vor.u32 %v540_v27, %v539_v26  ;;  %4414 = vmatpush.bf16.msra.mxu0 %v10814_v17  ;;  %10960 = vmatpush.bf16.msra.mxu2 %v10814_v17 }
  0x85   : > { %1296 = vrot.lane.b32.xlu0 %v1145_v4, %s11121_s10  ;;  %v856_v43 = vld [vmem:[#allocation2 + $0x9c] sm:$0xf]  ;;  %v401_v45 = vshrl.u32 %v234_v24, 16  ;;  %v404_v46 = vshll.u32 %v234_v24, 16  ;;  %v1200_v60 = vshll.u32 %v858_v35, 16  ;;  %v981_v1 = vor.u32 %v980_v34, %v11640_v42  ;;  %v10813_v3 = vld [vmem:[%s15029_s1 + $0x30] sm:$0xff] }
  0x86   : > { %v11642_v48 = vrot.slane %v1190_v37, 5  ;;  %v1196_v52 = vrot.slane %v1194_v38, 4  ;;  %v1181_v36 = vshrl.u32 %v856_v43, 16  ;;  %v1184_v53 = vshll.u32 %v856_v43, 16  ;;  %v235_v10 = vld [vmem:[%s11215_s9 + $0x2c] sm:$0xf] }
  0x87   : > { %v551_v2 = vsel %vm11297_vm5, %v543_v44, %v550_v39  ;;  %v552_v61 = vrot.slane %v547_v54, 4  ;;  %v733_v63 = vsel %vm11229_vm2, %v542_v41, %v732_v33  ;;  %v972_v11 = vrot.slane %v971_v16, 4  ;;  %v676_v30 = vld [vmem:[#allocation2 + $0x48] sm:$0xf]  ;;  %v673_v27 = vld [vmem:[#allocation2 + $0x44] sm:$0x1] }
  0x88   : > { %1266 = vrot.lane.b32.xlu2 %v963_v28, %s11121_s10  ;;  %v1197_v4 = vor.u32 %v1196_v52, %v11642_v48  ;;  %v1183_v7 = vrot.slane %v1181_v36, 4  ;;  %v1186_v50 = vrot.slane %v1184_v53, 5  ;;  %v831_v9 = vld [vmem:[#allocation2 + $0x38] sm:$0x1]  ;;  %735 = vst.msk [vmem:[#allocation2 + $0xac] sm:$0xf] %vm256_vm0, %v551_v2  ;;  %v1169_v24 = vsel %vm11345_vm9, %v11630_v25, %v11580_v62  ;;  %4415 = vmatpush.bf16.msra.mxu0 %v10813_v3 }
  0x89   : > { %v832_v23 = vld [vmem:[#allocation2 + $0x3c] sm:$0xf]  ;;  %v737_v58 = vsel %vm11362_vm10, %v552_v61, %v736_v55  ;;  %734 = vst [vmem:[#allocation2 + $0xa8] sm:$0xf] %v733_v63  ;;  %v403_v18 = vrot.slane %v401_v45, 7  ;;  %v984_v8 = vshll.u32 %v831_v9, 16  ;;  %v977_v22 = vsel %vm11345_vm9, %v972_v11, %v11640_v42  ;;  %10961 = vmatpush.bf16.msra.mxu2 %v10813_v3  ;;  %v1253_v3 = vpop.permute.xlu2 %1252 }
  0x8a   : > { %1302 = vrot.lane.b32.xlu1 %v1179_v12, %s11121_s10  ;;  %v1680_v12 = vld [vmem:[#allocation2 + $0x9c] sm:$0xf]  ;;  %v989_v47 = vshrl.u32 %v832_v23, 16  ;;  %v992_v13 = vshll.u32 %v832_v23, 16  ;;  %738 = vst [vmem:[#allocation2 + $0xb0] sm:$0x1] %v737_v58  ;;  %v1187_v15 = vor.u32 %v1186_v50, %v1183_v7 }
  0x8b   : > { %v11657_v14 = vrot.slane %v1200_v60, 5  ;;  %v11659_v49 = vld [vmem:[#allocation2 + $0x40] sm:$0xf]  ;;  %v406_v0 = vor.u32 %v404_v46, %v403_v18  ;;  %v11667_v20 = vrot.slane %v1197_v4, 4  ;;  %v11669_v40 = vrot.slane %v981_v1, 4  ;;  %v10821_v53 = vld [vmem:[%s15029_s1 + $0x70] sm:$0xff] }
  0x8c   : > { %v991_v21 = vrot.slane %v989_v47, 4  ;;  %v994_v51 = vrot.slane %v992_v13, 5  ;;  %v409_v26 = vshrl.u32 %v235_v10, 16  ;;  %v412_v54 = vshll.u32 %v235_v10, 16  ;;  %v11682_v16 = vld [vmem:[%s11215_s9 + $0x70] sm:$0xf]  ;;  %10969 = vmatpush.bf16.msra.mxu3 %v10821_v53  ;;  %4504 = vmatpush.bf16.msra.mxu1 %v10821_v53 }
  0x8d   : > { %1766 = vrot.lane.b32.xlu0 %v1679_v56, %s11121_s10  ;;  %v998_v28 = vshll.u32 %v11659_v49, 16  ;;  %v986_v31 = vrot.slane %v984_v8, 5  ;;  %v677_v32 = vsel %vm11229_vm2, %v406_v0, %v676_v30  ;;  %v399_v34 = vrot.slane %v11621_v57, 4  ;;  %v253_v42 = vld [vmem:[%s11215_s9 + $0x74] sm:$0xf]  ;;  %v10812_v2 = vld [vmem:[%s15029_s1 + $0x28] sm:$0xff] }
  0x8e   : > { %v995_v62 = vor.u32 %v994_v51, %v991_v21  ;;  %v11689_v25 = vrot.slane %v1187_v15, 4  ;;  %v407_v35 = vrot.slane %v403_v18, 4  ;;  %v11691_v37 = vrot.slane %v409_v26, 7  ;;  %678 = vst [vmem:[#allocation2 + $0x48] sm:$0xf] %v677_v32  ;;  %v10820_v4 = vld [vmem:[%s15029_s1 + $0x68] sm:$0xff]  ;;  %4416 = vmatpush.bf16.msra.mxu0 %v10812_v2  ;;  %10962 = vmatpush.bf16.msra.mxu2 %v10812_v2 }
  0x8f   : > { %v860_v33 = vld [vmem:[#allocation2 + $0xac] sm:$0xf]  ;;  %v674_v41 = vsel %vm11362_vm10, %v399_v34, %v673_v27  ;;  %v554_v57 = vshrl.u32 %v11682_v16, 16  ;;  %v11699_v46 = vrot.slane %v998_v28, 5  ;;  %v987_v61 = vsel %vm11345_vm9, %v11669_v40, %v986_v31  ;;  %v753_v7 = vld [vmem:[#allocation2] sm:$0xf] }
  0x90   : > { %1768 = vrot.lane.b32.xlu2 %v1680_v12, %s11121_s10  ;;  %v1214_v38 = vshll.u32 %v860_v33, 16  ;;  %v1218_v39 = vshrl.u32 %v860_v33, 16  ;;  %v414_v44 = vor.u32 %v412_v54, %v11691_v37  ;;  %v859_v45 = vld [vmem:[#allocation2 + $0xa8] sm:$0xf]  ;;  %675 = vst [vmem:[#allocation2 + $0x44] sm:$0x1] %v674_v41  ;;  %v1203_v9 = vsel %vm11345_vm9, %v11667_v20, %v11657_v14  ;;  %10970 = vmatpush.bf16.msra.mxu3 %v10820_v4 }
  0x91   : > { %v861_v43 = vld [vmem:[#allocation2 + $0xb0] sm:$0x1]  ;;  %v11707_v55 = vrot.slane %v995_v62, 4  ;;  %v1205_v1 = vshrl.u32 %v859_v45, 16  ;;  %v1002_v50 = vshrl.u32 %v11659_v49, 16  ;;  %v1208_v63 = vshll.u32 %v859_v45, 16  ;;  %4505 = vmatpush.bf16.msra.mxu1 %v10820_v4 }
  0x92   : > { %1268 = vrot.lane.b32.xlu1 %v977_v22, %s11121_s10  ;;  %v11701_v52 = vrot.slane %v1214_v38, 5  ;;  %v1220_v36 = vrot.slane %v1218_v39, 4  ;;  %v1224_v56 = vshll.u32 %v861_v43, 16  ;;  %v415_v60 = vsel %vm11297_vm5, %v407_v35, %v414_v44  ;;  %v10811_v10 = vld [vmem:[%s15029_s1 + $0x20] sm:$0xff]  ;;  %785 = vst.msk [vmem:[#allocation3] sm:$0xf] %vm256_vm0, %v753_v7 }
  0x93   : > { %679 = vst.msk [vmem:[#allocation2 + $0x4c] sm:$0xf] %vm256_vm0, %v415_v60  ;;  %v556_v11 = vrot.slane %v554_v57, 7  ;;  %v562_v23 = vshrl.u32 %v253_v42, 16  ;;  %v1681_v58 = vld [vmem:[#allocation2 + $0xa0] sm:$0xf]  ;;  %4417 = vmatpush.bf16.msra.mxu0 %v10811_v10  ;;  %10963 = vmatpush.bf16.msra.mxu2 %v10811_v10  ;;  %v1001_v57 = vsel %vm11345_vm9, %v11707_v55, %v11699_v46 }
  0x94   : > { %v1221_v18 = vor.u32 %v1220_v36, %v11701_v52  ;;  %v1004_v30 = vrot.slane %v1002_v50, 4  ;;  %v565_v12 = vshll.u32 %v253_v42, 16  ;;  %v557_v47 = vshll.u32 %v11682_v16, 16  ;;  %v743_v49 = vld [vmem:[#allocation2 + $0xbc] sm:$0x1]  ;;  %v10819_v28 = vld [vmem:[%s15029_s1 + $0x60] sm:$0xff] }
  0x95   : > { %1300 = vrot.lane.b32.xlu0 %v1169_v24, %s11121_s10  ;;  %v11733_v13 = vrot.slane %v1224_v56, 5  ;;  %v560_v8 = vrot.slane %v556_v11, 4  ;;  %v564_v14 = vrot.slane %v562_v23, 7  ;;  %v835_v15 = vld [vmem:[#allocation2 + $0x48] sm:$0xf]  ;;  %v11740_v51 = vrot.slane %v1205_v1, 4  ;;  %10971 = vmatpush.bf16.msra.mxu3 %v10819_v28 }
  0x96   : > { %v1005_v17 = vor.u32 %v1004_v30, %v11699_v46  ;;  %v559_v19 = vor.u32 %v557_v47, %v556_v11  ;;  %v739_v0 = vld [vmem:[#allocation2 + $0xb4] sm:$0xf]  ;;  %v11738_v20 = vld [vmem:[%s11215_s9 + $0x30] sm:$0xf]  ;;  %v1013_v21 = vshrl.u32 %v835_v15, 16  ;;  %v11742_v40 = vrot.slane %v1208_v63, 5  ;;  %4506 = vmatpush.bf16.msra.mxu1 %v10819_v28 }
  0x97   : > { %v834_v22 = vld [vmem:[#allocation2 + $0x44] sm:$0x1]  ;;  %v567_v24 = vor.u32 %v565_v12, %v564_v14  ;;  %v11744_v26 = vrot.slane %v1221_v18, 4  ;;  %v1682_v54 = vld [vmem:[#allocation2 + $0xa8] sm:$0xf]  ;;  %v1016_v27 = vshll.u32 %v835_v15, 16  ;;  %v1193_v50 = vsel %vm11345_vm9, %v11689_v25, %v11642_v48 }
  0x98   : > { %1270 = vrot.lane.b32.xlu2 %v987_v61, %s11121_s10  ;;  %1349 = vst.msk [vmem:[#allocation3] sm:$0xf] %vm1348_vm11, %v1253_v3  ;;  %v569_v16 = vrot.slane %v564_v14, 4  ;;  %v1008_v31 = vshll.u32 %v834_v22, 16  ;;  %v1405_v34 = vld [vmem:[#allocation2 + $0x60] sm:$0xe]  ;;  %v740_v62 = vsel %vm11229_vm2, %v559_v19, %v739_v0 }
  0x99   : > { %v568_v32 = vsel %vm11297_vm5, %v560_v8, %v567_v24  ;;  %v237_v33 = vld [vmem:[%s11215_s9 + $0x34] sm:$0xf]  ;;  %v418_v35 = vshrl.u32 %v11738_v20, 16  ;;  %v11757_v38 = vrot.slane %v1013_v21, 4  ;;  %v11759_v39 = vrot.slane %v1005_v17, 4  ;;  %v10810_v42 = vld [vmem:[%s15029_s1 + $0x18] sm:$0xff] }
  0x9a   : > { %1306 = vrot.lane.b32.xlu1 %v1203_v9, %s11121_s10  ;;  %742 = vst.msk [vmem:[#allocation2 + $0xb8] sm:$0xf] %vm256_vm0, %v568_v32  ;;  %v744_v41 = vsel %vm11362_vm10, %v569_v16, %v743_v49  ;;  %v11771_v43 = vld [vmem:[#allocation2 + $0x4c] sm:$0xf]  ;;  %v1406_v44 = vld [vmem:[#allocation2 + $0x64] sm:$0xf]  ;;  %4418 = vmatpush.bf16.msra.mxu0 %v10810_v42  ;;  %v1227_v24 = vsel %vm11345_vm9, %v11744_v26, %v11733_v13 }
  0x9b   : > { %745 = vst [vmem:[#allocation2 + $0xbc] sm:$0x1] %v744_v41  ;;  %v9673_v45 = vrot.slane %v1405_v34, 9  ;;  %v11773_v36 = vrot.slane %v1016_v27, 5  ;;  %v1538_v56 = vrot.slane %v1406_v44, 5  ;;  %v10818_v60 = vld [vmem:[%s15029_s1 + $0x58] sm:$0xff]  ;;  %10964 = vmatpush.bf16.msra.mxu2 %v10810_v42  ;;  %v1753_v23 = vpop.permute.xlu1 %1752  ;;  %v1211_v34 = vor.u32 %v11742_v40, %v11740_v51 }
  0x9c   : > { %v10809_v46 = vld [vmem:[%s15029_s1 + $0x10] sm:$0xff]  ;;  %741 = vst [vmem:[#allocation2 + $0xb4] sm:$0xf] %v740_v62  ;;  %v1010_v1 = vrot.slane %v1008_v31, 5  ;;  %v754_v2 = vld [vmem:[#allocation2 + $0x4] sm:$0xf]  ;;  %10972 = vmatpush.bf16.msra.mxu3 %v10818_v60  ;;  %4507 = vmatpush.bf16.msra.mxu1 %v10818_v60 }
  0x9d   : > { %1770 = vrot.lane.b32.xlu0 %v1681_v58, %s11121_s10  ;;  %v683_v55 = vld [vmem:[#allocation2 + $0x54] sm:$0xf]  ;;  %v420_v61 = vrot.slane %v418_v35, 7  ;;  %v421_v4 = vshll.u32 %v11738_v20, 16  ;;  %v426_v7 = vshrl.u32 %v237_v33, 16  ;;  %v1539_v9 = vsel %vm11775_vm14, %v9673_v45, %v1538_v56  ;;  %v10808_v0 = vld [vmem:[%s15029_s1 + $0x8] sm:$0xff] }
  0x9e   : > { %786 = vst.msk [vmem:[#allocation3 + $0x14] sm:$0xf] %vm256_vm0, %v754_v2  ;;  %v429_v63 = vshll.u32 %v237_v33, 16  ;;  %v1407_v10 = vld [vmem:[#allocation2 + $0x68] sm:$0x1]  ;;  %v416_v11 = vrot.slane %v11691_v37, 4  ;;  %4419 = vmatpush.bf16.msra.mxu0 %v10809_v46  ;;  %v1019_v8 = vor.u32 %v11773_v36, %v11757_v38  ;;  %v1011_v14 = vsel %vm11345_vm9, %v11759_v39, %v1010_v1 }
  0x9f   : > { %1640 = vst.msk [vmem:[#allocation3 + $0x144] sm:$0xf] %vm256_vm0, %v1539_v9  ;;  %v423_v58 = vor.u32 %v421_v4, %v420_v61  ;;  %v424_v18 = vrot.slane %v420_v61, 4  ;;  %v11797_v30 = vrot.slane %v426_v7, 7  ;;  %v680_v12 = vld [vmem:[#allocation2 + $0x50] sm:$0x1]  ;;  %10965 = vmatpush.bf16.msra.mxu2 %v10809_v46 }
  0xa0   : > { %1772 = vrot.lane.b32.xlu2 %v1682_v54, %s11121_s10  ;;  %v1022_v48 = vshll.u32 %v11771_v43, 16  ;;  %1832 = vst.msk [vmem:[#allocation3 + $0x144] sm:$0xf] %vm1348_vm11, %v1753_v23  ;;  %v10817_v25 = vld [vmem:[%s15029_s1 + $0x50] sm:$0xff]  ;;  %v1540_v47 = vrot.slane %v1538_v56, 4  ;;  %v1541_v37 = vrot.slane %v1407_v10, 5  ;;  %v681_v28 = vsel %vm11362_vm10, %v416_v11, %v680_v12 }
  0xa1   : > { %v863_v49 = vld [vmem:[#allocation2 + $0xb8] sm:$0xf]  ;;  %v431_v17 = vor.u32 %v429_v63, %v11797_v30  ;;  %v684_v19 = vsel %vm11229_vm2, %v423_v58, %v683_v55  ;;  %10973 = vmatpush.bf16.msra.mxu3 %v10817_v25  ;;  %v1026_v22 = vshrl.u32 %v11771_v43, 16  ;;  %v10816_v16 = vld [vmem:[%s15029_s1 + $0x48] sm:$0xff]  ;;  %4508 = vmatpush.bf16.msra.mxu1 %v10817_v25  ;;  %v1020_v13 = vrot.slane %v1019_v8, 4  ;;  %v10807_v33 = vld [vmem:[%s15029_s1] sm:$0xff] }
  0xa2   : > { %1272 = vrot.lane.b32.xlu1 %v1001_v57, %s11121_s10  ;;  %v1238_v20 = vshll.u32 %v863_v49, 16  ;;  %v1242_v21 = vshrl.u32 %v863_v49, 16  ;;  %v1542_v3 = vsel %vm11775_vm14, %v1540_v47, %v1541_v37  ;;  %v864_v54 = vld [vmem:[#allocation2 + $0xbc] sm:$0x1]  ;;  %685 = vst [vmem:[#allocation2 + $0x54] sm:$0xf] %v684_v19  ;;  %4420 = vmatpush.bf16.msra.mxu0 %v10808_v0 }
  0xa3   : > { %v432_v27 = vsel %vm11297_vm5, %v424_v18, %v431_v17  ;;  %v1683_v31 = vld [vmem:[#allocation2 + $0xac] sm:$0xf]  ;;  %v1024_v32 = vrot.slane %v1022_v48, 5  ;;  %10966 = vmatpush.bf16.msra.mxu2 %v10808_v0  ;;  %1641 = vst.msk [vmem:[#allocation3 + $0x158] sm:$0xf] %vm256_vm0, %v1542_v3  ;;  %v1248_v51 = vshll.u32 %v864_v54, 16 }
  0xa4   : > { %686 = vst.msk [vmem:[#allocation2 + $0x58] sm:$0xf] %vm256_vm0, %v432_v27  ;;  %v11835_v26 = vrot.slane %v1238_v20, 5  ;;  %v1244_v62 = vrot.slane %v1242_v21, 4  ;;  %v769_v40 = vld [vmem:[#allocation2 + $0x60] sm:$0xf] }
  0xa5   : > { %1304 = vrot.lane.b32.xlu0 %v1193_v50, %s11121_s10  ;;  %v1255_v15 = vpop.permute.xlu2 %1254  ;;  %10974 = vmatpush.bf16.msra.mxu3 %v10816_v16  ;;  %682 = vst [vmem:[#allocation2 + $0x50] sm:$0x1] %v681_v28  ;;  %v1028_v35 = vrot.slane %v1026_v22, 4  ;;  %v1212_v38 = vrot.slane %v1211_v34, 4  ;;  %v862_v39 = vld [vmem:[#allocation2 + $0xb4] sm:$0xf]  ;;  %v1025_v36 = vsel %vm11345_vm9, %v1020_v13, %v1024_v32 }
  0xa6   : > { %1350 = vst.msk [vmem:[#allocation3 + $0x14] sm:$0xf] %vm1348_vm11, %v1255_v15  ;;  %4509 = vmatpush.bf16.msra.mxu1 %v10816_v16  ;;  %4421 = vmatpush.bf16.msra.mxu0 %v10807_v33  ;;  %v254_v41 = vld [vmem:[%s11215_s9 + $0x78] sm:$0xf]  ;;  %v1245_v42 = vor.u32 %v1244_v62, %v11835_v26  ;;  %v1684_v57 = vld [vmem:[#allocation2 + $0xb4] sm:$0xf] }
  0xa7   : > { %801 = vst.msk [vmem:[#allocation3 + $0x140] sm:$0xf] %vm256_vm0, %v769_v40  ;;  %10967 = vmatpush.bf16.msra.mxu2 %v10807_v33  ;;  %v1029_v43 = vor.u32 %v1028_v35, %v1024_v32  ;;  %v255_v44 = vld [vmem:[%s11215_s9 + $0x7c] sm:$0xf]  ;;  %v571_v45 = vshrl.u32 %v254_v41, 16  ;;  %v11849_v56 = vrot.slane %v1248_v51, 5  ;;  %v1217_v7 = vsel %vm11345_vm9, %v1212_v38, %v11701_v52 }
  0xa8   : > { %1274 = vrot.lane.b32.xlu2 %v1011_v14, %s11121_s10  ;;  %v579_v46 = vshrl.u32 %v255_v44, 16  ;;  %v10815_v55 = vld [vmem:[%s15029_s1 + $0x40] sm:$0xff]  ;;  %v1229_v61 = vshrl.u32 %v862_v39, 16  ;;  %v582_v9 = vshll.u32 %v255_v44, 16  ;;  %v9715_v63 = vld [vmem:[#allocation3] sm:$0xf] }
  0xa9   : > { %v838_v60 = vld [vmem:[#allocation2 + $0x54] sm:$0xf]  ;;  %v573_v4 = vrot.slane %v571_v45, 7  ;;  %10975 = vmatpush.bf16.msra.mxu3 %v10815_v55  ;;  %v1246_v11 = vrot.slane %v1245_v42, 4  ;;  %v1232_v23 = vshll.u32 %v862_v39, 16  ;;  %v1030_v18 = vrot.slane %v1029_v43, 4 }
  0xaa   : > { %1310 = vrot.lane.b32.xlu1 %v1227_v24, %s11121_s10  ;;  %v1037_v1 = vshrl.u32 %v838_v60, 16  ;;  %v1040_v2 = vshll.u32 %v838_v60, 16  ;;  %v11857_v50 = vrot.slane %v579_v46, 7  ;;  %4510 = vmatpush.bf16.msra.mxu1 %v10815_v55  ;;  %v1408_v37 = vld [vmem:[#allocation2 + $0x6c] sm:$0xe]  ;;  %v574_v19 = vshll.u32 %v254_v41, 16 }
  0xab   : > { %v577_v12 = vrot.slane %v573_v4, 4  ;;  %v11862_v49 = vld [vmem:[#allocation2 + $0x70] sm:$0xf]  ;;  %v9674_v15 = vrot.slane %v1408_v37, 9  ;;  %v839_v0 = vld [vmem:[#allocation2 + $0x58] sm:$0xf]  ;;  %v1251_v27 = vsel %vm11345_vm9, %v1246_v11, %v11849_v56 }
  0xac   : > { %v837_v58 = vld [vmem:[#allocation2 + $0x50] sm:$0x1]  ;;  %v1039_v48 = vrot.slane %v1037_v1, 4  ;;  %v1042_v25 = vrot.slane %v1040_v2, 5  ;;  %v584_v52 = vor.u32 %v582_v9, %v11857_v50  ;;  %v1545_v3 = vrot.slane %v11862_v49, 5  ;;  %v10838_v44 = vld [vmem:[%s15029_s1 + $0xf8] sm:$0xff] }
  0xad   : > { %1774 = vrot.lane.b32.xlu0 %v1683_v31, %s11121_s10  ;;  %v10729_v10 = vld [vmem:[#allocation3 + $0x10] sm:$0xf0]  ;;  %v1032_v47 = vshll.u32 %v837_v58, 16  ;;  %v772_v17 = vld [vmem:[#allocation2 + $0x70] sm:$0xf]  ;;  %v1231_v22 = vrot.slane %v1229_v61, 4  ;;  %v576_v54 = vor.u32 %v574_v19, %v573_v4  ;;  %4681 = vmatpush.bf16.msrb.mxu3 %v10838_v44 }
  0xae   : > { %v9716_v14 = vor.u32 %v10729_v10, %v9715_v63  ;;  %v585_v21 = vsel %vm11297_vm5, %v577_v12, %v584_v52  ;;  %v1234_v24 = vrot.slane %v1232_v23, 5  ;;  %v1546_v28 = vsel %vm11775_vm14, %v9674_v15, %v1545_v3  ;;  %804 = vst.msk [vmem:[#allocation3 + $0x17c] sm:$0xf] %vm256_vm0, %v772_v17  ;;  %v770_v31 = vld [vmem:[#allocation2 + $0x64] sm:$0xf]  ;;  %v10842_v11 = vld [vmem:[%s15029_s1 + $0x118] sm:$0xff] }
  0xaf   : > { %v1034_v20 = vrot.slane %v1032_v47, 5  ;;  %749 = vst.msk [vmem:[#allocation2 + $0xc4] sm:$0xf] %vm256_vm0, %v585_v21  ;;  %v746_v32 = vld [vmem:[#allocation2 + $0xc0] sm:$0xf]  ;;  %v1043_v34 = vor.u32 %v1042_v25, %v1039_v48  ;;  %v1046_v13 = vshll.u32 %v839_v0, 16  ;;  %4774 = vmatpush.bf16.msrb.mxu0 %v10842_v11 }
  0xb0   : > { %1776 = vrot.lane.b32.xlu2 %v1684_v57, %s11121_s10  ;;  %4422 = vmatmul.bf16.vlgmr.msra.gmra.mxu0 %v9716_v14  ;;  %1642 = vst.msk [vmem:[#allocation3 + $0x16c] sm:$0xf] %vm256_vm0, %v1546_v28  ;;  %v10767_v33 = vld [vmem:[#allocation3 + $0x144] sm:$0xf]  ;;  %v747_v51 = vsel %vm11229_vm2, %v576_v54, %v746_v32  ;;  %v433_v40 = vrot.slane %v11797_v30, 4  ;;  %v1050_v42 = vshrl.u32 %v839_v0, 16  ;;  %v1235_v57 = vor.u32 %v1234_v24, %v1231_v22 }
  0xb1   : > { %v1035_v16 = vsel %vm11345_vm9, %v1030_v18, %v1034_v20  ;;  %v1685_v35 = vld [vmem:[#allocation2 + $0xb8] sm:$0xf]  ;;  %v756_v38 = vld [vmem:[#allocation2 + $0x10] sm:$0xf]  ;;  %v755_v39 = vld [vmem:[#allocation2 + $0xc] sm:$0xf] }
  0xb2   : > { %1276 = vrot.lane.b32.xlu1 %v1025_v36, %s11121_s10  ;;  %802 = vst.msk [vmem:[#allocation3 + $0x154] sm:$0xf] %vm256_vm0, %v770_v31  ;;  %v687_v41 = vld [vmem:[#allocation2 + $0x5c] sm:$0x1]  ;;  %v771_v43 = vld [vmem:[#allocation2 + $0x6c] sm:$0xf] }
  0xb3   : > { %v1755_v8 = vpop.permute.xlu1 %1754  ;;  %748 = vst [vmem:[#allocation2 + $0xc0] sm:$0xf] %v747_v51  ;;  %v10830_v30 = vld [vmem:[%s15029_s1 + $0xb8] sm:$0xff]  ;;  %v1044_v45 = vrot.slane %v1043_v34, 4  ;;  %v1048_v36 = vrot.slane %v1046_v13, 5  ;;  %v688_v55 = vsel %vm11362_vm10, %v433_v40, %v687_v41  ;;  %v1052_v2 = vrot.slane %v1050_v42, 4 }
  0xb4   : > { %1833 = vst.msk [vmem:[#allocation3 + $0x158] sm:$0xf] %vm1348_vm11, %v1755_v8  ;;  %v11893_v60 = vld [vmem:[#allocation2 + $0x10] sm:$0xf]  ;;  %4592 = vmatpush.bf16.msrb.mxu2 %v10830_v30  ;;  %v1236_v61 = vrot.slane %v1235_v57, 4  ;;  %v1547_v48 = vrot.slane %v1545_v3, 4 }
  0xb5   : > { %1308 = vrot.lane.b32.xlu0 %v1217_v7, %s11121_s10  ;;  %788 = vst.msk [vmem:[#allocation3 + $0x3c] sm:$0xf] %vm256_vm0, %v756_v38  ;;  %v1049_v4 = vsel %vm11345_vm9, %v1044_v45, %v1048_v36  ;;  %v2346_v7 = vld [vmem:[#allocation2 + $0x14] sm:$0x1]  ;;  %v2442_v9 = vrot.slane %v11893_v60, 5  ;;  %v1053_v58 = vor.u32 %v1052_v2, %v1048_v36 }
  0xb6   : > { %787 = vst.msk [vmem:[#allocation3 + $0x28] sm:$0xf] %vm256_vm0, %v755_v39  ;;  %v1411_v63 = vld [vmem:[#allocation2 + $0x78] sm:$0xe]  ;;  %v11904_v10 = vld [vmem:[#allocation2 + $0x7c] sm:$0xf]  ;;  %v1241_v25 = vsel %vm11345_vm9, %v1236_v61, %v11835_v26 }
  0xb7   : > { %v1757_v62 = vpop.permute.xlu2 %1756  ;;  %803 = vst.msk [vmem:[#allocation3 + $0x168] sm:$0xf] %vm256_vm0, %v771_v43  ;;  %v2746_v18 = vld [vmem:[#allocation2 + $0x1c] sm:$0xf]  ;;  %v9675_v12 = vrot.slane %v1411_v63, 9  ;;  %v2445_v47 = vrot.slane %v2346_v7, 5 }
  0xb8   : > { %1834 = vst.msk [vmem:[#allocation3 + $0x16c] sm:$0xf] %vm1348_vm11, %v1757_v62  ;;  %1278 = vrot.lane.b32.xlu2 %v1035_v16, %s11121_s10  ;;  %v1552_v52 = vrot.slane %v11904_v10, 5  ;;  %v774_v37 = vld [vmem:[#allocation2 + $0x7c] sm:$0xf]  ;;  %v2444_v14 = vrot.slane %v2442_v9, 4 }
  0xb9   : > { %689 = vst [vmem:[#allocation2 + $0x5c] sm:$0x1] %v688_v55  ;;  %v1410_v8 = vld [vmem:[#allocation2 + $0x74] sm:$0x1]  ;;  %v2745_v17 = vld [vmem:[#allocation2 + $0x18] sm:$0xf] }
  0xba   : > { %1314 = vrot.lane.b32.xlu1 %v1251_v27, %s11121_s10  ;;  %v1686_v23 = vld [vmem:[#allocation2 + $0xc0] sm:$0xf]  ;;  %806 = vst.msk [vmem:[#allocation3 + $0x1a4] sm:$0xf] %vm256_vm0, %v774_v37  ;;  %v1548_v15 = vrot.slane %v1410_v8, 5  ;;  %v1553_v26 = vsel %vm11775_vm14, %v9675_v12, %v1552_v52  ;;  %v2794_v0 = vshrl.u32 %v2745_v17, 16  ;;  %v2446_v16 = vsel %vm11775_vm14, %v2444_v14, %v2445_v47 }
  0xbb   : > { %v9877_v56 = vld [vmem:[#allocation3 + $0x154] sm:$0xf0]  ;;  %v2797_v20 = vshll.u32 %v2745_v17, 16  ;;  %v1054_v21 = vrot.slane %v1053_v58, 4  ;;  %v2803_v3 = vshll.u32 %v2746_v18, 16  ;;  %v2807_v31 = vshrl.u32 %v2746_v18, 16 }
  0xbc   : > { %v9880_v46 = vor.u32 %v10767_v33, %v9877_v56  ;;  %v1549_v22 = vsel %vm11775_vm14, %v1547_v48, %v1548_v15  ;;  %1644 = vst.msk [vmem:[#allocation3 + $0x194] sm:$0xf] %vm256_vm0, %v1553_v26  ;;  %v2796_v54 = vrot.slane %v2794_v0, 4  ;;  %v758_v32 = vld [vmem:[#allocation2 + $0x1c] sm:$0xf]  ;;  %v10829_v39 = vld [vmem:[%s15029_s1 + $0xb0] sm:$0xff] }
  0xbd   : > { %1778 = vrot.lane.b32.xlu0 %v1685_v35, %s11121_s10  ;;  %v1285_v1 = vpop.permute.xlu0 %1284  ;;  %v2799_v27 = vrot.slane %v2797_v20, 5  ;;  %1643 = vst.msk [vmem:[#allocation3 + $0x180] sm:$0xf] %vm256_vm0, %v1549_v22  ;;  %v757_v34 = vld [vmem:[#allocation2 + $0x18] sm:$0xf]  ;;  %v10837_v41 = vld [vmem:[%s15029_s1 + $0xf0] sm:$0xff]  ;;  %4593 = vmatpush.bf16.msrb.mxu2 %v10829_v39 }
  0xbe   : > { %1365 = vst.msk [vmem:[#allocation3 + $0x140] sm:$0xf] %vm1348_vm11, %v1285_v1  ;;  %4551 = vmatmul.bf16.vlgmr.msra.gmra.mxu3 %v9880_v46  ;;  %v773_v13 = vld [vmem:[#allocation2 + $0x78] sm:$0xf]  ;;  %v1687_v51 = vld [vmem:[#allocation2 + $0xc4] sm:$0xf] }
  0xbf   : > { %790 = vst.msk [vmem:[#allocation3 + $0x64] sm:$0xf] %vm256_vm0, %v758_v32  ;;  %v2800_v33 = vor.u32 %v2799_v27, %v2796_v54  ;;  %v2344_v40 = vld [vmem:[#allocation2 + $0xc] sm:$0xe]  ;;  %v11942_v42 = vld [vmem:[#allocation2 + $0x1c] sm:$0xf]  ;;  %4682 = vmatpush.bf16.msrb.mxu3 %v10837_v41 }
  0xc0   : > { %1780 = vrot.lane.b32.xlu2 %v1686_v23, %s11121_s10  ;;  %v840_v24 = vld [vmem:[#allocation2 + $0x5c] sm:$0x1]  ;;  %789 = vst.msk [vmem:[#allocation3 + $0x50] sm:$0xf] %vm256_vm0, %v757_v34  ;;  %v2805_v57 = vrot.slane %v2803_v3, 5  ;;  %v2809_v43 = vrot.slane %v2807_v31, 4 }
  0xc1   : > { %v1056_v28 = vshll.u32 %v840_v24, 16  ;;  %805 = vst.msk [vmem:[#allocation3 + $0x190] sm:$0xf] %vm256_vm0, %v773_v13  ;;  %v1656_v30 = vld [vmem:[#allocation2 + $0xc] sm:$0xf]  ;;  %v2801_v45 = vrot.slane %v2800_v33, 4 }
  0xc2   : > { %1280 = vrot.lane.b32.xlu1 %v1049_v4, %s11121_s10  ;;  %v1259_v49 = vpop.permute.xlu2 %1258  ;;  %v2747_v44 = vld [vmem:[#allocation2 + $0x20] sm:$0x1]  ;;  %v1414_v36 = vld [vmem:[#allocation2 + $0x84] sm:$0xe]  ;;  %v9681_v56 = vrot.slane %v2344_v40, 9  ;;  %v1554_v1 = vrot.slane %v1552_v52, 4  ;;  %v2810_v11 = vor.u32 %v2809_v43, %v2805_v57 }
  0xc3   : > { %1352 = vst.msk [vmem:[#allocation3 + $0x3c] sm:$0xf] %vm1348_vm11, %v1259_v49  ;;  %v1058_v62 = vrot.slane %v1056_v28, 5  ;;  %v11946_v46 = vld [vmem:[#allocation2 + $0x88] sm:$0xf]  ;;  %v9676_v55 = vrot.slane %v1414_v36, 9  ;;  %v2806_v18 = vsel %vm11345_vm9, %v2801_v45, %v2805_v57 }
  0xc4   : > { %v1291_v19 = vpop.permute.xlu1 %1290  ;;  %v2449_v61 = vrot.slane %v11942_v42, 5  ;;  %v1559_v4 = vrot.slane %v11946_v46, 5  ;;  %v776_v7 = vld [vmem:[#allocation2 + $0x88] sm:$0xf]  ;;  %v1413_v63 = vld [vmem:[#allocation2 + $0x80] sm:$0x1]  ;;  %v2443_v48 = vsel %vm11775_vm14, %v9681_v56, %v2442_v9 }
  0xc5   : > { %1312 = vrot.lane.b32.xlu0 %v1241_v25, %s11121_s10  ;;  %1368 = vst.msk [vmem:[#allocation3 + $0x17c] sm:$0xf] %vm1348_vm11, %v1291_v19  ;;  %v1059_v35 = vsel %vm11345_vm9, %v1054_v21, %v1058_v62  ;;  %v2349_v10 = vld [vmem:[#allocation2 + $0x20] sm:$0x1]  ;;  %v2813_v23 = vshll.u32 %v2747_v44, 16  ;;  %v1555_v58 = vrot.slane %v1413_v63, 5 }
  0xc6   : > { %v1560_v12 = vsel %vm11775_vm14, %v9676_v55, %v1559_v4  ;;  %808 = vst.msk [vmem:[#allocation3 + $0x1cc] sm:$0xf] %vm256_vm0, %v776_v7  ;;  %v2748_v47 = vld [vmem:[#allocation2 + $0x24] sm:$0xf]  ;;  %v2451_v52 = vrot.slane %v2449_v61, 4  ;;  %v2452_v37 = vrot.slane %v2349_v10, 5 }
  0xc7   : > { %1646 = vst.msk [vmem:[#allocation3 + $0x1bc] sm:$0xf] %vm256_vm0, %v1560_v12  ;;  %v1556_v25 = vsel %vm11775_vm14, %v1554_v1, %v1555_v58  ;;  %v2818_v14 = vshrl.u32 %v2748_v47, 16  ;;  %v2821_v49 = vshll.u32 %v2748_v47, 16  ;;  %v2811_v60 = vrot.slane %v2810_v11, 4  ;;  %v10828_v33 = vld [vmem:[%s15029_s1 + $0xa8] sm:$0xff] }
  0xc8   : > { %1282 = vrot.lane.b32.xlu2 %v1059_v35, %s11121_s10  ;;  %1645 = vst.msk [vmem:[#allocation3 + $0x1a8] sm:$0xf] %vm256_vm0, %v1556_v25  ;;  %v2815_v17 = vrot.slane %v2813_v23, 5  ;;  %v2749_v9 = vld [vmem:[#allocation2 + $0x28] sm:$0xf]  ;;  %v2453_v54 = vsel %vm11775_vm14, %v2451_v52, %v2452_v37  ;;  %4594 = vmatpush.bf16.msrb.mxu2 %v10828_v33  ;;  %v1561_v1 = vrot.slane %v1559_v4, 4 }
  0xc9   : > { %v2820_v19 = vrot.slane %v2818_v14, 4  ;;  %v2823_v26 = vrot.slane %v2821_v49, 5  ;;  %v760_v0 = vld [vmem:[#allocation2 + $0x28] sm:$0xf]  ;;  %v759_v20 = vld [vmem:[#allocation2 + $0x24] sm:$0xf] }
  0xca   : > { %2554 = vrot.lane.b32.xlu1 %v2446_v16, %s11121_s10  ;;  %v1761_v38 = vpop.permute.xlu2 %1760  ;;  %792 = vst.msk [vmem:[#allocation3 + $0x8c] sm:$0xf] %vm256_vm0, %v760_v0  ;;  %v775_v21 = vld [vmem:[#allocation2 + $0x84] sm:$0xf]  ;;  %v9875_v22 = vld [vmem:[#allocation3 + $0x140] sm:$0xf]  ;;  %v2816_v34 = vsel %vm11345_vm9, %v2811_v60, %v2815_v17 }
  0xcb   : > { %1836 = vst.msk [vmem:[#allocation3 + $0x194] sm:$0xf] %vm1348_vm11, %v1761_v38  ;;  %v2347_v16 = vld [vmem:[#allocation2 + $0x18] sm:$0xe]  ;;  %v2827_v28 = vshll.u32 %v2749_v9, 16  ;;  %v2824_v31 = vor.u32 %v2823_v26, %v2820_v19  ;;  %v2831_v62 = vshrl.u32 %v2749_v9, 16 }
  0xcc   : > { %791 = vst.msk [vmem:[#allocation3 + $0x78] sm:$0xf] %vm256_vm0, %v759_v20  ;;  %v1657_v32 = vld [vmem:[#allocation2 + $0x10] sm:$0xf]  ;;  %v10734_v13 = vld [vmem:[#allocation3 + $0x38] sm:$0xf0] }
  0xcd   : > { %1782 = vrot.lane.b32.xlu0 %v1687_v51, %s11121_s10  ;;  %807 = vst.msk [vmem:[#allocation3 + $0x1b8] sm:$0xf] %vm256_vm0, %v775_v21  ;;  %v10836_v51 = vld [vmem:[%s15029_s1 + $0xe8] sm:$0xff]  ;;  %v9682_v40 = vrot.slane %v2347_v16, 9  ;;  %v1417_v39 = vld [vmem:[#allocation2 + $0x90] sm:$0xe] }
  0xce   : > { %v11988_v35 = vld [vmem:[#allocation2 + $0x28] sm:$0xf]  ;;  %v2750_v43 = vld [vmem:[#allocation2 + $0x2c] sm:$0x1]  ;;  %v2825_v44 = vrot.slane %v2824_v31, 4  ;;  %4683 = vmatpush.bf16.msrb.mxu3 %v10836_v51  ;;  %v9677_v55 = vrot.slane %v1417_v39, 9 }
  0xcf   : > { %v1287_v2 = vpop.permute.xlu0 %1286  ;;  %v1658_v45 = vld [vmem:[#allocation2 + $0x18] sm:$0xf]  ;;  %v11994_v56 = vld [vmem:[#allocation2 + $0x94] sm:$0xf]  ;;  %v1416_v10 = vld [vmem:[#allocation2 + $0x8c] sm:$0x1]  ;;  %v2450_v47 = vsel %vm11775_vm14, %v9682_v40, %v2449_v61 }
  0xd0   : > { %1366 = vst.msk [vmem:[#allocation3 + $0x154] sm:$0xf] %vm1348_vm11, %v1287_v2  ;;  %3177 = vrot.lane.b32.xlu2 %v2806_v18, %s11121_s10  ;;  %v2833_v2 = vrot.slane %v2831_v62, 4  ;;  %v1566_v7 = vrot.slane %v11994_v56, 5  ;;  %v778_v63 = vld [vmem:[#allocation2 + $0x94] sm:$0xf] }
  0xd1   : > { %v2352_v23 = vld [vmem:[#allocation2 + $0x2c] sm:$0x1]  ;;  %v2456_v58 = vrot.slane %v11988_v35, 5  ;;  %810 = vst.msk [vmem:[#allocation3 + $0x1f4] sm:$0xf] %vm256_vm0, %v778_v63  ;;  %v1562_v18 = vrot.slane %v1416_v10, 5 }
  0xd2   : > { %1720 = vrot.lane.b32.xlu1 %v1656_v30, %s11121_s10  ;;  %v1263_v8 = vpop.permute.xlu2 %1262  ;;  %v2829_v30 = vrot.slane %v2827_v28, 5  ;;  %v1567_v46 = vsel %vm11775_vm14, %v9677_v55, %v1566_v7  ;;  %v2837_v4 = vshll.u32 %v2750_v43, 16  ;;  %v10841_v25 = vld [vmem:[%s15029_s1 + $0x110] sm:$0xff]  ;;  %v2459_v52 = vrot.slane %v2352_v23, 5  ;;  %v10772_v26 = vld [vmem:[#allocation3 + $0x16c] sm:$0xf] }
  0xd3   : > { %1354 = vst.msk [vmem:[#allocation3 + $0x64] sm:$0xf] %vm1348_vm11, %v1263_v8  ;;  %v2751_v8 = vld [vmem:[#allocation2 + $0x30] sm:$0xf]  ;;  %v10774_v49 = vld [vmem:[#allocation3 + $0x178] sm:$0xf0]  ;;  %4775 = vmatpush.bf16.msrb.mxu0 %v10841_v25 }
  0xd4   : > { %v1257_v15 = vpop.permute.xlu1 %1256  ;;  %v2830_v12 = vsel %vm11345_vm9, %v2825_v44, %v2829_v30  ;;  %1648 = vst.msk [vmem:[#allocation3 + $0x1e4] sm:$0xf] %vm256_vm0, %v1567_v46  ;;  %v2834_v37 = vor.u32 %v2833_v2, %v2829_v30  ;;  %v2842_v17 = vshrl.u32 %v2751_v8, 16  ;;  %v762_v9 = vld [vmem:[#allocation2 + $0x34] sm:$0xf]  ;;  %v2845_v61 = vshll.u32 %v2751_v8, 16 }
  0xd5   : > { %2552 = vrot.lane.b32.xlu0 %v2443_v48, %s11121_s10  ;;  %1351 = vst.msk [vmem:[#allocation3 + $0x28] sm:$0xf] %vm1348_vm11, %v1257_v15  ;;  %v1563_v48 = vsel %vm11775_vm14, %v1561_v1, %v1562_v18  ;;  %v2458_v15 = vrot.slane %v2456_v58, 4  ;;  %v2752_v42 = vld [vmem:[#allocation2 + $0x34] sm:$0xf]  ;;  %v2839_v0 = vrot.slane %v2837_v4, 5 }
  0xd6   : > { %1647 = vst.msk [vmem:[#allocation3 + $0x1d0] sm:$0xf] %vm256_vm0, %v1563_v48  ;;  %v2844_v20 = vrot.slane %v2842_v17, 4  ;;  %v761_v21 = vld [vmem:[#allocation2 + $0x30] sm:$0xf]  ;;  %v10827_v39 = vld [vmem:[%s15029_s1 + $0xa0] sm:$0xff] }
  0xd7   : > { %v1289_v3 = vpop.permute.xlu0 %1288  ;;  %v10769_v24 = vld [vmem:[#allocation3 + $0x150] sm:$0xf0]  ;;  %794 = vst.msk [vmem:[#allocation3 + $0xb4] sm:$0xf] %vm256_vm0, %v762_v9  ;;  %v2460_v16 = vsel %vm11775_vm14, %v2458_v15, %v2459_v52  ;;  %v2350_v28 = vld [vmem:[#allocation2 + $0x24] sm:$0xe]  ;;  %4595 = vmatpush.bf16.msrb.mxu2 %v10827_v39 }
  0xd8   : > { %1367 = vst.msk [vmem:[#allocation3 + $0x168] sm:$0xf] %vm1348_vm11, %v1289_v3  ;;  %v9876_v27 = vor.u32 %v10769_v24, %v9875_v22  ;;  %1722 = vrot.lane.b32.xlu2 %v1657_v32, %s11121_s10  ;;  %v2835_v3 = vrot.slane %v2834_v37, 4  ;;  %v2847_v22 = vrot.slane %v2845_v61, 5  ;;  %v777_v24 = vld [vmem:[#allocation2 + $0x90] sm:$0xf] }
  0xd9   : > { %793 = vst.msk [vmem:[#allocation3 + $0xa0] sm:$0xf] %vm256_vm0, %v761_v21  ;;  %v1659_v33 = vld [vmem:[#allocation2 + $0x1c] sm:$0xf]  ;;  %v2753_v55 = vld [vmem:[#allocation2 + $0x38] sm:$0x1] }
  0xda   : > { %4462 = vmatmul.bf16.vlgmr.msra.gmra.mxu2 %v9876_v27  ;;  %2558 = vrot.lane.b32.xlu1 %v2453_v54, %s11121_s10  ;;  %v1765_v38 = vpop.permute.xlu2 %1764  ;;  %v2848_v62 = vor.u32 %v2847_v22, %v2844_v20  ;;  %809 = vst.msk [vmem:[#allocation3 + $0x1e0] sm:$0xf] %vm256_vm0, %v777_v24  ;;  %v2840_v51 = vsel %vm11345_vm9, %v2835_v3, %v2839_v0  ;;  %v10739_v40 = vld [vmem:[#allocation3 + $0x60] sm:$0xf0]  ;;  %v12048_v10 = vld [vmem:[#allocation2 + $0xa0] sm:$0xf] }
  0xdb   : > { %1838 = vst.msk [vmem:[#allocation3 + $0x1bc] sm:$0xf] %vm1348_vm11, %v1765_v38  ;;  %v2855_v38 = vshrl.u32 %v2752_v42, 16  ;;  %v1420_v44 = vld [vmem:[#allocation2 + $0x9c] sm:$0xe]  ;;  %v1568_v23 = vrot.slane %v1566_v7, 4 }
  0xdc   : > { %v1295_v41 = vpop.permute.xlu1 %1294  ;;  %v9735_v57 = vld [vmem:[#allocation3 + $0x28] sm:$0xf]  ;;  %v2849_v2 = vrot.slane %v2848_v62, 4  ;;  %v1573_v46 = vrot.slane %v12048_v10, 5  ;;  %v2355_v52 = vld [vmem:[#allocation2 + $0x38] sm:$0x1] }
  0xdd   : > { %3179 = vrot.lane.b32.xlu0 %v2816_v34, %s11121_s10  ;;  %1370 = vst.msk [vmem:[#allocation3 + $0x1a4] sm:$0xf] %vm1348_vm11, %v1295_v41  ;;  %v9736_v36 = vor.u32 %v10734_v13, %v9735_v57  ;;  %v12031_v34 = vld [vmem:[#allocation2 + $0x34] sm:$0xf]  ;;  %v2851_v13 = vshll.u32 %v2752_v42, 16  ;;  %v10835_v41 = vld [vmem:[%s15029_s1 + $0xe0] sm:$0xff] }
  0xde   : > { %v9683_v57 = vrot.slane %v2350_v28, 9  ;;  %v2463_v43 = vrot.slane %v12031_v34, 5  ;;  %4684 = vmatpush.bf16.msrb.mxu3 %v10835_v41  ;;  %v2857_v18 = vrot.slane %v2855_v38, 4  ;;  %v780_v4 = vld [vmem:[#allocation2 + $0xa0] sm:$0xf]  ;;  %v2861_v7 = vshll.u32 %v2753_v55, 16 }
  0xdf   : > { %v1759_v11 = vpop.permute.xlu0 %1758  ;;  %4427 = vmatmul.bf16.gmra.mxu0 %v9736_v36  ;;  %v9895_v14 = vld [vmem:[#allocation3 + $0x168] sm:$0xf]  ;;  %v2853_v1 = vrot.slane %v2851_v13, 5  ;;  %812 = vst.msk [vmem:[#allocation3 + $0x21c] sm:$0xf] %vm256_vm0, %v780_v4 }
  0xe0   : > { %1835 = vst.msk [vmem:[#allocation3 + $0x180] sm:$0xf] %vm1348_vm11, %v1759_v11  ;;  %3181 = vrot.lane.b32.xlu2 %v2830_v12, %s11121_s10  ;;  %v9896_v31 = vor.u32 %v10774_v49, %v9895_v14  ;;  %v9678_v11 = vrot.slane %v1420_v44, 9  ;;  %v1419_v12 = vld [vmem:[#allocation2 + $0x98] sm:$0x1]  ;;  %v2457_v14 = vsel %vm11775_vm14, %v9683_v57, %v2456_v58  ;;  %v2465_v49 = vrot.slane %v2463_v43, 4 }
  0xe1   : > { %v1569_v25 = vrot.slane %v1419_v12, 5  ;;  %v2854_v37 = vsel %vm11345_vm9, %v2849_v2, %v2853_v1  ;;  %v2858_v15 = vor.u32 %v2857_v18, %v2853_v1  ;;  %v2755_v35 = vld [vmem:[#allocation2 + $0x40] sm:$0xf]  ;;  %v10777_v20 = vld [vmem:[#allocation3 + $0x194] sm:$0xf]  ;;  %v2863_v21 = vrot.slane %v2861_v7, 5 }
  0xe2   : > { %1724 = vrot.lane.b32.xlu1 %v1658_v45, %s11121_s10  ;;  %v1267_v60 = vpop.permute.xlu2 %1266  ;;  %v1574_v56 = vsel %vm11775_vm14, %v9678_v11, %v1573_v46  ;;  %v763_v22 = vld [vmem:[#allocation2 + $0x3c] sm:$0xf]  ;;  %v1661_v38 = vld [vmem:[#allocation2 + $0x28] sm:$0xf]  ;;  %v2879_v57 = vshrl.u32 %v2755_v35, 16 }
  0xe3   : > { %1356 = vst.msk [vmem:[#allocation3 + $0x8c] sm:$0xf] %vm1348_vm11, %v1267_v60  ;;  %v1570_v8 = vsel %vm11775_vm14, %v1568_v23, %v1569_v25  ;;  %v2754_v60 = vld [vmem:[#allocation2 + $0x3c] sm:$0xf]  ;;  %v2859_v24 = vrot.slane %v2858_v15, 4  ;;  %v1575_v25 = vrot.slane %v1573_v46, 4 }
  0xe4   : > { %v1261_v19 = vpop.permute.xlu1 %1260  ;;  %1650 = vst.msk [vmem:[#allocation3 + $0x20c] sm:$0xf] %vm256_vm0, %v1574_v56  ;;  %v10779_v9 = vld [vmem:[#allocation3 + $0x1a0] sm:$0xf0]  ;;  %v2866_v61 = vshrl.u32 %v2754_v60, 16  ;;  %v2869_v58 = vshll.u32 %v2754_v60, 16 }
  0xe5   : > { %1353 = vst.msk [vmem:[#allocation3 + $0x50] sm:$0xf] %vm1348_vm11, %v1261_v19  ;;  %2556 = vrot.lane.b32.xlu0 %v2450_v47, %s11121_s10  ;;  %v1660_v47 = vld [vmem:[#allocation2 + $0x24] sm:$0xf]  ;;  %v2466_v19 = vrot.slane %v2355_v52, 5  ;;  %v2864_v39 = vsel %vm11345_vm9, %v2859_v24, %v2863_v21  ;;  %v10834_v44 = vld [vmem:[%s15029_s1 + $0xd8] sm:$0xff] }
  0xe6   : > { %1649 = vst.msk [vmem:[#allocation3 + $0x1f8] sm:$0xf] %vm256_vm0, %v1570_v8  ;;  %v2868_v3 = vrot.slane %v2866_v61, 4  ;;  %v1423_v1 = vld [vmem:[#allocation2 + $0xa8] sm:$0xe]  ;;  %4685 = vmatpush.bf16.msrb.mxu3 %v10834_v44 }
  0xe7   : > { %v1293_v54 = vpop.permute.xlu0 %1292  ;;  %v9897_v27 = vld [vmem:[#allocation3 + $0x17c] sm:$0xf0]  ;;  %795 = vst.msk [vmem:[#allocation3 + $0xc8] sm:$0xf] %vm256_vm0, %v763_v22  ;;  %v2756_v11 = vld [vmem:[#allocation2 + $0x44] sm:$0x1] }
  0xe8   : > { %1369 = vst.msk [vmem:[#allocation3 + $0x190] sm:$0xf] %vm1348_vm11, %v1293_v54  ;;  %v9900_v32 = vor.u32 %v10772_v26, %v9897_v27  ;;  %1726 = vrot.lane.b32.xlu2 %v1659_v33, %s11121_s10  ;;  %v764_v26 = vld [vmem:[#allocation2 + $0x40] sm:$0xf]  ;;  %v2871_v54 = vrot.slane %v2869_v58, 5  ;;  %v2885_v46 = vshll.u32 %v2756_v11, 16 }
  0xe9   : > { %796 = vst.msk [vmem:[#allocation3 + $0xdc] sm:$0xf] %vm256_vm0, %v764_v26  ;;  %v779_v27 = vld [vmem:[#allocation2 + $0x9c] sm:$0xf]  ;;  %v12081_v33 = vld [vmem:[#allocation2 + $0x40] sm:$0xf] }
  0xea   : > { %4467 = vmatmul.bf16.gmra.mxu2 %v9896_v31  ;;  %4556 = vmatmul.bf16.gmra.mxu3 %v9900_v32  ;;  %v1769_v30 = vpop.permute.xlu2 %1768  ;;  %v2467_v31 = vsel %vm11775_vm14, %v2465_v49, %v2466_v19  ;;  %v2353_v32 = vld [vmem:[#allocation2 + $0x30] sm:$0xe]  ;;  %811 = vst.msk [vmem:[#allocation3 + $0x208] sm:$0xf] %vm256_vm0, %v779_v27  ;;  %v10744_v41 = vld [vmem:[#allocation3 + $0x88] sm:$0xf0] }
  0xeb   : > { %2562 = vrot.lane.b32.xlu1 %v2460_v16, %s11121_s10  ;;  %1840 = vst.msk [vmem:[#allocation3 + $0x1e4] sm:$0xf] %vm1348_vm11, %v1769_v30  ;;  %v10826_v30 = vld [vmem:[%s15029_s1 + $0x98] sm:$0xff]  ;;  %v12098_v12 = vld [vmem:[#allocation2 + $0xac] sm:$0xf]  ;;  %v2887_v24 = vrot.slane %v2885_v46, 5 }
  0xec   : > { %v1299_v45 = vpop.permute.xlu1 %1298  ;;  %v9755_v36 = vld [vmem:[#allocation3 + $0x50] sm:$0xf]  ;;  %4596 = vmatpush.bf16.msrb.mxu2 %v10826_v30  ;;  %v1580_v52 = vrot.slane %v12098_v12, 5  ;;  %v782_v56 = vld [vmem:[#allocation2 + $0xac] sm:$0xf] }
  0xed   : > { %1372 = vst.msk [vmem:[#allocation3 + $0x1cc] sm:$0xf] %vm1348_vm11, %v1299_v45  ;;  %3183 = vrot.lane.b32.xlu0 %v2840_v51, %s11121_s10  ;;  %v9756_v63 = vor.u32 %v10739_v40, %v9755_v36  ;;  %v2875_v51 = vshll.u32 %v2755_v35, 16  ;;  %v2872_v40 = vor.u32 %v2871_v54, %v2868_v3  ;;  %v9684_v45 = vrot.slane %v2353_v32, 9  ;;  %v1422_v7 = vld [vmem:[#allocation2 + $0xa4] sm:$0x1] }
  0xee   : > { %v2470_v36 = vrot.slane %v12081_v33, 5  ;;  %814 = vst.msk [vmem:[#allocation3 + $0x244] sm:$0xf] %vm256_vm0, %v782_v56  ;;  %v1576_v8 = vrot.slane %v1422_v7, 5  ;;  %v2358_v49 = vld [vmem:[#allocation2 + $0x44] sm:$0x1] }
  0xef   : > { %v1763_v48 = vpop.permute.xlu0 %1762  ;;  %4432 = vmatmul.bf16.gmra.mxu0 %v9756_v63  ;;  %v9915_v17 = vld [vmem:[#allocation3 + $0x190] sm:$0xf]  ;;  %v2877_v23 = vrot.slane %v2875_v51, 5  ;;  %v2873_v18 = vrot.slane %v2872_v40, 4  ;;  %v2473_v35 = vrot.slane %v2358_v49, 5 }
  0xf0   : > { %1837 = vst.msk [vmem:[#allocation3 + $0x1a8] sm:$0xf] %vm1348_vm11, %v1763_v48  ;;  %3185 = vrot.lane.b32.xlu2 %v2854_v37, %s11121_s10  ;;  %v9916_v13 = vor.u32 %v10779_v9, %v9915_v17  ;;  %v9679_v48 = vrot.slane %v1423_v1, 9  ;;  %v1577_v60 = vsel %vm11775_vm14, %v1575_v25, %v1576_v8  ;;  %v10840_v17 = vld [vmem:[%s15029_s1 + $0x108] sm:$0xff]  ;;  %v2464_v9 = vsel %vm11775_vm14, %v9684_v45, %v2463_v43  ;;  %v10782_v22 = vld [vmem:[#allocation3 + $0x1bc] sm:$0xf] }
  0xf1   : > { %v2878_v15 = vsel %vm11345_vm9, %v2873_v18, %v2877_v23  ;;  %v2472_v19 = vrot.slane %v2470_v36, 4  ;;  %1651 = vst.msk [vmem:[#allocation3 + $0x220] sm:$0xf] %vm256_vm0, %v1577_v60  ;;  %v2757_v61 = vld [vmem:[#allocation2 + $0x48] sm:$0xf]  ;;  %4776 = vmatpush.bf16.msrb.mxu0 %v10840_v17  ;;  %v10825_v1 = vld [vmem:[%s15029_s1 + $0x90] sm:$0xff] }
  0xf2   : > { %v1271_v42 = vpop.permute.xlu2 %1270  ;;  %v1581_v10 = vsel %vm11775_vm14, %v9679_v48, %v1580_v52  ;;  %v766_v21 = vld [vmem:[#allocation2 + $0x4c] sm:$0xf]  ;;  %v2893_v3 = vshll.u32 %v2757_v61, 16  ;;  %v765_v27 = vld [vmem:[#allocation2 + $0x48] sm:$0xf]  ;;  %4597 = vmatpush.bf16.msrb.mxu2 %v10825_v1 }
  0xf3   : > { %1728 = vrot.lane.b32.xlu1 %v1660_v47, %s11121_s10  ;;  %1358 = vst.msk [vmem:[#allocation3 + $0xb4] sm:$0xf] %vm1348_vm11, %v1271_v42  ;;  %v2881_v47 = vrot.slane %v2879_v57, 4  ;;  %v2758_v43 = vld [vmem:[#allocation2 + $0x4c] sm:$0xf] }
  0xf4   : > { %v1265_v0 = vpop.permute.xlu1 %1264  ;;  %1652 = vst.msk [vmem:[#allocation3 + $0x234] sm:$0xf] %vm256_vm0, %v1581_v10  ;;  %v2356_v51 = vld [vmem:[#allocation2 + $0x3c] sm:$0xe]  ;;  %v1663_v30 = vld [vmem:[#allocation2 + $0x34] sm:$0xf] }
  0xf5   : > { %1355 = vst.msk [vmem:[#allocation3 + $0x78] sm:$0xf] %vm1348_vm11, %v1265_v0  ;;  %2560 = vrot.lane.b32.xlu0 %v2457_v14, %s11121_s10  ;;  %v1662_v14 = vld [vmem:[#allocation2 + $0x30] sm:$0xf]  ;;  %v2882_v42 = vor.u32 %v2881_v47, %v2877_v23  ;;  %v10784_v0 = vld [vmem:[#allocation3 + $0x1c8] sm:$0xf0] }
  0xf6   : > { %798 = vst.msk [vmem:[#allocation3 + $0x104] sm:$0xf] %vm256_vm0, %v766_v21  ;;  %v1426_v18 = vld [vmem:[#allocation2 + $0xb4] sm:$0xe]  ;;  %v2759_v25 = vld [vmem:[#allocation2 + $0x50] sm:$0x1] }
  0xf7   : > { %v1297_v16 = vpop.permute.xlu0 %1296  ;;  %v9917_v28 = vld [vmem:[#allocation3 + $0x1a4] sm:$0xf0]  ;;  %797 = vst.msk [vmem:[#allocation3 + $0xf0] sm:$0xf] %vm256_vm0, %v765_v27  ;;  %v9680_v8 = vrot.slane %v1426_v18, 9  ;;  %v10824_v18 = vld [vmem:[%s15029_s1 + $0x88] sm:$0xff] }
  0xf8   : > { %1371 = vst.msk [vmem:[#allocation3 + $0x1b8] sm:$0xf] %vm1348_vm11, %v1297_v16  ;;  %v9920_v62 = vor.u32 %v10777_v20, %v9917_v28  ;;  %1730 = vrot.lane.b32.xlu2 %v1661_v38, %s11121_s10  ;;  %v2890_v20 = vshrl.u32 %v2757_v61, 16  ;;  %v2883_v16 = vrot.slane %v2882_v42, 4  ;;  %v2895_v28 = vrot.slane %v2893_v3, 5  ;;  %4598 = vmatpush.bf16.msrb.mxu2 %v10824_v18 }
  0xf9   : > { %v784_v46 = vld [vmem:[#allocation2 + $0xb8] sm:$0xf]  ;;  %v1665_v1 = vld [vmem:[#allocation2 + $0x40] sm:$0xf] }
  0xfa   : > { %4472 = vmatmul.bf16.gmra.mxu2 %v9916_v13  ;;  %4561 = vmatmul.bf16.gmra.mxu3 %v9920_v62  ;;  %v1773_v55 = vpop.permute.xlu2 %1772  ;;  %v2892_v54 = vrot.slane %v2890_v20, 4  ;;  %v2474_v62 = vsel %vm11775_vm14, %v2472_v19, %v2473_v35  ;;  %v2888_v44 = vsel %vm11345_vm9, %v2883_v16, %v2887_v24  ;;  %v10749_v45 = vld [vmem:[#allocation3 + $0xb0] sm:$0xf0]  ;;  %816 = vst.msk [vmem:[#allocation3 + $0x26c] sm:$0xf] %vm256_vm0, %v784_v46 }
  0xfb   : > { %2566 = vrot.lane.b32.xlu1 %v2467_v31, %s11121_s10  ;;  %1842 = vst.msk [vmem:[#allocation3 + $0x20c] sm:$0xf] %vm1348_vm11, %v1773_v55  ;;  %v781_v31 = vld [vmem:[#allocation2 + $0xa8] sm:$0xf]  ;;  %v2903_v55 = vshrl.u32 %v2758_v43, 16 }
  0xfc   : > { %v1303_v2 = vpop.permute.xlu1 %1302  ;;  %v9775_v63 = vld [vmem:[#allocation3 + $0x78] sm:$0xf]  ;;  %v2896_v57 = vor.u32 %v2895_v28, %v2892_v54  ;;  %813 = vst.msk [vmem:[#allocation3 + $0x230] sm:$0xf] %vm256_vm0, %v781_v31  ;;  %v2761_v33 = vld [vmem:[#allocation2 + $0x58] sm:$0xf] }
  0xfd   : > { %1374 = vst.msk [vmem:[#allocation3 + $0x1f4] sm:$0xf] %vm1348_vm11, %v1303_v2  ;;  %3187 = vrot.lane.b32.xlu0 %v2864_v39, %s11121_s10  ;;  %v9776_v4 = vor.u32 %v10744_v41, %v9775_v63  ;;  %v12134_v39 = vld [vmem:[#allocation2 + $0x4c] sm:$0xf]  ;;  %v2899_v41 = vshll.u32 %v2758_v43, 16  ;;  %v10833_v2 = vld [vmem:[%s15029_s1 + $0xd0] sm:$0xff] }
  0xfe   : > { %v9685_v63 = vrot.slane %v2356_v51, 9  ;;  %v2477_v11 = vrot.slane %v12134_v39, 5  ;;  %v2897_v56 = vrot.slane %v2896_v57, 4  ;;  %4686 = vmatpush.bf16.msrb.mxu3 %v10833_v2  ;;  %v2905_v49 = vrot.slane %v2903_v55, 4  ;;  %v2361_v19 = vld [vmem:[#allocation2 + $0x50] sm:$0x1] }
  0xff   : > { %v1767_v37 = vpop.permute.xlu0 %1766  ;;  %4437 = vmatmul.bf16.gmra.mxu0 %v9776_v4  ;;  %v9935_v26 = vld [vmem:[#allocation3 + $0x1b8] sm:$0xf]  ;;  %v2901_v47 = vrot.slane %v2899_v41, 5  ;;  %v10787_v54 = vld [vmem:[#allocation3 + $0x1e4] sm:$0xf]  ;;  %v2923_v41 = vshll.u32 %v2761_v33, 16 }
 0x100   : > { %1839 = vst.msk [vmem:[#allocation3 + $0x1d0] sm:$0xf] %vm1348_vm11, %v1767_v37  ;;  %3189 = vrot.lane.b32.xlu2 %v2878_v15, %s11121_s10  ;;  %v9936_v40 = vor.u32 %v10784_v0, %v9935_v26  ;;  %v12151_v37 = vld [vmem:[#allocation2 + $0xb8] sm:$0xf]  ;;  %v1425_v15 = vld [vmem:[#allocation2 + $0xb0] sm:$0x1]  ;;  %v2471_v26 = vsel %vm11775_vm14, %v9685_v63, %v2470_v36 }
 0x101   : > { %v1587_v10 = vrot.slane %v12151_v37, 5  ;;  %v1583_v17 = vrot.slane %v1425_v15, 5  ;;  %v2902_v42 = vsel %vm11345_vm9, %v2897_v56, %v2901_v47  ;;  %v2479_v0 = vrot.slane %v2477_v11, 4  ;;  %v12179_v16 = vld [vmem:[#allocation2 + $0x48] sm:$0xe] }
 0x102   : > { %v1275_v58 = vpop.permute.xlu2 %1274  ;;  %v2906_v35 = vor.u32 %v2905_v49, %v2901_v47  ;;  %v767_v31 = vld [vmem:[#allocation2 + $0x54] sm:$0xf]  ;;  %v2925_v47 = vrot.slane %v2923_v41, 5  ;;  %v2681_v56 = vld [vmem:[#allocation2 + $0x18] sm:$0xf] }
 0x103   : > { %1732 = vrot.lane.b32.xlu1 %v1662_v14, %s11121_s10  ;;  %1360 = vst.msk [vmem:[#allocation3 + $0xdc] sm:$0xf] %vm1348_vm11, %v1275_v58  ;;  %v1582_v14 = vrot.slane %v1580_v52, 4  ;;  %v1588_v12 = vsel %vm11775_vm14, %v9680_v8, %v1587_v10  ;;  %v2909_v52 = vshll.u32 %v2759_v25, 16  ;;  %v2760_v58 = vld [vmem:[#allocation2 + $0x54] sm:$0xf] }
 0x104   : > { %v1269_v34 = vpop.permute.xlu1 %1268  ;;  %1654 = vst.msk [vmem:[#allocation3 + $0x25c] sm:$0xf] %vm256_vm0, %v1588_v12  ;;  %v10789_v21 = vld [vmem:[#allocation3 + $0x1f0] sm:$0xf0]  ;;  %v2914_v3 = vshrl.u32 %v2760_v58, 16  ;;  %v2917_v36 = vshll.u32 %v2760_v58, 16 }
 0x105   : > { %1357 = vst.msk [vmem:[#allocation3 + $0xa0] sm:$0xf] %vm1348_vm11, %v1269_v34  ;;  %2564 = vrot.lane.b32.xlu0 %v2464_v9, %s11121_s10  ;;  %v1664_v9 = vld [vmem:[#allocation2 + $0x3c] sm:$0xf]  ;;  %v1584_v61 = vsel %vm11775_vm14, %v1582_v14, %v1583_v17  ;;  %v2480_v34 = vrot.slane %v2361_v19, 5  ;;  %v2911_v27 = vrot.slane %v2909_v52, 5 }
 0x106   : > { %1653 = vst.msk [vmem:[#allocation3 + $0x248] sm:$0xf] %vm256_vm0, %v1584_v61  ;;  %v2916_v28 = vrot.slane %v2914_v3, 4  ;;  %v2762_v25 = vld [vmem:[#allocation2 + $0x5c] sm:$0x1] }
 0x107   : > { %v1301_v32 = vpop.permute.xlu0 %1300  ;;  %v9937_v13 = vld [vmem:[#allocation3 + $0x1cc] sm:$0xf0]  ;;  %799 = vst.msk [vmem:[#allocation3 + $0x118] sm:$0xf] %vm256_vm0, %v767_v31  ;;  %v12201_v14 = vld [vmem:[#allocation2 + $0x5c] sm:$0x1] }
 0x108   : > { %1373 = vst.msk [vmem:[#allocation3 + $0x1e0] sm:$0xf] %vm1348_vm11, %v1301_v32  ;;  %v9940_v38 = vor.u32 %v10782_v22, %v9937_v13  ;;  %1734 = vrot.lane.b32.xlu2 %v1663_v30, %s11121_s10  ;;  %v768_v22 = vld [vmem:[#allocation2 + $0x58] sm:$0xf]  ;;  %v2907_v32 = vrot.slane %v2906_v35, 4  ;;  %v2919_v13 = vrot.slane %v2917_v36, 5 }
 0x109   : > { %800 = vst.msk [vmem:[#allocation3 + $0x12c] sm:$0xf] %vm256_vm0, %v768_v22  ;;  %v1849_v17 = vld [vmem:[#allocation2 + $0x10] sm:$0xf]  ;;  %v2933_v19 = vshll.u32 %v2762_v25, 16  ;;  %v1589_v35 = vrot.slane %v1587_v10, 4 }
 0x10a   : > { %4477 = vmatmul.bf16.gmra.mxu2 %v9936_v40  ;;  %4566 = vmatmul.bf16.gmra.mxu3 %v9940_v38  ;;  %v1777_v23 = vpop.permute.xlu2 %1776  ;;  %v2481_v38 = vsel %vm11775_vm14, %v2479_v0, %v2480_v34  ;;  %v2920_v55 = vor.u32 %v2919_v13, %v2916_v28  ;;  %v2912_v2 = vsel %vm11345_vm9, %v2907_v32, %v2911_v27  ;;  %v10754_v63 = vld [vmem:[#allocation3 + $0xd8] sm:$0xf0]  ;;  %v1906_v12 = vshll.u32 %v1849_v17, 16  ;;  %v1428_v0 = vld [vmem:[#allocation2 + $0xbc] sm:$0x1]  ;;  %v10839_v34 = vld [vmem:[%s15029_s1 + $0x100] sm:$0xff] }
 0x10b   : > { %2570 = vrot.lane.b32.xlu1 %v2474_v62, %s11121_s10  ;;  %1844 = vst.msk [vmem:[#allocation3 + $0x234] sm:$0xf] %vm1348_vm11, %v1777_v23  ;;  %v783_v62 = vld [vmem:[#allocation2 + $0xb4] sm:$0xf]  ;;  %v9686_v23 = vrot.slane %v12179_v16, 9  ;;  %v1910_v52 = vshrl.u32 %v1849_v17, 16  ;;  %4777 = vmatpush.bf16.msrb.mxu0 %v10839_v34 }
 0x10c   : > { %v1307_v4 = vpop.permute.xlu1 %1306  ;;  %v9795_v48 = vld [vmem:[#allocation3 + $0xa0] sm:$0xf]  ;;  %815 = vst.msk [vmem:[#allocation3 + $0x258] sm:$0xf] %vm256_vm0, %v783_v62  ;;  %v2921_v15 = vrot.slane %v2920_v55, 4  ;;  %v2487_v3 = vrot.slane %v12201_v14, 5 }
 0x10d   : > { %1376 = vst.msk [vmem:[#allocation3 + $0x21c] sm:$0xf] %vm1348_vm11, %v1307_v4  ;;  %3191 = vrot.lane.b32.xlu0 %v2888_v44, %s11121_s10  ;;  %v9796_v7 = vor.u32 %v10749_v45, %v9795_v48  ;;  %v12186_v44 = vld [vmem:[#allocation2 + $0x58] sm:$0xf]  ;;  %v2927_v45 = vshrl.u32 %v2761_v33, 16  ;;  %v10832_v4 = vld [vmem:[%s15029_s1 + $0xc8] sm:$0xff]  ;;  %v2478_v10 = vsel %vm11775_vm14, %v9686_v23, %v2477_v11 }
 0x10e   : > { %v2484_v48 = vrot.slane %v12186_v44, 5  ;;  %2713 = vst.msk [vmem:[#allocation3 + $0xc] sm:$0xf] %vm256_vm0, %v2681_v56  ;;  %4687 = vmatpush.bf16.msrb.mxu3 %v10832_v4  ;;  %v2926_v22 = vsel %vm11345_vm9, %v2921_v15, %v2925_v47  ;;  %v1590_v37 = vrot.slane %v1428_v0, 5  ;;  %v12224_v33 = vrot.slane %v2933_v19, 5 }
 0x10f   : > { %v1771_v60 = vpop.permute.xlu0 %1770  ;;  %4442 = vmatmul.bf16.gmra.mxu0 %v9796_v7  ;;  %v9955_v20 = vld [vmem:[#allocation3 + $0x1e0] sm:$0xf]  ;;  %v2929_v46 = vrot.slane %v2927_v45, 4  ;;  %v2763_v27 = vld [vmem:[#allocation2 + $0x60] sm:$0xf] }
 0x110   : > { %1841 = vst.msk [vmem:[#allocation3 + $0x1f8] sm:$0xf] %vm1348_vm11, %v1771_v60  ;;  %3193 = vrot.lane.b32.xlu2 %v2902_v42, %s11121_s10  ;;  %v9956_v57 = vor.u32 %v10789_v21, %v9955_v20  ;;  %v12210_v20 = vrot.slane %v1906_v12, 5  ;;  %v1912_v21 = vrot.slane %v1910_v52, 4  ;;  %v12228_v16 = vld [vmem:[#allocation2 + $0x54] sm:$0xe]  ;;  %v1591_v28 = vsel %vm11775_vm14, %v1589_v35, %v1590_v37 }
 0x111   : > { %v2930_v58 = vor.u32 %v2929_v46, %v2925_v47  ;;  %v2938_v31 = vshrl.u32 %v2763_v27, 16  ;;  %v2941_v39 = vshll.u32 %v2763_v27, 16  ;;  %v1382_v32 = vld [vmem:[#allocation2 + $0x4] sm:$0xf]  ;;  %1655 = vst.msk [vmem:[#allocation3 + $0x270] sm:$0xf] %vm256_vm0, %v1591_v28 }
 0x112   : > { %v1279_v43 = vpop.permute.xlu2 %1278  ;;  %v1913_v36 = vor.u32 %v1912_v21, %v12210_v20  ;;  %v9687_v45 = vrot.slane %v12228_v16, 9  ;;  %v1667_v46 = vld [vmem:[#allocation2 + $0x4c] sm:$0xf]  ;;  %v12243_v15 = vld [vmem:[#allocation2 + $0x64] sm:$0xf] }
 0x113   : > { %1736 = vrot.lane.b32.xlu1 %v1664_v9, %s11121_s10  ;;  %1362 = vst.msk [vmem:[#allocation3 + $0x104] sm:$0xf] %vm1348_vm11, %v1279_v43  ;;  %v1850_v9 = vld [vmem:[#allocation2 + $0x14] sm:$0x1]  ;;  %v2486_v43 = vrot.slane %v2484_v48, 4  ;;  %v2931_v62 = vrot.slane %v2930_v58, 4 }
 0x114   : > { %v1273_v24 = vpop.permute.xlu1 %1272  ;;  %v1916_v42 = vshll.u32 %v1850_v9, 16  ;;  %v2940_v41 = vrot.slane %v2938_v31, 4  ;;  %v1848_v52 = vld [vmem:[#allocation2 + $0xc] sm:$0xf] }
 0x115   : > { %1359 = vst.msk [vmem:[#allocation3 + $0xc8] sm:$0xf] %vm1348_vm11, %v1273_v24  ;;  %2568 = vrot.lane.b32.xlu0 %v2471_v26, %s11121_s10  ;;  %v1666_v26 = vld [vmem:[#allocation2 + $0x48] sm:$0xf]  ;;  %v10794_v24 = vld [vmem:[#allocation3 + $0x218] sm:$0xf0]  ;;  %v2488_v25 = vsel %vm11775_vm14, %v2486_v43, %v2487_v3  ;;  %v2936_v9 = vsel %vm11345_vm9, %v2931_v62, %v12224_v33 }
 0x116   : > { %v1900_v34 = vshll.u32 %v1848_v52, 16  ;;  %v10831_v43 = vld [vmem:[%s15029_s1 + $0xc0] sm:$0xff]  ;;  %v2367_v33 = vld [vmem:[#allocation2 + $0x68] sm:$0x1] }
 0x117   : > { %v1305_v51 = vpop.permute.xlu0 %1304  ;;  %v9957_v40 = vld [vmem:[#allocation3 + $0x1f4] sm:$0xf0]  ;;  %4688 = vmatpush.bf16.msrb.mxu3 %v10831_v43 }
 0x118   : > { %1375 = vst.msk [vmem:[#allocation3 + $0x208] sm:$0xf] %vm1348_vm11, %v1305_v51  ;;  %v9960_v30 = vor.u32 %v10787_v54, %v9957_v40  ;;  %1738 = vrot.lane.b32.xlu2 %v1665_v1, %s11121_s10  ;;  %v1918_v54 = vrot.slane %v1916_v42, 5  ;;  %v1914_v51 = vrot.slane %v1913_v36, 4  ;;  %v10792_v40 = vld [vmem:[#allocation3 + $0x20c] sm:$0xf] }
 0x119   : > { %v1383_v1 = vld [vmem:[#allocation2 + $0x8] sm:$0x1]  ;;  %v2491_v36 = vrot.slane %v12243_v15, 5  ;;  %v1902_v27 = vrot.slane %v1900_v34, 5 }
 0x11a   : > { %4482 = vmatmul.bf16.gmra.mxu2 %v9956_v57  ;;  %4571 = vmatmul.bf16.gmra.mxu3 %v9960_v30  ;;  %v1781_v49 = vpop.permute.xlu2 %1780  ;;  %v2943_v57 = vrot.slane %v2941_v39, 5  ;;  %v1919_v55 = vsel %vm11345_vm9, %v1914_v51, %v1918_v54  ;;  %v1485_v47 = vrot.slane %v1383_v1, 5  ;;  %v10759_v19 = vld [vmem:[#allocation3 + $0x100] sm:$0xf0]  ;;  %v2765_v42 = vld [vmem:[#allocation2 + $0x68] sm:$0x1] }
 0x11b   : > { %2574 = vrot.lane.b32.xlu1 %v2481_v38, %s11121_s10  ;;  %1846 = vst.msk [vmem:[#allocation3 + $0x25c] sm:$0xf] %vm1348_vm11, %v1781_v49  ;;  %v2764_v38 = vld [vmem:[#allocation2 + $0x64] sm:$0xf]  ;;  %v2957_v31 = vshll.u32 %v2765_v42, 16 }
 0x11c   : > { %v1311_v7 = vpop.permute.xlu1 %1310  ;;  %v9815_v8 = vld [vmem:[#allocation3 + $0xc8] sm:$0xf]  ;;  %v2951_v14 = vshrl.u32 %v2764_v38, 16  ;;  %2313 = vst.msk [vmem:[#allocation3 + $0x1c] sm:$0xf] %vm256_vm0, %v1919_v55 }
 0x11d   : > { %1378 = vst.msk [vmem:[#allocation3 + $0x244] sm:$0xf] %vm1348_vm11, %v1311_v7  ;;  %3195 = vrot.lane.b32.xlu0 %v2912_v2, %s11121_s10  ;;  %v9816_v60 = vor.u32 %v10754_v63, %v9815_v8  ;;  %v1482_v2 = vrot.slane %v1382_v32, 5  ;;  %v1381_v63 = vld [vmem:[#allocation2] sm:$0xe]  ;;  %v2947_v8 = vshll.u32 %v2764_v38, 16 }
 0x11e   : > { %v9665_v56 = vrot.slane %v1381_v63, 9  ;;  %v2953_v21 = vrot.slane %v2951_v14, 4  ;;  %v1852_v39 = vld [vmem:[#allocation2 + $0x1c] sm:$0xf]  ;;  %v2494_v63 = vrot.slane %v2367_v33, 5  ;;  %v2959_v16 = vrot.slane %v2957_v31, 5 }
 0x11f   : > { %v1775_v61 = vpop.permute.xlu0 %1774  ;;  %4447 = vmatmul.bf16.gmra.mxu0 %v9816_v60  ;;  %v9975_v11 = vld [vmem:[#allocation3 + $0x208] sm:$0xf]  ;;  %v1484_v49 = vrot.slane %v1482_v2, 4  ;;  %v2944_v60 = vor.u32 %v2943_v57, %v2940_v41  ;;  %v2949_v58 = vrot.slane %v2947_v8, 5  ;;  %v1930_v62 = vshll.u32 %v1852_v39, 16 }
 0x120   : > { %1843 = vst.msk [vmem:[#allocation3 + $0x220] sm:$0xf] %vm1348_vm11, %v1775_v61  ;;  %3197 = vrot.lane.b32.xlu2 %v2926_v22, %s11121_s10  ;;  %v9976_v18 = vor.u32 %v10794_v24, %v9975_v11  ;;  %v1483_v17 = vsel %vm11775_vm14, %v9665_v56, %v1482_v2  ;;  %v1897_v61 = vshrl.u32 %v1848_v52, 16  ;;  %v1668_v24 = vld [vmem:[#allocation2 + $0x54] sm:$0xf]  ;;  %v1934_v51 = vshrl.u32 %v1852_v39, 16 }
 0x121   : > { %v1486_v12 = vsel %vm11775_vm14, %v1484_v49, %v1485_v47  ;;  %1624 = vst.msk [vmem:[#allocation3 + $0x4] sm:$0xf] %vm256_vm0, %v1483_v17  ;;  %v2945_v22 = vrot.slane %v2944_v60, 4  ;;  %v2954_v32 = vor.u32 %v2953_v21, %v2949_v58  ;;  %v1853_v11 = vld [vmem:[#allocation2 + $0x20] sm:$0x1]  ;;  %v2493_v57 = vrot.slane %v2491_v36, 4 }
 0x122   : > { %v1283_v30 = vpop.permute.xlu2 %1282  ;;  %1625 = vst.msk [vmem:[#allocation3 + $0x18] sm:$0xf] %vm256_vm0, %v1486_v12  ;;  %v1899_v37 = vrot.slane %v1897_v61, 4  ;;  %v1940_v41 = vshll.u32 %v1853_v11, 16  ;;  %v12279_v55 = vrot.slane %v1930_v62, 5  ;;  %v1936_v1 = vrot.slane %v1934_v51, 4 }
 0x123   : > { %1740 = vrot.lane.b32.xlu1 %v1666_v26, %s11121_s10  ;;  %1364 = vst.msk [vmem:[#allocation3 + $0x12c] sm:$0xf] %vm1348_vm11, %v1283_v30  ;;  %v10823_v26 = vld [vmem:[%s15029_s1 + $0x80] sm:$0xff]  ;;  %v2950_v38 = vsel %vm11345_vm9, %v2945_v22, %v2949_v58  ;;  %v2682_v2 = vld [vmem:[#allocation2 + $0x1c] sm:$0xf] }
 0x124   : > { %v1277_v13 = vpop.permute.xlu1 %1276  ;;  %4599 = vmatpush.bf16.msrb.mxu2 %v10823_v26  ;;  %v10799_v44 = vld [vmem:[#allocation3 + $0x240] sm:$0xf0]  ;;  %2714 = vst.msk [vmem:[#allocation3 + $0x20] sm:$0xf] %vm256_vm0, %v2682_v2  ;;  %v2766_v47 = vld [vmem:[#allocation2 + $0x6c] sm:$0xf] }
 0x125   : > { %1361 = vst.msk [vmem:[#allocation3 + $0xf0] sm:$0xf] %vm1348_vm11, %v1277_v13  ;;  %2572 = vrot.lane.b32.xlu0 %v2478_v10, %s11121_s10  ;;  %v2683_v10 = vld [vmem:[#allocation2 + $0x24] sm:$0xf]  ;;  %v1903_v13 = vor.u32 %v1902_v27, %v1899_v37  ;;  %v10797_v56 = vld [vmem:[#allocation3 + $0x234] sm:$0xf] }
 0x126   : > { %2715 = vst.msk [vmem:[#allocation3 + $0x34] sm:$0xf] %vm256_vm0, %v2683_v10  ;;  %v2962_v8 = vshrl.u32 %v2766_v47, 16  ;;  %v2965_v14 = vshll.u32 %v2766_v47, 16  ;;  %v1385_v60 = vld [vmem:[#allocation2 + $0x10] sm:$0xf] }
 0x127   : > { %v1309_v23 = vpop.permute.xlu0 %1308  ;;  %v9977_v4 = vld [vmem:[#allocation3 + $0x21c] sm:$0xf0]  ;;  %v1904_v30 = vrot.slane %v1903_v13, 4  ;;  %v1489_v58 = vrot.slane %v1385_v60, 5  ;;  %v12307_v13 = vld [vmem:[#allocation2 + $0x70] sm:$0xf] }
 0x128   : > { %1377 = vst.msk [vmem:[#allocation3 + $0x230] sm:$0xf] %vm1348_vm11, %v1309_v23  ;;  %v9980_v7 = vor.u32 %v10792_v40, %v9977_v4  ;;  %1742 = vrot.lane.b32.xlu2 %v1667_v46, %s11121_s10  ;;  %v2485_v40 = vsel %vm11775_vm14, %v9687_v45, %v2484_v48  ;;  %v2955_v23 = vrot.slane %v2954_v32, 4  ;;  %v1937_v4 = vor.u32 %v1936_v1, %v12279_v55  ;;  %v1669_v12 = vld [vmem:[#allocation2 + $0x58] sm:$0xf] }
 0x129   : > { %v2964_v52 = vrot.slane %v2962_v8, 4  ;;  %v2967_v42 = vrot.slane %v2965_v14, 5  ;;  %v1851_v27 = vld [vmem:[#allocation2 + $0x18] sm:$0xf] }
 0x12a   : > { %4487 = vmatmul.bf16.gmra.mxu2 %v9976_v18  ;;  %4576 = vmatmul.bf16.gmra.mxu3 %v9980_v7  ;;  %v3178_v54 = vpop.permute.xlu2 %3177  ;;  %v1909_v18 = vsel %vm11345_vm9, %v1904_v30, %v12210_v20  ;;  %v2767_v7 = vld [vmem:[#allocation2 + $0x70] sm:$0xf]  ;;  %v1938_v46 = vrot.slane %v1937_v4, 4  ;;  %v2495_v20 = vsel %vm11775_vm14, %v2493_v57, %v2494_v63  ;;  %v2960_v21 = vsel %vm11345_vm9, %v2955_v23, %v2959_v16  ;;  %v10764_v22 = vld [vmem:[#allocation3 + $0x128] sm:$0xf0] }
 0x12b   : > { %2578 = vrot.lane.b32.xlu1 %v2488_v25, %s11121_s10  ;;  %3273 = vst.msk [vmem:[#allocation3 + $0xc] sm:$0xf] %vm1348_vm11, %v3178_v54  ;;  %v1942_v25 = vrot.slane %v1940_v41, 5  ;;  %v2968_v34 = vor.u32 %v2967_v42, %v2964_v52  ;;  %v2971_v37 = vshll.u32 %v2767_v7, 16  ;;  %v2975_v10 = vshrl.u32 %v2767_v7, 16 }
 0x12c   : > { %v1315_v0 = vpop.permute.xlu1 %1314  ;;  %v9835_v35 = vld [vmem:[#allocation3 + $0xf0] sm:$0xf]  ;;  %2312 = vst.msk [vmem:[#allocation3 + $0x8] sm:$0xf] %vm256_vm0, %v1909_v18  ;;  %v2768_v54 = vld [vmem:[#allocation2 + $0x74] sm:$0x1] }
 0x12d   : > { %1380 = vst.msk [vmem:[#allocation3 + $0x26c] sm:$0xf] %vm1348_vm11, %v1315_v0  ;;  %3199 = vrot.lane.b32.xlu0 %v2936_v9, %s11121_s10  ;;  %v9836_v3 = vor.u32 %v10759_v19, %v9835_v35  ;;  %v12294_v19 = vld [vmem:[#allocation2 + $0x60] sm:$0xe]  ;;  %v1943_v0 = vsel %vm11345_vm9, %v1938_v46, %v1942_v25  ;;  %v1386_v35 = vld [vmem:[#allocation2 + $0x14] sm:$0x1] }
 0x12e   : > { %2315 = vst.msk [vmem:[#allocation3 + $0x44] sm:$0xf] %vm256_vm0, %v1943_v0  ;;  %v1492_v43 = vrot.slane %v1386_v35, 5  ;;  %v9688_v39 = vrot.slane %v12294_v19, 9  ;;  %v1921_v11 = vshrl.u32 %v1851_v27, 16  ;;  %v2969_v51 = vrot.slane %v2968_v34, 4 }
 0x12f   : > { %v1779_v28 = vpop.permute.xlu0 %1778  ;;  %4452 = vmatmul.bf16.gmra.mxu0 %v9836_v3  ;;  %v9995_v45 = vld [vmem:[#allocation3 + $0x230] sm:$0xf]  ;;  %v1384_v3 = vld [vmem:[#allocation2 + $0xc] sm:$0xe]  ;;  %v1670_v41 = vld [vmem:[#allocation2 + $0x60] sm:$0xf] }
 0x130   : > { %1845 = vst.msk [vmem:[#allocation3 + $0x248] sm:$0xf] %vm1348_vm11, %v1779_v28  ;;  %3201 = vrot.lane.b32.xlu2 %v2950_v38, %s11121_s10  ;;  %v9996_v61 = vor.u32 %v10799_v44, %v9995_v45  ;;  %v9666_v33 = vrot.slane %v1384_v3, 9  ;;  %v3305_v38 = vld [vmem:[#allocation2 + $0x18] sm:$0xe]  ;;  %v2973_v30 = vrot.slane %v2971_v37, 5  ;;  %v2492_v14 = vsel %vm11775_vm14, %v9688_v39, %v2491_v36 }
 0x131   : > { %v2977_v1 = vrot.slane %v2975_v10, 4  ;;  %v1923_v44 = vrot.slane %v1921_v11, 4  ;;  %v2981_v16 = vshll.u32 %v2768_v54, 16  ;;  %v9697_v23 = vrot.slane %v3305_v38, 9  ;;  %v3306_v18 = vld [vmem:[#allocation2 + $0x1c] sm:$0xf] }
 0x132   : > { %v1723_v49 = vpop.permute.xlu2 %1722  ;;  %v1490_v2 = vsel %vm11775_vm14, %v9666_v33, %v1489_v58  ;;  %v3307_v4 = vld [vmem:[#allocation2 + $0x20] sm:$0x1]  ;;  %v2974_v25 = vsel %vm11345_vm9, %v2969_v51, %v2973_v30  ;;  %v2370_v7 = vld [vmem:[#allocation2 + $0x74] sm:$0x1]  ;;  %v1856_v42 = vld [vmem:[#allocation2 + $0x2c] sm:$0x1] }
 0x133   : > { %1744 = vrot.lane.b32.xlu1 %v1668_v24, %s11121_s10  ;;  %1817 = vst.msk [vmem:[#allocation3 + $0x18] sm:$0xf] %vm1348_vm11, %v1723_v49  ;;  %v1491_v24 = vrot.slane %v1489_v58, 4  ;;  %v2978_v46 = vor.u32 %v2977_v1, %v2973_v30  ;;  %v3406_v60 = vrot.slane %v3307_v4, 5  ;;  %v10802_v0 = vld [vmem:[#allocation3 + $0x25c] sm:$0xf] }
 0x134   : > { %v1281_v48 = vpop.permute.xlu1 %1280  ;;  %1626 = vst.msk [vmem:[#allocation3 + $0x2c] sm:$0xf] %vm256_vm0, %v1490_v2  ;;  %v10804_v49 = vld [vmem:[#allocation3 + $0x268] sm:$0xf0]  ;;  %v2983_v35 = vrot.slane %v2981_v16, 5 }
 0x135   : > { %1363 = vst.msk [vmem:[#allocation3 + $0x118] sm:$0xf] %vm1348_vm11, %v1281_v48  ;;  %2576 = vrot.lane.b32.xlu0 %v2485_v40, %s11121_s10  ;;  %v1493_v32 = vsel %vm11775_vm14, %v1491_v24, %v1492_v43  ;;  %v1924_v40 = vshll.u32 %v1851_v27, 16  ;;  %v2498_v48 = vrot.slane %v12307_v13, 5  ;;  %v2770_v34 = vld [vmem:[#allocation2 + $0x7c] sm:$0xf] }
 0x136   : > { %1627 = vst.msk [vmem:[#allocation3 + $0x40] sm:$0xf] %vm256_vm0, %v1493_v32  ;;  %v2979_v43 = vrot.slane %v2978_v46, 4  ;;  %v1671_v27 = vld [vmem:[#allocation2 + $0x64] sm:$0xf]  ;;  %v2999_v11 = vshrl.u32 %v2770_v34, 16 }
 0x137   : > { %v1313_v17 = vpop.permute.xlu0 %1312  ;;  %v9997_v9 = vld [vmem:[#allocation3 + $0x244] sm:$0xf0]  ;;  %v1926_v45 = vrot.slane %v1924_v40, 5  ;;  %v2500_v8 = vrot.slane %v2498_v48, 4  ;;  %v2368_v40 = vld [vmem:[#allocation2 + $0x6c] sm:$0xe] }
 0x138   : > { %1379 = vst.msk [vmem:[#allocation3 + $0x258] sm:$0xf] %vm1348_vm11, %v1313_v17  ;;  %v10000_v26 = vor.u32 %v10797_v56, %v9997_v9  ;;  %1746 = vrot.lane.b32.xlu2 %v1669_v12, %s11121_s10  ;;  %v3403_v56 = vrot.slane %v3306_v18, 5  ;;  %v2501_v17 = vrot.slane %v2370_v7, 5  ;;  %v2685_v9 = vld [vmem:[#allocation2 + $0x30] sm:$0xf] }
 0x139   : > { %v1927_v47 = vor.u32 %v1926_v45, %v1923_v44  ;;  %2717 = vst.msk [vmem:[#allocation3 + $0x5c] sm:$0xf] %vm256_vm0, %v2685_v9  ;;  %v1388_v38 = vld [vmem:[#allocation2 + $0x1c] sm:$0xf]  ;;  %v2771_v1 = vld [vmem:[#allocation2 + $0x80] sm:$0x1] }
 0x13a   : > { %4492 = vmatmul.bf16.gmra.mxu2 %v9996_v61  ;;  %4581 = vmatmul.bf16.gmra.mxu3 %v10000_v26  ;;  %v3182_v57 = vpop.permute.xlu2 %3181  ;;  %v3404_v12 = vsel %vm11775_vm14, %v9697_v23, %v3403_v56  ;;  %v3405_v52 = vrot.slane %v3403_v56, 4  ;;  %v9717_v51 = vld [vmem:[#allocation3 + $0x14] sm:$0xf0]  ;;  %v1496_v2 = vrot.slane %v1388_v38, 5  ;;  %v1389_v16 = vld [vmem:[#allocation2 + $0x20] sm:$0x1] }
 0x13b   : > { %2582 = vrot.lane.b32.xlu1 %v2495_v20, %s11121_s10  ;;  %3275 = vst.msk [vmem:[#allocation3 + $0x34] sm:$0xf] %vm1348_vm11, %v3182_v57  ;;  %v1855_v20 = vld [vmem:[#allocation2 + $0x28] sm:$0xf]  ;;  %v1928_v19 = vrot.slane %v1927_v47, 4  ;;  %v2984_v57 = vsel %vm11345_vm9, %v2979_v43, %v2983_v35  ;;  %v1499_v47 = vrot.slane %v1389_v16, 5 }
 0x13c   : > { %v2555_v28 = vpop.permute.xlu1 %2554  ;;  %v9855_v31 = vld [vmem:[#allocation3 + $0x118] sm:$0xf]  ;;  %3545 = vst.msk [vmem:[#allocation3 + $0x10] sm:$0xf] %vm256_vm0, %v3404_v12  ;;  %v1954_v36 = vshll.u32 %v1855_v20, 16  ;;  %v1958_v26 = vshrl.u32 %v1855_v20, 16 }
 0x13d   : > { %2649 = vst.msk [vmem:[#allocation3 + $0x1c] sm:$0xf] %vm1348_vm11, %v2555_v28  ;;  %3203 = vrot.lane.b32.xlu0 %v2960_v21, %s11121_s10  ;;  %v9856_v62 = vor.u32 %v10764_v22, %v9855_v31  ;;  %v1933_v58 = vsel %vm11345_vm9, %v1928_v19, %v12279_v55  ;;  %v1964_v21 = vshll.u32 %v1856_v42, 16  ;;  %v3407_v22 = vsel %vm11775_vm14, %v3405_v52, %v3406_v60  ;;  %v1387_v45 = vld [vmem:[#allocation2 + $0x18] sm:$0xe] }
 0x13e   : > { %2314 = vst.msk [vmem:[#allocation3 + $0x30] sm:$0xf] %vm256_vm0, %v1933_v58  ;;  %v12340_v37 = vrot.slane %v1954_v36, 5  ;;  %v1960_v10 = vrot.slane %v1958_v26, 4  ;;  %v2502_v55 = vsel %vm11775_vm14, %v2500_v8, %v2501_v17  ;;  %v2995_v28 = vshll.u32 %v2770_v34, 16 }
 0x13f   : > { %v1783_v63 = vpop.permute.xlu0 %1782  ;;  %4457 = vmatmul.bf16.gmra.mxu0 %v9856_v62  ;;  %v10015_v61 = vld [vmem:[#allocation3 + $0x258] sm:$0xf]  ;;  %v1966_v32 = vrot.slane %v1964_v21, 5  ;;  %v2684_v62 = vld [vmem:[#allocation2 + $0x28] sm:$0xf]  ;;  %v9667_v8 = vrot.slane %v1387_v45, 9 }
 0x140   : > { %1847 = vst.msk [vmem:[#allocation3 + $0x270] sm:$0xf] %vm1348_vm11, %v1783_v63  ;;  %3205 = vrot.lane.b32.xlu2 %v2974_v25, %s11121_s10  ;;  %v10016_v33 = vor.u32 %v10804_v49, %v10015_v61  ;;  %v1961_v39 = vor.u32 %v1960_v10, %v12340_v37  ;;  %v12354_v44 = vrot.slane %v2995_v28, 5  ;;  %v3001_v63 = vrot.slane %v2999_v11, 4  ;;  %v2371_v56 = vld [vmem:[#allocation2 + $0x78] sm:$0xe] }
 0x141   : > { %3546 = vst.msk [vmem:[#allocation3 + $0x24] sm:$0xf] %vm256_vm0, %v3407_v22  ;;  %v1498_v25 = vrot.slane %v1496_v2, 4  ;;  %v9690_v49 = vrot.slane %v2371_v56, 9  ;;  %v9689_v46 = vrot.slane %v2368_v40, 9  ;;  %v3005_v12 = vshll.u32 %v2771_v1, 16 }
 0x142   : > { %v1727_v3 = vpop.permute.xlu2 %1726  ;;  %v1962_v30 = vrot.slane %v1961_v39, 4  ;;  %2716 = vst.msk [vmem:[#allocation3 + $0x48] sm:$0xf] %vm256_vm0, %v2684_v62  ;;  %v1497_v52 = vsel %vm11775_vm14, %v9667_v8, %v1496_v2  ;;  %v1854_v42 = vld [vmem:[#allocation2 + $0x24] sm:$0xf] }
 0x143   : > { %1748 = vrot.lane.b32.xlu1 %v1670_v41, %s11121_s10  ;;  %1819 = vst.msk [vmem:[#allocation3 + $0x40] sm:$0xf] %vm1348_vm11, %v1727_v3  ;;  %v12348_v41 = vpop.f32.mrf.mxu0  ;;  %v9731_v60 = vld [vmem:[#allocation3 + $0x10] sm:$0xf]  ;;  %v1500_v9 = vsel %vm11775_vm14, %v1498_v25, %v1499_v47  ;;  %v1945_v36 = vshrl.u32 %v1854_v42, 16  ;;  %v1948_v35 = vshll.u32 %v1854_v42, 16  ;;  %v2499_v58 = vsel %vm11775_vm14, %v9689_v46, %v2498_v48 }
 0x144   : > { %v1721_v15 = vpop.permute.xlu1 %1720  ;;  %v1967_v4 = vsel %vm11345_vm9, %v1962_v30, %v1966_v32  ;;  %1629 = vst.msk [vmem:[#allocation3 + $0x68] sm:$0xf] %vm256_vm0, %v1500_v9  ;;  %v10730_v21 = vld [vmem:[#allocation3 + $0x18] sm:$0xf0]  ;;  %v2687_v43 = vld [vmem:[#allocation2 + $0x3c] sm:$0xf] }
 0x145   : > { %1816 = vst.msk [vmem:[#allocation3 + $0x4] sm:$0xf] %vm1348_vm11, %v1721_v15  ;;  %2580 = vrot.lane.b32.xlu0 %v2492_v14, %s11121_s10  ;;  %v12361_v14 = vld [vmem:[#allocation2 + $0x7c] sm:$0xf]  ;;  %v1947_v34 = vrot.slane %v1945_v36, 4  ;;  %v3007_v3 = vrot.slane %v3005_v12, 5 }
 0x146   : > { %2317 = vst.msk [vmem:[#allocation3 + $0x6c] sm:$0xf] %vm256_vm0, %v1967_v4  ;;  %v2505_v20 = vrot.slane %v12361_v14, 5  ;;  %v1950_v22 = vrot.slane %v1948_v35, 5  ;;  %v1858_v10 = vld [vmem:[#allocation2 + $0x34] sm:$0xf] }
 0x147   : > { %v2553_v24 = vpop.permute.xlu0 %2552  ;;  %v10017_v54 = vld [vmem:[#allocation3 + $0x26c] sm:$0xf0]  ;;  %1628 = vst.msk [vmem:[#allocation3 + $0x54] sm:$0xf] %vm256_vm0, %v1497_v52  ;;  %v1978_v48 = vshll.u32 %v1858_v10, 16 }
 0x148   : > { %2648 = vst.msk [vmem:[#allocation3 + $0x8] sm:$0xf] %vm1348_vm11, %v2553_v24  ;;  %v10020_v31 = vor.u32 %v10802_v0, %v10017_v54  ;;  %1750 = vrot.lane.b32.xlu2 %v1671_v27, %s11121_s10  ;;  %v10731_v15 = vld [vmem:[#allocation3 + $0x20] sm:$0xf0]  ;;  %v2506_v61 = vsel %vm11775_vm14, %v9690_v49, %v2505_v20  ;;  %v3002_v0 = vor.u32 %v3001_v63, %v12354_v44  ;;  %v1859_v54 = vld [vmem:[#allocation2 + $0x38] sm:$0x1] }
 0x149   : > { %v9732_v26 = vor.u32 %v10731_v15, %v9731_v60  ;;  %2719 = vst.msk [vmem:[#allocation3 + $0x84] sm:$0xf] %vm256_vm0, %v2687_v43  ;;  %v1982_v27 = vshrl.u32 %v1858_v10, 16  ;;  %v1988_v39 = vshll.u32 %v1859_v54, 16  ;;  %v2772_v32 = vld [vmem:[#allocation2 + $0x84] sm:$0xf]  ;;  %v4552_v60 = vpop.f32.mrf.mxu3 }
 0x14a   : > { %4497 = vmatmul.bf16.gmra.mxu2 %v10016_v33  ;;  %4586 = vmatmul.bf16.gmra.mxu3 %v10020_v31  ;;  %v3186_v17 = vpop.permute.xlu2 %3185  ;;  %v3003_v28 = vrot.slane %v3002_v0, 4  ;;  %v1951_v31 = vor.u32 %v1950_v22, %v1947_v34  ;;  %v12389_v62 = vrot.slane %v1978_v48, 5  ;;  %v2773_v40 = vld [vmem:[#allocation2 + $0x88] sm:$0xf]  ;;  %v3010_v38 = vshrl.u32 %v2772_v32, 16 }
 0x14b   : > { %2586 = vrot.lane.b32.xlu1 %v2502_v55, %s11121_s10  ;;  %3277 = vst.msk [vmem:[#allocation3 + $0x5c] sm:$0xf] %vm1348_vm11, %v3186_v17  ;;  %v12385_v24 = vpop.f32.mrf.mxu0  ;;  %v10728_v55 = vld [vmem:[#allocation3 + $0xc] sm:$0xf]  ;;  %v1990_v16 = vrot.slane %v1988_v39, 5  ;;  %v3023_v8 = vshrl.u32 %v2773_v40, 16 }
 0x14c   : > { %v2559_v23 = vpop.permute.xlu1 %2558  ;;  %v10727_v18 = vld [vmem:[#allocation3 + $0x4] sm:$0xf]  ;;  %v1952_v63 = vrot.slane %v1951_v31, 4  ;;  %v3012_v4 = vrot.slane %v3010_v38, 4  ;;  %v2774_v47 = vld [vmem:[#allocation2 + $0x8c] sm:$0x1]  ;;  %v3008_v17 = vsel %vm11345_vm9, %v3003_v28, %v3007_v3 }
 0x14d   : > { %2651 = vst.msk [vmem:[#allocation3 + $0x44] sm:$0xf] %vm1348_vm11, %v2559_v23  ;;  %3207 = vrot.lane.b32.xlu0 %v2984_v57, %s11121_s10  ;;  %v9720_v7 = vor.u32 %v10727_v18, %v9717_v51  ;;  %v1984_v51 = vrot.slane %v1982_v27, 4  ;;  %v3013_v57 = vshll.u32 %v2772_v32, 16  ;;  %v9737_v23 = vld [vmem:[#allocation3 + $0x3c] sm:$0xf0] }
 0x14e   : > { %v1957_v56 = vsel %vm11345_vm9, %v1952_v63, %v12340_v37  ;;  %v3029_v49 = vshll.u32 %v2774_v47, 16  ;;  %v2686_v46 = vld [vmem:[#allocation2 + $0x34] sm:$0xf]  ;;  %v3308_v12 = vld [vmem:[#allocation2 + $0x24] sm:$0xe]  ;;  %v3025_v42 = vrot.slane %v3023_v8, 4 }
 0x14f   : > { %v3180_v19 = vpop.permute.xlu0 %3179  ;;  %4511 = vmatmul.bf16.vlgmr.msra.gmra.mxu1 %v9720_v7  ;;  %10177 = vmatmul.msk.bf16.vlgmr.msrb.gmra.mxu0 %vm4365_vm15, %v9732_v26  ;;  %v9723_v33 = vld [vmem:[#allocation3 + $0x8] sm:$0xf]  ;;  %v1985_v18 = vor.u32 %v1984_v51, %v12389_v62  ;;  %v3015_v25 = vrot.slane %v3013_v57, 5  ;;  %v3019_v7 = vshll.u32 %v2773_v40, 16  ;;  %2316 = vst.msk [vmem:[#allocation3 + $0x58] sm:$0xf] %vm256_vm0, %v1957_v56 }
 0x150   : > { %3274 = vst.msk [vmem:[#allocation3 + $0x20] sm:$0xf] %vm1348_vm11, %v3180_v19  ;;  %v9724_v1 = vor.u32 %v10730_v21, %v9723_v33  ;;  %v9698_v37 = vrot.slane %v3308_v12, 9  ;;  %v12404_v15 = vld [vmem:[%s15030_s2] ss:$0 sm:$0xff]  ;;  %v3031_v43 = vrot.slane %v3029_v49, 5 }
 0x151   : > { %v1986_v9 = vrot.slane %v1985_v18, 4  ;;  %v3016_v19 = vor.u32 %v3015_v25, %v3012_v4  ;;  %v3021_v52 = vrot.slane %v3019_v7, 5  ;;  %2718 = vst.msk [vmem:[#allocation3 + $0x70] sm:$0xf] %vm256_vm0, %v2686_v46  ;;  %v3309_v0 = vld [vmem:[#allocation2 + $0x28] sm:$0xf]  ;;  %v12429_v25 = vpop.f32.mrf.mxu3 }
 0x152   : > { %v1731_v11 = vpop.permute.xlu2 %1730  ;;  %v3310_v3 = vld [vmem:[#allocation2 + $0x2c] sm:$0x1]  ;;  %v3410_v22 = vrot.slane %v3309_v0, 5  ;;  %v1391_v31 = vld [vmem:[#allocation2 + $0x28] sm:$0xf] }
 0x153   : > { %2588 = vrot.lane.b32.xlu1 %v2506_v61, %s11121_s10  ;;  %1821 = vst.msk [vmem:[#allocation3 + $0x68] sm:$0xf] %vm1348_vm11, %v1731_v11  ;;  %v1991_v26 = vsel %vm11345_vm9, %v1986_v9, %v1990_v16  ;;  %v3026_v34 = vor.u32 %v3025_v42, %v3021_v52  ;;  %v3017_v33 = vrot.slane %v3016_v19, 4  ;;  %v3413_v54 = vrot.slane %v3310_v3, 5  ;;  %v1392_v39 = vld [vmem:[#allocation2 + $0x2c] sm:$0x1] }
 0x154   : > { %v1725_v13 = vpop.permute.xlu1 %1724  ;;  %2319 = vst.msk [vmem:[#allocation3 + $0x94] sm:$0xf] %vm256_vm0, %v1991_v26  ;;  %v3412_v28 = vrot.slane %v3410_v22, 4  ;;  %v10735_v51 = vld [vmem:[#allocation3 + $0x40] sm:$0xf0]  ;;  %v1503_v57 = vrot.slane %v1391_v31, 5 }
 0x155   : > { %1818 = vst.msk [vmem:[#allocation3 + $0x2c] sm:$0xf] %vm1348_vm11, %v1725_v13  ;;  %2584 = vrot.lane.b32.xlu0 %v2499_v58, %s11121_s10  ;;  %v3027_v27 = vrot.slane %v3026_v34, 4  ;;  %v2769_v16 = vld [vmem:[#allocation2 + $0x78] sm:$0xf] }
 0x156   : > { %v3414_v38 = vsel %vm11775_vm14, %v3412_v28, %v3413_v54  ;;  %v2989_v18 = vshll.u32 %v2769_v16, 16  ;;  %v1857_v4 = vld [vmem:[#allocation2 + $0x30] sm:$0xf]  ;;  %v12435_v49 = vld [vmem:[#allocation2 + $0x88] sm:$0xf] }
 0x157   : > { %v2557_v30 = vpop.permute.xlu0 %2556  ;;  %v9725_v2 = vld [vmem:[#allocation3 + $0x1c] sm:$0xf0]  ;;  %v3032_v40 = vsel %vm11345_vm9, %v3027_v27, %v3031_v43  ;;  %3548 = vst.msk [vmem:[#allocation3 + $0x4c] sm:$0xf] %vm256_vm0, %v3414_v38  ;;  %v1969_v7 = vshrl.u32 %v1857_v4, 16  ;;  %v1972_v8 = vshll.u32 %v1857_v4, 16 }
 0x158   : > { %2650 = vst.msk [vmem:[#allocation3 + $0x30] sm:$0xf] %vm1348_vm11, %v2557_v30  ;;  %v9728_v45 = vor.u32 %v10728_v55, %v9725_v2  ;;  %v3411_v55 = vsel %vm11775_vm14, %v9698_v37, %v3410_v22  ;;  %v1506_v30 = vrot.slane %v1392_v39, 5  ;;  %v3022_v2 = vsel %vm11345_vm9, %v3017_v33, %v3021_v52  ;;  %v2376_v26 = vld [vmem:[#allocation2 + $0x8c] sm:$0x1] }
 0x159   : > { %3547 = vst.msk [vmem:[#allocation3 + $0x38] sm:$0xf] %vm256_vm0, %v3411_v55  ;;  %v2991_v12 = vrot.slane %v2989_v18, 5  ;;  %v1971_v37 = vrot.slane %v1969_v7, 4  ;;  %v2515_v34 = vrot.slane %v2376_v26, 5 }
 0x15a   : > { %4600 = vmatmul.bf16.vlgmr.msrb.gmra.mxu2 %v9724_v1  ;;  %4689 = vmatmul.bf16.vlgmr.msrb.gmra.mxu3 %v9728_v45  ;;  %v3190_v13 = vpop.permute.xlu2 %3189  ;;  %v1390_v1 = vld [vmem:[#allocation2 + $0x24] sm:$0xe]  ;;  %v1505_v45 = vrot.slane %v1503_v57, 4  ;;  %v1861_v28 = vld [vmem:[#allocation2 + $0x40] sm:$0xf] }
 0x15b   : > { %3279 = vst.msk [vmem:[#allocation3 + $0x84] sm:$0xf] %vm1348_vm11, %v3190_v13  ;;  %3215 = vrot.lane.b32.xlu1 %v3032_v40, %s11121_s10  ;;  %v9668_v63 = vrot.slane %v1390_v1, 9  ;;  %v9757_v13 = vld [vmem:[#allocation3 + $0x64] sm:$0xf0]  ;;  %v2006_v40 = vshrl.u32 %v1861_v28, 16 }
 0x15c   : > { %v10732_v61 = vld [vmem:[#allocation3 + $0x2c] sm:$0xf]  ;;  %v12406_v36 = vpop.f32.mrf.mxu0  ;;  %v1507_v9 = vsel %vm11775_vm14, %v1505_v45, %v1506_v30  ;;  %v2775_v38 = vld [vmem:[#allocation2 + $0x90] sm:$0xf] }
 0x15d   : > { %v4463_v35 = vpop.f32.mrf.mxu2  ;;  %v2563_v58 = vpop.permute.xlu1 %2562  ;;  %3211 = vrot.lane.b32.xlu0 %v3008_v17, %s11121_s10  ;;  %v9740_v21 = vor.u32 %v10732_v61, %v9737_v23  ;;  %v2986_v23 = vshrl.u32 %v2769_v16, 16  ;;  %v1504_v56 = vsel %vm11775_vm14, %v9668_v63, %v1503_v57  ;;  %v10733_v17 = vld [vmem:[#allocation3 + $0x34] sm:$0xf]  ;;  %v1974_v61 = vrot.slane %v1972_v8, 5  ;;  %1631 = vst.msk [vmem:[#allocation3 + $0x90] sm:$0xf] %vm256_vm0, %v1507_v9 }
 0x15e   : > { %v4464_v10 = vadd.f32 %v12404_v15, %v4463_v35  ;;  %2653 = vst.msk [vmem:[#allocation3 + $0x6c] sm:$0xf] %vm1348_vm11, %v2563_v58  ;;  %v10736_v33 = vld [vmem:[#allocation3 + $0x48] sm:$0xf0]  ;;  %v3037_v63 = vshll.u32 %v2775_v38, 16  ;;  %v2008_v4 = vrot.slane %v2006_v40, 4 }
 0x15f   : > { %v3184_v48 = vpop.permute.xlu0 %3183  ;;  %4516 = vmatmul.bf16.gmra.mxu1 %v9740_v21  ;;  %v9743_v11 = vld [vmem:[#allocation3 + $0x30] sm:$0xf]  ;;  %1630 = vst.msk [vmem:[#allocation3 + $0x7c] sm:$0xf] %vm256_vm0, %v1504_v56  ;;  %v2988_v19 = vrot.slane %v2986_v23, 4  ;;  %v2512_v21 = vrot.slane %v12435_v49, 5  ;;  %v1975_v22 = vor.u32 %v1974_v61, %v1971_v37 }
 0x160   : > { %3276 = vst.msk [vmem:[#allocation3 + $0x48] sm:$0xf] %vm1348_vm11, %v3184_v48  ;;  %v12418_v32 = vadd.f32 %v4552_v60, %v4464_v10  ;;  %v9744_v52 = vor.u32 %v10735_v51, %v9743_v11  ;;  %v9751_v3 = vld [vmem:[#allocation3 + $0x38] sm:$0xf]  ;;  %v2689_v10 = vld [vmem:[#allocation2 + $0x48] sm:$0xf] }
 0x161   : > { %v2992_v58 = vor.u32 %v2991_v12, %v2988_v19  ;;  %v2514_v48 = vrot.slane %v2512_v21, 4  ;;  %v9752_v27 = vor.u32 %v10736_v33, %v9751_v3  ;;  %v1976_v55 = vrot.slane %v1975_v22, 4  ;;  %2721 = vst.msk [vmem:[#allocation3 + $0xac] sm:$0xf] %vm256_vm0, %v2689_v10  ;;  %v1862_v11 = vld [vmem:[#allocation2 + $0x44] sm:$0x1] }
 0x162   : > { %v1735_v42 = vpop.permute.xlu2 %1734  ;;  %v2002_v51 = vshll.u32 %v1861_v28, 16  ;;  %v2012_v1 = vshll.u32 %v1862_v11, 16  ;;  %v2688_v9 = vld [vmem:[#allocation2 + $0x40] sm:$0xf]  ;;  %v3311_v37 = vld [vmem:[#allocation2 + $0x30] sm:$0xe] }
 0x163   : > { %1823 = vst.msk [vmem:[#allocation3 + $0x90] sm:$0xf] %vm1348_vm11, %v1735_v42  ;;  %v2993_v54 = vrot.slane %v2992_v58, 4  ;;  %v2516_v39 = vsel %vm11775_vm14, %v2514_v48, %v2515_v34  ;;  %10178 = vmatmul.msk.bf16.gmra.mxu0 %vm4365_vm15, %v9752_v27  ;;  %v1981_v30 = vsel %vm11345_vm9, %v1976_v55, %v12389_v62  ;;  %v3313_v3 = vld [vmem:[#allocation2 + $0x38] sm:$0x1]  ;;  %v9699_v22 = vrot.slane %v3311_v37, 9 }
 0x164   : > { %v12431_v47 = vpop.f32.mrf.mxu0  ;;  %2318 = vst.msk [vmem:[#allocation3 + $0x80] sm:$0xf] %vm256_vm0, %v1981_v30  ;;  %v12467_v18 = vrot.slane %v2002_v51, 5  ;;  %v2507_v33 = vrot.slane %v2505_v20, 4  ;;  %v2373_v55 = vld [vmem:[#allocation2 + $0x80] sm:$0x1] }
 0x165   : > { %v12437_v46 = vpop.f32.mrf.mxu2  ;;  %v1729_v60 = vpop.permute.xlu1 %1728  ;;  %3213 = vrot.lane.b32.xlu0 %v3022_v2, %s11121_s10  ;;  %v2998_v31 = vsel %vm11345_vm9, %v2993_v54, %v12354_v44  ;;  %v12463_v2 = vld [vmem:[#allocation2 + $0x94] sm:$0xf]  ;;  %v3034_v44 = vshrl.u32 %v2775_v38, 16  ;;  %2720 = vst.msk [vmem:[#allocation3 + $0x98] sm:$0xf] %vm256_vm0, %v2688_v9  ;;  %v2508_v51 = vrot.slane %v2373_v55, 5 }
 0x166   : > { %1820 = vst.msk [vmem:[#allocation3 + $0x54] sm:$0xf] %vm1348_vm11, %v1729_v60  ;;  %3209 = vrot.lane.b32.xlu2 %v2998_v31, %s11121_s10  ;;  %v2014_v60 = vrot.slane %v2012_v1, 5  ;;  %v2009_v12 = vor.u32 %v2008_v4, %v12467_v18  ;;  %v3043_v42 = vshll.u32 %v12463_v2, 16  ;;  %v10738_v54 = vld [vmem:[#allocation3 + $0x5c] sm:$0xf] }
 0x167   : > { %v2561_v0 = vpop.permute.xlu0 %2560  ;;  %v9745_v35 = vld [vmem:[#allocation3 + $0x44] sm:$0xf0]  ;;  %v1394_v28 = vld [vmem:[#allocation2 + $0x34] sm:$0xf]  ;;  %v1395_v40 = vld [vmem:[#allocation2 + $0x38] sm:$0x1]  ;;  %v2509_v4 = vsel %vm11775_vm14, %v2507_v33, %v2508_v51 }
 0x168   : > { %2652 = vst.msk [vmem:[#allocation3 + $0x58] sm:$0xf] %vm1348_vm11, %v2561_v0  ;;  %v9748_v43 = vor.u32 %v10733_v17, %v9745_v35  ;;  %v3036_v17 = vrot.slane %v3034_v44, 4  ;;  %v10740_v0 = vld [vmem:[#allocation3 + $0x68] sm:$0xf0]  ;;  %v2010_v58 = vrot.slane %v2009_v12, 4 }
 0x169   : > { %v3312_v35 = vld [vmem:[#allocation2 + $0x34] sm:$0xf]  ;;  %v1510_v1 = vrot.slane %v1394_v28, 5  ;;  %v1513_v44 = vrot.slane %v1395_v40, 5  ;;  %v1860_v37 = vld [vmem:[#allocation2 + $0x3c] sm:$0xf] }
 0x16a   : > { %4605 = vmatmul.bf16.gmra.mxu2 %v9744_v52  ;;  %4694 = vmatmul.bf16.gmra.mxu3 %v9748_v43  ;;  %v3194_v62 = vpop.permute.xlu2 %3193  ;;  %v3039_v52 = vrot.slane %v3037_v63, 5  ;;  %v12477_v43 = vrot.slane %v3043_v42, 5  ;;  %v3417_v10 = vrot.slane %v3312_v35, 5  ;;  %v2015_v48 = vsel %vm11345_vm9, %v2010_v58, %v2014_v60  ;;  %v1393_v63 = vld [vmem:[#allocation2 + $0x30] sm:$0xe] }
 0x16b   : > { %3281 = vst.msk [vmem:[#allocation3 + $0xac] sm:$0xf] %vm1348_vm11, %v3194_v62  ;;  %v2378_v62 = vld [vmem:[#allocation2 + $0x94] sm:$0xf]  ;;  %v1512_v9 = vrot.slane %v1510_v1, 4  ;;  %v1993_v35 = vshrl.u32 %v1860_v37, 16 }
 0x16c   : > { %v12456_v57 = vpop.f32.mrf.mxu0  ;;  %v3040_v34 = vor.u32 %v3039_v52, %v3036_v17  ;;  %2321 = vst.msk [vmem:[#allocation3 + $0xbc] sm:$0xf] %vm256_vm0, %v2015_v48  ;;  %v3419_v11 = vrot.slane %v3417_v10, 4  ;;  %v2519_v42 = vrot.slane %v2378_v62, 5  ;;  %v1996_v58 = vshll.u32 %v1860_v37, 16 }
 0x16d   : > { %v4468_v16 = vpop.f32.mrf.mxu2  ;;  %v4557_v45 = vpop.f32.mrf.mxu3  ;;  %v10737_v23 = vld [vmem:[#allocation3 + $0x54] sm:$0xf]  ;;  %2594 = vrot.lane.b32.xlu0 %v2516_v39, %s11121_s10  ;;  %v3418_v39 = vsel %vm11775_vm14, %v9699_v22, %v3417_v10  ;;  %v2379_v22 = vld [vmem:[#allocation2 + $0x98] sm:$0x1]  ;;  %v3047_v10 = vshrl.u32 %v12463_v2, 16 }
 0x16e   : > { %v4469_v56 = vadd.f32 %v12404_v15, %v4468_v16  ;;  %v2567_v7 = vpop.permute.xlu1 %2566  ;;  %v9760_v8 = vor.u32 %v10737_v23, %v9757_v13  ;;  %v3420_v13 = vrot.slane %v3313_v3, 5  ;;  %v3041_v27 = vrot.slane %v3040_v34, 4  ;;  %3549 = vst.msk [vmem:[#allocation3 + $0x60] sm:$0xf] %vm256_vm0, %v3418_v39  ;;  %2590 = vrot.lane.b32.xlu2 %v2509_v4, %s11121_s10  ;;  %v9777_v34 = vld [vmem:[#allocation3 + $0x8c] sm:$0xf0] }
 0x16f   : > { %2655 = vst.msk [vmem:[#allocation3 + $0x94] sm:$0xf] %vm1348_vm11, %v2567_v7  ;;  %v3188_v19 = vpop.permute.xlu0 %3187  ;;  %v9763_v26 = vld [vmem:[#allocation3 + $0x58] sm:$0xf]  ;;  %v9669_v7 = vrot.slane %v1393_v63, 9  ;;  %v1998_v33 = vrot.slane %v1996_v58, 5 }
 0x170   : > { %v12473_v61 = vadd.f32 %v4557_v45, %v4469_v56  ;;  %3278 = vst.msk [vmem:[#allocation3 + $0x70] sm:$0xf] %vm1348_vm11, %v3188_v19  ;;  %4521 = vmatmul.bf16.gmra.mxu1 %v9760_v8  ;;  %v9764_v20 = vor.u32 %v10740_v0, %v9763_v26  ;;  %v3046_v30 = vsel %vm11345_vm9, %v3041_v27, %v12477_v43  ;;  %v2377_v8 = vld [vmem:[#allocation2 + $0x90] sm:$0xe]  ;;  %v2522_v48 = vrot.slane %v2379_v22, 5 }
 0x171   : > { %3217 = vrot.lane.b32.xlu1 %v3046_v30, %s11121_s10  ;;  %v3421_v23 = vsel %vm11775_vm14, %v3419_v11, %v3420_v13  ;;  %v9692_v19 = vrot.slane %v2377_v8, 9  ;;  %v1514_v26 = vsel %vm11775_vm14, %v1512_v9, %v1513_v44  ;;  %v1511_v0 = vsel %vm11775_vm14, %v9669_v7, %v1510_v1  ;;  %v2691_v28 = vld [vmem:[#allocation2 + $0x54] sm:$0xf]  ;;  %v1864_v40 = vld [vmem:[#allocation2 + $0x4c] sm:$0xf] }
 0x172   : > { %v1739_v56 = vpop.permute.xlu2 %1738  ;;  %3550 = vst.msk [vmem:[#allocation3 + $0x74] sm:$0xf] %vm256_vm0, %v3421_v23  ;;  %v1995_v13 = vrot.slane %v1993_v35, 4  ;;  %v2026_v1 = vshll.u32 %v1864_v40, 16  ;;  %v2030_v44 = vshrl.u32 %v1864_v40, 16 }
 0x173   : > { %1633 = vst.msk [vmem:[#allocation3 + $0xb8] sm:$0xf] %vm256_vm0, %v1514_v26  ;;  %v2520_v3 = vsel %vm11775_vm14, %v9692_v19, %v2519_v42  ;;  %v2374_v9 = vld [vmem:[#allocation2 + $0x84] sm:$0xe]  ;;  %v3049_v19 = vrot.slane %v3047_v10, 4 }
 0x174   : > { %v12484_v31 = vpop.f32.mrf.mxu0  ;;  %1825 = vst.msk [vmem:[#allocation3 + $0xb8] sm:$0xf] %vm1348_vm11, %v1739_v56  ;;  %v1999_v51 = vor.u32 %v1998_v33, %v1995_v13  ;;  %v12530_v62 = vrot.slane %v2026_v1, 5  ;;  %v9691_v37 = vrot.slane %v2374_v9, 9  ;;  %v2779_v26 = vld [vmem:[#allocation2 + $0xa0] sm:$0xf] }
 0x175   : > { %v4470_v38 = vpop.f32.mrf.mxu2  ;;  %v4559_v14 = vpop.f32.mrf.mxu3  ;;  %2596 = vrot.lane.b32.xlu0 %v2520_v3, %s11121_s10  ;;  %v9771_v55 = vld [vmem:[#allocation3 + $0x60] sm:$0xf]  ;;  %1632 = vst.msk [vmem:[#allocation3 + $0xa4] sm:$0xf] %vm256_vm0, %v1511_v0  ;;  %v2780_v35 = vld [vmem:[#allocation2 + $0xa4] sm:$0x1] }
 0x176   : > { %v4471_v16 = vadd.f32 %v12404_v15, %v4470_v38  ;;  %v1733_v45 = vpop.permute.xlu1 %1732  ;;  %2723 = vst.msk [vmem:[#allocation3 + $0xd4] sm:$0xf] %vm256_vm0, %v2691_v28  ;;  %v1865_v38 = vld [vmem:[#allocation2 + $0x50] sm:$0x1]  ;;  %v2000_v23 = vrot.slane %v1999_v51, 4  ;;  %v3067_v58 = vshll.u32 %v2779_v26, 16  ;;  %v2513_v13 = vsel %vm11775_vm14, %v9691_v37, %v2512_v21 }
 0x177   : > { %1822 = vst.msk [vmem:[#allocation3 + $0x7c] sm:$0xf] %vm1348_vm11, %v1733_v45  ;;  %v2565_v60 = vpop.permute.xlu0 %2564  ;;  %v9765_v17 = vld [vmem:[#allocation3 + $0x6c] sm:$0xf0]  ;;  %v2036_v63 = vshll.u32 %v1865_v38, 16  ;;  %v3077_v33 = vshll.u32 %v2780_v35, 16  ;;  %2592 = vrot.lane.b32.xlu2 %v2513_v13, %s11121_s10 }
 0x178   : > { %v12501_v12 = vadd.f32 %v4559_v14, %v4471_v16  ;;  %2654 = vst.msk [vmem:[#allocation3 + $0x80] sm:$0xf] %vm1348_vm11, %v2565_v60  ;;  %v9768_v52 = vor.u32 %v10738_v54, %v9765_v17  ;;  %v2521_v54 = vrot.slane %v2519_v42, 4  ;;  %v4466_v14 = vadd.f32 %v12404_v15, %v12437_v46  ;;  %v10745_v8 = vld [vmem:[#allocation3 + $0x90] sm:$0xf0] }
 0x179   : > { %v10741_v56 = vld [vmem:[#allocation3 + $0x70] sm:$0xf0]  ;;  %v2032_v46 = vrot.slane %v2030_v44, 4  ;;  %v2005_v17 = vsel %vm11345_vm9, %v2000_v23, %v12467_v18  ;;  %v2038_v42 = vrot.slane %v2036_v63, 5  ;;  %v10743_v22 = vld [vmem:[#allocation3 + $0x84] sm:$0xf]  ;;  %v3050_v23 = vor.u32 %v3049_v19, %v12477_v43 }
 0x17a   : > { %4610 = vmatmul.bf16.gmra.mxu2 %v9764_v20  ;;  %4699 = vmatmul.bf16.gmra.mxu3 %v9768_v52  ;;  %v2523_v2 = vsel %vm11775_vm14, %v2521_v54, %v2522_v48  ;;  %v3198_v4 = vpop.permute.xlu2 %3197  ;;  %v9772_v60 = vor.u32 %v10741_v56, %v9771_v55  ;;  %2320 = vst.msk [vmem:[#allocation3 + $0xa8] sm:$0xf] %vm256_vm0, %v2005_v17  ;;  %v2690_v18 = vld [vmem:[#allocation2 + $0x4c] sm:$0xf]  ;;  %v12550_v55 = vrot.slane %v3067_v58, 5  ;;  %v3079_v21 = vrot.slane %v3077_v33, 5 }
 0x17b   : > { %2598 = vrot.lane.b32.xlu1 %v2523_v2, %s11121_s10  ;;  %3283 = vst.msk [vmem:[#allocation3 + $0xd4] sm:$0xf] %vm1348_vm11, %v3198_v4  ;;  %v2033_v52 = vor.u32 %v2032_v46, %v12530_v62  ;;  %v12539_v0 = vadd.f32 %v12429_v25, %v4466_v14  ;;  %v3314_v51 = vld [vmem:[#allocation2 + $0x3c] sm:$0xe]  ;;  %v3315_v2 = vld [vmem:[#allocation2 + $0x40] sm:$0xf] }
 0x17c   : > { %v12515_v27 = vpop.f32.mrf.mxu0  ;;  %10179 = vmatmul.msk.bf16.gmra.mxu0 %vm4365_vm15, %v9772_v60  ;;  %2722 = vst.msk [vmem:[#allocation3 + $0xc0] sm:$0xf] %vm256_vm0, %v2690_v18  ;;  %v3316_v14 = vld [vmem:[#allocation2 + $0x44] sm:$0x1]  ;;  %v1396_v19 = vld [vmem:[#allocation2 + $0x3c] sm:$0xe] }
 0x17d   : > { %v12518_v39 = vpop.f32.mrf.mxu3  ;;  %v12520_v11 = vpop.f32.mrf.mxu2  ;;  %v2034_v10 = vrot.slane %v2033_v52, 4  ;;  %v9670_v35 = vrot.slane %v1396_v19, 9  ;;  %v2777_v58 = vld [vmem:[#allocation2 + $0x98] sm:$0x1]  ;;  %v2380_v18 = vld [vmem:[#allocation2 + $0x9c] sm:$0xe] }
 0x17e   : > { %v2571_v20 = vpop.permute.xlu1 %2570  ;;  %v10742_v30 = vld [vmem:[#allocation3 + $0x7c] sm:$0xf]  ;;  %v3053_v13 = vshll.u32 %v2777_v58, 16  ;;  %v12575_v33 = vld [vmem:[#allocation2 + $0xa0] sm:$0xf] }
 0x17f   : > { %2657 = vst.msk [vmem:[#allocation3 + $0xbc] sm:$0xf] %vm1348_vm11, %v2571_v20  ;;  %v3192_v16 = vpop.permute.xlu0 %3191  ;;  %v9780_v45 = vor.u32 %v10742_v30, %v9777_v34  ;;  %v9783_v7 = vld [vmem:[#allocation3 + $0x80] sm:$0xf]  ;;  %v3071_v34 = vshrl.u32 %v2779_v26, 16  ;;  %v2039_v49 = vsel %vm11345_vm9, %v2034_v10, %v2038_v42  ;;  %v9700_v20 = vrot.slane %v3314_v51, 9 }
 0x180   : > { %3280 = vst.msk [vmem:[#allocation3 + $0x98] sm:$0xf] %vm1348_vm11, %v3192_v16  ;;  %v9784_v48 = vor.u32 %v10745_v8, %v9783_v7  ;;  %v1397_v30 = vld [vmem:[#allocation2 + $0x40] sm:$0xf]  ;;  %v3424_v16 = vrot.slane %v3315_v2, 5 }
 0x181   : > { %4526 = vmatmul.bf16.gmra.mxu1 %v9780_v45  ;;  %v3073_v28 = vrot.slane %v3071_v34, 4  ;;  %v3427_v45 = vrot.slane %v3316_v14, 5  ;;  %v1398_v7 = vld [vmem:[#allocation2 + $0x44] sm:$0x1]  ;;  %v1517_v8 = vrot.slane %v1397_v30, 5  ;;  %v3051_v34 = vrot.slane %v3050_v23, 4 }
 0x182   : > { %2323 = vst.msk [vmem:[#allocation3 + $0xe4] sm:$0xf] %vm256_vm0, %v2039_v49  ;;  %v3425_v60 = vsel %vm11775_vm14, %v9700_v20, %v3424_v16  ;;  %v3426_v17 = vrot.slane %v3424_v16, 4  ;;  %v1520_v9 = vrot.slane %v1398_v7, 5  ;;  %v1743_v52 = vpop.permute.xlu2 %1742  ;;  %v9797_v42 = vld [vmem:[#allocation3 + $0xb4] sm:$0xf0] }
 0x183   : > { %v3074_v63 = vor.u32 %v3073_v28, %v12550_v55  ;;  %3551 = vst.msk [vmem:[#allocation3 + $0x88] sm:$0xf] %vm256_vm0, %v3425_v60  ;;  %v1519_v43 = vrot.slane %v1517_v8, 4  ;;  %v2526_v28 = vrot.slane %v12575_v33, 5  ;;  %v1863_v51 = vld [vmem:[#allocation2 + $0x48] sm:$0xf] }
 0x184   : > { %v12542_v3 = vpop.f32.mrf.mxu0  ;;  %v3428_v26 = vsel %vm11775_vm14, %v3426_v17, %v3427_v45  ;;  %v3055_v49 = vrot.slane %v3053_v13, 5  ;;  %v2693_v7 = vld [vmem:[#allocation2 + $0x60] sm:$0xf]  ;;  %v10748_v17 = vld [vmem:[#allocation3 + $0xac] sm:$0xf] }
 0x185   : > { %v4475_v25 = vpop.f32.mrf.mxu2  ;;  %v4564_v54 = vpop.f32.mrf.mxu3  ;;  %v3075_v46 = vrot.slane %v3074_v63, 4  ;;  %3552 = vst.msk [vmem:[#allocation3 + $0x9c] sm:$0xf] %vm256_vm0, %v3428_v26  ;;  %v1521_v10 = vsel %vm11775_vm14, %v1519_v43, %v1520_v9  ;;  %v4474_v26 = vadd.f32 %v12404_v15, %v12520_v11  ;;  %v2782_v13 = vld [vmem:[#allocation2 + $0xac] sm:$0xf] }
 0x186   : > { %v4476_v40 = vadd.f32 %v12404_v15, %v4475_v25  ;;  %v1737_v38 = vpop.permute.xlu1 %1736  ;;  %v9693_v25 = vrot.slane %v2380_v18, 9  ;;  %1635 = vst.msk [vmem:[#allocation3 + $0xe0] sm:$0xf] %vm256_vm0, %v1521_v10  ;;  %v2781_v10 = vld [vmem:[#allocation2 + $0xa8] sm:$0xf] }
 0x187   : > { %1824 = vst.msk [vmem:[#allocation3 + $0xa4] sm:$0xf] %vm1348_vm11, %v1737_v38  ;;  %v2569_v1 = vpop.permute.xlu0 %2568  ;;  %v9785_v44 = vld [vmem:[#allocation3 + $0x94] sm:$0xf0]  ;;  %v3080_v37 = vsel %vm11345_vm9, %v3075_v46, %v3079_v21  ;;  %v1518_v38 = vsel %vm11775_vm14, %v9670_v35, %v1517_v8  ;;  %v2017_v21 = vshrl.u32 %v1863_v51, 16 }
 0x188   : > { %v12558_v4 = vadd.f32 %v4564_v54, %v4476_v40  ;;  %2656 = vst.msk [vmem:[#allocation3 + $0xa8] sm:$0xf] %vm1348_vm11, %v2569_v1  ;;  %v9788_v56 = vor.u32 %v10743_v22, %v9785_v44  ;;  %3223 = vrot.lane.b32.xlu0 %v3080_v37, %s11121_s10  ;;  %v2527_v30 = vsel %vm11775_vm14, %v9693_v25, %v2526_v28  ;;  %v2020_v1 = vshll.u32 %v1863_v51, 16  ;;  %v1867_v8 = vld [vmem:[#allocation2 + $0x58] sm:$0xf] }
 0x189   : > { %1827 = vst.msk [vmem:[#allocation3 + $0xe0] sm:$0xf] %vm1348_vm11, %v1743_v52  ;;  %v3056_v44 = vsel %vm11345_vm9, %v3051_v34, %v3055_v49  ;;  %2600 = vrot.lane.b32.xlu1 %v2527_v30, %s11121_s10  ;;  %v2019_v63 = vrot.slane %v2017_v21, 4  ;;  %v1868_v52 = vld [vmem:[#allocation2 + $0x5c] sm:$0x1]  ;;  %v2050_v43 = vshll.u32 %v1867_v8, 16 }
 0x18a   : > { %4615 = vmatmul.bf16.gmra.mxu2 %v9784_v48  ;;  %4704 = vmatmul.bf16.gmra.mxu3 %v9788_v56  ;;  %v9791_v45 = vld [vmem:[#allocation3 + $0x88] sm:$0xf]  ;;  %1634 = vst.msk [vmem:[#allocation3 + $0xcc] sm:$0xf] %vm256_vm0, %v1518_v38  ;;  %v2022_v23 = vrot.slane %v2020_v1, 5  ;;  %v3202_v9 = vpop.permute.xlu2 %3201  ;;  %v2054_v19 = vshrl.u32 %v1867_v8, 16 }
 0x18b   : > { %3219 = vrot.lane.b32.xlu2 %v3056_v44, %s11121_s10  ;;  %v10750_v56 = vld [vmem:[#allocation3 + $0xb8] sm:$0xf0]  ;;  %2725 = vst.msk [vmem:[#allocation3 + $0xfc] sm:$0xf] %vm256_vm0, %v2693_v7  ;;  %v2060_v37 = vshll.u32 %v1868_v52, 16  ;;  %v3082_v30 = vshrl.u32 %v2781_v10, 16  ;;  %v12618_v52 = vadd.f32 %v12518_v39, %v4474_v26 }
 0x18c   : > { %v12570_v22 = vpop.f32.mrf.mxu0  ;;  %v10746_v46 = vld [vmem:[#allocation3 + $0x98] sm:$0xf0]  ;;  %v2023_v60 = vor.u32 %v2022_v23, %v2019_v63  ;;  %3285 = vst.msk [vmem:[#allocation3 + $0xfc] sm:$0xf] %vm1348_vm11, %v3202_v9  ;;  %v2056_v38 = vrot.slane %v2054_v19, 4  ;;  %v3085_v1 = vshll.u32 %v2781_v10, 16 }
 0x18d   : > { %v12577_v54 = vpop.f32.mrf.mxu3  ;;  %v12579_v48 = vpop.f32.mrf.mxu2  ;;  %v2062_v49 = vrot.slane %v2060_v37, 5  ;;  %v2783_v21 = vld [vmem:[#allocation2 + $0xb0] sm:$0x1]  ;;  %v2692_v23 = vld [vmem:[#allocation2 + $0x58] sm:$0xf]  ;;  %v3095_v8 = vshrl.u32 %v2782_v13, 16 }
 0x18e   : > { %v2575_v2 = vpop.permute.xlu1 %2574  ;;  %v10747_v40 = vld [vmem:[#allocation3 + $0xa4] sm:$0xf]  ;;  %v2024_v34 = vrot.slane %v2023_v60, 4  ;;  %v3087_v7 = vrot.slane %v3085_v1, 5  ;;  %2724 = vst.msk [vmem:[#allocation3 + $0xe8] sm:$0xf] %vm256_vm0, %v2692_v23 }
 0x18f   : > { %2659 = vst.msk [vmem:[#allocation3 + $0xe4] sm:$0xf] %vm1348_vm11, %v2575_v2  ;;  %v3196_v14 = vpop.permute.xlu0 %3195  ;;  %v9800_v20 = vor.u32 %v10747_v40, %v9797_v42  ;;  %v9803_v16 = vld [vmem:[#allocation3 + $0xa8] sm:$0xf]  ;;  %v9792_v42 = vor.u32 %v10746_v46, %v9791_v45  ;;  %v12605_v40 = vrot.slane %v2050_v43, 5  ;;  %v3091_v45 = vshll.u32 %v2782_v13, 16 }
 0x190   : > { %3282 = vst.msk [vmem:[#allocation3 + $0xc0] sm:$0xf] %vm1348_vm11, %v3196_v14  ;;  %v9804_v18 = vor.u32 %v10750_v56, %v9803_v16  ;;  %v2029_v11 = vsel %vm11345_vm9, %v2024_v34, %v12530_v62  ;;  %v3084_v56 = vrot.slane %v3082_v30, 4  ;;  %v3101_v46 = vshll.u32 %v2783_v21, 16  ;;  %v9817_v9 = vld [vmem:[#allocation3 + $0xdc] sm:$0xf0] }
 0x191   : > { %4531 = vmatmul.bf16.gmra.mxu1 %v9800_v20  ;;  %10180 = vmatmul.msk.bf16.gmra.mxu0 %vm4365_vm15, %v9792_v42  ;;  %2322 = vst.msk [vmem:[#allocation3 + $0xd0] sm:$0xf] %vm256_vm0, %v2029_v11  ;;  %v2057_v16 = vor.u32 %v2056_v38, %v12605_v40  ;;  %v3093_v60 = vrot.slane %v3091_v45, 5  ;;  %v3097_v42 = vrot.slane %v3095_v8, 4  ;;  %v3317_v19 = vld [vmem:[#allocation2 + $0x48] sm:$0xe] }
 0x192   : > { %v3103_v43 = vrot.slane %v3101_v46, 5  ;;  %v3318_v37 = vld [vmem:[#allocation2 + $0x4c] sm:$0xf]  ;;  %v9701_v34 = vrot.slane %v3317_v19, 9  ;;  %v1401_v26 = vld [vmem:[#allocation2 + $0x50] sm:$0x1] }
 0x193   : > { %v2058_v62 = vrot.slane %v2057_v16, 4  ;;  %v1400_v10 = vld [vmem:[#allocation2 + $0x4c] sm:$0xf]  ;;  %v3098_v38 = vor.u32 %v3097_v42, %v3093_v60  ;;  %v1399_v1 = vld [vmem:[#allocation2 + $0x48] sm:$0xe]  ;;  %v1747_v42 = vpop.permute.xlu2 %1746 }
 0x194   : > { %v12603_v2 = vpop.f32.mrf.mxu0  ;;  %v1524_v30 = vrot.slane %v1400_v10, 5  ;;  %v9671_v19 = vrot.slane %v1399_v1, 9 }
 0x195   : > { %v4480_v35 = vpop.f32.mrf.mxu2  ;;  %v4569_v58 = vpop.f32.mrf.mxu3  ;;  %v3099_v16 = vrot.slane %v3098_v38, 4 }
 0x196   : > { %v4481_v25 = vadd.f32 %v12404_v15, %v4480_v35  ;;  %v1741_v51 = vpop.permute.xlu1 %1740  ;;  %v2063_v35 = vsel %vm11345_vm9, %v2058_v62, %v2062_v49 }
 0x197   : > { %1826 = vst.msk [vmem:[#allocation3 + $0xcc] sm:$0xf] %vm1348_vm11, %v1741_v51  ;;  %v2573_v14 = vpop.permute.xlu0 %2572  ;;  %v9805_v20 = vld [vmem:[#allocation3 + $0xbc] sm:$0xf0] }
 0x198   : > { %v12611_v44 = vadd.f32 %v4569_v58, %v4481_v25  ;;  %v9808_v63 = vor.u32 %v10748_v17, %v9805_v20  ;;  %2658 = vst.msk [vmem:[#allocation3 + $0xd0] sm:$0xf] %vm1348_vm11, %v2573_v14  ;;  %v3088_v17 = vor.u32 %v3087_v7, %v3084_v56  ;;  %v3319_v58 = vld [vmem:[#allocation2 + $0x50] sm:$0x1]  ;;  %v1527_v56 = vrot.slane %v1401_v26, 5 }
 0x199   : > { %2325 = vst.msk [vmem:[#allocation3 + $0x10c] sm:$0xf] %vm256_vm0, %v2063_v35  ;;  %v3434_v39 = vrot.slane %v3319_v58, 5  ;;  %v2778_v7 = vld [vmem:[#allocation2 + $0x9c] sm:$0xf] }
 0x19a   : > { %4620 = vmatmul.bf16.gmra.mxu2 %v9804_v18  ;;  %4709 = vmatmul.bf16.gmra.mxu3 %v9808_v63  ;;  %v3431_v18 = vrot.slane %v3318_v37, 5  ;;  %v3089_v51 = vrot.slane %v3088_v17, 4  ;;  %v1526_v17 = vrot.slane %v1524_v30, 4  ;;  %v3058_v37 = vshrl.u32 %v2778_v7, 16  ;;  %v5421_v58 = vld [vmem:[#allocation2 + $0x8] sm:$0x1] }
 0x19b   : > { %v3061_v35 = vshll.u32 %v2778_v7, 16  ;;  %v5487_v38 = vshll.u32 %v5421_v58, 16 }
 0x19c   : > { %v3432_v20 = vsel %vm11775_vm14, %v9701_v34, %v3431_v18  ;;  %v3433_v49 = vrot.slane %v3431_v18, 4  ;;  %v3094_v63 = vsel %vm11345_vm9, %v3089_v51, %v3093_v60  ;;  %v12633_v46 = vpop.f32.mrf.mxu0  ;;  %v5420_v60 = vld [vmem:[#allocation2 + $0x4] sm:$0xf]  ;;  %v1528_v34 = vsel %vm11775_vm14, %v1526_v17, %v1527_v56 }
 0x19d   : > { %v4483_v13 = vpop.f32.mrf.mxu2  ;;  %v4572_v25 = vpop.f32.mrf.mxu3  ;;  %3225 = vrot.lane.b32.xlu0 %v3094_v63, %s11121_s10  ;;  %3553 = vst.msk [vmem:[#allocation3 + $0xb0] sm:$0xf] %vm256_vm0, %v3432_v20  ;;  %v1525_v18 = vsel %vm11775_vm14, %v9671_v19, %v1524_v30  ;;  %v5477_v10 = vshll.u32 %v5420_v60, 16  ;;  %v3063_v51 = vrot.slane %v3061_v35, 5  ;;  %v5489_v1 = vrot.slane %v5487_v38, 5 }
 0x19e   : > { %v4484_v21 = vadd.f32 %v12404_v15, %v4483_v13  ;;  %v2579_v11 = vpop.permute.xlu1 %2578  ;;  %v10752_v14 = vld [vmem:[#allocation3 + $0xcc] sm:$0xf]  ;;  %v3435_v62 = vsel %vm11775_vm14, %v3433_v49, %v3434_v39  ;;  %v5481_v13 = vshrl.u32 %v5420_v60, 16  ;;  %1637 = vst.msk [vmem:[#allocation3 + $0x108] sm:$0xf] %vm256_vm0, %v1528_v34 }
 0x19f   : > { %2661 = vst.msk [vmem:[#allocation3 + $0x10c] sm:$0xf] %vm1348_vm11, %v2579_v11  ;;  %v3200_v45 = vpop.permute.xlu0 %3199  ;;  %v9820_v23 = vor.u32 %v10752_v14, %v9817_v9  ;;  %v3104_v9 = vsel %vm11345_vm9, %v3099_v16, %v3103_v43  ;;  %v3060_v43 = vrot.slane %v3058_v37, 4  ;;  %v12648_v26 = vrot.slane %v5477_v10, 5  ;;  %v12650_v11 = vld [vmem:[#allocation2 + $0xac] sm:$0xf] }
 0x1a0   : > { %v12629_v8 = vadd.f32 %v4572_v25, %v4484_v21  ;;  %3284 = vst.msk [vmem:[#allocation3 + $0xe8] sm:$0xf] %vm1348_vm11, %v3200_v45  ;;  %3227 = vrot.lane.b32.xlu1 %v3104_v9, %s11121_s10  ;;  %v2383_v25 = vld [vmem:[#allocation2 + $0xa8] sm:$0xe]  ;;  %v5483_v21 = vrot.slane %v5481_v13, 4  ;;  %v4479_v14 = vadd.f32 %v12404_v15, %v12579_v48  ;;  %v2533_v63 = vrot.slane %v12650_v11, 5 }
 0x1a1   : > { %4536 = vmatmul.bf16.gmra.mxu1 %v9820_v23  ;;  %3554 = vst.msk [vmem:[#allocation3 + $0xc4] sm:$0xf] %vm256_vm0, %v3435_v62  ;;  %v9694_v39 = vrot.slane %v2383_v25, 9  ;;  %v3064_v30 = vor.u32 %v3063_v51, %v3060_v43  ;;  %v1866_v16 = vld [vmem:[#allocation2 + $0x54] sm:$0xf] }
 0x1a2   : > { %1829 = vst.msk [vmem:[#allocation3 + $0x108] sm:$0xf] %vm1348_vm11, %v1747_v42  ;;  %v5484_v56 = vor.u32 %v5483_v21, %v12648_v26  ;;  %v2041_v7 = vshrl.u32 %v1866_v16, 16  ;;  %v2044_v62 = vshll.u32 %v1866_v16, 16  ;;  %v9823_v17 = vld [vmem:[#allocation3 + $0xd0] sm:$0xf]  ;;  %v12669_v38 = vadd.f32 %v12577_v54, %v4479_v14 }
 0x1a3   : > { %1636 = vst.msk [vmem:[#allocation3 + $0xf4] sm:$0xf] %vm256_vm0, %v1525_v18  ;;  %v10755_v42 = vld [vmem:[#allocation3 + $0xe0] sm:$0xf0]  ;;  %v3065_v48 = vrot.slane %v3064_v30, 4  ;;  %v2534_v19 = vsel %vm11775_vm14, %v9694_v39, %v2533_v63  ;;  %v3206_v30 = vpop.permute.xlu2 %3205 }
 0x1a4   : > { %v9824_v9 = vor.u32 %v10755_v42, %v9823_v17  ;;  %v10753_v37 = vld [vmem:[#allocation3 + $0xd4] sm:$0xf]  ;;  %v9811_v35 = vld [vmem:[#allocation3 + $0xb0] sm:$0xf]  ;;  %v5485_v34 = vrot.slane %v5484_v56, 4  ;;  %v2043_v18 = vrot.slane %v2041_v7, 4 }
 0x1a5   : > { %v4485_v20 = vpop.f32.mrf.mxu2  ;;  %v4574_v49 = vpop.f32.mrf.mxu3  ;;  %v2046_v10 = vrot.slane %v2044_v62, 5  ;;  %v3070_v25 = vsel %vm11345_vm9, %v3065_v48, %v12550_v55  ;;  %v2695_v51 = vld [vmem:[#allocation2 + $0x6c] sm:$0xf]  ;;  %v1870_v55 = vld [vmem:[#allocation2 + $0x64] sm:$0xf]  ;;  %v2528_v62 = vrot.slane %v2526_v28, 4 }
 0x1a6   : > { %v4486_v45 = vadd.f32 %v12404_v15, %v4485_v20  ;;  %v1745_v23 = vpop.permute.xlu1 %1744  ;;  %3221 = vrot.lane.b32.xlu2 %v3070_v25, %s11121_s10  ;;  %v5490_v21 = vsel %vm11345_vm9, %v5485_v34, %v5489_v1  ;;  %2727 = vst.msk [vmem:[#allocation3 + $0x124] sm:$0xf] %vm256_vm0, %v2695_v51  ;;  %v1871_v16 = vld [vmem:[#allocation2 + $0x68] sm:$0x1]  ;;  %v2074_v14 = vshll.u32 %v1870_v55, 16 }
 0x1a7   : > { %1828 = vst.msk [vmem:[#allocation3 + $0xf4] sm:$0xf] %vm1348_vm11, %v1745_v23  ;;  %v2577_v60 = vpop.permute.xlu0 %2576  ;;  %v9825_v43 = vld [vmem:[#allocation3 + $0xe4] sm:$0xf0]  ;;  %v2047_v20 = vor.u32 %v2046_v10, %v2043_v18  ;;  %5853 = vrot.lane.b32.xlu0 %v5490_v21, %s11121_s10  ;;  %v2084_v23 = vshll.u32 %v1871_v16, 16 }
 0x1a8   : > { %v12663_v58 = vadd.f32 %v4574_v49, %v4486_v45  ;;  %v10751_v13 = vld [vmem:[#allocation3 + $0xc0] sm:$0xf0]  ;;  %2604 = vrot.lane.b32.xlu1 %v2534_v19, %s11121_s10  ;;  %v12675_v49 = vpop.f32.mrf.mxu0  ;;  %v9828_v54 = vor.u32 %v10753_v37, %v9825_v43  ;;  %3287 = vst.msk [vmem:[#allocation3 + $0x124] sm:$0xf] %vm1348_vm11, %v3206_v30  ;;  %v2078_v45 = vshrl.u32 %v1870_v55, 16  ;;  %v12683_v48 = vrot.slane %v2074_v14, 5 }
 0x1a9   : > { %v9812_v39 = vor.u32 %v10751_v13, %v9811_v35  ;;  %v2048_v1 = vrot.slane %v2047_v20, 4  ;;  %v2784_v56 = vld [vmem:[#allocation2 + $0xb4] sm:$0xf]  ;;  %v2785_v7 = vld [vmem:[#allocation2 + $0xb8] sm:$0xf] }
 0x1aa   : > { %4625 = vmatmul.bf16.gmra.mxu2 %v9824_v9  ;;  %4714 = vmatmul.bf16.gmra.mxu3 %v9828_v54  ;;  %v2080_v19 = vrot.slane %v2078_v45, 4  ;;  %v2086_v9 = vrot.slane %v2084_v23, 5  ;;  %v3106_v37 = vshrl.u32 %v2784_v56, 16  ;;  %v2786_v35 = vld [vmem:[#allocation2 + $0xbc] sm:$0x1]  ;;  %v3109_v10 = vshll.u32 %v2784_v56, 16 }
 0x1ab   : > { %10181 = vmatmul.msk.bf16.gmra.mxu0 %vm4365_vm15, %v9812_v39  ;;  %v2053_v34 = vsel %vm11345_vm9, %v2048_v1, %v12605_v40  ;;  %v3115_v13 = vshll.u32 %v2785_v7, 16  ;;  %v2694_v25 = vld [vmem:[#allocation2 + $0x64] sm:$0xf]  ;;  %v3119_v51 = vshrl.u32 %v2785_v7, 16  ;;  %v3125_v39 = vshll.u32 %v2786_v35, 16 }
 0x1ac   : > { %2324 = vst.msk [vmem:[#allocation3 + $0xf8] sm:$0xf] %vm256_vm0, %v2053_v34  ;;  %v2081_v28 = vor.u32 %v2080_v19, %v12683_v48  ;;  %v3108_v43 = vrot.slane %v3106_v37, 4  ;;  %v3111_v40 = vrot.slane %v3109_v10, 5  ;;  %v3320_v1 = vld [vmem:[#allocation2 + $0x54] sm:$0xe] }
 0x1ad   : > { %v4488_v17 = vpop.f32.mrf.mxu2  ;;  %v4577_v42 = vpop.f32.mrf.mxu3  ;;  %2660 = vst.msk [vmem:[#allocation3 + $0xf8] sm:$0xf] %vm1348_vm11, %v2577_v60  ;;  %v3117_v55 = vrot.slane %v3115_v13, 5  ;;  %v3121_v54 = vrot.slane %v3119_v51, 4  ;;  %v3127_v14 = vrot.slane %v3125_v39, 5 }
 0x1ae   : > { %v4489_v18 = vadd.f32 %v12404_v15, %v4488_v17  ;;  %v10757_v33 = vld [vmem:[#allocation3 + $0xf4] sm:$0xf]  ;;  %v2583_v30 = vpop.permute.xlu1 %2582  ;;  %v9837_v15 = vld [vmem:[#allocation3 + $0x104] sm:$0xf0]  ;;  %v2082_v16 = vrot.slane %v2081_v28, 4  ;;  %v3112_v23 = vor.u32 %v3111_v40, %v3108_v43 }
 0x1af   : > { %v3204_v21 = vpop.permute.xlu0 %3203  ;;  %2726 = vst.msk [vmem:[#allocation3 + $0x110] sm:$0xf] %vm256_vm0, %v2694_v25  ;;  %v9840_v45 = vor.u32 %v10757_v33, %v9837_v15  ;;  %v3321_v56 = vld [vmem:[#allocation2 + $0x58] sm:$0xf]  ;;  %v3122_v7 = vor.u32 %v3121_v54, %v3117_v55  ;;  %v3322_v17 = vld [vmem:[#allocation2 + $0x5c] sm:$0x1] }
 0x1b0   : > { %v12692_v20 = vadd.f32 %v4577_v42, %v4489_v18  ;;  %3286 = vst.msk [vmem:[#allocation3 + $0x110] sm:$0xf] %vm1348_vm11, %v3204_v21  ;;  %v2087_v60 = vsel %vm11345_vm9, %v2082_v16, %v2086_v9  ;;  %v9702_v42 = vrot.slane %v3320_v1, 9  ;;  %v3438_v19 = vrot.slane %v3321_v56, 5  ;;  %v2382_v37 = vld [vmem:[#allocation2 + $0xa4] sm:$0x1]  ;;  %v12699_v34 = vpop.f32.mrf.mxu0 }
 0x1b1   : > { %4541 = vmatmul.bf16.gmra.mxu1 %v9840_v45  ;;  %2327 = vst.msk [vmem:[#allocation3 + $0x134] sm:$0xf] %vm256_vm0, %v2087_v60  ;;  %v3113_v35 = vrot.slane %v3112_v23, 4  ;;  %v3441_v18 = vrot.slane %v3322_v17, 5  ;;  %v2529_v10 = vrot.slane %v2382_v37, 5  ;;  %v3123_v13 = vrot.slane %v3122_v7, 4  ;;  %v1751_v17 = vpop.permute.xlu2 %1750 }
 0x1b2   : > { %2663 = vst.msk [vmem:[#allocation3 + $0x134] sm:$0xf] %vm1348_vm11, %v2583_v30  ;;  %v3439_v25 = vsel %vm11775_vm14, %v9702_v42, %v3438_v19  ;;  %v3440_v9 = vrot.slane %v3438_v19, 4  ;;  %v1403_v43 = vld [vmem:[#allocation2 + $0x58] sm:$0xf] }
 0x1b3   : > { %v3118_v51 = vsel %vm11345_vm9, %v3113_v35, %v3117_v55  ;;  %3555 = vst.msk [vmem:[#allocation3 + $0xd8] sm:$0xf] %vm256_vm0, %v3439_v25  ;;  %v2530_v39 = vsel %vm11775_vm14, %v2528_v62, %v2529_v10  ;;  %v12712_v21 = vld [vmem:[%s15030_s2] ss:$0 sm:$0xff]  ;;  %v1404_v40 = vld [vmem:[#allocation2 + $0x5c] sm:$0x1]  ;;  %v3128_v16 = vsel %vm11345_vm9, %v3123_v13, %v3127_v14 }
 0x1b4   : > { %v1531_v15 = vrot.slane %v1403_v43, 5  ;;  %3229 = vrot.lane.b32.xlu0 %v3118_v51, %s11121_s10  ;;  %v3442_v55 = vsel %vm11775_vm14, %v3440_v9, %v3441_v18  ;;  %2602 = vrot.lane.b32.xlu2 %v2530_v39, %s11121_s10  ;;  %v1534_v62 = vrot.slane %v1404_v40, 5  ;;  %v1402_v54 = vld [vmem:[#allocation2 + $0x54] sm:$0xe]  ;;  %v1869_v45 = vld [vmem:[#allocation2 + $0x60] sm:$0xf] }
 0x1b5   : > { %v4490_v33 = vpop.f32.mrf.mxu2  ;;  %v4579_v28 = vpop.f32.mrf.mxu3  ;;  %3231 = vrot.lane.b32.xlu1 %v3128_v16, %s11121_s10  ;;  %3556 = vst.msk [vmem:[#allocation3 + $0xec] sm:$0xf] %vm256_vm0, %v3442_v55  ;;  %v9672_v60 = vrot.slane %v1402_v54, 9  ;;  %v2065_v7 = vshrl.u32 %v1869_v45, 16  ;;  %v2068_v14 = vshll.u32 %v1869_v45, 16 }
 0x1b6   : > { %v4491_v30 = vadd.f32 %v12712_v21, %v4490_v33  ;;  %v1533_v56 = vrot.slane %v1531_v15, 4  ;;  %v9843_v42 = vld [vmem:[#allocation3 + $0xf8] sm:$0xf]  ;;  %v10760_v19 = vld [vmem:[#allocation3 + $0x108] sm:$0xf0]  ;;  %v1749_v18 = vpop.permute.xlu1 %1748 }
 0x1b7   : > { %v2581_v23 = vpop.permute.xlu0 %2580  ;;  %v1532_v35 = vsel %vm11775_vm14, %v9672_v60, %v1531_v15  ;;  %v2067_v10 = vrot.slane %v2065_v7, 4  ;;  %v9844_v13 = vor.u32 %v10760_v19, %v9843_v42  ;;  %v10758_v25 = vld [vmem:[#allocation3 + $0xfc] sm:$0xf]  ;;  %v9845_v9 = vld [vmem:[#allocation3 + $0x10c] sm:$0xf0]  ;;  %v2070_v33 = vrot.slane %v2068_v14, 5 }
 0x1b8   : > { %v12723_v1 = vadd.f32 %v4579_v28, %v4491_v30  ;;  %v1535_v37 = vsel %vm11775_vm14, %v1533_v56, %v1534_v62  ;;  %v9848_v28 = vor.u32 %v10758_v25, %v9845_v9  ;;  %v5419_v43 = vld [vmem:[#allocation2] sm:$0xf]  ;;  %v2696_v30 = vld [vmem:[#allocation2 + $0x70] sm:$0xf]  ;;  %1638 = vst.msk [vmem:[#allocation3 + $0x11c] sm:$0xf] %vm256_vm0, %v1532_v35  ;;  %v12733_v54 = vpop.f32.mrf.mxu0 }
 0x1b9   : > { %1639 = vst.msk [vmem:[#allocation3 + $0x130] sm:$0xf] %vm256_vm0, %v1535_v37  ;;  %v5468_v51 = vshrl.u32 %v5419_v43, 16  ;;  %v5471_v39 = vshll.u32 %v5419_v43, 16  ;;  %v2071_v15 = vor.u32 %v2070_v33, %v2067_v10  ;;  %v3323_v62 = vld [vmem:[#allocation2 + $0x60] sm:$0xe] }
 0x1ba   : > { %15055 = vst [vmem:[#allocation7_spill] sm:$0xff] %v12723_v1  ;;  %4630 = vmatmul.bf16.gmra.mxu2 %v9844_v13  ;;  %v9831_v40 = vld [vmem:[#allocation3 + $0xd8] sm:$0xf]  ;;  %4719 = vmatmul.bf16.gmra.mxu3 %v9848_v28  ;;  %v3324_v7 = vld [vmem:[#allocation2 + $0x64] sm:$0xf]  ;;  %v9703_v19 = vrot.slane %v3323_v62, 9 }
 0x1bb   : > { %1831 = vst.msk [vmem:[#allocation3 + $0x130] sm:$0xf] %vm1348_vm11, %v1751_v17  ;;  %v5470_v45 = vrot.slane %v5468_v51, 4  ;;  %v5473_v56 = vrot.slane %v5471_v39, 5  ;;  %v2072_v14 = vrot.slane %v2071_v15, 4  ;;  %v3445_v13 = vrot.slane %v3324_v7, 5 }
 0x1bc   : > { %1830 = vst.msk [vmem:[#allocation3 + $0x11c] sm:$0xf] %vm1348_vm11, %v1749_v18  ;;  %v10756_v17 = vld [vmem:[#allocation3 + $0xe8] sm:$0xf0]  ;;  %v3325_v18 = vld [vmem:[#allocation2 + $0x68] sm:$0x1] }
 0x1bd   : > { %v4493_v16 = vpop.f32.mrf.mxu2  ;;  %v4582_v55 = vpop.f32.mrf.mxu3  ;;  %2728 = vst.msk [vmem:[#allocation3 + $0x138] sm:$0xf] %vm256_vm0, %v2696_v30  ;;  %v9832_v37 = vor.u32 %v10756_v17, %v9831_v40  ;;  %v5474_v35 = vor.u32 %v5473_v56, %v5470_v45  ;;  %v2077_v25 = vsel %vm11345_vm9, %v2072_v14, %v12683_v48  ;;  %v3448_v9 = vrot.slane %v3325_v18, 5  ;;  %v2385_v33 = vld [vmem:[#allocation2 + $0xb0] sm:$0x1] }
 0x1be   : > { %v4494_v60 = vadd.f32 %v12712_v21, %v4493_v16  ;;  %v1872_v28 = vld [vmem:[#allocation2 + $0x6c] sm:$0xf]  ;;  %2326 = vst.msk [vmem:[#allocation3 + $0x120] sm:$0xf] %vm256_vm0, %v2077_v25  ;;  %v3446_v51 = vsel %vm11775_vm14, %v9703_v19, %v3445_v13  ;;  %v3447_v39 = vrot.slane %v3445_v13, 4  ;;  %v2535_v30 = vrot.slane %v2533_v63, 4  ;;  %v12749_v40 = vpop.permute.xlu1 %2586 }
 0x1bf   : > { %v3208_v42 = vpop.permute.xlu0 %3207  ;;  %10182 = vmatmul.msk.bf16.gmra.mxu0 %vm4365_vm15, %v9832_v37  ;;  %v5475_v43 = vrot.slane %v5474_v35, 4  ;;  %2662 = vst.msk [vmem:[#allocation3 + $0x120] sm:$0xf] %vm1348_vm11, %v2581_v23  ;;  %v1873_v15 = vld [vmem:[#allocation2 + $0x70] sm:$0xf]  ;;  %v2536_v62 = vrot.slane %v2385_v33, 5 }
 0x1c0   : > { %v12737_v10 = vadd.f32 %v4582_v55, %v4494_v60  ;;  %3288 = vst.msk [vmem:[#allocation3 + $0x138] sm:$0xf] %vm1348_vm11, %v3208_v42  ;;  %v3449_v55 = vsel %vm11775_vm14, %v3447_v39, %v3448_v9  ;;  %v2089_v45 = vshrl.u32 %v1872_v28, 16  ;;  %v2092_v56 = vshll.u32 %v1872_v28, 16  ;;  %v10765_v14 = vld [vmem:[#allocation3 + $0x130] sm:$0xf0]  ;;  %v3210_v33 = vpop.permute.xlu2 %3209 }
 0x1c1   : > { %v5480_v16 = vsel %vm11345_vm9, %v5475_v43, %v12648_v26  ;;  %3557 = vst.msk [vmem:[#allocation3 + $0x100] sm:$0xf] %vm256_vm0, %v3446_v51  ;;  %v2098_v60 = vshll.u32 %v1873_v15, 16  ;;  %v10763_v42 = vld [vmem:[#allocation3 + $0x124] sm:$0xf]  ;;  %v2102_v37 = vshrl.u32 %v1873_v15, 16  ;;  %v12761_v43 = vpop.f32.mrf.mxu0  ;;  %v2537_v15 = vsel %vm11775_vm14, %v2535_v30, %v2536_v62 }
 0x1c2   : > { %15056 = vst [vmem:[#allocation8_spill] sm:$0xff] %v12737_v10  ;;  %v9857_v48 = vld [vmem:[#allocation3 + $0x12c] sm:$0xf0]  ;;  %5851 = vrot.lane.b32.xlu2 %v5480_v16, %s11121_s10  ;;  %v2091_v26 = vrot.slane %v2089_v45, 4  ;;  %v1874_v19 = vld [vmem:[#allocation2 + $0x74] sm:$0x1] }
 0x1c3   : > { %v10762_v11 = vld [vmem:[#allocation3 + $0x11c] sm:$0xf]  ;;  %3558 = vst.msk [vmem:[#allocation3 + $0x114] sm:$0xf] %vm256_vm0, %v3449_v55  ;;  %v2094_v35 = vrot.slane %v2092_v56, 5  ;;  %v2100_v18 = vrot.slane %v2098_v60, 5 }
 0x1c4   : > { %v9860_v7 = vor.u32 %v10762_v11, %v9857_v48  ;;  %v2108_v9 = vshll.u32 %v1874_v19, 16  ;;  %v2104_v28 = vrot.slane %v2102_v37, 4  ;;  %v2697_v39 = vld [vmem:[#allocation2 + $0x78] sm:$0xf]  ;;  %v2698_v48 = vld [vmem:[#allocation2 + $0x7c] sm:$0xf] }
 0x1c5   : > { %v4495_v63 = vpop.f32.mrf.mxu2  ;;  %v4584_v23 = vpop.f32.mrf.mxu3  ;;  %v2095_v16 = vor.u32 %v2094_v35, %v2091_v26  ;;  %2729 = vst.msk [vmem:[#allocation3 + $0x14c] sm:$0xf] %vm256_vm0, %v2697_v39  ;;  %v3326_v45 = vld [vmem:[#allocation2 + $0x6c] sm:$0xe]  ;;  %v3327_v60 = vld [vmem:[#allocation2 + $0x70] sm:$0xf] }
 0x1c6   : > { %v4496_v17 = vadd.f32 %v12712_v21, %v4495_v63  ;;  %4546 = vmatmul.bf16.gmra.mxu1 %v9860_v7  ;;  %v2110_v55 = vrot.slane %v2108_v9, 5  ;;  %v9863_v11 = vld [vmem:[#allocation3 + $0x120] sm:$0xf]  ;;  %v2105_v56 = vor.u32 %v2104_v28, %v2100_v18  ;;  %3289 = vst.msk [vmem:[#allocation3 + $0x14c] sm:$0xf] %vm1348_vm11, %v3210_v33  ;;  %v12769_v7 = vpop.permute.xlu1 %2588  ;;  %v9704_v26 = vrot.slane %v3326_v45, 9 }
 0x1c7   : > { %v2585_v13 = vpop.permute.xlu0 %2584  ;;  %v9865_v25 = vld [vmem:[#allocation3 + $0x134] sm:$0xf0]  ;;  %v9864_v19 = vor.u32 %v10765_v14, %v9863_v11  ;;  %2730 = vst.msk [vmem:[#allocation3 + $0x160] sm:$0xf] %vm256_vm0, %v2698_v48  ;;  %v3328_v39 = vld [vmem:[#allocation2 + $0x74] sm:$0x1] }
 0x1c8   : > { %v12763_v51 = vadd.f32 %v4584_v23, %v4496_v17  ;;  %v9868_v63 = vor.u32 %v10763_v42, %v9865_v25  ;;  %v9851_v23 = vld [vmem:[#allocation3 + $0x100] sm:$0xf]  ;;  %v2096_v17 = vrot.slane %v2095_v16, 4  ;;  %v2106_v9 = vrot.slane %v2105_v56, 4  ;;  %v1876_v14 = vld [vmem:[#allocation2 + $0x7c] sm:$0xf] }
 0x1c9   : > { %v3452_v30 = vrot.slane %v3327_v60, 5  ;;  %v3455_v33 = vrot.slane %v3328_v39, 5  ;;  %v1875_v28 = vld [vmem:[#allocation2 + $0x78] sm:$0xf]  ;;  %v2122_v60 = vshll.u32 %v1876_v14, 16 }
 0x1ca   : > { %15057 = vst [vmem:[#allocation9_spill] sm:$0xff] %v12763_v51  ;;  %v10761_v37 = vld [vmem:[#allocation3 + $0x110] sm:$0xf0]  ;;  %2606 = vrot.lane.b32.xlu2 %v2537_v15, %s11121_s10  ;;  %v2101_v62 = vsel %vm11345_vm9, %v2096_v17, %v2100_v18  ;;  %4635 = vmatmul.bf16.gmra.mxu2 %v9864_v19  ;;  %v2111_v45 = vsel %vm11345_vm9, %v2106_v9, %v2110_v55  ;;  %v2113_v18 = vshrl.u32 %v1875_v28, 16  ;;  %v2116_v56 = vshll.u32 %v1875_v28, 16 }
 0x1cb   : > { %v9852_v16 = vor.u32 %v10761_v37, %v9851_v23  ;;  %2328 = vst.msk [vmem:[#allocation3 + $0x148] sm:$0xf] %vm256_vm0, %v2101_v62  ;;  %4724 = vmatmul.bf16.gmra.mxu3 %v9868_v63  ;;  %v3454_v11 = vrot.slane %v3452_v30, 4  ;;  %v2126_v17 = vshrl.u32 %v1876_v14, 16  ;;  %v3453_v63 = vsel %vm11775_vm14, %v9704_v26, %v3452_v30  ;;  %v1877_v37 = vld [vmem:[#allocation2 + $0x80] sm:$0x1]  ;;  %v12792_v62 = vpop.f32.mrf.mxu0 }
 0x1cc   : > { %v12772_v35 = vpop.f32.mrf.mxu1  ;;  %2664 = vst.msk [vmem:[#allocation3 + $0x148] sm:$0xf] %vm1348_vm11, %v2585_v13  ;;  %v2115_v13 = vrot.slane %v2113_v18, 4  ;;  %v2118_v55 = vrot.slane %v2116_v56, 5  ;;  %v2124_v9 = vrot.slane %v2122_v60, 5 }
 0x1cd   : > { %v4498_v42 = vpop.f32.mrf.mxu2  ;;  %v4587_v25 = vpop.f32.mrf.mxu3  ;;  %2329 = vst.msk [vmem:[#allocation3 + $0x15c] sm:$0xf] %vm256_vm0, %v2111_v45  ;;  %v3456_v23 = vsel %vm11775_vm14, %v3454_v11, %v3455_v33  ;;  %v2128_v39 = vrot.slane %v2126_v17, 4  ;;  %v2700_v33 = vld [vmem:[#allocation2 + $0x88] sm:$0xf] }
 0x1ce   : > { %v4499_v48 = vadd.f32 %v12712_v21, %v4498_v42  ;;  %2665 = vst.msk [vmem:[#allocation3 + $0x15c] sm:$0xf] %vm1348_vm11, %v12749_v40  ;;  %v2132_v42 = vshll.u32 %v1877_v37, 16  ;;  %v2119_v26 = vor.u32 %v2118_v55, %v2115_v13  ;;  %v3329_v28 = vld [vmem:[#allocation2 + $0x78] sm:$0xe] }
 0x1cf   : > { %v3212_v15 = vpop.permute.xlu0 %3211  ;;  %10183 = vmatmul.msk.bf16.gmra.mxu0 %vm4365_vm15, %v9852_v16  ;;  %3559 = vst.msk [vmem:[#allocation3 + $0x128] sm:$0xf] %vm256_vm0, %v3453_v63  ;;  %v2129_v30 = vor.u32 %v2128_v39, %v2124_v9  ;;  %v3330_v45 = vld [vmem:[#allocation2 + $0x7c] sm:$0xf]  ;;  %v10768_v56 = vld [vmem:[#allocation3 + $0x14c] sm:$0xf] }
 0x1d0   : > { %v12782_v19 = vadd.f32 %v4587_v25, %v4499_v48  ;;  %3290 = vst.msk [vmem:[#allocation3 + $0x160] sm:$0xf] %vm1348_vm11, %v3212_v15  ;;  %v2699_v25 = vld [vmem:[#allocation2 + $0x84] sm:$0xf]  ;;  %v2134_v14 = vrot.slane %v2132_v42, 5  ;;  %v3216_v48 = vpop.permute.xlu1 %3215  ;;  %v2120_v18 = vrot.slane %v2119_v26, 4 }
 0x1d1   : > { %3560 = vst.msk [vmem:[#allocation3 + $0x13c] sm:$0xf] %vm256_vm0, %v3456_v23  ;;  %v2130_v15 = vrot.slane %v2129_v30, 4  ;;  %v3331_v60 = vld [vmem:[#allocation2 + $0x80] sm:$0x1]  ;;  %v9705_v37 = vrot.slane %v3329_v28, 9  ;;  %v2591_v30 = vpop.permute.xlu2 %2590  ;;  %v4424_v28 = vadd.f32 %v12712_v21, %v12348_v41 }
 0x1d2   : > { %15058 = vst [vmem:[#allocation10_spill] sm:$0xff] %v12782_v19  ;;  %v3459_v23 = vrot.slane %v3330_v45, 5  ;;  %v2125_v13 = vsel %vm11345_vm9, %v2120_v18, %v2124_v9  ;;  %v3462_v39 = vrot.slane %v3331_v60, 5  ;;  %v1878_v42 = vld [vmem:[#allocation2 + $0x84] sm:$0xf] }
 0x1d3   : > { %2731 = vst.msk [vmem:[#allocation3 + $0x174] sm:$0xf] %vm256_vm0, %v2699_v25  ;;  %v9883_v63 = vld [vmem:[#allocation3 + $0x148] sm:$0xf]  ;;  %v2135_v55 = vsel %vm11345_vm9, %v2130_v15, %v2134_v14  ;;  %v4779_v15 = vpop.f32.mrf.mxu0 }
 0x1d4   : > { %v12797_v40 = vpop.f32.mrf.mxu1  ;;  %2732 = vst.msk [vmem:[#allocation3 + $0x188] sm:$0xf] %vm256_vm0, %v2700_v33  ;;  %v2137_v33 = vshrl.u32 %v1878_v42, 16  ;;  %v3460_v60 = vsel %vm11775_vm14, %v9705_v37, %v3459_v23 }
 0x1d5   : > { %v4500_v16 = vpop.f32.mrf.mxu2  ;;  %v4589_v11 = vpop.f32.mrf.mxu3  ;;  %3292 = vst.msk [vmem:[#allocation3 + $0x188] sm:$0xf] %vm1348_vm11, %v3216_v48  ;;  %v10770_v25 = vld [vmem:[#allocation3 + $0x158] sm:$0xf0]  ;;  %v1879_v48 = vld [vmem:[#allocation2 + $0x88] sm:$0xf] }
 0x1d6   : > { %v4501_v17 = vadd.f32 %v12712_v21, %v4500_v16  ;;  %2330 = vst.msk [vmem:[#allocation3 + $0x170] sm:$0xf] %vm256_vm0, %v2125_v13  ;;  %v3461_v16 = vrot.slane %v3459_v23, 4  ;;  %v9884_v9 = vor.u32 %v10770_v25, %v9883_v63  ;;  %v9871_v18 = vld [vmem:[#allocation3 + $0x128] sm:$0xf]  ;;  %v2140_v13 = vshll.u32 %v1878_v42, 16 }
 0x1d7   : > { %2666 = vst.msk [vmem:[#allocation3 + $0x170] sm:$0xf] %vm1348_vm11, %v12769_v7  ;;  %v9885_v14 = vld [vmem:[#allocation3 + $0x15c] sm:$0xf0]  ;;  %v3214_v45 = vpop.permute.xlu0 %3213  ;;  %v2146_v7 = vshll.u32 %v1879_v48, 16  ;;  %v2150_v63 = vshrl.u32 %v1879_v48, 16  ;;  %v4513_v25 = vadd.f32 %v12772_v35, %v4424_v28 }
 0x1d8   : > { %v12807_v26 = vadd.f32 %v4589_v11, %v4501_v17  ;;  %v9888_v11 = vor.u32 %v10768_v56, %v9885_v14  ;;  %2331 = vst.msk [vmem:[#allocation3 + $0x184] sm:$0xf] %vm256_vm0, %v2135_v55  ;;  %v2139_v17 = vrot.slane %v2137_v33, 4  ;;  %v3463_v41 = vsel %vm11775_vm14, %v3461_v16, %v3462_v39  ;;  %v1880_v55 = vld [vmem:[#allocation2 + $0x8c] sm:$0x1] }
 0x1d9   : > { %2667 = vst.msk [vmem:[#allocation3 + $0x184] sm:$0xf] %vm1348_vm11, %v2591_v30  ;;  %v2142_v56 = vrot.slane %v2140_v13, 5  ;;  %v2148_v42 = vrot.slane %v2146_v7, 5  ;;  %v2152_v30 = vrot.slane %v2150_v63, 4  ;;  %v2156_v33 = vshll.u32 %v1880_v55, 16 }
 0x1da   : > { %15059 = vst [vmem:[#allocation11_spill] sm:$0xff] %v12807_v26  ;;  %v10766_v26 = vld [vmem:[#allocation3 + $0x138] sm:$0xf0]  ;;  %4640 = vmatmul.bf16.gmra.mxu2 %v9884_v9 }
 0x1db   : > { %3291 = vst.msk [vmem:[#allocation3 + $0x174] sm:$0xf] %vm1348_vm11, %v3214_v45  ;;  %v9872_v14 = vor.u32 %v10766_v26, %v9871_v18  ;;  %4729 = vmatmul.bf16.gmra.mxu3 %v9888_v11  ;;  %v2143_v35 = vor.u32 %v2142_v56, %v2139_v17  ;;  %v2702_v16 = vld [vmem:[#allocation2 + $0x94] sm:$0xf]  ;;  %v2153_v28 = vor.u32 %v2152_v30, %v2148_v42  ;;  %v2158_v48 = vrot.slane %v2156_v33, 5  ;;  %v4781_v30 = vpop.f32.mrf.mxu0 }
 0x1dc   : > { %v12821_v19 = vpop.f32.mrf.mxu1  ;;  %3561 = vst.msk [vmem:[#allocation3 + $0x150] sm:$0xf] %vm256_vm0, %v3460_v60  ;;  %v2701_v45 = vld [vmem:[#allocation2 + $0x90] sm:$0xf]  ;;  %v2593_v60 = vpop.permute.xlu2 %2592  ;;  %v2386_v63 = vld [vmem:[#allocation2 + $0xb4] sm:$0xe]  ;;  %v4426_v26 = vadd.f32 %v12712_v21, %v12385_v24 }
 0x1dd   : > { %v4601_v37 = vpop.f32.mrf.mxu2  ;;  %v4690_v23 = vpop.f32.mrf.mxu3  ;;  %3562 = vst.msk [vmem:[#allocation3 + $0x164] sm:$0xf] %vm256_vm0, %v3463_v41  ;;  %v2144_v13 = vrot.slane %v2143_v35, 4  ;;  %v2154_v7 = vrot.slane %v2153_v28, 4  ;;  %v12833_v17 = vld [vmem:[#allocation2 + $0xb8] sm:$0xf] }
 0x1de   : > { %v4602_v39 = vadd.f32 %v4601_v37, %v4513_v25  ;;  %2734 = vst.msk [vmem:[#allocation3 + $0x1b0] sm:$0xf] %vm256_vm0, %v2702_v16  ;;  %v9695_v41 = vrot.slane %v2386_v63, 9  ;;  %v9903_v25 = vld [vmem:[#allocation3 + $0x170] sm:$0xf]  ;;  %v15034_v24 = vrot.slane %v12833_v17, 5 }
 0x1df   : > { %2733 = vst.msk [vmem:[#allocation3 + $0x19c] sm:$0xf] %vm256_vm0, %v2701_v45  ;;  %10184 = vmatmul.msk.bf16.gmra.mxu0 %vm4365_vm15, %v9872_v14  ;;  %v2149_v11 = vsel %vm11345_vm9, %v2144_v13, %v2148_v42  ;;  %v12836_v56 = vld [vmem:[#allocation3 + $0x184] sm:$0xf0]  ;;  %v2159_v55 = vsel %vm11345_vm9, %v2154_v7, %v2158_v48  ;;  %v2595_v37 = vpop.permute.xlu0 %2594  ;;  %v3332_v16 = vld [vmem:[#allocation2 + $0x84] sm:$0xe] }
 0x1e0   : > { %v4691_v9 = vadd.f32 %v4690_v23, %v4602_v39  ;;  %2332 = vst.msk [vmem:[#allocation3 + $0x198] sm:$0xf] %vm256_vm0, %v2149_v11  ;;  %v4515_v23 = vadd.f32 %v12797_v40, %v4426_v26  ;;  %v10775_v42 = vld [vmem:[#allocation3 + $0x180] sm:$0xf0]  ;;  %v2541_v35 = vsel %vm11775_vm14, %v9695_v41, %v15034_v24  ;;  %v4429_v40 = vadd.f32 %v12712_v21, %v12406_v36  ;;  %v3334_v13 = vld [vmem:[#allocation2 + $0x8c] sm:$0x1] }
 0x1e1   : > { %2668 = vst.msk [vmem:[#allocation3 + $0x198] sm:$0xf] %vm1348_vm11, %v2593_v60  ;;  %2608 = vrot.lane.b32.xlu1 %v2541_v35, %s11121_s10  ;;  %v9904_v60 = vor.u32 %v10775_v42, %v9903_v25  ;;  %v9706_v7 = vrot.slane %v3332_v16, 9  ;;  %v3469_v26 = vrot.slane %v3334_v13, 5  ;;  %v1882_v36 = vld [vmem:[#allocation2 + $0x94] sm:$0xf] }
 0x1e2   : > { %v4780_v18 = vadd.f32 %v4779_v15, %v4691_v9  ;;  %v10773_v39 = vld [vmem:[#allocation3 + $0x174] sm:$0xf]  ;;  %2333 = vst.msk [vmem:[#allocation3 + $0x1ac] sm:$0xf] %vm256_vm0, %v2159_v55  ;;  %v3333_v9 = vld [vmem:[#allocation2 + $0x88] sm:$0xf] }
 0x1e3   : > { %2669 = vst.msk [vmem:[#allocation3 + $0x1ac] sm:$0xf] %vm1348_vm11, %v2595_v37  ;;  %v3466_v63 = vrot.slane %v3333_v9, 5  ;;  %v9908_v55 = vor.u32 %v10773_v39, %v12836_v56  ;;  %v3218_v24 = vpop.permute.xlu1 %3217  ;;  %v2170_v42 = vshll.u32 %v1882_v36, 16 }
 0x1e4   : > { %v4859_v15 = vmax.f32 %v4780_v18, 0.0  ;;  %v12842_v33 = vpop.f32.mrf.mxu1  ;;  %v1881_v18 = vld [vmem:[#allocation2 + $0x90] sm:$0xf]  ;;  %3293 = vst.msk [vmem:[#allocation3 + $0x19c] sm:$0xf] %vm1348_vm11, %v3218_v24 }
 0x1e5   : > { %v4603_v14 = vpop.f32.mrf.mxu2  ;;  %v4692_v45 = vpop.f32.mrf.mxu3  ;;  %v3467_v37 = vsel %vm11775_vm14, %v9706_v7, %v3466_v63  ;;  %v3468_v35 = vrot.slane %v3466_v63, 4  ;;  %v2164_v25 = vshll.u32 %v1881_v18, 16  ;;  %v10771_v39 = vld [vmem:[#allocation3 + $0x160] sm:$0xf0]  ;;  %v1883_v24 = vld [vmem:[#allocation2 + $0x98] sm:$0x1]  ;;  %v4518_v7 = vadd.f32 %v12821_v19, %v4429_v40 }
 0x1e6   : > { %v4891_v28 = vpack.c.bf16 %v4859_v15, %v4859_v15  ;;  %v4604_v48 = vadd.f32 %v4603_v14, %v4515_v23  ;;  %v2161_v15 = vshrl.u32 %v1881_v18, 16  ;;  %v5243_v23 = vld [vmem:[#allocation2 + $0xc] sm:$0xf]  ;;  %v9891_v14 = vld [vmem:[#allocation3 + $0x150] sm:$0xf]  ;;  %v4784_v18 = vpop.f32.mrf.mxu0 }
 0x1e7   : > { %3563 = vst.msk [vmem:[#allocation3 + $0x178] sm:$0xf] %vm256_vm0, %v3467_v37  ;;  %v2166_v51 = vrot.slane %v2164_v25, 5 }
 0x1e8   : > { %v4924_v11 = vshrl.u32 %v4891_v28, 16  ;;  %v4693_v41 = vadd.f32 %v4692_v45, %v4604_v48  ;;  %v4927_v9 = vshll.u32 %v4891_v28, 16  ;;  %v2163_v56 = vrot.slane %v2161_v15, 4  ;;  %v3220_v48 = vpop.permute.xlu2 %3219 }
 0x1e9   : > { %v3470_v45 = vsel %vm11775_vm14, %v3468_v35, %v3469_v26  ;;  %3294 = vst.msk [vmem:[#allocation3 + $0x1b0] sm:$0xf] %vm1348_vm11, %v3220_v48  ;;  %v2174_v28 = vshrl.u32 %v1882_v36, 16  ;;  %v2172_v15 = vrot.slane %v2170_v42, 5  ;;  %v2180_v26 = vshll.u32 %v1883_v24, 16 }
 0x1ea   : > { %v12858_v16 = vrot.slane %v4924_v11, 7  ;;  %v4782_v13 = vadd.f32 %v4781_v30, %v4693_v41  ;;  %4645 = vmatmul.bf16.gmra.mxu2 %v9904_v60  ;;  %3564 = vst.msk [vmem:[#allocation3 + $0x18c] sm:$0xf] %vm256_vm0, %v3470_v45  ;;  %v2167_v41 = vor.u32 %v2166_v51, %v2163_v56  ;;  %v9892_v35 = vor.u32 %v10771_v39, %v9891_v14  ;;  %v12872_v42 = vld [vmem:[#allocation3 + $0x198] sm:$0xf] }
 0x1eb   : > { %4734 = vmatmul.bf16.gmra.mxu3 %v9908_v55  ;;  %v2176_v48 = vrot.slane %v2174_v28, 4  ;;  %v12874_v56 = vld [vmem:[#allocation3 + $0x1a8] sm:$0xf0]  ;;  %v4431_v55 = vadd.f32 %v12712_v21, %v12431_v47  ;;  %v12881_v39 = vld [vmem:[#allocation3 + $0x19c] sm:$0xf]  ;;  %v2597_v47 = vpop.permute.xlu0 %2596 }
 0x1ec   : > { %v4929_v10 = vor.u32 %v4927_v9, %v12858_v16  ;;  %v4860_v63 = vmax.f32 %v4782_v13, 0.0  ;;  %v2703_v9 = vld [vmem:[#allocation2 + $0x9c] sm:$0xf]  ;;  %v2704_v13 = vld [vmem:[#allocation2 + $0xa0] sm:$0xf]  ;;  %v2168_v36 = vrot.slane %v2167_v41, 4 }
 0x1ed   : > { %v4606_v30 = vpop.f32.mrf.mxu2  ;;  %v12866_v11 = vpop.f32.mrf.mxu1  ;;  %2735 = vst.msk [vmem:[#allocation3 + $0x1c4] sm:$0xf] %vm256_vm0, %v2703_v9  ;;  %v2177_v24 = vor.u32 %v2176_v48, %v2172_v15  ;;  %v3336_v41 = vld [vmem:[#allocation2 + $0x94] sm:$0xf] }
 0x1ee   : > { %v5244_v37 = vsel %vm11229_vm2, %v4929_v10, %v5243_v23  ;;  %v4892_v25 = vpack.c.bf16 %v4860_v63, %v4860_v63  ;;  %v4607_v19 = vadd.f32 %v4606_v30, %v4518_v7  ;;  %v4695_v40 = vpop.f32.mrf.mxu3  ;;  %v2182_v10 = vrot.slane %v2180_v26, 5  ;;  %v5247_v23 = vld [vmem:[#allocation2 + $0x14] sm:$0x1]  ;;  %2736 = vst.msk [vmem:[#allocation3 + $0x1d8] sm:$0xf] %vm256_vm0, %v2704_v13  ;;  %v2599_v9 = vpop.permute.xlu1 %2598 }
 0x1ef   : > { %5245 = vst [vmem:[#allocation2 + $0xc] sm:$0xf] %v5244_v37  ;;  %v2173_v14 = vsel %vm11345_vm9, %v2168_v36, %v2172_v15  ;;  %v3335_v7 = vld [vmem:[#allocation2 + $0x90] sm:$0xe]  ;;  %v4434_v63 = vadd.f32 %v12712_v21, %v12456_v57  ;;  %10185 = vmatmul.msk.bf16.gmra.mxu0 %vm4365_vm15, %v9892_v35  ;;  %v12890_v37 = vadd.f32 %v12712_v21, %v12484_v31  ;;  %v2178_v57 = vrot.slane %v2177_v24, 4 }
 0x1f0   : > { %v4932_v1 = vshrl.u32 %v4892_v25, 16  ;;  %v4935_v45 = vshll.u32 %v4892_v25, 16  ;;  %v4696_v51 = vadd.f32 %v4695_v40, %v4607_v19  ;;  %2334 = vst.msk [vmem:[#allocation3 + $0x1c0] sm:$0xf] %vm256_vm0, %v2173_v14  ;;  %v9707_v26 = vrot.slane %v3335_v7, 9 }
 0x1f1   : > { %v4520_v15 = vadd.f32 %v12842_v33, %v4431_v55  ;;  %2670 = vst.msk [vmem:[#allocation3 + $0x1c0] sm:$0xf] %vm1348_vm11, %v2597_v47  ;;  %v12894_v25 = vld [vmem:[#allocation3 + $0x1ac] sm:$0xf0]  ;;  %v3473_v19 = vrot.slane %v3336_v41, 5  ;;  %v9924_v31 = vor.u32 %v12874_v56, %v12872_v42 }
 0x1f2   : > { %v4934_v28 = vrot.slane %v4932_v1, 7  ;;  %v4785_v30 = vadd.f32 %v4784_v18, %v4696_v51  ;;  %v4930_v1 = vrot.slane %v12858_v16, 4  ;;  %v3337_v13 = vld [vmem:[#allocation2 + $0x98] sm:$0x1]  ;;  %v9928_v33 = vor.u32 %v12881_v39, %v12894_v25  ;;  %v1884_v14 = vld [vmem:[#allocation2 + $0x9c] sm:$0xf] }
 0x1f3   : > { %v2183_v51 = vsel %vm11345_vm9, %v2178_v57, %v2182_v10  ;;  %v3475_v55 = vrot.slane %v3473_v19, 4  ;;  %v12909_v7 = vld [vmem:[#allocation3 + $0x178] sm:$0xf]  ;;  %v12914_v10 = vld [vmem:[#allocation2 + $0xa0] sm:$0xf]  ;;  %v3474_v47 = vsel %vm11775_vm14, %v9707_v26, %v3473_v19  ;;  %v3476_v41 = vrot.slane %v3337_v13, 5 }
 0x1f4   : > { %v4937_v18 = vor.u32 %v4935_v45, %v4934_v28  ;;  %v4939_v35 = vrot.slane %v4934_v28, 4  ;;  %v4861_v40 = vmax.f32 %v4785_v30, 0.0  ;;  %v12911_v28 = vld [vmem:[#allocation3 + $0x188] sm:$0xf0]  ;;  %v4786_v30 = vpop.f32.mrf.mxu0  ;;  %2335 = vst.msk [vmem:[#allocation3 + $0x1d4] sm:$0xf] %vm256_vm0, %v2183_v51  ;;  %v4523_v13 = vadd.f32 %v12866_v11, %v4434_v63 }
 0x1f5   : > { %v4608_v36 = vpop.f32.mrf.mxu2  ;;  %v12897_v48 = vpop.f32.mrf.mxu1  ;;  %2671 = vst.msk [vmem:[#allocation3 + $0x1d4] sm:$0xf] %vm1348_vm11, %v2599_v9  ;;  %v2188_v51 = vshll.u32 %v1884_v14, 16  ;;  %v2194_v19 = vshll.u32 %v12914_v10, 16  ;;  %v9912_v9 = vor.u32 %v12911_v28, %v12909_v7  ;;  %v1886_v28 = vld [vmem:[#allocation2 + $0xa4] sm:$0x1] }
 0x1f6   : > { %v4938_v16 = vsel %vm11297_vm5, %v4930_v1, %v4937_v18  ;;  %v5248_v45 = vsel %vm11362_vm10, %v4939_v35, %v5247_v23  ;;  %v4893_v24 = vpack.c.bf16 %v4861_v40, %v4861_v40  ;;  %v4609_v42 = vadd.f32 %v4608_v36, %v4520_v15  ;;  %v4697_v56 = vpop.f32.mrf.mxu3  ;;  %v5422_v39 = vld [vmem:[#allocation2 + $0xc] sm:$0xf]  ;;  %3565 = vst.msk [vmem:[#allocation3 + $0x1a0] sm:$0xf] %vm256_vm0, %v3474_v47 }
 0x1f7   : > { %5246 = vst.msk [vmem:[#allocation2 + $0x10] sm:$0xf] %vm256_vm0, %v4938_v16  ;;  %v5492_v23 = vshrl.u32 %v5422_v39, 16  ;;  %v5495_v25 = vshll.u32 %v5422_v39, 16  ;;  %v2185_v15 = vshrl.u32 %v1884_v14, 16  ;;  %v3477_v35 = vsel %vm11775_vm14, %v3475_v55, %v3476_v41 }
 0x1f8   : > { %5249 = vst [vmem:[#allocation2 + $0x14] sm:$0x1] %v5248_v45  ;;  %v4941_v57 = vshrl.u32 %v4893_v24, 16  ;;  %v4944_v1 = vshll.u32 %v4893_v24, 16  ;;  %v4698_v18 = vadd.f32 %v4697_v56, %v4609_v42  ;;  %v5250_v45 = vld [vmem:[#allocation2 + $0x18] sm:$0xf] }
 0x1f9   : > { %v5494_v40 = vrot.slane %v5492_v23, 4  ;;  %v5497_v36 = vrot.slane %v5495_v25, 5  ;;  %v2187_v26 = vrot.slane %v2185_v15, 4  ;;  %3566 = vst.msk [vmem:[#allocation3 + $0x1b4] sm:$0xf] %vm256_vm0, %v3477_v35  ;;  %v2190_v24 = vrot.slane %v2188_v51, 5 }
 0x1fa   : > { %v12922_v16 = vrot.slane %v4941_v57, 7  ;;  %v4787_v60 = vadd.f32 %v4786_v30, %v4698_v18  ;;  %v12932_v30 = vld [vmem:[#allocation2 + $0xbc] sm:$0x1]  ;;  %v15060_v39 = vrot.slane %v12833_v17, 5  ;;  %4650 = vmatmul.bf16.gmra.mxu2 %v9924_v31  ;;  %v12938_v7 = vrot.slane %v2194_v19, 5 }
 0x1fb   : > { %v5498_v55 = vor.u32 %v5497_v36, %v5494_v40  ;;  %v2191_v41 = vor.u32 %v2190_v24, %v2187_v26  ;;  %v2198_v23 = vshrl.u32 %v12914_v10, 16  ;;  %4739 = vmatmul.bf16.gmra.mxu3 %v9928_v33  ;;  %v2543_v15 = vrot.slane %v12932_v30, 5  ;;  %v750_v31 = vld [vmem:[#allocation2 + $0xc8] sm:$0x1]  ;;  %v3224_v10 = vpop.permute.xlu0 %3223 }
 0x1fc   : > { %v4946_v14 = vor.u32 %v4944_v1, %v12922_v16  ;;  %v4947_v42 = vrot.slane %v12922_v16, 4  ;;  %v4862_v56 = vmax.f32 %v4787_v60, 0.0  ;;  %v12936_v47 = vrot.slane %v15060_v39, 4  ;;  %3296 = vst.msk [vmem:[#allocation3 + $0x1d8] sm:$0xf] %vm1348_vm11, %v3224_v10 }
 0x1fd   : > { %v4611_v11 = vpop.f32.mrf.mxu2  ;;  %v5499_v63 = vrot.slane %v5498_v55, 4  ;;  %v4439_v35 = vadd.f32 %v12712_v21, %v12515_v27  ;;  %v4525_v40 = vadd.f32 %v12897_v48, %v12890_v37  ;;  %v2204_v55 = vshll.u32 %v1886_v28, 16  ;;  %v5254_v37 = vld [vmem:[#allocation2 + $0x20] sm:$0x1]  ;;  %v12964_v10 = vld [vmem:[#allocation3 + $0x1a0] sm:$0xf] }
 0x1fe   : > { %v5251_v25 = vsel %vm11229_vm2, %v4946_v14, %v5250_v45  ;;  %v4894_v57 = vpack.c.bf16 %v4862_v56, %v4862_v56  ;;  %v4612_v60 = vadd.f32 %v4611_v11, %v4523_v13  ;;  %v4527_v1 = vpop.f32.mrf.mxu1  ;;  %v4700_v18 = vpop.f32.mrf.mxu3  ;;  %v5423_v17 = vld [vmem:[#allocation2 + $0x10] sm:$0xf]  ;;  %v2192_v56 = vrot.slane %v2191_v41, 4 }
 0x1ff   : > { %5252 = vst [vmem:[#allocation2 + $0x18] sm:$0xf] %v5251_v25  ;;  %v5501_v36 = vshll.u32 %v5423_v17, 16  ;;  %v5505_v51 = vshrl.u32 %v5423_v17, 16  ;;  %v5424_v26 = vld [vmem:[#allocation2 + $0x14] sm:$0x1]  ;;  %v4789_v13 = vpop.f32.mrf.mxu0  ;;  %10186 = vmatmul.msk.bf16.gmra.mxu0 %vm4365_vm15, %v9912_v9  ;;  %v2544_v16 = vsel %vm11775_vm14, %v12936_v47, %v2543_v15 }
 0x200   : > { %v4949_v19 = vshrl.u32 %v4894_v57, 16  ;;  %v4701_v33 = vadd.f32 %v4700_v18, %v4612_v60  ;;  %v5511_v45 = vshll.u32 %v5424_v26, 16  ;;  %v2200_v30 = vrot.slane %v2198_v23, 4  ;;  %v2788_v9 = vld [vmem:[#allocation2 + $0xc4] sm:$0xf]  ;;  %v3222_v17 = vpop.permute.xlu2 %3221 }
 0x201   : > { %v5503_v24 = vrot.slane %v5501_v36, 5  ;;  %v5507_v14 = vrot.slane %v5505_v51, 4  ;;  %v4952_v21 = vshll.u32 %v4894_v57, 16  ;;  %v15061_v39 = vrot.slane %v11857_v50, 4  ;;  %3295 = vst.msk [vmem:[#allocation3 + $0x1c4] sm:$0xf] %vm1348_vm11, %v3222_v17 }
 0x202   : > { %v4951_v27 = vrot.slane %v4949_v19, 7  ;;  %v4790_v48 = vadd.f32 %v4789_v13, %v4701_v33  ;;  %v5513_v28 = vrot.slane %v5511_v45, 5  ;;  %v2197_v41 = vsel %vm11345_vm9, %v2192_v56, %v12938_v7  ;;  %v12966_v36 = vld [vmem:[#allocation3 + $0x1b0] sm:$0xf0]  ;;  %v2601_v19 = vpop.permute.xlu1 %2600  ;;  %v3338_v17 = vld [vmem:[#allocation2 + $0x9c] sm:$0xe] }
 0x203   : > { %v751_v11 = vsel %vm11362_vm10, %v15061_v39, %v750_v31  ;;  %v5504_v25 = vsel %vm11345_vm9, %v5499_v63, %v5503_v24  ;;  %v5508_v60 = vor.u32 %v5507_v14, %v5503_v24  ;;  %v12959_v18 = vadd.f32 %v4527_v1, %v4439_v35  ;;  %2336 = vst.msk [vmem:[#allocation3 + $0x1e8] sm:$0xf] %vm256_vm0, %v2197_v41  ;;  %v9943_v31 = vld [vmem:[#allocation3 + $0x1c0] sm:$0xf]  ;;  %v10785_v63 = vld [vmem:[#allocation3 + $0x1d0] sm:$0xf0] }
 0x204   : > { %752 = vst [vmem:[#allocation2 + $0xc8] sm:$0x1] %v751_v11  ;;  %v4954_v23 = vor.u32 %v4952_v21, %v4951_v27  ;;  %v4956_v57 = vrot.slane %v4951_v27, 4  ;;  %v4863_v50 = vmax.f32 %v4790_v48, 0.0  ;;  %5855 = vrot.lane.b32.xlu2 %v5504_v25, %s11121_s10  ;;  %v2201_v1 = vor.u32 %v2200_v30, %v12938_v7  ;;  %v2787_v21 = vld [vmem:[#allocation2 + $0xc0] sm:$0xf] }
 0x205   : > { %v4613_v51 = vpop.f32.mrf.mxu2  ;;  %v5509_v26 = vrot.slane %v5508_v60, 4  ;;  %v2206_v35 = vrot.slane %v2204_v55, 5  ;;  %v3139_v33 = vshll.u32 %v2788_v9, 16  ;;  %2672 = vst.msk [vmem:[#allocation3 + $0x1e8] sm:$0xf] %vm1348_vm11, %v2601_v19  ;;  %v3143_v60 = vshrl.u32 %v2788_v9, 16 }
 0x206   : > { %v4955_v13 = vsel %vm11297_vm5, %v4947_v42, %v4954_v23  ;;  %v5255_v45 = vsel %vm11362_vm10, %v4956_v57, %v5254_v37  ;;  %v4895_v24 = vpack.c.bf16 %v4863_v50, %v4863_v50  ;;  %v4614_v14 = vadd.f32 %v4613_v51, %v4525_v40  ;;  %v12975_v56 = vpop.f32.mrf.mxu1  ;;  %v4702_v27 = vpop.f32.mrf.mxu3  ;;  %v2705_v48 = vld [vmem:[#allocation2 + $0xa8] sm:$0xf]  ;;  %v2706_v30 = vld [vmem:[#allocation2 + $0xac] sm:$0xf]  ;;  %v9945_v25 = vld [vmem:[#allocation3 + $0x1d4] sm:$0xf0] }
 0x207   : > { %5256 = vst [vmem:[#allocation2 + $0x20] sm:$0x1] %v5255_v45  ;;  %v5514_v7 = vsel %vm11345_vm9, %v5509_v26, %v5513_v28  ;;  %v2202_v42 = vrot.slane %v2201_v1, 4  ;;  %v12983_v55 = vrot.slane %v3139_v33, 5  ;;  %v4791_v11 = vpop.f32.mrf.mxu0  ;;  %v10930_v28 = vld [vmem:[%s15031_s3 + $0x38] sm:$0xff]  ;;  %v9944_v47 = vor.u32 %v10785_v63, %v9943_v31 }
 0x208   : > { %5253 = vst.msk [vmem:[#allocation2 + $0x1c] sm:$0xf] %vm256_vm0, %v4955_v13  ;;  %v4958_v40 = vshrl.u32 %v4895_v24, 16  ;;  %v4961_v37 = vshll.u32 %v4895_v24, 16  ;;  %v4703_v39 = vadd.f32 %v4702_v27, %v4614_v14  ;;  %5857 = vrot.lane.b32.xlu0 %v5514_v7, %s11121_s10  ;;  %v5257_v41 = vld [vmem:[#allocation2 + $0x24] sm:$0xf]  ;;  %v9932_v51 = vor.u32 %v12966_v36, %v12964_v10  ;;  %9007 = vmatpush.bf16.msrb.mxu1 %v10930_v28 }
 0x209   : > { %v2207_v15 = vsel %vm11345_vm9, %v2202_v42, %v2206_v35  ;;  %v3130_v23 = vshrl.u32 %v2787_v21, 16  ;;  %v3133_v57 = vshll.u32 %v2787_v21, 16  ;;  %2737 = vst.msk [vmem:[#allocation3 + $0x1ec] sm:$0xf] %vm256_vm0, %v2705_v48  ;;  %v3145_v19 = vrot.slane %v3143_v60, 4 }
 0x20a   : > { %v12993_v50 = vrot.slane %v4958_v40, 7  ;;  %v4792_v9 = vadd.f32 %v4791_v11, %v4703_v39  ;;  %2337 = vst.msk [vmem:[#allocation3 + $0x1fc] sm:$0xf] %vm256_vm0, %v2207_v15  ;;  %v9708_v35 = vrot.slane %v3338_v17, 9  ;;  %v10783_v24 = vld [vmem:[#allocation3 + $0x1c4] sm:$0xf]  ;;  %4655 = vmatmul.bf16.gmra.mxu2 %v9944_v47 }
 0x20b   : > { %v2789_v26 = vld [vmem:[#allocation2 + $0xc8] sm:$0x1]  ;;  %v3132_v63 = vrot.slane %v3130_v23, 4  ;;  %v3135_v1 = vrot.slane %v3133_v57, 5  ;;  %2738 = vst.msk [vmem:[#allocation3 + $0x200] sm:$0xf] %vm256_vm0, %v2706_v30  ;;  %v3146_v10 = vor.u32 %v3145_v19, %v12983_v55  ;;  %v9948_v14 = vor.u32 %v10783_v24, %v9945_v25 }
 0x20c   : > { %v3149_v31 = vshll.u32 %v2789_v26, 16  ;;  %v4963_v33 = vor.u32 %v4961_v37, %v12993_v50  ;;  %v4964_v13 = vrot.slane %v12993_v50, 4  ;;  %v4864_v45 = vmax.f32 %v4792_v9, 0.0  ;;  %2610 = vrot.lane.b32.xlu2 %v2544_v16, %s11121_s10  ;;  %v3339_v36 = vld [vmem:[#allocation2 + $0xa0] sm:$0xf]  ;;  %v10929_v25 = vld [vmem:[%s15031_s3 + $0x30] sm:$0xff] }
 0x20d   : > { %v4616_v27 = vpop.f32.mrf.mxu2  ;;  %v3136_v48 = vor.u32 %v3135_v1, %v3132_v63  ;;  %v3340_v7 = vld [vmem:[#allocation2 + $0xa4] sm:$0x1]  ;;  %v3480_v42 = vrot.slane %v3339_v36, 5  ;;  %v5425_v30 = vld [vmem:[#allocation2 + $0x18] sm:$0xf]  ;;  %v3147_v60 = vrot.slane %v3146_v10, 4  ;;  %4744 = vmatmul.bf16.gmra.mxu3 %v9948_v14  ;;  %9008 = vmatpush.bf16.msrb.mxu1 %v10929_v25 }
 0x20e   : > { %v3151_v21 = vrot.slane %v3149_v31, 5  ;;  %v5258_v40 = vsel %vm11229_vm2, %v4963_v33, %v5257_v41  ;;  %v4896_v37 = vpack.c.bf16 %v4864_v45, %v4864_v45  ;;  %v4617_v39 = vadd.f32 %v4616_v27, %v12959_v18  ;;  %v4705_v11 = vpop.f32.mrf.mxu3  ;;  %v5355_v16 = vld [vmem:[#allocation2] sm:$0xf]  ;;  %v13020_v26 = vpop.f32.mrf.mxu1  ;;  %v5356_v24 = vld [vmem:[#allocation2 + $0x4] sm:$0xf]  ;;  %v10928_v10 = vld [vmem:[%s15031_s3 + $0x28] sm:$0xff] }
 0x20f   : > { %v13006_v28 = vld [vmem:[#allocation2 + $0x20] sm:$0x1]  ;;  %5259 = vst [vmem:[#allocation2 + $0x24] sm:$0xf] %v5258_v40  ;;  %v3137_v18 = vrot.slane %v3136_v48, 4  ;;  %v3481_v15 = vsel %vm11775_vm14, %v9708_v35, %v3480_v42  ;;  %v3482_v23 = vrot.slane %v3480_v42, 4  ;;  %v2603_v63 = vpop.permute.xlu2 %2602  ;;  %10187 = vmatmul.msk.bf16.gmra.mxu0 %vm4365_vm15, %v9932_v51  ;;  %v3226_v14 = vpop.permute.xlu0 %3225 }
 0x210   : > { %v13014_v47 = vld [vmem:[%s15030_s2] ss:$0 sm:$0xff]  ;;  %v5426_v57 = vld [vmem:[#allocation2 + $0x1c] sm:$0xf]  ;;  %v4966_v17 = vshrl.u32 %v4896_v37, 16  ;;  %v4969_v9 = vshll.u32 %v4896_v37, 16  ;;  %v4706_v19 = vadd.f32 %v4705_v11, %v4617_v39  ;;  %v3152_v31 = vsel %vm11345_vm9, %v3147_v60, %v3151_v21 }
 0x211   : > { %v4441_v41 = vadd.f32 %v13014_v47, %v12542_v3  ;;  %3567 = vst.msk [vmem:[#allocation3 + $0x1c8] sm:$0xf] %vm256_vm0, %v3481_v15  ;;  %v5261_v3 = vld [vmem:[#allocation2 + $0x2c] sm:$0x1]  ;;  %3235 = vrot.lane.b32.xlu1 %v3152_v31, %s11121_s10  ;;  %v3142_v1 = vsel %vm11345_vm9, %v3137_v18, %v12983_v55  ;;  %v3483_v35 = vrot.slane %v3340_v7, 5  ;;  %v5516_v33 = vshrl.u32 %v5425_v30, 16  ;;  %v4794_v7 = vpop.f32.mrf.mxu0  ;;  %9009 = vmatpush.bf16.msrb.mxu1 %v10928_v10 }
 0x212   : > { %v5519_v45 = vshll.u32 %v5425_v30, 16  ;;  %5387 = vst.msk [vmem:[#allocation3] sm:$0xf] %vm256_vm0, %v5355_v16  ;;  %v4968_v36 = vrot.slane %v4966_v17, 7  ;;  %3233 = vrot.lane.b32.xlu0 %v3142_v1, %s11121_s10  ;;  %v5525_v27 = vshll.u32 %v5426_v57, 16  ;;  %v5529_v55 = vshrl.u32 %v5426_v57, 16  ;;  %v3228_v11 = vpop.permute.xlu1 %3227 }
 0x213   : > { %2673 = vst.msk [vmem:[#allocation3 + $0x1fc] sm:$0xf] %vm1348_vm11, %v2603_v63  ;;  %v5535_v21 = vshll.u32 %v13006_v28, 16  ;;  %v4530_v48 = vadd.f32 %v12975_v56, %v4441_v41  ;;  %v3484_v42 = vsel %vm11775_vm14, %v3482_v23, %v3483_v35  ;;  %v5518_v30 = vrot.slane %v5516_v33, 4  ;;  %v1887_v40 = vld [vmem:[#allocation2 + $0xa8] sm:$0xf] }
 0x214   : > { %3297 = vst.msk [vmem:[#allocation3 + $0x1ec] sm:$0xf] %vm1348_vm11, %v3226_v14  ;;  %v5521_v51 = vrot.slane %v5519_v45, 5  ;;  %v4971_v37 = vor.u32 %v4969_v9, %v4968_v36  ;;  %v4973_v39 = vrot.slane %v4968_v36, 4  ;;  %v4795_v60 = vadd.f32 %v4794_v7, %v4706_v19  ;;  %v1888_v25 = vld [vmem:[#allocation2 + $0xac] sm:$0xf] }
 0x215   : > { %3568 = vst.msk [vmem:[#allocation3 + $0x1dc] sm:$0xf] %vm256_vm0, %v3484_v42  ;;  %v5527_v16 = vrot.slane %v5525_v27, 5  ;;  %v4618_v28 = vpop.f32.mrf.mxu2  ;;  %v5531_v41 = vrot.slane %v5529_v55, 4  ;;  %v2209_v18 = vshrl.u32 %v1887_v40, 16  ;;  %v10927_v15 = vld [vmem:[%s15031_s3 + $0x20] sm:$0xff] }
 0x216   : > { %3298 = vst.msk [vmem:[#allocation3 + $0x200] sm:$0xf] %vm1348_vm11, %v3228_v11  ;;  %v5522_v56 = vor.u32 %v5521_v51, %v5518_v30  ;;  %v4972_v23 = vsel %vm11297_vm5, %v4964_v13, %v4971_v37  ;;  %v5262_v57 = vsel %vm11362_vm10, %v4973_v39, %v5261_v3  ;;  %v4865_v17 = vmax.f32 %v4795_v60, 0.0  ;;  %v4707_v19 = vpop.f32.mrf.mxu3  ;;  %v9963_v13 = vld [vmem:[#allocation3 + $0x1e8] sm:$0xf]  ;;  %9010 = vmatpush.bf16.msrb.mxu1 %v10927_v15  ;;  %v13059_v7 = vpop.f32.mrf.mxu1  ;;  %v10926_v15 = vld [vmem:[%s15031_s3 + $0x18] sm:$0xff] }
 0x217   : > { %v4619_v9 = vadd.f32 %v4618_v28, %v4530_v48  ;;  %5388 = vst.msk [vmem:[#allocation3 + $0x14] sm:$0xf] %vm256_vm0, %v5356_v24  ;;  %v5532_v63 = vor.u32 %v5531_v41, %v5527_v16  ;;  %v5537_v1 = vrot.slane %v5535_v21, 5  ;;  %v2211_v35 = vrot.slane %v2209_v18, 4  ;;  %v1889_v27 = vld [vmem:[#allocation2 + $0xb0] sm:$0x1] }
 0x218   : > { %5263 = vst [vmem:[#allocation2 + $0x2c] sm:$0x1] %v5262_v57  ;;  %v5523_v31 = vrot.slane %v5522_v56, 4  ;;  %v4897_v33 = vpack.c.bf16 %v4865_v17, %v4865_v17  ;;  %v2212_v45 = vshll.u32 %v1887_v40, 16  ;;  %v2218_v10 = vshll.u32 %v1888_v25, 16 }
 0x219   : > { %5260 = vst.msk [vmem:[#allocation2 + $0x28] sm:$0xf] %vm256_vm0, %v4972_v23  ;;  %v4708_v50 = vadd.f32 %v4707_v19, %v4619_v9  ;;  %v13054_v36 = vld [vmem:[#allocation3 + $0x1c8] sm:$0xf]  ;;  %v5533_v14 = vrot.slane %v5532_v63, 4  ;;  %v2222_v55 = vshrl.u32 %v1888_v25, 16  ;;  %v4796_v39 = vpop.f32.mrf.mxu0  ;;  %v4444_v23 = vadd.f32 %v13014_v47, %v12570_v22  ;;  %v5854_v17 = vpop.permute.xlu0 %5853 }
 0x21a   : > { %v5528_v3 = vsel %vm11345_vm9, %v5523_v31, %v5527_v16  ;;  %v10790_v24 = vld [vmem:[#allocation3 + $0x1f8] sm:$0xf0]  ;;  %v4975_v48 = vshrl.u32 %v4897_v33, 16  ;;  %v4978_v21 = vshll.u32 %v4897_v33, 16  ;;  %v2214_v42 = vrot.slane %v2212_v45, 5  ;;  %9011 = vmatpush.bf16.msrb.mxu1 %v10926_v15 }
 0x21b   : > { %5859 = vrot.lane.b32.xlu2 %v5528_v3, %s11121_s10  ;;  %v2220_v30 = vrot.slane %v2218_v10, 5  ;;  %v10788_v51 = vld [vmem:[#allocation3 + $0x1ec] sm:$0xf]  ;;  %v5538_v37 = vsel %vm11345_vm9, %v5533_v14, %v5537_v1  ;;  %v9964_v11 = vor.u32 %v10790_v24, %v9963_v13  ;;  %v2224_v60 = vrot.slane %v2222_v55, 4  ;;  %v2707_v56 = vld [vmem:[#allocation2 + $0xb4] sm:$0xf]  ;;  %v2605_v55 = vpop.permute.xlu1 %2604 }
 0x21c   : > { %v10786_v40 = vld [vmem:[#allocation3 + $0x1d8] sm:$0xf0]  ;;  %v2228_v16 = vshll.u32 %v1889_v27, 16  ;;  %v13063_v28 = vrot.slane %v4975_v48, 7  ;;  %5861 = vrot.lane.b32.xlu0 %v5538_v37, %s11121_s10  ;;  %v2215_v25 = vor.u32 %v2214_v42, %v2211_v35  ;;  %v4797_v41 = vadd.f32 %v4796_v39, %v4708_v50  ;;  %2739 = vst.msk [vmem:[#allocation3 + $0x214] sm:$0xf] %vm256_vm0, %v2707_v56  ;;  %v5852_v3 = vpop.permute.xlu2 %5851 }
 0x21d   : > { %v9965_v18 = vld [vmem:[#allocation3 + $0x1fc] sm:$0xf0]  ;;  %v5264_v57 = vld [vmem:[#allocation2 + $0x30] sm:$0xf]  ;;  %4660 = vmatmul.bf16.gmra.mxu2 %v9964_v11  ;;  %v4621_v19 = vpop.f32.mrf.mxu2  ;;  %v2225_v31 = vor.u32 %v2224_v60, %v2220_v30  ;;  %v9952_v33 = vor.u32 %v10786_v40, %v13054_v36  ;;  %5948 = vst.msk [vmem:[#allocation3 + $0x14] sm:$0xf] %vm1348_vm11, %v5854_v17  ;;  %v4533_v13 = vadd.f32 %v13020_v26, %v4444_v23 }
 0x21e   : > { %v9968_v9 = vor.u32 %v10788_v51, %v9965_v18  ;;  %v2230_v63 = vrot.slane %v2228_v16, 5  ;;  %v2708_v1 = vld [vmem:[#allocation2 + $0xb8] sm:$0xf]  ;;  %v4980_v35 = vor.u32 %v4978_v21, %v13063_v28  ;;  %v2216_v50 = vrot.slane %v2215_v25, 4  ;;  %v4710_v10 = vpop.f32.mrf.mxu3  ;;  %v10925_v22 = vld [vmem:[%s15031_s3 + $0x10] sm:$0xff]  ;;  %v10924_v26 = vld [vmem:[%s15031_s3 + $0x8] sm:$0xff]  ;;  %v13095_v17 = vpop.f32.mrf.mxu1 }
 0x21f   : > { %v4866_v45 = vmax.f32 %v4797_v41, 0.0  ;;  %v2226_v14 = vrot.slane %v2225_v31, 4  ;;  %2740 = vst.msk [vmem:[#allocation3 + $0x228] sm:$0xf] %vm256_vm0, %v2708_v1  ;;  %v3341_v24 = vld [vmem:[#allocation2 + $0xa8] sm:$0xe]  ;;  %v4622_v51 = vadd.f32 %v4621_v19, %v4533_v13  ;;  %10188 = vmatmul.msk.bf16.gmra.mxu0 %vm4365_vm15, %v9952_v33  ;;  %9012 = vmatpush.bf16.msrb.mxu1 %v10925_v22 }
 0x220   : > { %4749 = vmatmul.bf16.gmra.mxu3 %v9968_v9  ;;  %v5265_v36 = vsel %vm11229_vm2, %v4980_v35, %v5264_v57  ;;  %5947 = vst.msk [vmem:[#allocation3] sm:$0xf] %vm1348_vm11, %v5852_v3  ;;  %v2221_v27 = vsel %vm11345_vm9, %v2216_v50, %v2220_v30  ;;  %v3342_v21 = vld [vmem:[#allocation2 + $0xac] sm:$0xf]  ;;  %v3343_v42 = vld [vmem:[#allocation2 + $0xb0] sm:$0x1] }
 0x221   : > { %v4898_v48 = vpack.c.bf16 %v4866_v45, %v4866_v45  ;;  %5266 = vst [vmem:[#allocation2 + $0x30] sm:$0xf] %v5265_v36  ;;  %v2231_v40 = vsel %vm11345_vm9, %v2226_v14, %v2230_v63  ;;  %v9709_v37 = vrot.slane %v3341_v24, 9  ;;  %v3487_v39 = vrot.slane %v3342_v21, 5  ;;  %v5428_v11 = vld [vmem:[#allocation2 + $0x24] sm:$0xf] }
 0x222   : > { %2338 = vst.msk [vmem:[#allocation3 + $0x210] sm:$0xf] %vm256_vm0, %v2221_v27  ;;  %v3490_v16 = vrot.slane %v3343_v42, 5  ;;  %v5540_v56 = vshrl.u32 %v5428_v11, 16  ;;  %v5268_v25 = vld [vmem:[#allocation2 + $0x38] sm:$0x1]  ;;  %v4446_v63 = vadd.f32 %v13014_v47, %v12603_v2  ;;  %v4711_v3 = vadd.f32 %v4710_v10, %v4622_v51 }
 0x223   : > { %v4983_v30 = vshrl.u32 %v4898_v48, 16  ;;  %v4986_v60 = vshll.u32 %v4898_v48, 16  ;;  %2674 = vst.msk [vmem:[#allocation3 + $0x210] sm:$0xf] %vm1348_vm11, %v2605_v55  ;;  %v3488_v41 = vsel %vm11775_vm14, %v9709_v37, %v3487_v39  ;;  %v3489_v18 = vrot.slane %v3487_v39, 4  ;;  %9013 = vmatpush.bf16.msrb.mxu1 %v10924_v26  ;;  %v10923_v2 = vld [vmem:[%s15031_s3] sm:$0xff] }
 0x224   : > { %v5429_v15 = vld [vmem:[#allocation2 + $0x28] sm:$0xf]  ;;  %v5543_v23 = vshll.u32 %v5428_v11, 16  ;;  %2339 = vst.msk [vmem:[#allocation3 + $0x224] sm:$0xf] %vm256_vm0, %v2231_v40  ;;  %v5542_v9 = vrot.slane %v5540_v56, 4  ;;  %v4535_v42 = vadd.f32 %v13059_v7, %v4446_v63 }
 0x225   : > { %v4985_v57 = vrot.slane %v4983_v30, 7  ;;  %v5549_v19 = vshll.u32 %v5429_v15, 16  ;;  %v5553_v31 = vshrl.u32 %v5429_v15, 16  ;;  %v4981_v1 = vrot.slane %v13063_v28, 4  ;;  %3569 = vst.msk [vmem:[#allocation3 + $0x1f0] sm:$0xf] %vm256_vm0, %v3488_v41  ;;  %v4623_v50 = vpop.f32.mrf.mxu2  ;;  %v2607_v28 = vpop.permute.xlu2 %2606 }
 0x226   : > { %v3491_v35 = vsel %vm11775_vm14, %v3489_v18, %v3490_v16  ;;  %v5545_v33 = vrot.slane %v5543_v23, 5  ;;  %v5430_v45 = vld [vmem:[#allocation2 + $0x2c] sm:$0x1]  ;;  %v4712_v24 = vpop.f32.mrf.mxu3  ;;  %v3344_v48 = vld [vmem:[#allocation2 + $0xb4] sm:$0xe]  ;;  %v3230_v40 = vpop.permute.xlu0 %3229  ;;  %v4624_v56 = vadd.f32 %v4623_v50, %v4535_v42 }
 0x227   : > { %v4988_v22 = vor.u32 %v4986_v60, %v4985_v57  ;;  %v4990_v13 = vrot.slane %v4985_v57, 4  ;;  %3570 = vst.msk [vmem:[#allocation3 + $0x204] sm:$0xf] %vm256_vm0, %v3491_v35  ;;  %v5551_v14 = vrot.slane %v5549_v19, 5  ;;  %v5555_v27 = vrot.slane %v5553_v31, 4  ;;  %v3232_v16 = vpop.permute.xlu1 %3231  ;;  %9014 = vmatpush.bf16.msrb.mxu1 %v10923_v2 }
 0x228   : > { %v5546_v36 = vor.u32 %v5545_v33, %v5542_v9  ;;  %v5559_v55 = vshll.u32 %v5430_v45, 16  ;;  %v3345_v21 = vld [vmem:[#allocation2 + $0xb8] sm:$0xf]  ;;  %2675 = vst.msk [vmem:[#allocation3 + $0x224] sm:$0xf] %vm1348_vm11, %v2607_v28  ;;  %v9710_v26 = vrot.slane %v3344_v48, 9  ;;  %v4799_v37 = vpop.f32.mrf.mxu0 }
 0x229   : > { %v4989_v10 = vsel %vm11297_vm5, %v4981_v1, %v4988_v22  ;;  %v5269_v51 = vsel %vm11362_vm10, %v4990_v13, %v5268_v25  ;;  %v5556_v11 = vor.u32 %v5555_v27, %v5551_v14  ;;  %v3346_v30 = vld [vmem:[#allocation2 + $0xbc] sm:$0x1]  ;;  %v3494_v60 = vrot.slane %v3345_v21, 5  ;;  %3299 = vst.msk [vmem:[#allocation3 + $0x214] sm:$0xf] %vm1348_vm11, %v3230_v40  ;;  %v13125_v13 = vpop.f32.mrf.mxu1 }
 0x22a   : > { %5270 = vst [vmem:[#allocation2 + $0x38] sm:$0x1] %v5269_v51  ;;  %v5547_v39 = vrot.slane %v5546_v36, 4  ;;  %v4800_v7 = vadd.f32 %v4799_v37, %v4711_v3  ;;  %v5561_v41 = vrot.slane %v5559_v55, 5  ;;  %v9983_v15 = vld [vmem:[#allocation3 + $0x210] sm:$0xf]  ;;  %v4713_v3 = vadd.f32 %v4712_v24, %v4624_v56 }
 0x22b   : > { %5267 = vst.msk [vmem:[#allocation2 + $0x34] sm:$0xf] %vm256_vm0, %v4989_v10  ;;  %v5557_v18 = vrot.slane %v5556_v11, 4  ;;  %v3495_v23 = vsel %vm11775_vm14, %v9710_v26, %v3494_v60  ;;  %v3496_v57 = vrot.slane %v3494_v60, 4  ;;  %v5431_v9 = vld [vmem:[#allocation2 + $0x30] sm:$0xf] }
 0x22c   : > { %v5552_v25 = vsel %vm11345_vm9, %v5547_v39, %v5551_v14  ;;  %3300 = vst.msk [vmem:[#allocation3 + $0x228] sm:$0xf] %vm1348_vm11, %v3232_v16  ;;  %v4867_v19 = vmax.f32 %v4800_v7, 0.0  ;;  %v9971_v31 = vld [vmem:[#allocation3 + $0x1f0] sm:$0xf]  ;;  %v3497_v63 = vrot.slane %v3346_v30, 5 }
 0x22d   : > { %5863 = vrot.lane.b32.xlu1 %v5552_v25, %s11121_s10  ;;  %v5562_v35 = vsel %vm11345_vm9, %v5557_v18, %v5561_v41  ;;  %3571 = vst.msk [vmem:[#allocation3 + $0x218] sm:$0xf] %vm256_vm0, %v3495_v23  ;;  %v5564_v33 = vshrl.u32 %v5431_v9, 16  ;;  %v5567_v50 = vshll.u32 %v5431_v9, 16  ;;  %v4626_v14 = vpop.f32.mrf.mxu2  ;;  %v10243_v28 = vld [vmem:[#allocation3] sm:$0xf] }
 0x22e   : > { %v10791_v1 = vld [vmem:[#allocation3 + $0x200] sm:$0xf0]  ;;  %v4899_v45 = vpack.c.bf16 %v4867_v19, %v4867_v19  ;;  %5865 = vrot.lane.b32.xlu2 %v5562_v35, %s11121_s10  ;;  %v3498_v2 = vsel %vm11775_vm14, %v3496_v57, %v3497_v63  ;;  %v10845_v36 = vld [vmem:[#allocation3 + $0x10] sm:$0xf0]  ;;  %v4715_v40 = vpop.f32.mrf.mxu3  ;;  %v5359_v30 = vld [vmem:[#allocation2 + $0x18] sm:$0xf] }
 0x22f   : > { %v9972_v22 = vor.u32 %v10791_v1, %v9971_v31  ;;  %v5357_v27 = vld [vmem:[#allocation2 + $0xc] sm:$0xf]  ;;  %v10795_v55 = vld [vmem:[#allocation3 + $0x220] sm:$0xf0]  ;;  %3572 = vst.msk [vmem:[#allocation3 + $0x22c] sm:$0xf] %vm256_vm0, %v3498_v2  ;;  %v10244_v42 = vor.u32 %v10845_v36, %v10243_v28 }
 0x230   : > { %v5566_v48 = vrot.slane %v5564_v33, 4  ;;  %v5569_v21 = vrot.slane %v5567_v50, 5  ;;  %v4992_v10 = vshrl.u32 %v4899_v45, 16  ;;  %v4995_v51 = vshll.u32 %v4899_v45, 16  ;;  %5389 = vst.msk [vmem:[#allocation3 + $0x28] sm:$0xf] %vm256_vm0, %v5357_v27  ;;  %v4801_v24 = vpop.f32.mrf.mxu0 }
 0x231   : > { %v9984_v26 = vor.u32 %v10795_v55, %v9983_v15  ;;  %v5433_v11 = vld [vmem:[#allocation2 + $0x38] sm:$0x1]  ;;  %9015 = vmatmul.bf16.vlgmr.msrb.gmra.mxu1 %v10244_v42  ;;  %10189 = vmatmul.msk.bf16.gmra.mxu0 %vm4365_vm15, %v9972_v22  ;;  %v4802_v16 = vadd.f32 %v4801_v24, %v4713_v3  ;;  %v10793_v7 = vld [vmem:[#allocation3 + $0x214] sm:$0xf]  ;;  %v5271_v25 = vld [vmem:[#allocation2 + $0x3c] sm:$0xf]  ;;  %v4449_v15 = vadd.f32 %v13014_v47, %v12633_v46 }
 0x232   : > { %v5432_v37 = vld [vmem:[#allocation2 + $0x34] sm:$0xf]  ;;  %v5570_v39 = vor.u32 %v5569_v21, %v5566_v48  ;;  %v4994_v60 = vrot.slane %v4992_v10, 7  ;;  %5391 = vst.msk [vmem:[#allocation3 + $0x50] sm:$0xf] %vm256_vm0, %v5359_v30  ;;  %v5583_v1 = vshll.u32 %v5433_v11, 16  ;;  %v4542_v48 = vpop.f32.mrf.mxu1 }
 0x233   : > { %4665 = vmatmul.bf16.gmra.mxu2 %v9984_v26  ;;  %v5573_v56 = vshll.u32 %v5432_v37, 16  ;;  %v5577_v41 = vshrl.u32 %v5432_v37, 16  ;;  %v9985_v18 = vld [vmem:[#allocation3 + $0x224] sm:$0xf0]  ;;  %v4868_v57 = vmax.f32 %v4802_v16, 0.0  ;;  %v4538_v33 = vadd.f32 %v13095_v17, %v4449_v15 }
 0x234   : > { %v4997_v23 = vor.u32 %v4995_v51, %v4994_v60  ;;  %v9988_v9 = vor.u32 %v10793_v7, %v9985_v18  ;;  %v5571_v19 = vrot.slane %v5570_v39, 4  ;;  %v5358_v35 = vld [vmem:[#allocation2 + $0x10] sm:$0xf]  ;;  %v5360_v46 = vld [vmem:[#allocation2 + $0x1c] sm:$0xf]  ;;  %v5585_v42 = vrot.slane %v5583_v1, 5 }
 0x235   : > { %v5575_v31 = vrot.slane %v5573_v56, 5  ;;  %v5579_v63 = vrot.slane %v5577_v41, 4  ;;  %v4900_v45 = vpack.c.bf16 %v4868_v57, %v4868_v57  ;;  %v4628_v22 = vpop.f32.mrf.mxu2  ;;  %5390 = vst.msk [vmem:[#allocation3 + $0x3c] sm:$0xf] %vm256_vm0, %v5358_v35  ;;  %v5362_v28 = vld [vmem:[#allocation2 + $0x28] sm:$0xf]  ;;  %v4627_v55 = vadd.f32 %v4626_v14, %v4538_v33 }
 0x236   : > { %v5272_v50 = vsel %vm11229_vm2, %v4997_v23, %v5271_v25  ;;  %4754 = vmatmul.bf16.gmra.mxu3 %v9988_v9  ;;  %v5361_v36 = vld [vmem:[#allocation2 + $0x24] sm:$0xf]  ;;  %v4717_v17 = vpop.f32.mrf.mxu3  ;;  %5394 = vst.msk [vmem:[#allocation3 + $0x8c] sm:$0xf] %vm256_vm0, %v5362_v28  ;;  %v4451_v26 = vadd.f32 %v13014_v47, %v12675_v49  ;;  %v9991_v37 = vld [vmem:[#allocation3 + $0x218] sm:$0xf]  ;;  %v4454_v33 = vadd.f32 %v13014_v47, %v12699_v34 }
 0x237   : > { %5273 = vst [vmem:[#allocation2 + $0x3c] sm:$0xf] %v5272_v50  ;;  %v5576_v3 = vsel %vm11345_vm9, %v5571_v19, %v5575_v31  ;;  %v5580_v2 = vor.u32 %v5579_v63, %v5575_v31  ;;  %v5000_v27 = vshrl.u32 %v4900_v45, 16  ;;  %v5003_v51 = vshll.u32 %v4900_v45, 16  ;;  %v5275_v24 = vld [vmem:[#allocation2 + $0x44] sm:$0x1] }
 0x238   : > { %5867 = vrot.lane.b32.xlu0 %v5576_v3, %s11121_s10  ;;  %5392 = vst.msk [vmem:[#allocation3 + $0x64] sm:$0xf] %vm256_vm0, %v5360_v46  ;;  %v10796_v14 = vld [vmem:[#allocation3 + $0x228] sm:$0xf0]  ;;  %v4998_v11 = vrot.slane %v4994_v60, 4  ;;  %v4716_v7 = vadd.f32 %v4715_v40, %v4627_v55  ;;  %v4540_v56 = vadd.f32 %v13125_v13, %v4451_v26  ;;  %v4543_v46 = vadd.f32 %v4542_v48, %v4454_v33 }
 0x239   : > { %v5581_v21 = vrot.slane %v5580_v2, 4  ;;  %v5002_v10 = vrot.slane %v5000_v27, 7  ;;  %5393 = vst.msk [vmem:[#allocation3 + $0x78] sm:$0xf] %vm256_vm0, %v5361_v36  ;;  %v9992_v25 = vor.u32 %v10796_v14, %v9991_v37  ;;  %v5363_v9 = vld [vmem:[#allocation2 + $0x30] sm:$0xf] }
 0x23a   : > { %v4629_v19 = vadd.f32 %v4628_v22, %v4540_v56  ;;  %5395 = vst.msk [vmem:[#allocation3 + $0xa0] sm:$0xf] %vm256_vm0, %v5363_v9  ;;  %v4544_v63 = vpop.f32.mrf.mxu1  ;;  %v5278_v34 = vld [vmem:[#allocation2 + $0x48] sm:$0xf]  ;;  %v5282_v33 = vld [vmem:[#allocation2 + $0x50] sm:$0x1] }
 0x23b   : > { %v5586_v39 = vsel %vm11345_vm9, %v5581_v21, %v5585_v42  ;;  %v5005_v30 = vor.u32 %v5003_v51, %v5002_v10  ;;  %v5007_v16 = vrot.slane %v5002_v10, 4  ;;  %v5364_v42 = vld [vmem:[#allocation2 + $0x34] sm:$0xf] }
 0x23c   : > { %5869 = vrot.lane.b32.xlu1 %v5586_v39, %s11121_s10  ;;  %v4804_v15 = vpop.f32.mrf.mxu0  ;;  %v4718_v45 = vadd.f32 %v4717_v17, %v4629_v19  ;;  %5396 = vst.msk [vmem:[#allocation3 + $0xb4] sm:$0xf] %vm256_vm0, %v5364_v42 }
 0x23d   : > { %v5006_v41 = vsel %vm11297_vm5, %v4998_v11, %v5005_v30  ;;  %v5276_v49 = vsel %vm11362_vm10, %v5007_v16, %v5275_v24  ;;  %v4631_v23 = vpop.f32.mrf.mxu2  ;;  %v4805_v40 = vadd.f32 %v4804_v15, %v4716_v7  ;;  %v4456_v11 = vadd.f32 %v13014_v47, %v12733_v54 }
 0x23e   : > { %v5434_v18 = vld [vmem:[#allocation2 + $0x3c] sm:$0xf]  ;;  %5277 = vst [vmem:[#allocation2 + $0x44] sm:$0x1] %v5276_v49  ;;  %v4720_v31 = vpop.f32.mrf.mxu3  ;;  %v4632_v22 = vadd.f32 %v4631_v23, %v4543_v46 }
 0x23f   : > { %v5588_v57 = vshrl.u32 %v5434_v18, 16  ;;  %v5591_v60 = vshll.u32 %v5434_v18, 16  ;;  %5274 = vst.msk [vmem:[#allocation2 + $0x40] sm:$0xf] %vm256_vm0, %v5006_v41  ;;  %v4869_v13 = vmax.f32 %v4805_v40, 0.0  ;;  %v4545_v15 = vadd.f32 %v4544_v63, %v4456_v11 }
 0x240   : > { %v4721_v49 = vadd.f32 %v4720_v31, %v4632_v22  ;;  %v5365_v9 = vld [vmem:[#allocation2 + $0x3c] sm:$0xf]  ;;  %v4459_v31 = vadd.f32 %v13014_v47, %v12761_v43 }
 0x241   : > { %10190 = vmatmul.msk.bf16.gmra.mxu0 %vm4365_vm15, %v9992_v25  ;;  %v5590_v1 = vrot.slane %v5588_v57, 4  ;;  %v5593_v35 = vrot.slane %v5591_v60, 5  ;;  %v4901_v50 = vpack.c.bf16 %v4869_v13, %v4869_v13  ;;  %5397 = vst.msk [vmem:[#allocation3 + $0xc8] sm:$0xf] %vm256_vm0, %v5365_v9 }
 0x243   : > { %v5009_v3 = vshrl.u32 %v4901_v50, 16  ;;  %v5012_v2 = vshll.u32 %v4901_v50, 16  ;;  %v5594_v28 = vor.u32 %v5593_v35, %v5590_v1  ;;  %v4547_v41 = vpop.f32.mrf.mxu1 }
 0x244   : > { %v4806_v36 = vpop.f32.mrf.mxu0 }
 0x245   : > { %v4633_v55 = vpop.f32.mrf.mxu2  ;;  %v5436_v21 = vld [vmem:[#allocation2 + $0x44] sm:$0x1]  ;;  %v5011_v10 = vrot.slane %v5009_v3, 7  ;;  %v4807_v51 = vadd.f32 %v4806_v36, %v4718_v45  ;;  %v5595_v48 = vrot.slane %v5594_v28, 4  ;;  %v4548_v28 = vadd.f32 %v4547_v41, %v4459_v31 }
 0x246   : > { %v5435_v27 = vld [vmem:[#allocation2 + $0x40] sm:$0xf]  ;;  %v4722_v37 = vpop.f32.mrf.mxu3  ;;  %v5607_v16 = vshll.u32 %v5436_v21, 16  ;;  %v4634_v1 = vadd.f32 %v4633_v55, %v4545_v15  ;;  %v6444_v21 = vld [vmem:[#allocation2 + $0x10] sm:$0xf] }
 0x247   : > { %v5597_v26 = vshll.u32 %v5435_v27, 16  ;;  %v5601_v24 = vshrl.u32 %v5435_v27, 16  ;;  %v5014_v14 = vor.u32 %v5012_v2, %v5011_v10  ;;  %v4870_v17 = vmax.f32 %v4807_v51, 0.0  ;;  %v5982_v15 = vld [vmem:[#allocation2 + $0xc] sm:$0xe] }
 0x248   : > { %v5609_v54 = vrot.slane %v5607_v16, 5  ;;  %v5015_v45 = vrot.slane %v5011_v10, 4  ;;  %v4723_v43 = vadd.f32 %v4722_v37, %v4634_v1  ;;  %v6501_v11 = vshll.u32 %v6444_v21, 16 }
 0x249   : > { %v5599_v39 = vrot.slane %v5597_v26, 5  ;;  %v5603_v30 = vrot.slane %v5601_v24, 4  ;;  %v5279_v7 = vsel %vm11229_vm2, %v5014_v14, %v5278_v34  ;;  %v4902_v56 = vpack.c.bf16 %v4870_v17, %v4870_v17 }
 0x24a   : > { %5280 = vst [vmem:[#allocation2 + $0x48] sm:$0xf] %v5279_v7  ;;  %v4461_v34 = vadd.f32 %v13014_v47, %v12792_v62  ;;  %v10194_v31 = vrot.slane %v5982_v15, 9  ;;  %v1892_v15 = vld [vmem:[#allocation2 + $0xbc] sm:$0x1] }
 0x24b   : > { %v5600_v25 = vsel %vm11345_vm9, %v5595_v48, %v5599_v39  ;;  %v5604_v18 = vor.u32 %v5603_v30, %v5599_v39  ;;  %v5017_v23 = vshrl.u32 %v4902_v56, 16  ;;  %v5020_v19 = vshll.u32 %v4902_v56, 16  ;;  %v4549_v26 = vpop.f32.mrf.mxu1  ;;  %v5366_v39 = vld [vmem:[#allocation2 + $0x40] sm:$0xf]  ;;  %v5285_v56 = vld [vmem:[#allocation2 + $0x54] sm:$0xf] }
 0x24c   : > { %5871 = vrot.lane.b32.xlu2 %v5600_v25, %s11121_s10  ;;  %v4809_v57 = vpop.f32.mrf.mxu0  ;;  %5398 = vst.msk [vmem:[#allocation3 + $0xdc] sm:$0xf] %vm256_vm0, %v5366_v39  ;;  %v4550_v41 = vadd.f32 %v4549_v26, %v4461_v34 }
 0x24d   : > { %v5605_v60 = vrot.slane %v5604_v18, 4  ;;  %v5019_v40 = vrot.slane %v5017_v23, 7  ;;  %v4810_v13 = vadd.f32 %v4809_v57, %v4721_v49  ;;  %v4636_v35 = vpop.f32.mrf.mxu2  ;;  %v6505_v18 = vshrl.u32 %v6444_v21, 16  ;;  %v13186_v57 = vld [vmem:[#allocation2 + $0x10] sm:$0xf] }
 0x24e   : > { %v4725_v63 = vpop.f32.mrf.mxu3  ;;  %v4637_v24 = vadd.f32 %v4636_v35, %v4548_v28 }
 0x24f   : > { %v5610_v50 = vsel %vm11345_vm9, %v5605_v60, %v5609_v54  ;;  %v5022_v46 = vor.u32 %v5020_v19, %v5019_v40  ;;  %v5024_v3 = vrot.slane %v5019_v40, 4  ;;  %v4871_v2 = vmax.f32 %v4810_v13, 0.0 }
 0x250   : > { %5873 = vrot.lane.b32.xlu0 %v5610_v50, %s11121_s10  ;;  %v4726_v23 = vadd.f32 %v4725_v63, %v4637_v24  ;;  %v13189_v40 = vrot.slane %v6501_v11, 5  ;;  %v13193_v35 = vrot.slane %v6505_v18, 4  ;;  %v6084_v63 = vrot.slane %v13186_v57, 5 }
 0x251   : > { %v5023_v36 = vsel %vm11297_vm5, %v5015_v45, %v5022_v46  ;;  %v5283_v22 = vsel %vm11362_vm10, %v5024_v3, %v5282_v33  ;;  %v4903_v27 = vpack.c.bf16 %v4871_v2, %v4871_v2  ;;  %v5437_v55 = vld [vmem:[#allocation2 + $0x48] sm:$0xf] }
 0x252   : > { %5284 = vst [vmem:[#allocation2 + $0x50] sm:$0x1] %v5283_v22  ;;  %v5612_v42 = vshrl.u32 %v5437_v55, 16  ;;  %v5615_v51 = vshll.u32 %v5437_v55, 16  ;;  %v1891_v55 = vld [vmem:[#allocation2 + $0xb8] sm:$0xf] }
 0x253   : > { %5281 = vst.msk [vmem:[#allocation2 + $0x4c] sm:$0xf] %vm256_vm0, %v5023_v36  ;;  %v5026_v10 = vshrl.u32 %v4903_v27, 16  ;;  %v5029_v37 = vshll.u32 %v4903_v27, 16  ;;  %v1890_v36 = vld [vmem:[#allocation2 + $0xb4] sm:$0xf] }
 0x254   : > { %v4811_v14 = vpop.f32.mrf.mxu0  ;;  %v5614_v17 = vrot.slane %v5612_v42, 4  ;;  %v5617_v48 = vrot.slane %v5615_v51, 5  ;;  %v2233_v21 = vshrl.u32 %v1890_v36, 16  ;;  %v5289_v51 = vld [vmem:[#allocation2 + $0x5c] sm:$0x1]  ;;  %v2242_v39 = vshll.u32 %v1891_v55, 16 }
 0x255   : > { %v13182_v30 = vrot.slane %v5026_v10, 7  ;;  %v4812_v16 = vadd.f32 %v4811_v14, %v4723_v43  ;;  %v4638_v7 = vpop.f32.mrf.mxu2  ;;  %v5367_v11 = vld [vmem:[#allocation2 + $0x48] sm:$0xf] }
 0x256   : > { %v5618_v49 = vor.u32 %v5617_v48, %v5614_v17  ;;  %v4727_v25 = vpop.f32.mrf.mxu3  ;;  %v4639_v9 = vadd.f32 %v4638_v7, %v4550_v41  ;;  %v2235_v17 = vrot.slane %v2233_v21, 4  ;;  %v2236_v48 = vshll.u32 %v1890_v36, 16  ;;  %5399 = vst.msk [vmem:[#allocation3 + $0xf0] sm:$0xf] %vm256_vm0, %v5367_v11 }
 0x257   : > { %v5031_v62 = vor.u32 %v5029_v37, %v13182_v30  ;;  %v4872_v47 = vmax.f32 %v4812_v16, 0.0  ;;  %v5032_v60 = vrot.slane %v13182_v30, 4  ;;  %v6085_v30 = vsel %vm11775_vm14, %v10194_v31, %v6084_v63 }
 0x258   : > { %v5619_v54 = vrot.slane %v5618_v49, 4  ;;  %v4728_v27 = vadd.f32 %v4727_v25, %v4639_v9  ;;  %v2238_v25 = vrot.slane %v2236_v48, 5  ;;  %v2244_v18 = vrot.slane %v2242_v39, 5  ;;  %6221 = vst.msk [vmem:[#allocation3 + $0x2c] sm:$0xf] %vm256_vm0, %v6085_v30 }
 0x259   : > { %v5286_v19 = vsel %vm11229_vm2, %v5031_v62, %v5285_v56  ;;  %v4904_v13 = vpack.c.bf16 %v4872_v47, %v4872_v47  ;;  %v5439_v1 = vld [vmem:[#allocation2 + $0x50] sm:$0x1] }
 0x25a   : > { %5287 = vst [vmem:[#allocation2 + $0x54] sm:$0xf] %v5286_v19  ;;  %v5438_v33 = vld [vmem:[#allocation2 + $0x4c] sm:$0xf]  ;;  %v5631_v50 = vshll.u32 %v5439_v1, 16  ;;  %v2246_v19 = vshrl.u32 %v1891_v55, 16 }
 0x25b   : > { %v5034_v45 = vshrl.u32 %v4904_v13, 16  ;;  %v5037_v46 = vshll.u32 %v4904_v13, 16  ;;  %v5621_v3 = vshll.u32 %v5438_v33, 16  ;;  %v5625_v2 = vshrl.u32 %v5438_v33, 16 }
 0x25c   : > { %v4814_v22 = vpop.f32.mrf.mxu0  ;;  %v5633_v43 = vrot.slane %v5631_v50, 5  ;;  %v2239_v33 = vor.u32 %v2238_v25, %v2235_v17  ;;  %v6508_v17 = vor.u32 %v13193_v35, %v13189_v40 }
 0x25d   : > { %v5036_v42 = vrot.slane %v5034_v45, 7  ;;  %v4815_v10 = vadd.f32 %v4814_v22, %v4726_v23  ;;  %v5623_v26 = vrot.slane %v5621_v3, 5  ;;  %v5627_v24 = vrot.slane %v5625_v2, 4  ;;  %v4641_v34 = vpop.f32.mrf.mxu2  ;;  %v5368_v22 = vld [vmem:[#allocation2 + $0x4c] sm:$0xf] }
 0x25e   : > { %v5856_v28 = vpop.permute.xlu2 %5855  ;;  %v4730_v14 = vpop.f32.mrf.mxu3  ;;  %v4642_v49 = vadd.f32 %v4641_v34, %v12418_v32  ;;  %v2248_v45 = vrot.slane %v2246_v19, 4  ;;  %v2240_v36 = vrot.slane %v2239_v33, 4  ;;  %5400 = vst.msk [vmem:[#allocation3 + $0x104] sm:$0xf] %vm256_vm0, %v5368_v22 }
 0x25f   : > { %5949 = vst.msk [vmem:[#allocation3 + $0x28] sm:$0xf] %vm1348_vm11, %v5856_v28  ;;  %v5039_v37 = vor.u32 %v5037_v46, %v5036_v42  ;;  %v5041_v16 = vrot.slane %v5036_v42, 4  ;;  %v4873_v7 = vmax.f32 %v4815_v10, 0.0  ;;  %v5624_v56 = vsel %vm11345_vm9, %v5619_v54, %v5623_v26  ;;  %v6445_v54 = vld [vmem:[#allocation2 + $0x14] sm:$0x1] }
 0x260   : > { %5875 = vrot.lane.b32.xlu1 %v5624_v56, %s11121_s10  ;;  %v5628_v41 = vor.u32 %v5627_v24, %v5623_v26  ;;  %v2252_v46 = vshll.u32 %v1892_v15, 16  ;;  %v2249_v10 = vor.u32 %v2248_v45, %v2244_v18  ;;  %v5292_v24 = vld [vmem:[#allocation2 + $0x60] sm:$0xf]  ;;  %v2245_v34 = vsel %vm11345_vm9, %v2240_v36, %v2244_v18 }
 0x261   : > { %v5040_v62 = vsel %vm11297_vm5, %v5032_v60, %v5039_v37  ;;  %v5290_v47 = vsel %vm11362_vm10, %v5041_v16, %v5289_v51  ;;  %v4905_v23 = vpack.c.bf16 %v4873_v7, %v4873_v7  ;;  %v5440_v9 = vld [vmem:[#allocation2 + $0x54] sm:$0xf]  ;;  %v2609_v51 = vpop.permute.xlu1 %2608  ;;  %v6511_v48 = vshll.u32 %v6445_v54, 16  ;;  %2340 = vst.msk [vmem:[#allocation3 + $0x238] sm:$0xf] %vm256_vm0, %v2245_v34 }
 0x262   : > { %5291 = vst [vmem:[#allocation2 + $0x5c] sm:$0x1] %v5290_v47  ;;  %v5629_v13 = vrot.slane %v5628_v41, 4  ;;  %v5636_v1 = vshrl.u32 %v5440_v9, 16  ;;  %v5639_v31 = vshll.u32 %v5440_v9, 16  ;;  %v2254_v26 = vrot.slane %v2252_v46, 5 }
 0x263   : > { %5288 = vst.msk [vmem:[#allocation2 + $0x58] sm:$0xf] %vm256_vm0, %v5040_v62  ;;  %v5043_v32 = vshrl.u32 %v4905_v23, 16  ;;  %v5046_v50 = vshll.u32 %v4905_v23, 16  ;;  %v4731_v41 = vadd.f32 %v4730_v14, %v4642_v49  ;;  %v6509_v18 = vrot.slane %v6508_v17, 4 }
 0x264   : > { %v5634_v60 = vsel %vm11345_vm9, %v5629_v13, %v5633_v43  ;;  %v4816_v3 = vpop.f32.mrf.mxu0  ;;  %v5638_v2 = vrot.slane %v5636_v1, 4  ;;  %v5641_v28 = vrot.slane %v5639_v31, 5  ;;  %2676 = vst.msk [vmem:[#allocation3 + $0x238] sm:$0xf] %vm1348_vm11, %v2609_v51  ;;  %v6513_v15 = vrot.slane %v6511_v48, 5 }
 0x265   : > { %v5045_v55 = vrot.slane %v5043_v32, 7  ;;  %5877 = vrot.lane.b32.xlu2 %v5634_v60, %s11121_s10  ;;  %v4817_v21 = vadd.f32 %v4816_v3, %v4728_v27  ;;  %v4643_v42 = vpop.f32.mrf.mxu2  ;;  %v2250_v27 = vrot.slane %v2249_v10, 4  ;;  %v5369_v14 = vld [vmem:[#allocation2 + $0x54] sm:$0xf]  ;;  %v5296_v46 = vld [vmem:[#allocation2 + $0x68] sm:$0x1] }
 0x266   : > { %v4732_v43 = vpop.f32.mrf.mxu3  ;;  %v2611_v37 = vpop.permute.xlu2 %2610  ;;  %v5642_v16 = vor.u32 %v5641_v28, %v5638_v2  ;;  %v4644_v13 = vadd.f32 %v4643_v42, %v12539_v0  ;;  %v6514_v49 = vsel %vm11345_vm9, %v6509_v18, %v6513_v15  ;;  %5401 = vst.msk [vmem:[#allocation3 + $0x118] sm:$0xf] %vm256_vm0, %v5369_v14 }
 0x267   : > { %v5048_v39 = vor.u32 %v5046_v50, %v5045_v55  ;;  %v4874_v11 = vmax.f32 %v4817_v21, 0.0  ;;  %v2255_v35 = vsel %vm11345_vm9, %v2250_v27, %v2254_v26  ;;  %v5049_v45 = vrot.slane %v5045_v55, 4  ;;  %6908 = vst.msk [vmem:[#allocation3 + $0x1c] sm:$0xf] %vm256_vm0, %v6514_v49 }
 0x268   : > { %2341 = vst.msk [vmem:[#allocation3 + $0x24c] sm:$0xf] %vm256_vm0, %v2255_v35  ;;  %v5643_v54 = vrot.slane %v5642_v16, 4  ;;  %v4733_v51 = vadd.f32 %v4732_v43, %v4644_v13 }
 0x269   : > { %v5293_v7 = vsel %vm11229_vm2, %v5048_v39, %v5292_v24  ;;  %v4906_v56 = vpack.c.bf16 %v4874_v11, %v4874_v11  ;;  %v5442_v25 = vld [vmem:[#allocation2 + $0x5c] sm:$0x1]  ;;  %2677 = vst.msk [vmem:[#allocation3 + $0x24c] sm:$0xf] %vm1348_vm11, %v2611_v37 }
 0x26a   : > { %5294 = vst [vmem:[#allocation2 + $0x60] sm:$0xf] %v5293_v7  ;;  %v5441_v30 = vld [vmem:[#allocation2 + $0x58] sm:$0xf]  ;;  %v5655_v60 = vshll.u32 %v5442_v25, 16 }
 0x26b   : > { %v5051_v62 = vshrl.u32 %v4906_v56, 16  ;;  %v5645_v47 = vshll.u32 %v5441_v30, 16  ;;  %v5649_v23 = vshrl.u32 %v5441_v30, 16  ;;  %v5054_v9 = vshll.u32 %v4906_v56, 16  ;;  %v10003_v26 = vld [vmem:[#allocation3 + $0x238] sm:$0xf] }
 0x26c   : > { %v4819_v19 = vpop.f32.mrf.mxu0  ;;  %v5657_v17 = vrot.slane %v5655_v60, 5  ;;  %v5303_v60 = vld [vmem:[#allocation2 + $0x74] sm:$0x1] }
 0x26d   : > { %v5053_v1 = vrot.slane %v5051_v62, 7  ;;  %v4820_v31 = vadd.f32 %v4819_v19, %v4731_v41  ;;  %v5647_v33 = vrot.slane %v5645_v47, 5  ;;  %v5651_v32 = vrot.slane %v5649_v23, 4  ;;  %v4646_v50 = vpop.f32.mrf.mxu2  ;;  %v5370_v41 = vld [vmem:[#allocation2 + $0x58] sm:$0xf] }
 0x26e   : > { %v4735_v3 = vpop.f32.mrf.mxu3  ;;  %v4647_v18 = vadd.f32 %v4646_v50, %v12473_v61  ;;  %5402 = vst.msk [vmem:[#allocation3 + $0x12c] sm:$0xf] %vm256_vm0, %v5370_v41  ;;  %v5299_v62 = vld [vmem:[#allocation2 + $0x6c] sm:$0xf]  ;;  %v2710_v50 = vld [vmem:[#allocation2 + $0xc4] sm:$0xf] }
 0x26f   : > { %v5056_v0 = vor.u32 %v5054_v9, %v5053_v1  ;;  %v5058_v2 = vrot.slane %v5053_v1, 4  ;;  %v4875_v28 = vmax.f32 %v4820_v31, 0.0  ;;  %v5648_v36 = vsel %vm11345_vm9, %v5643_v54, %v5647_v33  ;;  %2742 = vst.msk [vmem:[#allocation3 + $0x250] sm:$0xf] %vm256_vm0, %v2710_v50 }
 0x270   : > { %5879 = vrot.lane.b32.xlu0 %v5648_v36, %s11121_s10  ;;  %v5652_v22 = vor.u32 %v5651_v32, %v5647_v33  ;;  %v10800_v27 = vld [vmem:[#allocation3 + $0x248] sm:$0xf0]  ;;  %v4736_v49 = vadd.f32 %v4735_v3, %v4647_v18  ;;  %v2709_v36 = vld [vmem:[#allocation2 + $0xc0] sm:$0xf] }
 0x271   : > { %v5057_v21 = vsel %vm11297_vm5, %v5049_v45, %v5056_v0  ;;  %v5297_v55 = vsel %vm11362_vm10, %v5058_v2, %v5296_v46  ;;  %v4907_v42 = vpack.c.bf16 %v4875_v28, %v4875_v28  ;;  %v5443_v24 = vld [vmem:[#allocation2 + $0x60] sm:$0xf]  ;;  %v10004_v7 = vor.u32 %v10800_v27, %v10003_v26  ;;  %v13250_v45 = vld [vmem:[#allocation2 + $0x1c] sm:$0xf]  ;;  %2741 = vst.msk [vmem:[#allocation3 + $0x23c] sm:$0xf] %vm256_vm0, %v2709_v36 }
 0x272   : > { %5298 = vst [vmem:[#allocation2 + $0x68] sm:$0x1] %v5297_v55  ;;  %v5653_v34 = vrot.slane %v5652_v22, 4  ;;  %v5660_v48 = vshrl.u32 %v5443_v24, 16  ;;  %v5663_v39 = vshll.u32 %v5443_v24, 16  ;;  %v6529_v36 = vshrl.u32 %v13250_v45, 16 }
 0x273   : > { %5295 = vst.msk [vmem:[#allocation2 + $0x64] sm:$0xf] %vm256_vm0, %v5057_v21  ;;  %v5060_v11 = vshrl.u32 %v4907_v42, 16  ;;  %v5063_v25 = vshll.u32 %v4907_v42, 16  ;;  %4670 = vmatmul.bf16.gmra.mxu2 %v10004_v7  ;;  %v10263_v24 = vld [vmem:[#allocation3 + $0x28] sm:$0xf] }
 0x274   : > { %v5658_v37 = vsel %vm11345_vm9, %v5653_v34, %v5657_v17  ;;  %v4821_v16 = vpop.f32.mrf.mxu0  ;;  %v5662_v43 = vrot.slane %v5660_v48, 4  ;;  %v5665_v56 = vrot.slane %v5663_v39, 5  ;;  %v5371_v34 = vld [vmem:[#allocation2 + $0x60] sm:$0xf]  ;;  %v6525_v7 = vshll.u32 %v13250_v45, 16 }
 0x275   : > { %v5860_v10 = vpop.permute.xlu2 %5859  ;;  %v5062_v35 = vrot.slane %v5060_v11, 7  ;;  %5881 = vrot.lane.b32.xlu1 %v5658_v37, %s11121_s10  ;;  %v4822_v30 = vadd.f32 %v4821_v16, %v4733_v51  ;;  %v4648_v15 = vpop.f32.mrf.mxu2  ;;  %5403 = vst.msk [vmem:[#allocation3 + $0x140] sm:$0xf] %vm256_vm0, %v5371_v34  ;;  %v6448_v45 = vld [vmem:[#allocation2 + $0x20] sm:$0x1] }
 0x276   : > { %5951 = vst.msk [vmem:[#allocation3 + $0x50] sm:$0xf] %vm1348_vm11, %v5860_v10  ;;  %v4737_v47 = vpop.f32.mrf.mxu3  ;;  %v5666_v54 = vor.u32 %v5665_v56, %v5662_v43  ;;  %v4649_v28 = vadd.f32 %v4648_v15, %v12501_v12 }
 0x277   : > { %v5065_v23 = vor.u32 %v5063_v25, %v5062_v35  ;;  %v4876_v9 = vmax.f32 %v4822_v30, 0.0  ;;  %v5066_v51 = vrot.slane %v5062_v35, 4 }
 0x278   : > { %v5667_v2 = vrot.slane %v5666_v54, 4  ;;  %v4738_v35 = vadd.f32 %v4737_v47, %v4649_v28  ;;  %v3347_v54 = vld [vmem:[#allocation2 + $0xc0] sm:$0xe] }
 0x279   : > { %v5300_v13 = vsel %vm11229_vm2, %v5065_v23, %v5299_v62  ;;  %v4908_v14 = vpack.c.bf16 %v4876_v9, %v4876_v9  ;;  %v5445_v61 = vld [vmem:[#allocation2 + $0x68] sm:$0x1] }
 0x27a   : > { %v5858_v19 = vpop.permute.xlu0 %5857  ;;  %5301 = vst [vmem:[#allocation2 + $0x6c] sm:$0xf] %v5300_v13  ;;  %v5444_v1 = vld [vmem:[#allocation2 + $0x64] sm:$0xf]  ;;  %v5679_v10 = vshll.u32 %v5445_v61, 16 }
 0x27b   : > { %5950 = vst.msk [vmem:[#allocation3 + $0x3c] sm:$0xf] %vm1348_vm11, %v5858_v19  ;;  %v5068_v31 = vshrl.u32 %v4908_v14, 16  ;;  %v5669_v33 = vshll.u32 %v5444_v1, 16  ;;  %v5673_v32 = vshrl.u32 %v5444_v1, 16  ;;  %v5071_v46 = vshll.u32 %v4908_v14, 16 }
 0x27c   : > { %v4824_v0 = vpop.f32.mrf.mxu0  ;;  %v5681_v15 = vrot.slane %v5679_v10, 5  ;;  %v3348_v61 = vld [vmem:[#allocation2 + $0xc4] sm:$0xf] }
 0x27d   : > { %v5070_v22 = vrot.slane %v5068_v31, 7  ;;  %v4825_v3 = vadd.f32 %v4824_v0, %v4736_v49  ;;  %v5671_v21 = vrot.slane %v5669_v33, 5  ;;  %v5675_v55 = vrot.slane %v5673_v32, 4  ;;  %v4651_v42 = vpop.f32.mrf.mxu2 }
 0x27e   : > { %v4740_v26 = vpop.f32.mrf.mxu3  ;;  %v4652_v47 = vadd.f32 %v4651_v42, %v12618_v52  ;;  %v3501_v0 = vrot.slane %v3348_v61, 5 }
 0x27f   : > { %v5073_v17 = vor.u32 %v5071_v46, %v5070_v22  ;;  %v5075_v48 = vrot.slane %v5070_v22, 4  ;;  %v4877_v39 = vmax.f32 %v4825_v3, 0.0  ;;  %v5672_v12 = vsel %vm11345_vm9, %v5667_v2, %v5671_v21  ;;  %v3349_v46 = vld [vmem:[#allocation2 + $0xc8] sm:$0x1]  ;;  %v5306_v2 = vld [vmem:[#allocation2 + $0x78] sm:$0xf] }
 0x280   : > { %5883 = vrot.lane.b32.xlu2 %v5672_v12, %s11121_s10  ;;  %v5676_v27 = vor.u32 %v5675_v55, %v5671_v21  ;;  %v3504_v52 = vrot.slane %v3349_v46, 5  ;;  %v3503_v42 = vrot.slane %v3501_v0, 4  ;;  %v4741_v34 = vadd.f32 %v4740_v26, %v4652_v47 }
 0x281   : > { %v5074_v43 = vsel %vm11297_vm5, %v5066_v51, %v5073_v17  ;;  %v5304_v56 = vsel %vm11362_vm10, %v5075_v48, %v5303_v60  ;;  %v4909_v41 = vpack.c.bf16 %v4877_v39, %v4877_v39  ;;  %v5446_v30 = vld [vmem:[#allocation2 + $0x6c] sm:$0xf]  ;;  %v9711_v60 = vrot.slane %v3347_v54, 9 }
 0x282   : > { %v10850_v11 = vld [vmem:[#allocation3 + $0x38] sm:$0xf0]  ;;  %5305 = vst [vmem:[#allocation2 + $0x74] sm:$0x1] %v5304_v56  ;;  %v5677_v18 = vrot.slane %v5676_v27, 4  ;;  %v5684_v62 = vshrl.u32 %v5446_v30, 16  ;;  %v3505_v12 = vsel %vm11775_vm14, %v3503_v42, %v3504_v52 }
 0x283   : > { %v3236_v37 = vpop.permute.xlu1 %3235  ;;  %v10264_v16 = vor.u32 %v10850_v11, %v10263_v24  ;;  %v5687_v23 = vshll.u32 %v5446_v30, 16  ;;  %5302 = vst.msk [vmem:[#allocation2 + $0x70] sm:$0xf] %vm256_vm0, %v5074_v43  ;;  %v5077_v9 = vshrl.u32 %v4909_v41, 16  ;;  %v5080_v19 = vshll.u32 %v4909_v41, 16 }
 0x284   : > { %3302 = vst.msk [vmem:[#allocation3 + $0x250] sm:$0xf] %vm1348_vm11, %v3236_v37  ;;  %v3234_v25 = vpop.permute.xlu0 %3233  ;;  %v5682_v13 = vsel %vm11345_vm9, %v5677_v18, %v5681_v15  ;;  %v4826_v14 = vpop.f32.mrf.mxu0  ;;  %v5686_v49 = vrot.slane %v5684_v62, 4  ;;  %v3502_v21 = vsel %vm11775_vm14, %v9711_v60, %v3501_v0  ;;  %v13279_v51 = vrot.slane %v6525_v7, 5 }
 0x285   : > { %9020 = vmatmul.bf16.gmra.mxu1 %v10264_v16  ;;  %3301 = vst.msk [vmem:[#allocation3 + $0x23c] sm:$0xf] %vm1348_vm11, %v3234_v25  ;;  %v5689_v1 = vrot.slane %v5687_v23, 5  ;;  %v13270_v31 = vrot.slane %v5077_v9, 7  ;;  %5885 = vrot.lane.b32.xlu0 %v5682_v13, %s11121_s10  ;;  %v4827_v33 = vadd.f32 %v4826_v14, %v4738_v35  ;;  %v4653_v50 = vpop.f32.mrf.mxu2  ;;  %v6531_v11 = vrot.slane %v6529_v36, 4 }
 0x286   : > { %v4742_v28 = vpop.f32.mrf.mxu3  ;;  %3573 = vst.msk [vmem:[#allocation3 + $0x240] sm:$0xf] %vm256_vm0, %v3502_v21  ;;  %v4654_v7 = vadd.f32 %v4653_v50, %v12558_v4  ;;  %v5310_v35 = vld [vmem:[#allocation2 + $0x80] sm:$0x1]  ;;  %v5372_v13 = vld [vmem:[#allocation2 + $0x64] sm:$0xf] }
 0x287   : > { %v5082_v22 = vor.u32 %v5080_v19, %v13270_v31  ;;  %v4878_v3 = vmax.f32 %v4827_v33, 0.0  ;;  %v5690_v55 = vor.u32 %v5689_v1, %v5686_v49  ;;  %v6532_v18 = vor.u32 %v6531_v11, %v13279_v51  ;;  %3574 = vst.msk [vmem:[#allocation3 + $0x254] sm:$0xf] %vm256_vm0, %v3505_v12  ;;  %v5985_v21 = vld [vmem:[#allocation2 + $0x18] sm:$0xe] }
 0x288   : > { %v5866_v32 = vpop.permute.xlu2 %5865  ;;  %v5083_v4 = vrot.slane %v13270_v31, 4  ;;  %v6535_v47 = vshll.u32 %v6448_v45, 16  ;;  %5404 = vst.msk [vmem:[#allocation3 + $0x154] sm:$0xf] %vm256_vm0, %v5372_v13  ;;  %v4743_v50 = vadd.f32 %v4742_v28, %v4654_v7  ;;  %v13294_v31 = vld [vmem:[#allocation2 + $0x1c] sm:$0xf] }
 0x289   : > { %5954 = vst.msk [vmem:[#allocation3 + $0x8c] sm:$0xf] %vm1348_vm11, %v5866_v32  ;;  %v5307_v10 = vsel %vm11229_vm2, %v5082_v22, %v5306_v2  ;;  %v4910_v24 = vpack.c.bf16 %v4878_v3, %v4878_v3  ;;  %v5448_v17 = vld [vmem:[#allocation2 + $0x74] sm:$0x1]  ;;  %v5691_v26 = vrot.slane %v5690_v55, 4  ;;  %v6533_v14 = vrot.slane %v6532_v18, 4 }
 0x28a   : > { %5308 = vst [vmem:[#allocation2 + $0x78] sm:$0xf] %v5307_v10  ;;  %v5447_v39 = vld [vmem:[#allocation2 + $0x70] sm:$0xf]  ;;  %v5703_v54 = vshll.u32 %v5448_v17, 16  ;;  %v6537_v3 = vrot.slane %v6535_v47, 5 }
 0x28b   : > { %v10005_v48 = vld [vmem:[#allocation3 + $0x24c] sm:$0xf0]  ;;  %v5085_v27 = vshrl.u32 %v4910_v24, 16  ;;  %v5693_v37 = vshll.u32 %v5447_v39, 16  ;;  %v5697_v16 = vshrl.u32 %v5447_v39, 16  ;;  %v5088_v41 = vshll.u32 %v4910_v24, 16 }
 0x28c   : > { %v10798_v56 = vld [vmem:[#allocation3 + $0x23c] sm:$0xf]  ;;  %v4829_v25 = vpop.f32.mrf.mxu0  ;;  %v10283_v22 = vld [vmem:[#allocation3 + $0x50] sm:$0xf]  ;;  %v5705_v10 = vrot.slane %v5703_v54, 5  ;;  %v6538_v45 = vsel %vm11345_vm9, %v6533_v14, %v6537_v3  ;;  %v6091_v39 = vrot.slane %v13294_v31, 5 }
 0x28d   : > { %v10008_v30 = vor.u32 %v10798_v56, %v10005_v48  ;;  %v5087_v15 = vrot.slane %v5085_v27, 7  ;;  %v4830_v62 = vadd.f32 %v4829_v25, %v4741_v34  ;;  %v5695_v23 = vrot.slane %v5693_v37, 5  ;;  %v4656_v19 = vpop.f32.mrf.mxu2  ;;  %v10011_v60 = vld [vmem:[#allocation3 + $0x240] sm:$0xf]  ;;  %v6450_v55 = vld [vmem:[#allocation2 + $0x28] sm:$0xf] }
 0x28e   : > { %v5862_v43 = vpop.permute.xlu0 %5861  ;;  %v5699_v9 = vrot.slane %v5697_v16, 4  ;;  %v4657_v17 = vadd.f32 %v4656_v19, %v12669_v38  ;;  %v10801_v27 = vld [vmem:[#allocation3 + $0x250] sm:$0xf0]  ;;  %6910 = vst.msk [vmem:[#allocation3 + $0x44] sm:$0xf] %vm256_vm0, %v6538_v45  ;;  %v10195_v18 = vrot.slane %v5985_v21, 9 }
 0x28f   : > { %5952 = vst.msk [vmem:[#allocation3 + $0x64] sm:$0xf] %vm1348_vm11, %v5862_v43  ;;  %4759 = vmatmul.bf16.gmra.mxu3 %v10008_v30  ;;  %v5090_v49 = vor.u32 %v5088_v41, %v5087_v15  ;;  %v5092_v1 = vrot.slane %v5087_v15, 4  ;;  %v4879_v61 = vmax.f32 %v4830_v62, 0.0  ;;  %v5696_v33 = vsel %vm11345_vm9, %v5691_v26, %v5695_v23  ;;  %v5373_v43 = vld [vmem:[#allocation2 + $0x6c] sm:$0xf] }
 0x290   : > { %v4745_v32 = vpop.f32.mrf.mxu3  ;;  %5887 = vrot.lane.b32.xlu1 %v5696_v33, %s11121_s10  ;;  %v5700_v46 = vor.u32 %v5699_v9, %v5695_v23  ;;  %5405 = vst.msk [vmem:[#allocation3 + $0x168] sm:$0xf] %vm256_vm0, %v5373_v43  ;;  %v5313_v26 = vld [vmem:[#allocation2 + $0x84] sm:$0xf]  ;;  %v6549_v15 = vshll.u32 %v6450_v55, 16  ;;  %v6092_v19 = vsel %vm11775_vm14, %v10195_v18, %v6091_v39  ;;  %v6553_v47 = vshrl.u32 %v6450_v55, 16 }
 0x291   : > { %v5091_v0 = vsel %vm11297_vm5, %v5083_v4, %v5090_v49  ;;  %v5311_v2 = vsel %vm11362_vm10, %v5092_v1, %v5310_v35  ;;  %v4911_v52 = vpack.c.bf16 %v4879_v61, %v4879_v61  ;;  %v5449_v36 = vld [vmem:[#allocation2 + $0x78] sm:$0xf]  ;;  %v10012_v35 = vor.u32 %v10801_v27, %v10011_v60  ;;  %6223 = vst.msk [vmem:[#allocation3 + $0x54] sm:$0xf] %vm256_vm0, %v6092_v19  ;;  %v10944_v31 = vld [vmem:[%s15031_s3 + $0xa8] sm:$0xff] }
 0x292   : > { %5312 = vst [vmem:[#allocation2 + $0x80] sm:$0x1] %v5311_v2  ;;  %v5701_v42 = vrot.slane %v5700_v46, 4  ;;  %v5708_v28 = vshrl.u32 %v5449_v36, 16  ;;  %v5711_v24 = vshll.u32 %v5449_v36, 16  ;;  %v4746_v13 = vadd.f32 %v4745_v32, %v4657_v17 }
 0x293   : > { %5309 = vst.msk [vmem:[#allocation2 + $0x7c] sm:$0xf] %vm256_vm0, %v5091_v0  ;;  %v5094_v34 = vshrl.u32 %v4911_v52, 16  ;;  %v5097_v41 = vshll.u32 %v4911_v52, 16  ;;  %10191 = vmatmul.msk.bf16.gmra.mxu0 %vm4365_vm15, %v10012_v35  ;;  %v13318_v61 = vrot.slane %v6549_v15, 5  ;;  %v6555_v3 = vrot.slane %v6553_v47, 4 }
 0x294   : > { %v5706_v12 = vsel %vm11345_vm9, %v5701_v42, %v5705_v10  ;;  %v4831_v11 = vpop.f32.mrf.mxu0  ;;  %v5710_v37 = vrot.slane %v5708_v28, 4  ;;  %v5713_v16 = vrot.slane %v5711_v24, 5  ;;  %v6451_v2 = vld [vmem:[#allocation2 + $0x2c] sm:$0x1]  ;;  %v5374_v32 = vld [vmem:[#allocation2 + $0x70] sm:$0xf] }
 0x295   : > { %v5096_v56 = vrot.slane %v5094_v34, 7  ;;  %5889 = vrot.lane.b32.xlu2 %v5706_v12, %s11121_s10  ;;  %v4832_v38 = vadd.f32 %v4831_v11, %v4743_v50  ;;  %v4658_v25 = vpop.f32.mrf.mxu2  ;;  %5406 = vst.msk [vmem:[#allocation3 + $0x17c] sm:$0xf] %vm256_vm0, %v5374_v32  ;;  %v5317_v24 = vld [vmem:[#allocation2 + $0x8c] sm:$0x1]  ;;  %v6556_v17 = vor.u32 %v6555_v3, %v13318_v61 }
 0x296   : > { %v10855_v48 = vld [vmem:[#allocation3 + $0x60] sm:$0xf0]  ;;  %v5714_v30 = vor.u32 %v5713_v16, %v5710_v37  ;;  %v5375_v47 = vld [vmem:[#allocation2 + $0x78] sm:$0xf]  ;;  %v6453_v32 = vld [vmem:[#allocation2 + $0x34] sm:$0xf] }
 0x297   : > { %v10284_v7 = vor.u32 %v10855_v48, %v10283_v22  ;;  %v5099_v62 = vor.u32 %v5097_v41, %v5096_v56  ;;  %v4880_v23 = vmax.f32 %v4832_v38, 0.0  ;;  %v4659_v22 = vadd.f32 %v4658_v25, %v12611_v44  ;;  %v10860_v38 = vld [vmem:[#allocation3 + $0x88] sm:$0xf0]  ;;  %5407 = vst.msk [vmem:[#allocation3 + $0x190] sm:$0xf] %vm256_vm0, %v5375_v47 }
 0x298   : > { %v4747_v9 = vpop.f32.mrf.mxu3  ;;  %v5715_v1 = vrot.slane %v5714_v30, 4  ;;  %v5100_v28 = vrot.slane %v5096_v56, 4  ;;  %v6559_v48 = vshll.u32 %v6451_v2, 16  ;;  %v6557_v18 = vrot.slane %v6556_v17, 4 }
 0x299   : > { %9025 = vmatmul.bf16.gmra.mxu1 %v10284_v7  ;;  %v5314_v4 = vsel %vm11229_vm2, %v5099_v62, %v5313_v26  ;;  %v4912_v54 = vpack.c.bf16 %v4880_v23, %v4880_v23  ;;  %v5451_v14 = vld [vmem:[#allocation2 + $0x80] sm:$0x1]  ;;  %v4748_v27 = vadd.f32 %v4747_v9, %v4659_v22  ;;  %v5988_v22 = vld [vmem:[#allocation2 + $0x24] sm:$0xe] }
 0x29a   : > { %5315 = vst [vmem:[#allocation2 + $0x84] sm:$0xf] %v5314_v4  ;;  %v5450_v49 = vld [vmem:[#allocation2 + $0x7c] sm:$0xf]  ;;  %v5727_v0 = vshll.u32 %v5451_v14, 16  ;;  %v6561_v23 = vrot.slane %v6559_v48, 5 }
 0x29b   : > { %v5102_v33 = vshrl.u32 %v4912_v54, 16  ;;  %v5717_v50 = vshll.u32 %v5450_v49, 16  ;;  %v5721_v46 = vshrl.u32 %v5450_v49, 16  ;;  %v5105_v52 = vshll.u32 %v4912_v54, 16 }
 0x29c   : > { %v4834_v36 = vpop.f32.mrf.mxu0  ;;  %v5729_v56 = vrot.slane %v5727_v0, 5  ;;  %v6562_v0 = vsel %vm11345_vm9, %v6557_v18, %v6561_v23 }
 0x29d   : > { %v5104_v21 = vrot.slane %v5102_v33, 7  ;;  %v4835_v55 = vadd.f32 %v4834_v36, %v4746_v13  ;;  %v5719_v42 = vrot.slane %v5717_v50, 5  ;;  %v5723_v10 = vrot.slane %v5721_v46, 4  ;;  %v13339_v46 = vld [vmem:[#allocation2 + $0x28] sm:$0xf] }
 0x29e   : > { %6912 = vst.msk [vmem:[#allocation3 + $0x6c] sm:$0xf] %vm256_vm0, %v6562_v0 }
 0x29f   : > { %v5864_v60 = vpop.permute.xlu1 %5863  ;;  %v5107_v45 = vor.u32 %v5105_v52, %v5104_v21  ;;  %v5109_v12 = vrot.slane %v5104_v21, 4  ;;  %v4881_v11 = vmax.f32 %v4835_v55, 0.0  ;;  %v5720_v44 = vsel %vm11345_vm9, %v5715_v1, %v5719_v42 }
 0x2a0   : > { %5953 = vst.msk [vmem:[#allocation3 + $0x78] sm:$0xf] %vm1348_vm11, %v5864_v60  ;;  %v4661_v34 = vpop.f32.mrf.mxu2  ;;  %5891 = vrot.lane.b32.xlu0 %v5720_v44, %s11121_s10  ;;  %v5724_v37 = vor.u32 %v5723_v10, %v5719_v42  ;;  %v5320_v60 = vld [vmem:[#allocation2 + $0x90] sm:$0xf]  ;;  %v6577_v44 = vshrl.u32 %v6453_v32, 16 }
 0x2a1   : > { %v5108_v16 = vsel %vm11297_vm5, %v5100_v28, %v5107_v45  ;;  %v5318_v7 = vsel %vm11362_vm10, %v5109_v12, %v5317_v24  ;;  %v4913_v43 = vpack.c.bf16 %v4881_v11, %v4881_v11  ;;  %v5452_v41 = vld [vmem:[#allocation2 + $0x84] sm:$0xf]  ;;  %v4662_v50 = vadd.f32 %v4661_v34, %v12629_v8 }
 0x2a2   : > { %5319 = vst [vmem:[#allocation2 + $0x8c] sm:$0x1] %v5318_v7  ;;  %v5725_v35 = vrot.slane %v5724_v37, 4  ;;  %v5732_v26 = vshrl.u32 %v5452_v41, 16  ;;  %v5735_v30 = vshll.u32 %v5452_v41, 16  ;;  %v6098_v8 = vrot.slane %v13339_v46, 5 }
 0x2a3   : > { %v4750_v25 = vpop.f32.mrf.mxu3  ;;  %5316 = vst.msk [vmem:[#allocation2 + $0x88] sm:$0xf] %vm256_vm0, %v5108_v16  ;;  %v5111_v15 = vshrl.u32 %v4913_v43, 16  ;;  %v5114_v1 = vshll.u32 %v4913_v43, 16  ;;  %v10196_v24 = vrot.slane %v5988_v22, 9  ;;  %v6573_v34 = vshll.u32 %v6453_v32, 16 }
 0x2a4   : > { %v5730_v9 = vsel %vm11345_vm9, %v5725_v35, %v5729_v56  ;;  %v4836_v19 = vpop.f32.mrf.mxu0  ;;  %v5734_v54 = vrot.slane %v5732_v26, 4  ;;  %v5737_v13 = vrot.slane %v5735_v30, 5  ;;  %v4751_v10 = vadd.f32 %v4750_v25, %v4662_v50  ;;  %v5376_v41 = vld [vmem:[#allocation2 + $0x7c] sm:$0xf] }
 0x2a5   : > { %v13334_v49 = vrot.slane %v5111_v15, 7  ;;  %5893 = vrot.lane.b32.xlu1 %v5730_v9, %s11121_s10  ;;  %v4837_v33 = vadd.f32 %v4836_v19, %v4748_v27  ;;  %v7275_v27 = vld [vmem:[#allocation2 + $0x18] sm:$0xf]  ;;  %5408 = vst.msk [vmem:[#allocation3 + $0x1a4] sm:$0xf] %vm256_vm0, %v5376_v41  ;;  %v6579_v50 = vrot.slane %v6577_v44, 4 }
 0x2a6   : > { %v5872_v4 = vpop.permute.xlu2 %5871  ;;  %v5738_v3 = vor.u32 %v5737_v13, %v5734_v54  ;;  %v5324_v15 = vld [vmem:[#allocation2 + $0x98] sm:$0x1]  ;;  %v13362_v13 = vrot.slane %v6573_v34, 5  ;;  %7307 = vst.msk [vmem:[#allocation3 + $0xc] sm:$0xf] %vm256_vm0, %v7275_v27 }
 0x2a7   : > { %v10303_v62 = vld [vmem:[#allocation3 + $0x78] sm:$0xf]  ;;  %5957 = vst.msk [vmem:[#allocation3 + $0xc8] sm:$0xf] %vm1348_vm11, %v5872_v4  ;;  %v5116_v2 = vor.u32 %v5114_v1, %v13334_v49  ;;  %v4882_v52 = vmax.f32 %v4837_v33, 0.0  ;;  %v5117_v18 = vrot.slane %v13334_v49, 4 }
 0x2a8   : > { %v10304_v14 = vor.u32 %v10860_v38, %v10303_v62  ;;  %v4663_v21 = vpop.f32.mrf.mxu2  ;;  %v5739_v7 = vrot.slane %v5738_v3, 4  ;;  %v6099_v38 = vsel %vm11775_vm14, %v10196_v24, %v6098_v8  ;;  %v10946_v24 = vld [vmem:[%s15031_s3 + $0xb8] sm:$0xff]  ;;  %v5377_v27 = vld [vmem:[#allocation2 + $0x84] sm:$0xf] }
 0x2a9   : > { %v5321_v55 = vsel %vm11229_vm2, %v5116_v2, %v5320_v60  ;;  %v4914_v42 = vpack.c.bf16 %v4882_v52, %v4882_v52  ;;  %v5454_v12 = vld [vmem:[#allocation2 + $0x8c] sm:$0x1]  ;;  %v4664_v43 = vadd.f32 %v4663_v21, %v12663_v58  ;;  %6225 = vst.msk [vmem:[#allocation3 + $0x7c] sm:$0xf] %vm256_vm0, %v6099_v38  ;;  %v6454_v34 = vld [vmem:[#allocation2 + $0x38] sm:$0x1]  ;;  %9185 = vmatpush.bf16.msra.mxu3 %v10946_v24 }
 0x2aa   : > { %9030 = vmatmul.bf16.gmra.mxu1 %v10304_v14  ;;  %v5868_v36 = vpop.permute.xlu0 %5867  ;;  %5322 = vst [vmem:[#allocation2 + $0x90] sm:$0xf] %v5321_v55  ;;  %v5453_v28 = vld [vmem:[#allocation2 + $0x88] sm:$0xf]  ;;  %v5751_v62 = vshll.u32 %v5454_v12, 16  ;;  %v10958_v44 = vld [vmem:[%s15031_s3 + $0x118] sm:$0xff] }
 0x2ab   : > { %5955 = vst.msk [vmem:[#allocation3 + $0xa0] sm:$0xf] %vm1348_vm11, %v5868_v36  ;;  %v5119_v17 = vshrl.u32 %v4914_v42, 16  ;;  %v5741_v48 = vshll.u32 %v5453_v28, 16  ;;  %v5745_v45 = vshrl.u32 %v5453_v28, 16  ;;  %v5122_v37 = vshll.u32 %v4914_v42, 16  ;;  %v4752_v56 = vpop.f32.mrf.mxu3  ;;  %9367 = vmatpush.bf16.msra.mxu1 %v10958_v44 }
 0x2ac   : > { %v4753_v54 = vadd.f32 %v4752_v56, %v4664_v43  ;;  %v5753_v0 = vrot.slane %v5751_v62, 5  ;;  %v10938_v28 = vld [vmem:[%s15031_s3 + $0x78] sm:$0xff]  ;;  %5409 = vst.msk [vmem:[#allocation3 + $0x1b8] sm:$0xf] %vm256_vm0, %v5377_v27  ;;  %v6583_v41 = vshll.u32 %v6454_v34, 16 }
 0x2ad   : > { %v5121_v35 = vrot.slane %v5119_v17, 7  ;;  %v5743_v26 = vrot.slane %v5741_v48, 5  ;;  %v5747_v30 = vrot.slane %v5745_v45, 4  ;;  %9096 = vmatpush.bf16.msra.mxu2 %v10938_v28 }
 0x2ae   : > { %v5870_v11 = vpop.permute.xlu1 %5869  ;;  %v4839_v16 = vpop.f32.mrf.mxu0 }
 0x2af   : > { %5956 = vst.msk [vmem:[#allocation3 + $0xb4] sm:$0xf] %vm1348_vm11, %v5870_v11  ;;  %v4840_v25 = vadd.f32 %v4839_v16, %v4751_v10  ;;  %v5124_v58 = vor.u32 %v5122_v37, %v5121_v35  ;;  %v5126_v23 = vrot.slane %v5121_v35, 4  ;;  %v5744_v19 = vsel %vm11345_vm9, %v5739_v7, %v5743_v26  ;;  %v10954_v11 = vld [vmem:[%s15031_s3 + $0xf8] sm:$0xff] }
 0x2b0   : > { %v5748_v4 = vor.u32 %v5747_v30, %v5743_v26  ;;  %5895 = vrot.lane.b32.xlu2 %v5744_v19, %s11121_s10  ;;  %v5327_v37 = vld [vmem:[#allocation2 + $0x9c] sm:$0xf]  ;;  %v6580_v7 = vor.u32 %v6579_v50, %v13362_v13  ;;  %9274 = vmatpush.bf16.msra.mxu0 %v10954_v11 }
 0x2b1   : > { %v4883_v9 = vmax.f32 %v4840_v25, 0.0  ;;  %v5125_v14 = vsel %vm11297_vm5, %v5117_v18, %v5124_v58  ;;  %v5325_v47 = vsel %vm11362_vm10, %v5126_v23, %v5324_v15  ;;  %v5455_v1 = vld [vmem:[#allocation2 + $0x90] sm:$0xf] }
 0x2b2   : > { %v10323_v33 = vld [vmem:[#allocation3 + $0xa0] sm:$0xf]  ;;  %5326 = vst [vmem:[#allocation2 + $0x98] sm:$0x1] %v5325_v47  ;;  %v5749_v60 = vrot.slane %v5748_v4, 4  ;;  %v5756_v52 = vshrl.u32 %v5455_v1, 16 }
 0x2b3   : > { %v4915_v49 = vpack.c.bf16 %v4883_v9, %v4883_v9  ;;  %v5759_v36 = vshll.u32 %v5455_v1, 16  ;;  %5323 = vst.msk [vmem:[#allocation2 + $0x94] sm:$0xf] %vm256_vm0, %v5125_v14  ;;  %v6581_v18 = vrot.slane %v6580_v7, 4  ;;  %v5378_v47 = vld [vmem:[#allocation2 + $0x88] sm:$0xf] }
 0x2b4   : > { %v5754_v3 = vsel %vm11345_vm9, %v5749_v60, %v5753_v0  ;;  %v5758_v55 = vrot.slane %v5756_v52, 4  ;;  %5410 = vst.msk [vmem:[#allocation3 + $0x1cc] sm:$0xf] %vm256_vm0, %v5378_v47  ;;  %v13421_v47 = vld [vmem:[#allocation2 + $0xc4] sm:$0xf] }
 0x2b5   : > { %v5128_v22 = vshrl.u32 %v4915_v49, 16  ;;  %v5761_v42 = vrot.slane %v5759_v36, 5  ;;  %v5131_v48 = vshll.u32 %v4915_v49, 16  ;;  %5897 = vrot.lane.b32.xlu0 %v5754_v3, %s11121_s10  ;;  %v6585_v49 = vrot.slane %v6583_v41, 5 }
 0x2b6   : > { %v4666_v2 = vpop.f32.mrf.mxu2  ;;  %v10865_v32 = vld [vmem:[#allocation3 + $0xb0] sm:$0xf0]  ;;  %v4841_v21 = vpop.f32.mrf.mxu0 }
 0x2b7   : > { %v10324_v10 = vor.u32 %v10865_v32, %v10323_v33  ;;  %v5130_v17 = vrot.slane %v5128_v22, 7  ;;  %v4842_v45 = vadd.f32 %v4841_v21, %v4753_v54  ;;  %v4667_v12 = vadd.f32 %v4666_v2, %v12692_v20  ;;  %v15062_v54 = vld [vmem:[#allocation7_spill] sm:$0xff]  ;;  %v5331_v2 = vld [vmem:[#allocation2 + $0xa4] sm:$0x1] }
 0x2b8   : > { %v5762_v20 = vor.u32 %v5761_v42, %v5758_v55  ;;  %v6586_v22 = vsel %vm11345_vm9, %v6581_v18, %v6585_v49  ;;  %v2791_v18 = vld [vmem:[#allocation2 + $0xd0] sm:$0xf] }
 0x2b9   : > { %v4755_v16 = vpop.f32.mrf.mxu3  ;;  %v5133_v43 = vor.u32 %v5131_v48, %v5130_v17  ;;  %v4884_v56 = vmax.f32 %v4842_v45, 0.0  ;;  %v5457_v23 = vld [vmem:[#allocation2 + $0x98] sm:$0x1]  ;;  %v5134_v0 = vrot.slane %v5130_v17, 4  ;;  %6914 = vst.msk [vmem:[#allocation3 + $0x94] sm:$0xf] %vm256_vm0, %v6586_v22 }
 0x2ba   : > { %9035 = vmatmul.bf16.gmra.mxu1 %v10324_v10  ;;  %v4756_v25 = vadd.f32 %v4755_v16, %v4667_v12  ;;  %v5456_v26 = vld [vmem:[#allocation2 + $0x94] sm:$0xf]  ;;  %v5763_v4 = vrot.slane %v5762_v20, 4  ;;  %v5775_v36 = vshll.u32 %v5457_v23, 16  ;;  %v13415_v23 = vld [vmem:[#allocation2 + $0x30] sm:$0xe] }
 0x2bb   : > { %v5328_v38 = vsel %vm11229_vm2, %v5133_v43, %v5327_v37  ;;  %v4916_v35 = vpack.c.bf16 %v4884_v56, %v4884_v56  ;;  %v5765_v62 = vshll.u32 %v5456_v26, 16  ;;  %v5769_v58 = vshrl.u32 %v5456_v26, 16 }
 0x2bc   : > { %5329 = vst [vmem:[#allocation2 + $0x9c] sm:$0xf] %v5328_v38  ;;  %v5777_v11 = vrot.slane %v5775_v36, 5 }
 0x2bd   : > { %v5136_v15 = vshrl.u32 %v4916_v35, 16  ;;  %v5139_v9 = vshll.u32 %v4916_v35, 16  ;;  %v5767_v50 = vrot.slane %v5765_v62, 5  ;;  %v5771_v60 = vrot.slane %v5769_v58, 4  ;;  %v5379_v35 = vld [vmem:[#allocation2 + $0x90] sm:$0xf] }
 0x2be   : > { %v4668_v30 = vpop.f32.mrf.mxu2  ;;  %v4844_v19 = vpop.f32.mrf.mxu0  ;;  %5411 = vst.msk [vmem:[#allocation3 + $0x1e0] sm:$0xf] %vm256_vm0, %v5379_v35  ;;  %v10937_v62 = vld [vmem:[%s15031_s3 + $0x70] sm:$0xff] }
 0x2bf   : > { %v4669_v14 = vadd.f32 %v4668_v30, %v15062_v54  ;;  %v5138_v1 = vrot.slane %v5136_v15, 7  ;;  %v4845_v33 = vadd.f32 %v4844_v19, %v4756_v25  ;;  %v5878_v55 = vpop.permute.xlu2 %5877  ;;  %v5768_v42 = vsel %vm11345_vm9, %v5763_v4, %v5767_v50  ;;  %v5334_v25 = vld [vmem:[#allocation2 + $0xa8] sm:$0xf]  ;;  %v10945_v58 = vld [vmem:[%s15031_s3 + $0xb0] sm:$0xff]  ;;  %v10343_v4 = vld [vmem:[#allocation3 + $0xc8] sm:$0xf]  ;;  %9097 = vmatpush.bf16.msra.mxu2 %v10937_v62 }
 0x2c0   : > { %5960 = vst.msk [vmem:[#allocation3 + $0x104] sm:$0xf] %vm1348_vm11, %v5878_v55  ;;  %5899 = vrot.lane.b32.xlu1 %v5768_v42, %s11121_s10  ;;  %v5772_v10 = vor.u32 %v5771_v60, %v5767_v50  ;;  %9186 = vmatpush.bf16.msra.mxu3 %v10945_v58  ;;  %v10953_v58 = vld [vmem:[%s15031_s3 + $0xf0] sm:$0xff] }
 0x2c1   : > { %v4757_v52 = vpop.f32.mrf.mxu3  ;;  %v5141_v32 = vor.u32 %v5139_v9, %v5138_v1  ;;  %v5143_v3 = vrot.slane %v5138_v1, 4  ;;  %v4885_v21 = vmax.f32 %v4845_v33, 0.0  ;;  %v3163_v1 = vshll.u32 %v2791_v18, 16  ;;  %9275 = vmatpush.bf16.msra.mxu0 %v10953_v58 }
 0x2c2   : > { %v4758_v17 = vadd.f32 %v4757_v52, %v4669_v14  ;;  %v5874_v48 = vpop.permute.xlu0 %5873  ;;  %v5773_v12 = vrot.slane %v5772_v10, 4  ;;  %v13419_v14 = vld [vmem:[#allocation2 + $0xc0] sm:$0xe]  ;;  %v3167_v33 = vshrl.u32 %v2791_v18, 16  ;;  %v10197_v52 = vrot.slane %v13415_v23, 9 }
 0x2c3   : > { %v5142_v28 = vsel %vm11297_vm5, %v5134_v0, %v5141_v32  ;;  %v5332_v24 = vsel %vm11362_vm10, %v5143_v3, %v5331_v2  ;;  %v4917_v34 = vpack.c.bf16 %v4885_v21, %v4885_v21  ;;  %v5458_v45 = vld [vmem:[#allocation2 + $0x9c] sm:$0xf]  ;;  %5958 = vst.msk [vmem:[#allocation3 + $0xdc] sm:$0xf] %vm1348_vm11, %v5874_v48  ;;  %v9696_v3 = vrot.slane %v13419_v14, 9 }
 0x2c4   : > { %5333 = vst [vmem:[#allocation2 + $0xa4] sm:$0x1] %v5332_v24  ;;  %v5780_v44 = vshrl.u32 %v5458_v45, 16  ;;  %v5783_v27 = vshll.u32 %v5458_v45, 16  ;;  %v5778_v16 = vsel %vm11345_vm9, %v5773_v12, %v5777_v11  ;;  %v5380_v21 = vld [vmem:[#allocation2 + $0x94] sm:$0xf]  ;;  %9187 = vmatpush.bf16.msra.mxu3 %v10944_v31 }
 0x2c5   : > { %5330 = vst.msk [vmem:[#allocation2 + $0xa0] sm:$0xf] %vm256_vm0, %v5142_v28  ;;  %v5145_v37 = vshrl.u32 %v4917_v34, 16  ;;  %v5148_v41 = vshll.u32 %v4917_v34, 16  ;;  %5901 = vrot.lane.b32.xlu2 %v5778_v16, %s11121_s10  ;;  %v5338_v34 = vld [vmem:[#allocation2 + $0xb0] sm:$0x1] }
 0x2c6   : > { %v4846_v7 = vpop.f32.mrf.mxu0  ;;  %v5782_v43 = vrot.slane %v5780_v44, 4  ;;  %v5785_v56 = vrot.slane %v5783_v27, 5  ;;  %5412 = vst.msk [vmem:[#allocation3 + $0x1f4] sm:$0xf] %vm256_vm0, %v5380_v21  ;;  %v13427_v48 = vrot.slane %v3163_v1, 5  ;;  %v3169_v45 = vrot.slane %v3167_v33, 4 }
 0x2c7   : > { %v5147_v20 = vrot.slane %v5145_v37, 7  ;;  %v4847_v38 = vadd.f32 %v4846_v7, %v4758_v17  ;;  %v2547_v17 = vrot.slane %v13421_v47, 5  ;;  %v2792_v37 = vld [vmem:[#allocation2 + $0xd4] sm:$0x1]  ;;  %v2790_v7 = vld [vmem:[#allocation2 + $0xcc] sm:$0xf] }
 0x2c8   : > { %v5786_v15 = vor.u32 %v5785_v56, %v5782_v43  ;;  %v13431_v16 = vld [vmem:[#allocation2 + $0x34] sm:$0xf]  ;;  %v6456_v43 = vld [vmem:[#allocation2 + $0x40] sm:$0xf]  ;;  %v7277_v56 = vld [vmem:[#allocation2 + $0x24] sm:$0xf] }
 0x2c9   : > { %v5150_v26 = vor.u32 %v5148_v41, %v5147_v20  ;;  %v4886_v30 = vmax.f32 %v4847_v38, 0.0  ;;  %v5151_v24 = vrot.slane %v5147_v20, 4  ;;  %7309 = vst.msk [vmem:[#allocation3 + $0x34] sm:$0xf] %vm256_vm0, %v7277_v56  ;;  %v3173_v62 = vshll.u32 %v2792_v37, 16 }
 0x2ca   : > { %v10870_v2 = vld [vmem:[#allocation3 + $0xd8] sm:$0xf0]  ;;  %v5787_v36 = vrot.slane %v5786_v15, 4  ;;  %v3170_v15 = vor.u32 %v3169_v45, %v13427_v48  ;;  %v5994_v23 = vld [vmem:[#allocation2 + $0x3c] sm:$0xe] }
 0x2cb   : > { %v5335_v9 = vsel %vm11229_vm2, %v5150_v26, %v5334_v25  ;;  %v4918_v19 = vpack.c.bf16 %v4886_v30, %v4886_v30  ;;  %v5460_v54 = vld [vmem:[#allocation2 + $0xa4] sm:$0x1]  ;;  %v10344_v22 = vor.u32 %v10870_v2, %v10343_v4  ;;  %v3157_v4 = vshll.u32 %v2790_v7, 16  ;;  %v5984_v1 = vld [vmem:[#allocation2 + $0x14] sm:$0x1] }
 0x2cc   : > { %5336 = vst [vmem:[#allocation2 + $0xa8] sm:$0xf] %v5335_v9  ;;  %v5459_v49 = vld [vmem:[#allocation2 + $0xa0] sm:$0xf]  ;;  %v5799_v32 = vshll.u32 %v5460_v54, 16  ;;  %v6105_v54 = vrot.slane %v13431_v16, 5 }
 0x2cd   : > { %v5153_v50 = vshrl.u32 %v4918_v19, 16  ;;  %v5789_v60 = vshll.u32 %v5459_v49, 16  ;;  %v5793_v0 = vshrl.u32 %v5459_v49, 16  ;;  %v5156_v42 = vshll.u32 %v4918_v19, 16  ;;  %9040 = vmatmul.bf16.gmra.mxu1 %v10344_v22  ;;  %v6457_v14 = vld [vmem:[#allocation2 + $0x44] sm:$0x1] }
 0x2ce   : > { %v5801_v35 = vrot.slane %v5799_v32, 5  ;;  %v3154_v19 = vshrl.u32 %v2790_v7, 16  ;;  %v13449_v49 = vld [vmem:[#allocation2 + $0x40] sm:$0xf]  ;;  %v6597_v2 = vshll.u32 %v6456_v43, 16  ;;  %v13459_v22 = vrot.slane %v3173_v62, 5 }
 0x2cf   : > { %v5155_v55 = vrot.slane %v5153_v50, 7  ;;  %v5791_v10 = vrot.slane %v5789_v60, 5  ;;  %v5795_v28 = vrot.slane %v5793_v0, 4  ;;  %v5381_v60 = vld [vmem:[#allocation2 + $0x9c] sm:$0xf]  ;;  %v6106_v0 = vsel %vm11775_vm14, %v10197_v52, %v6105_v54 }
 0x2d0   : > { %5413 = vst.msk [vmem:[#allocation3 + $0x208] sm:$0xf] %vm256_vm0, %v5381_v60  ;;  %v6601_v32 = vshrl.u32 %v6456_v43, 16  ;;  %v6443_v21 = vld [vmem:[#allocation2 + $0xc] sm:$0xf]  ;;  %v6112_v52 = vrot.slane %v13449_v49, 5 }
 0x2d1   : > { %v5158_v12 = vor.u32 %v5156_v42, %v5155_v55  ;;  %v5160_v11 = vrot.slane %v5155_v55, 4  ;;  %v5792_v44 = vsel %vm11345_vm9, %v5787_v36, %v5791_v10  ;;  %v5796_v27 = vor.u32 %v5795_v28, %v5791_v10  ;;  %6227 = vst.msk [vmem:[#allocation3 + $0xa4] sm:$0xf] %vm256_vm0, %v6106_v0  ;;  %v7276_v62 = vld [vmem:[#allocation2 + $0x1c] sm:$0xf] }
 0x2d2   : > { %5903 = vrot.lane.b32.xlu0 %v5792_v44, %s11121_s10  ;;  %v5876_v26 = vpop.permute.xlu1 %5875  ;;  %v2548_v36 = vsel %vm11775_vm14, %v9696_v3, %v2547_v17  ;;  %v13462_v55 = vrot.slane %v3170_v15, 4  ;;  %v13465_v42 = vrot.slane %v6597_v2, 5  ;;  %v10198_v10 = vrot.slane %v5994_v23, 9  ;;  %7308 = vst.msk [vmem:[#allocation3 + $0x20] sm:$0xf] %vm256_vm0, %v7276_v62 }
 0x2d3   : > { %v5159_v20 = vsel %vm11297_vm5, %v5151_v24, %v5158_v12  ;;  %v5339_v41 = vsel %vm11362_vm10, %v5160_v11, %v5338_v34  ;;  %v5797_v38 = vrot.slane %v5796_v27, 4  ;;  %v5461_v25 = vld [vmem:[#allocation2 + $0xa8] sm:$0xf]  ;;  %5959 = vst.msk [vmem:[#allocation3 + $0xf0] sm:$0xf] %vm1348_vm11, %v5876_v26  ;;  %v13468_v28 = vrot.slane %v3154_v19, 4 }
 0x2d4   : > { %5340 = vst [vmem:[#allocation2 + $0xb0] sm:$0x1] %v5339_v41  ;;  %v5804_v30 = vshrl.u32 %v5461_v25, 16  ;;  %v5807_v18 = vshll.u32 %v5461_v25, 16  ;;  %v6603_v24 = vrot.slane %v6601_v32, 4  ;;  %v6607_v34 = vshll.u32 %v6457_v14, 16 }
 0x2d5   : > { %5337 = vst.msk [vmem:[#allocation2 + $0xac] sm:$0xf] %vm256_vm0, %v5159_v20  ;;  %v5802_v9 = vsel %vm11345_vm9, %v5797_v38, %v5801_v35  ;;  %v6086_v3 = vrot.slane %v6084_v63, 4  ;;  %v10875_v12 = vld [vmem:[#allocation3 + $0x100] sm:$0xf0]  ;;  %v3159_v44 = vrot.slane %v3157_v4, 5  ;;  %v6113_v27 = vsel %vm11775_vm14, %v10198_v10, %v6112_v52 }
 0x2d6   : > { %5905 = vrot.lane.b32.xlu1 %v5802_v9, %s11121_s10  ;;  %v5806_v33 = vrot.slane %v5804_v30, 4  ;;  %v5809_v50 = vrot.slane %v5807_v18, 5  ;;  %v6087_v37 = vrot.slane %v5984_v1, 5  ;;  %v6604_v56 = vor.u32 %v6603_v24, %v13465_v42  ;;  %6229 = vst.msk [vmem:[#allocation3 + $0xcc] sm:$0xf] %vm256_vm0, %v6113_v27 }
 0x2d7   : > { %v6492_v20 = vshrl.u32 %v6443_v21, 16  ;;  %v6495_v41 = vshll.u32 %v6443_v21, 16  ;;  %v6446_v25 = vld [vmem:[#allocation2 + $0x18] sm:$0xf]  ;;  %v5382_v30 = vld [vmem:[#allocation2 + $0xa0] sm:$0xf]  ;;  %v3176_v60 = vsel %vm11345_vm9, %v13462_v55, %v13459_v22  ;;  %v3160_v2 = vor.u32 %v3159_v44, %v13468_v28 }
 0x2d8   : > { %v5810_v45 = vor.u32 %v5809_v50, %v5806_v33  ;;  %v6088_v35 = vsel %vm11775_vm14, %v6086_v3, %v6087_v37  ;;  %v6605_v18 = vrot.slane %v6604_v56, 4  ;;  %v6609_v15 = vrot.slane %v6607_v34, 5  ;;  %5414 = vst.msk [vmem:[#allocation3 + $0x21c] sm:$0xf] %vm256_vm0, %v5382_v30  ;;  %v2391_v4 = vld [vmem:[#allocation2 + $0xc8] sm:$0x1] }
 0x2d9   : > { %6222 = vst.msk [vmem:[#allocation3 + $0x40] sm:$0xf] %vm256_vm0, %v6088_v35  ;;  %v6494_v1 = vrot.slane %v6492_v20, 4  ;;  %v6497_v33 = vrot.slane %v6495_v41, 5  ;;  %v6516_v21 = vshrl.u32 %v6446_v25, 16  ;;  %v2550_v34 = vrot.slane %v2391_v4, 5 }
 0x2da   : > { %v5884_v7 = vpop.permute.xlu2 %5883  ;;  %v10363_v38 = vld [vmem:[#allocation3 + $0xf0] sm:$0xf]  ;;  %v5811_v58 = vrot.slane %v5810_v45, 4  ;;  %v6610_v14 = vsel %vm11345_vm9, %v6605_v18, %v6609_v15  ;;  %v5987_v3 = vld [vmem:[#allocation2 + $0x20] sm:$0x1]  ;;  %v6519_v45 = vshll.u32 %v6446_v25, 16 }
 0x2db   : > { %v5463_v11 = vld [vmem:[#allocation2 + $0xb0] sm:$0x1]  ;;  %5963 = vst.msk [vmem:[#allocation3 + $0x140] sm:$0xf] %vm1348_vm11, %v5884_v7  ;;  %v10364_v26 = vor.u32 %v10875_v12, %v10363_v38  ;;  %v6498_v32 = vor.u32 %v6497_v33, %v6494_v1  ;;  %v6093_v12 = vrot.slane %v6091_v39, 4  ;;  %v3161_v44 = vrot.slane %v3160_v2, 4 }
 0x2dc   : > { %v5462_v43 = vld [vmem:[#allocation2 + $0xac] sm:$0xf]  ;;  %v5823_v19 = vshll.u32 %v5463_v11, 16  ;;  %6916 = vst.msk [vmem:[#allocation3 + $0xbc] sm:$0xf] %vm256_vm0, %v6610_v14  ;;  %v6518_v11 = vrot.slane %v6516_v21, 4 }
 0x2dd   : > { %v5813_v57 = vshll.u32 %v5462_v43, 16  ;;  %v5817_v63 = vshrl.u32 %v5462_v43, 16  ;;  %9045 = vmatmul.bf16.gmra.mxu1 %v10364_v26  ;;  %v6499_v55 = vrot.slane %v6498_v32, 4  ;;  %v7899_v27 = vld [vmem:[#allocation2 + $0x18] sm:$0xe]  ;;  %v10936_v37 = vld [vmem:[%s15031_s3 + $0x68] sm:$0xff]  ;;  %v3166_v30 = vsel %vm11345_vm9, %v3161_v44, %v13427_v48 }
 0x2de   : > { %2612 = vrot.lane.b32.xlu1 %v2548_v36, %s11121_s10  ;;  %v2549_v36 = vrot.slane %v2547_v17, 4  ;;  %v5825_v24 = vrot.slane %v5823_v19, 5  ;;  %v6521_v17 = vrot.slane %v6519_v45, 5  ;;  %v7900_v28 = vld [vmem:[#allocation2 + $0x1c] sm:$0xf]  ;;  %v6094_v43 = vrot.slane %v5987_v3, 5  ;;  %9098 = vmatpush.bf16.msra.mxu2 %v10936_v37 }
 0x2df   : > { %v5815_v23 = vrot.slane %v5813_v57, 5  ;;  %v5819_v9 = vrot.slane %v5817_v63, 4  ;;  %v5383_v39 = vld [vmem:[#allocation2 + $0xa8] sm:$0xf]  ;;  %v6504_v7 = vsel %vm11345_vm9, %v6499_v55, %v13189_v40  ;;  %v7901_v41 = vld [vmem:[#allocation2 + $0x20] sm:$0x1] }
 0x2e0   : > { %v2551_v56 = vsel %vm11775_vm14, %v2549_v36, %v2550_v34  ;;  %5415 = vst.msk [vmem:[#allocation3 + $0x230] sm:$0xf] %vm256_vm0, %v5383_v39  ;;  %v6522_v20 = vor.u32 %v6521_v17, %v6518_v11  ;;  %v13517_v57 = vld [vmem:[#allocation2 + $0x10] sm:$0xf]  ;;  %v6095_v63 = vsel %vm11775_vm14, %v6093_v12, %v6094_v43  ;;  %v10225_v40 = vrot.slane %v7899_v27, 9  ;;  %v10952_v44 = vld [vmem:[%s15031_s3 + $0xe8] sm:$0xff] }
 0x2e1   : > { %v5816_v50 = vsel %vm11345_vm9, %v5811_v58, %v5815_v23  ;;  %v5820_v0 = vor.u32 %v5819_v9, %v5815_v23  ;;  %6907 = vst.msk [vmem:[#allocation3 + $0x8] sm:$0xf] %vm256_vm0, %v6504_v7  ;;  %v7997_v25 = vrot.slane %v7900_v28, 5  ;;  %v6100_v26 = vrot.slane %v6098_v8, 4  ;;  %v5990_v15 = vld [vmem:[#allocation2 + $0x2c] sm:$0x1]  ;;  %9276 = vmatpush.bf16.msra.mxu0 %v10952_v44 }
 0x2e2   : > { %5907 = vrot.lane.b32.xlu2 %v5816_v50, %s11121_s10  ;;  %v5880_v22 = vpop.permute.xlu0 %5879  ;;  %v6523_v35 = vrot.slane %v6522_v20, 4  ;;  %v8000_v18 = vrot.slane %v7901_v41, 5  ;;  %v6251_v62 = vld [vmem:[#allocation2 + $0xc] sm:$0xf]  ;;  %6224 = vst.msk [vmem:[#allocation3 + $0x68] sm:$0xf] %vm256_vm0, %v6095_v63 }
 0x2e3   : > { %v5821_v10 = vrot.slane %v5820_v0, 4  ;;  %5961 = vst.msk [vmem:[#allocation3 + $0x118] sm:$0xf] %vm1348_vm11, %v5880_v22  ;;  %v7998_v46 = vsel %vm11775_vm14, %v10225_v40, %v7997_v25  ;;  %v7999_v8 = vrot.slane %v7997_v25, 4  ;;  %v6101_v23 = vrot.slane %v5990_v15, 5  ;;  %v10957_v7 = vld [vmem:[%s15031_s3 + $0x110] sm:$0xff] }
 0x2e4   : > { %v6528_v58 = vsel %vm11345_vm9, %v6523_v35, %v13279_v51  ;;  %v7037_v9 = vrot.slane %v13517_v57, 5  ;;  %v7278_v48 = vld [vmem:[#allocation2 + $0x28] sm:$0xf]  ;;  %v6941_v19 = vld [vmem:[#allocation2 + $0x14] sm:$0x1]  ;;  %9368 = vmatpush.bf16.msra.mxu1 %v10957_v7  ;;  %v6107_v40 = vrot.slane %v6105_v54, 4 }
 0x2e5   : > { %v5826_v47 = vsel %vm11345_vm9, %v5821_v10, %v5825_v24  ;;  %6909 = vst.msk [vmem:[#allocation3 + $0x30] sm:$0xf] %vm256_vm0, %v6528_v58  ;;  %v7279_v4 = vld [vmem:[#allocation2 + $0x30] sm:$0xf]  ;;  %v8001_v14 = vsel %vm11775_vm14, %v7999_v8, %v8000_v18  ;;  %v6102_v51 = vsel %vm11775_vm14, %v6100_v26, %v6101_v23  ;;  %v6449_v1 = vld [vmem:[#allocation2 + $0x24] sm:$0xf] }
 0x2e6   : > { %3239 = vrot.lane.b32.xlu1 %v3176_v60, %s11121_s10  ;;  %5909 = vrot.lane.b32.xlu0 %v5826_v47, %s11121_s10  ;;  %8139 = vst.msk [vmem:[#allocation3 + $0x10] sm:$0xf] %vm256_vm0, %v7998_v46  ;;  %v6540_v33 = vshrl.u32 %v6449_v1, 16  ;;  %v6543_v50 = vshll.u32 %v6449_v1, 16  ;;  %v7902_v60 = vld [vmem:[#allocation2 + $0x24] sm:$0xe] }
 0x2e7   : > { %v5882_v38 = vpop.permute.xlu1 %5881  ;;  %7311 = vst.msk [vmem:[#allocation3 + $0x5c] sm:$0xf] %vm256_vm0, %v7279_v4  ;;  %v7903_v2 = vld [vmem:[#allocation2 + $0x28] sm:$0xf]  ;;  %v7904_v36 = vld [vmem:[#allocation2 + $0x2c] sm:$0x1] }
 0x2e8   : > { %5962 = vst.msk [vmem:[#allocation3 + $0x12c] sm:$0xf] %vm1348_vm11, %v5882_v38  ;;  %v6542_v32 = vrot.slane %v6540_v33, 4  ;;  %v6545_v21 = vrot.slane %v6543_v50, 5  ;;  %v8004_v10 = vrot.slane %v7903_v2, 5  ;;  %v7039_v3 = vrot.slane %v7037_v9, 4 }
 0x2e9   : > { %8140 = vst.msk [vmem:[#allocation3 + $0x24] sm:$0xf] %vm256_vm0, %v8001_v14  ;;  %v10226_v45 = vrot.slane %v7902_v60, 9  ;;  %v7040_v55 = vrot.slane %v6941_v19, 5  ;;  %v6452_v11 = vld [vmem:[#allocation2 + $0x30] sm:$0xf] }
 0x2ea   : > { %2614 = vrot.lane.b32.xlu2 %v2551_v56, %s11121_s10  ;;  %v10383_v0 = vld [vmem:[#allocation3 + $0x118] sm:$0xf]  ;;  %6226 = vst.msk [vmem:[#allocation3 + $0x90] sm:$0xf] %vm256_vm0, %v6102_v51  ;;  %v6546_v12 = vor.u32 %v6545_v21, %v6542_v32  ;;  %v8006_v47 = vrot.slane %v8004_v10, 4  ;;  %v8007_v17 = vrot.slane %v7904_v36, 5 }
 0x2eb   : > { %7310 = vst.msk [vmem:[#allocation3 + $0x48] sm:$0xf] %vm256_vm0, %v7278_v48  ;;  %v8005_v27 = vsel %vm11775_vm14, %v10226_v45, %v8004_v10  ;;  %v6564_v28 = vshrl.u32 %v6452_v11, 16  ;;  %v5384_v37 = vld [vmem:[#allocation2 + $0xac] sm:$0xf]  ;;  %v7041_v39 = vsel %vm11775_vm14, %v7039_v3, %v7040_v55  ;;  %v6567_v35 = vshll.u32 %v6452_v11, 16 }
 0x2ec   : > { %v6547_v31 = vrot.slane %v6546_v12, 4  ;;  %5416 = vst.msk [vmem:[#allocation3 + $0x244] sm:$0xf] %vm256_vm0, %v5384_v37  ;;  %v8008_v43 = vsel %vm11775_vm14, %v8006_v47, %v8007_v17  ;;  %v5993_v20 = vld [vmem:[#allocation2 + $0x38] sm:$0x1] }
 0x2ed   : > { %8141 = vst.msk [vmem:[#allocation3 + $0x38] sm:$0xf] %vm256_vm0, %v8005_v27  ;;  %v7905_v41 = vld [vmem:[#allocation2 + $0x30] sm:$0xe]  ;;  %v7280_v63 = vld [vmem:[#allocation2 + $0x34] sm:$0xf] }
 0x2ee   : > { %6315 = vrot.lane.b32.xlu1 %v6251_v62, %s11121_s10  ;;  %3237 = vrot.lane.b32.xlu0 %v3166_v30, %s11121_s10  ;;  %v6552_v56 = vsel %vm11345_vm9, %v6547_v31, %v13318_v61  ;;  %v6566_v38 = vrot.slane %v6564_v28, 4  ;;  %8142 = vst.msk [vmem:[#allocation3 + $0x4c] sm:$0xf] %vm256_vm0, %v8008_v43  ;;  %v6108_v25 = vrot.slane %v5993_v20, 5  ;;  %v7906_v26 = vld [vmem:[#allocation2 + $0x34] sm:$0xf] }
 0x2ef   : > { %v5890_v24 = vpop.permute.xlu2 %5889  ;;  %v10880_v34 = vld [vmem:[#allocation3 + $0x128] sm:$0xf0]  ;;  %6911 = vst.msk [vmem:[#allocation3 + $0x58] sm:$0xf] %vm256_vm0, %v6552_v56  ;;  %v13575_v61 = vld [vmem:[#allocation2 + $0x1c] sm:$0xf] }
 0x2f0   : > { %5966 = vst.msk [vmem:[#allocation3 + $0x17c] sm:$0xf] %vm1348_vm11, %v5890_v24  ;;  %v10384_v22 = vor.u32 %v10880_v34, %v10383_v0  ;;  %v6109_v18 = vsel %vm11775_vm14, %v6107_v40, %v6108_v25  ;;  %v6569_v15 = vrot.slane %v6567_v35, 5  ;;  %v7907_v62 = vld [vmem:[#allocation2 + $0x38] sm:$0x1]  ;;  %v10227_v58 = vrot.slane %v7905_v41, 9 }
 0x2f1   : > { %7312 = vst.msk [vmem:[#allocation3 + $0x70] sm:$0xf] %vm256_vm0, %v7280_v63  ;;  %v8011_v46 = vrot.slane %v7906_v26, 5  ;;  %v6253_v54 = vld [vmem:[#allocation2 + $0x18] sm:$0xf]  ;;  %v7044_v8 = vrot.slane %v13575_v61, 5 }
 0x2f2   : > { %9050 = vmatmul.bf16.gmra.mxu1 %v10384_v22  ;;  %6228 = vst.msk [vmem:[#allocation3 + $0xb8] sm:$0xf] %vm256_vm0, %v6109_v18  ;;  %v6570_v16 = vor.u32 %v6569_v15, %v6566_v38  ;;  %v7281_v23 = vld [vmem:[#allocation2 + $0x3c] sm:$0xf]  ;;  %v8014_v4 = vrot.slane %v7907_v62, 5  ;;  %v6114_v27 = vrot.slane %v6112_v52, 4 }
 0x2f3   : > { %v8012_v48 = vsel %vm11775_vm14, %v10227_v58, %v8011_v46  ;;  %v8013_v19 = vrot.slane %v8011_v46, 4  ;;  %7313 = vst.msk [vmem:[#allocation3 + $0x84] sm:$0xf] %vm256_vm0, %v7281_v23  ;;  %v6944_v51 = vld [vmem:[#allocation2 + $0x20] sm:$0x1]  ;;  %v7046_v0 = vrot.slane %v7044_v8, 4 }
 0x2f4   : > { %v6571_v14 = vrot.slane %v6570_v16, 4  ;;  %8143 = vst.msk [vmem:[#allocation3 + $0x60] sm:$0xf] %vm256_vm0, %v8012_v48  ;;  %v6455_v33 = vld [vmem:[#allocation2 + $0x3c] sm:$0xf]  ;;  %v7047_v10 = vrot.slane %v6944_v51, 5 }
 0x2f5   : > { %v8015_v1 = vsel %vm11775_vm14, %v8013_v19, %v8014_v4  ;;  %v10403_v50 = vld [vmem:[#allocation3 + $0x140] sm:$0xf]  ;;  %v6588_v36 = vshrl.u32 %v6455_v33, 16  ;;  %v6591_v21 = vshll.u32 %v6455_v33, 16  ;;  %v5996_v22 = vld [vmem:[#allocation2 + $0x44] sm:$0x1] }
 0x2f6   : > { %7149 = vrot.lane.b32.xlu1 %v7041_v39, %s11121_s10  ;;  %v6576_v2 = vsel %vm11345_vm9, %v6571_v14, %v13362_v13  ;;  %8144 = vst.msk [vmem:[#allocation3 + $0x74] sm:$0xf] %vm256_vm0, %v8015_v1  ;;  %v7048_v45 = vsel %vm11775_vm14, %v7046_v0, %v7047_v10  ;;  %v7282_v55 = vld [vmem:[#allocation2 + $0x40] sm:$0xf]  ;;  %v13599_v13 = vld [vmem:[#allocation2 + $0x28] sm:$0xf]  ;;  %v4671_v38 = vpop.f32.mrf.mxu2 }
 0x2f7   : > { %v5886_v30 = vpop.permute.xlu0 %5885  ;;  %6913 = vst.msk [vmem:[#allocation3 + $0x80] sm:$0xf] %vm256_vm0, %v6576_v2  ;;  %v6590_v34 = vrot.slane %v6588_v36, 4  ;;  %v6593_v3 = vrot.slane %v6591_v21, 5  ;;  %v7909_v12 = vld [vmem:[#allocation2 + $0x40] sm:$0xf] }
 0x2f8   : > { %5964 = vst.msk [vmem:[#allocation3 + $0x154] sm:$0xf] %vm1348_vm11, %v5886_v30  ;;  %v5997_v11 = vld [vmem:[#allocation2 + $0x48] sm:$0xe]  ;;  %v6115_v47 = vrot.slane %v5996_v22, 5  ;;  %v7051_v28 = vrot.slane %v13599_v13, 5 }
 0x2f9   : > { %7314 = vst.msk [vmem:[#allocation3 + $0x98] sm:$0xf] %vm256_vm0, %v7282_v55  ;;  %v6594_v17 = vor.u32 %v6593_v3, %v6590_v34  ;;  %v7908_v44 = vld [vmem:[#allocation2 + $0x3c] sm:$0xe]  ;;  %v8018_v37 = vrot.slane %v7909_v12, 5  ;;  %v10199_v63 = vrot.slane %v5997_v11, 9 }
 0x2fa   : > { %v6459_v31 = vld [vmem:[#allocation2 + $0x4c] sm:$0xf]  ;;  %v6460_v39 = vld [vmem:[#allocation2 + $0x50] sm:$0x1]  ;;  %v6116_v43 = vsel %vm11775_vm14, %v6114_v27, %v6115_v47  ;;  %v6255_v56 = vld [vmem:[#allocation2 + $0x24] sm:$0xf] }
 0x2fb   : > { %v13605_v7 = vld [vmem:[#allocation2 + $0x4c] sm:$0xf]  ;;  %v6621_v20 = vshll.u32 %v6459_v31, 16  ;;  %v6625_v41 = vshrl.u32 %v6459_v31, 16  ;;  %v7910_v52 = vld [vmem:[#allocation2 + $0x44] sm:$0x1] }
 0x2fc   : > { %v6119_v49 = vrot.slane %v13605_v7, 5  ;;  %v6631_v40 = vshll.u32 %v6460_v39, 16  ;;  %6230 = vst.msk [vmem:[#allocation3 + $0xe0] sm:$0xf] %vm256_vm0, %v6116_v43  ;;  %v6595_v25 = vrot.slane %v6594_v17, 4  ;;  %v10228_v26 = vrot.slane %v7908_v44, 9 }
 0x2fd   : > { %v10935_v30 = vld [vmem:[%s15031_s3 + $0x60] sm:$0xff]  ;;  %v13618_v15 = vrot.slane %v6621_v20, 5  ;;  %v6627_v62 = vrot.slane %v6625_v41, 4  ;;  %v6947_v46 = vld [vmem:[#allocation2 + $0x2c] sm:$0x1]  ;;  %v7053_v16 = vrot.slane %v7051_v28, 4 }
 0x2fe   : > { %6319 = vrot.lane.b32.xlu1 %v6253_v54, %s11121_s10  ;;  %v10943_v18 = vld [vmem:[%s15031_s3 + $0xa0] sm:$0xff]  ;;  %v6120_v58 = vsel %vm11775_vm14, %v10199_v63, %v6119_v49  ;;  %v6600_v54 = vsel %vm11345_vm9, %v6595_v25, %v13465_v42  ;;  %v8020_v23 = vrot.slane %v8018_v37, 4  ;;  %v8021_v48 = vrot.slane %v7910_v52, 5  ;;  %9099 = vmatpush.bf16.msra.mxu2 %v10935_v30  ;;  %v7283_v14 = vld [vmem:[#allocation2 + $0x48] sm:$0xf] }
 0x2ff   : > { %v10885_v60 = vld [vmem:[#allocation3 + $0x150] sm:$0xf0]  ;;  %9188 = vmatpush.bf16.msra.mxu3 %v10943_v18  ;;  %v6628_v4 = vor.u32 %v6627_v62, %v13618_v15  ;;  %6231 = vst.msk [vmem:[#allocation3 + $0xf4] sm:$0xf] %vm256_vm0, %v6120_v58  ;;  %v8019_v51 = vsel %vm11775_vm14, %v10228_v26, %v8018_v37  ;;  %v10890_v1 = vld [vmem:[#allocation3 + $0x178] sm:$0xf0]  ;;  %v4673_v37 = vpop.f32.mrf.mxu2 }
 0x300   : > { %v10404_v32 = vor.u32 %v10885_v60, %v10403_v50  ;;  %7315 = vst.msk [vmem:[#allocation3 + $0xac] sm:$0xf] %vm256_vm0, %v7283_v14  ;;  %v8022_v33 = vsel %vm11775_vm14, %v8020_v23, %v8021_v48  ;;  %v6458_v42 = vld [vmem:[#allocation2 + $0x48] sm:$0xf]  ;;  %v13637_v50 = vpop.f32.mrf.mxu1  ;;  %v6633_v0 = vrot.slane %v6631_v40, 5  ;;  %v10951_v11 = vld [vmem:[%s15031_s3 + $0xe0] sm:$0xff] }
 0x301   : > { %v6629_v60 = vrot.slane %v6628_v4, 4  ;;  %6915 = vst.msk [vmem:[#allocation3 + $0xa8] sm:$0xf] %vm256_vm0, %v6600_v54  ;;  %v6612_v2 = vshrl.u32 %v6458_v42, 16  ;;  %v6615_v36 = vshll.u32 %v6458_v42, 16  ;;  %9277 = vmatpush.bf16.msra.mxu0 %v10951_v11  ;;  %v6121_v20 = vrot.slane %v6119_v49, 4 }
 0x302   : > { %9055 = vmatmul.bf16.gmra.mxu1 %v10404_v32  ;;  %v5888_v24 = vpop.permute.xlu1 %5887  ;;  %v15063_v32 = vld [vmem:[#allocation8_spill] sm:$0xff]  ;;  %8145 = vst.msk [vmem:[#allocation3 + $0x88] sm:$0xf] %vm256_vm0, %v8019_v51  ;;  %v5999_v47 = vld [vmem:[#allocation2 + $0x50] sm:$0x1] }
 0x303   : > { %5965 = vst.msk [vmem:[#allocation3 + $0x168] sm:$0xf] %vm1348_vm11, %v5888_v24  ;;  %v4672_v21 = vadd.f32 %v4671_v38, %v15063_v32  ;;  %v7054_v24 = vrot.slane %v6947_v46, 5  ;;  %v6634_v3 = vsel %vm11345_vm9, %v6629_v60, %v6633_v0  ;;  %v6617_v22 = vrot.slane %v6615_v36, 5  ;;  %v7284_v17 = vld [vmem:[#allocation2 + $0x4c] sm:$0xf] }
 0x304   : > { %8146 = vst.msk [vmem:[#allocation3 + $0x9c] sm:$0xf] %vm256_vm0, %v8022_v33  ;;  %v7911_v43 = vld [vmem:[#allocation2 + $0x48] sm:$0xe]  ;;  %v6122_v41 = vrot.slane %v5999_v47, 5 }
 0x305   : > { %6918 = vst.msk [vmem:[#allocation3 + $0xe4] sm:$0xf] %vm256_vm0, %v6634_v3  ;;  %v7055_v27 = vsel %vm11775_vm14, %v7053_v16, %v7054_v24  ;;  %v7913_v52 = vld [vmem:[#allocation2 + $0x50] sm:$0x1]  ;;  %v13658_v30 = vld [vmem:[#allocation2 + $0x34] sm:$0xf] }
 0x306   : > { %7153 = vrot.lane.b32.xlu1 %v7048_v45, %s11121_s10  ;;  %v6614_v45 = vrot.slane %v6612_v2, 4  ;;  %7316 = vst.msk [vmem:[#allocation3 + $0xc0] sm:$0xf] %vm256_vm0, %v7284_v17  ;;  %v6123_v18 = vsel %vm11775_vm14, %v6121_v20, %v6122_v41  ;;  %v10229_v49 = vrot.slane %v7911_v43, 9  ;;  %v8028_v54 = vrot.slane %v7913_v52, 5 }
 0x307   : > { %6232 = vst.msk [vmem:[#allocation3 + $0x108] sm:$0xf] %vm256_vm0, %v6123_v18  ;;  %v6257_v4 = vld [vmem:[#allocation2 + $0x30] sm:$0xf]  ;;  %v7058_v14 = vrot.slane %v13658_v30, 5 }
 0x308   : > { %v6618_v44 = vor.u32 %v6617_v22, %v6614_v45  ;;  %v13665_v58 = vpop.f32.mrf.mxu1  ;;  %v13675_v33 = vld [vmem:[#allocation2 + $0xc] sm:$0xe]  ;;  %v13677_v42 = vld [vmem:[#allocation2 + $0x18] sm:$0xf]  ;;  %v13680_v36 = vld [vmem:[#allocation2 + $0x1c] sm:$0xf] }
 0x309   : > { %v5341_v32 = vld [vmem:[#allocation2 + $0xb4] sm:$0xf]  ;;  %v7060_v22 = vrot.slane %v7058_v14, 4  ;;  %v13697_v20 = vld [vmem:[#allocation2 + $0x40] sm:$0xf]  ;;  %v7401_v41 = vshrl.u32 %v13680_v36, 16 }
 0x30a   : > { %v5896_v35 = vpop.permute.xlu2 %5895  ;;  %v10423_v19 = vld [vmem:[#allocation3 + $0x168] sm:$0xf]  ;;  %v6619_v63 = vrot.slane %v6618_v44, 4  ;;  %v7388_v44 = vshrl.u32 %v13677_v42, 16  ;;  %v6463_v52 = vld [vmem:[#allocation2 + $0x5c] sm:$0x1] }
 0x30b   : > { %5969 = vst.msk [vmem:[#allocation3 + $0x1b8] sm:$0xf] %vm1348_vm11, %v5896_v35  ;;  %v10424_v10 = vor.u32 %v10890_v1, %v10423_v19  ;;  %v15064_v35 = vld [vmem:[#allocation9_spill] sm:$0xff]  ;;  %v6478_v30 = vld [vmem:[#allocation2 + $0x98] sm:$0x1] }
 0x30c   : > { %v4674_v40 = vadd.f32 %v4673_v37, %v15064_v35  ;;  %v6624_v7 = vsel %vm11345_vm9, %v6619_v63, %v13618_v15  ;;  %v7285_v15 = vld [vmem:[#allocation2 + $0x54] sm:$0xf]  ;;  %v7391_v37 = vshll.u32 %v13677_v42, 16  ;;  %v6462_v63 = vld [vmem:[#allocation2 + $0x58] sm:$0xf] }
 0x30d   : > { %6917 = vst.msk [vmem:[#allocation3 + $0xd0] sm:$0xf] %vm256_vm0, %v6624_v7  ;;  %v6645_v35 = vshll.u32 %v6462_v63, 16  ;;  %v10950_v42 = vld [vmem:[%s15031_s3 + $0xd8] sm:$0xff] }
 0x30e   : > { %6323 = vrot.lane.b32.xlu1 %v6255_v56, %s11121_s10  ;;  %v7912_v56 = vld [vmem:[#allocation2 + $0x4c] sm:$0xf]  ;;  %7317 = vst.msk [vmem:[#allocation3 + $0xd4] sm:$0xf] %vm256_vm0, %v7285_v15  ;;  %9278 = vmatpush.bf16.msra.mxu0 %v10950_v42 }
 0x30f   : > { %v8025_v38 = vrot.slane %v7912_v56, 5 }
 0x310   : > { %v4849_v31 = vpop.f32.mrf.mxu0  ;;  %v13688_v11 = vpop.f32.mrf.mxu1 }
 0x311   : > { %v8027_v62 = vrot.slane %v8025_v38, 4  ;;  %v8026_v48 = vsel %vm11775_vm14, %v10229_v49, %v8025_v38  ;;  %v5345_v38 = vld [vmem:[#allocation2 + $0xbc] sm:$0x1] }
 0x312   : > { %v4760_v34 = vpop.f32.mrf.mxu3  ;;  %9060 = vmatmul.bf16.gmra.mxu1 %v10424_v10  ;;  %v5892_v55 = vpop.permute.xlu0 %5891  ;;  %8147 = vst.msk [vmem:[#allocation3 + $0xb0] sm:$0xf] %vm256_vm0, %v8026_v48  ;;  %v6002_v48 = vld [vmem:[#allocation2 + $0x5c] sm:$0x1] }
 0x313   : > { %v4761_v12 = vadd.f32 %v4760_v34, %v4672_v21  ;;  %5967 = vst.msk [vmem:[#allocation3 + $0x190] sm:$0xf] %vm1348_vm11, %v5892_v55  ;;  %v8029_v51 = vsel %vm11775_vm14, %v8027_v62, %v8028_v54  ;;  %v6950_v21 = vld [vmem:[#allocation2 + $0x38] sm:$0x1]  ;;  %v6461_v62 = vld [vmem:[#allocation2 + $0x54] sm:$0xf] }
 0x314   : > { %8148 = vst.msk [vmem:[#allocation3 + $0xc4] sm:$0xf] %vm256_vm0, %v8029_v51  ;;  %v7061_v17 = vrot.slane %v6950_v21, 5  ;;  %v10934_v51 = vld [vmem:[%s15031_s3 + $0x58] sm:$0xff] }
 0x315   : > { %v4850_v39 = vadd.f32 %v4849_v31, %v4761_v12  ;;  %v10209_v12 = vrot.slane %v13675_v33, 9  ;;  %v7397_v31 = vshll.u32 %v13680_v36, 16  ;;  %9100 = vmatpush.bf16.msra.mxu2 %v10934_v51 }
 0x316   : > { %7157 = vrot.lane.b32.xlu1 %v7055_v27, %s11121_s10  ;;  %v7062_v56 = vsel %vm11775_vm14, %v7060_v22, %v7061_v17  ;;  %v6639_v22 = vshll.u32 %v6461_v62, 16 }
 0x317   : > { %v5894_v25 = vpop.permute.xlu1 %5893  ;;  %v4887_v26 = vmax.f32 %v4850_v39, 0.0  ;;  %v6000_v39 = vld [vmem:[#allocation2 + $0x54] sm:$0xe] }
 0x318   : > { %5968 = vst.msk [vmem:[#allocation3 + $0x1a4] sm:$0xf] %vm1348_vm11, %v5894_v25  ;;  %v4851_v1 = vpop.f32.mrf.mxu0  ;;  %v6001_v25 = vld [vmem:[#allocation2 + $0x58] sm:$0xf]  ;;  %v10200_v7 = vrot.slane %v6000_v39, 9 }
 0x319   : > { %v4919_v46 = vpack.c.bf16 %v4887_v26, %v4887_v26  ;;  %v6126_v49 = vrot.slane %v6001_v25, 5  ;;  %v6259_v39 = vld [vmem:[#allocation2 + $0x3c] sm:$0xf]  ;;  %v10463_v25 = vld [vmem:[#allocation3 + $0x1b8] sm:$0xf] }
 0x31a   : > { %v4762_v16 = vpop.f32.mrf.mxu3  ;;  %v10443_v34 = vld [vmem:[#allocation3 + $0x190] sm:$0xf] }
 0x31b   : > { %v4763_v23 = vadd.f32 %v4762_v16, %v4674_v40  ;;  %v5162_v19 = vshrl.u32 %v4919_v46, 16  ;;  %v5165_v0 = vshll.u32 %v4919_v46, 16  ;;  %v6649_v40 = vshrl.u32 %v6462_v63, 16 }
 0x31c   : > { %v13701_v16 = vrot.slane %v6645_v35, 5  ;;  %v1894_v35 = vld [vmem:[#allocation2 + $0xc4] sm:$0xf] }
 0x31d   : > { %v5164_v60 = vrot.slane %v5162_v19, 7  ;;  %v4852_v2 = vadd.f32 %v4851_v1, %v4763_v23  ;;  %v6651_v54 = vrot.slane %v6649_v40, 4  ;;  %v6655_v23 = vshll.u32 %v6463_v52, 16  ;;  %v10942_v1 = vld [vmem:[%s15031_s3 + $0x98] sm:$0xff] }
 0x31e   : > { %6327 = vrot.lane.b32.xlu1 %v6257_v4, %s11121_s10  ;;  %9189 = vmatpush.bf16.msra.mxu3 %v10942_v1  ;;  %v2270_v51 = vshrl.u32 %v1894_v35, 16 }
 0x31f   : > { %v5167_v10 = vor.u32 %v5165_v0, %v5164_v60  ;;  %v5902_v24 = vpop.permute.xlu2 %5901  ;;  %v10895_v3 = vld [vmem:[#allocation3 + $0x1a0] sm:$0xf0]  ;;  %v4888_v45 = vmax.f32 %v4852_v2, 0.0  ;;  %v5168_v46 = vrot.slane %v5164_v60, 4  ;;  %v6127_v0 = vsel %vm11775_vm14, %v10200_v7, %v6126_v49 }
 0x320   : > { %5972 = vst.msk [vmem:[#allocation3 + $0x1f4] sm:$0xf] %vm1348_vm11, %v5902_v24  ;;  %v10444_v55 = vor.u32 %v10895_v3, %v10443_v34  ;;  %v6128_v60 = vrot.slane %v6126_v49, 4  ;;  %v7065_v2 = vrot.slane %v13697_v20, 5  ;;  %v6652_v21 = vor.u32 %v6651_v54, %v13701_v16 }
 0x321   : > { %v5342_v27 = vsel %vm11229_vm2, %v5167_v10, %v5341_v32  ;;  %v4920_v47 = vpack.c.bf16 %v4888_v45, %v4888_v45  ;;  %v13713_v32 = vrot.slane %v7388_v44, 4  ;;  %v6636_v10 = vshrl.u32 %v6461_v62, 16  ;;  %6233 = vst.msk [vmem:[#allocation3 + $0x11c] sm:$0xf] %vm256_vm0, %v6127_v0  ;;  %v13721_v44 = vpop.f32.mrf.mxu1  ;;  %v7341_v62 = vld [vmem:[#allocation2 + $0x20] sm:$0x1] }
 0x322   : > { %5343 = vst [vmem:[#allocation2 + $0xb4] sm:$0xf] %v5342_v27  ;;  %9065 = vmatmul.bf16.gmra.mxu1 %v10444_v55  ;;  %v6129_v45 = vrot.slane %v6002_v48, 5  ;;  %v6657_v17 = vrot.slane %v6655_v23, 5  ;;  %v2266_v49 = vshll.u32 %v1894_v35, 16  ;;  %v6641_v23 = vrot.slane %v6639_v22, 5 }
 0x323   : > { %v5170_v43 = vshrl.u32 %v4920_v47, 16  ;;  %v5173_v18 = vshll.u32 %v4920_v47, 16  ;;  %v6653_v47 = vrot.slane %v6652_v21, 4  ;;  %v6638_v54 = vrot.slane %v6636_v10, 4  ;;  %v1895_v21 = vld [vmem:[#allocation2 + $0xc8] sm:$0x1] }
 0x324   : > { %v2276_v22 = vshll.u32 %v1895_v21, 16  ;;  %v6003_v21 = vld [vmem:[#allocation2 + $0x60] sm:$0xe] }
 0x325   : > { %v5172_v26 = vrot.slane %v5170_v43, 7  ;;  %v6953_v43 = vld [vmem:[#allocation2 + $0x44] sm:$0x1]  ;;  %v6658_v40 = vsel %vm11345_vm9, %v6653_v47, %v6657_v17  ;;  %v13744_v17 = vrot.slane %v7397_v31, 5 }
 0x326   : > { %7161 = vrot.lane.b32.xlu1 %v7062_v56, %s11121_s10  ;;  %v6130_v56 = vsel %vm11775_vm14, %v6128_v60, %v6129_v45  ;;  %6920 = vst.msk [vmem:[#allocation3 + $0x10c] sm:$0xf] %vm256_vm0, %v6658_v40  ;;  %v7068_v0 = vrot.slane %v6953_v43, 5  ;;  %v2272_v45 = vrot.slane %v2270_v51, 4  ;;  %v6642_v43 = vor.u32 %v6641_v23, %v6638_v54  ;;  %v7286_v23 = vld [vmem:[#allocation2 + $0x58] sm:$0xf] }
 0x327   : > { %v5175_v19 = vor.u32 %v5173_v18, %v5172_v26  ;;  %v5177_v4 = vrot.slane %v5172_v26, 4  ;;  %v5898_v15 = vpop.permute.xlu0 %5897  ;;  %v7067_v26 = vrot.slane %v7065_v2, 4  ;;  %6234 = vst.msk [vmem:[#allocation3 + $0x130] sm:$0xf] %vm256_vm0, %v6130_v56  ;;  %v2278_v40 = vrot.slane %v2276_v22, 5 }
 0x328   : > { %5970 = vst.msk [vmem:[#allocation3 + $0x1cc] sm:$0xf] %vm1348_vm11, %v5898_v15  ;;  %v2268_v15 = vrot.slane %v2266_v49, 5  ;;  %v13775_v51 = vld [vmem:[#allocation2 + $0x28] sm:$0xf] }
 0x329   : > { %v5176_v24 = vsel %vm11297_vm5, %v5168_v46, %v5175_v19  ;;  %v5346_v34 = vsel %vm11362_vm10, %v5177_v4, %v5345_v38  ;;  %v5464_v3 = vld [vmem:[#allocation2 + $0xb4] sm:$0xf]  ;;  %v1893_v38 = vld [vmem:[#allocation2 + $0xc0] sm:$0xf]  ;;  %7318 = vst.msk [vmem:[#allocation3 + $0xe8] sm:$0xf] %vm256_vm0, %v7286_v23 }
 0x32a   : > { %5347 = vst [vmem:[#allocation2 + $0xbc] sm:$0x1] %v5346_v34  ;;  %v5828_v55 = vshrl.u32 %v5464_v3, 16  ;;  %v5831_v27 = vshll.u32 %v5464_v3, 16  ;;  %v2257_v18 = vshrl.u32 %v1893_v38, 16  ;;  %v2260_v7 = vshll.u32 %v1893_v38, 16 }
 0x32b   : > { %5344 = vst.msk [vmem:[#allocation2 + $0xb8] sm:$0xf] %vm256_vm0, %v5176_v24  ;;  %v7287_v46 = vld [vmem:[#allocation2 + $0x60] sm:$0xf]  ;;  %v13735_v24 = vrot.slane %v7391_v37, 5  ;;  %v10956_v37 = vld [vmem:[%s15031_s3 + $0x108] sm:$0xff]  ;;  %v2273_v38 = vor.u32 %v2272_v45, %v2268_v15 }
 0x32c   : > { %v5830_v63 = vrot.slane %v5828_v55, 4  ;;  %v5833_v52 = vrot.slane %v5831_v27, 5  ;;  %v2259_v19 = vrot.slane %v2257_v18, 4  ;;  %v2262_v4 = vrot.slane %v2260_v7, 5  ;;  %7319 = vst.msk [vmem:[#allocation3 + $0xfc] sm:$0xf] %vm256_vm0, %v7287_v46  ;;  %v13758_v18 = vpop.f32.mrf.mxu1  ;;  %9369 = vmatpush.bf16.msra.mxu1 %v10956_v37 }
 0x32d   : > { %v13738_v34 = vld [vmem:[#allocation2 + $0x4c] sm:$0xf]  ;;  %v7069_v27 = vsel %vm11775_vm14, %v7067_v26, %v7068_v0  ;;  %v2712_v26 = vld [vmem:[#allocation2 + $0xd0] sm:$0xf]  ;;  %v2274_v46 = vrot.slane %v2273_v38, 4  ;;  %v7394_v36 = vor.u32 %v13735_v24, %v13713_v32  ;;  %v6643_v0 = vrot.slane %v6642_v43, 4 }
 0x32e   : > { %6331 = vrot.lane.b32.xlu1 %v6259_v39, %s11121_s10  ;;  %v5834_v60 = vor.u32 %v5833_v52, %v5830_v63  ;;  %v2263_v10 = vor.u32 %v2262_v4, %v2259_v19  ;;  %v7407_v39 = vshll.u32 %v7341_v62, 16  ;;  %2744 = vst.msk [vmem:[#allocation3 + $0x278] sm:$0xf] %vm256_vm0, %v2712_v26  ;;  %v15037_v54 = vrot.slane %v13738_v34, 5  ;;  %v6466_v22 = vld [vmem:[#allocation2 + $0x68] sm:$0x1] }
 0x32f   : > { %v10900_v48 = vld [vmem:[#allocation3 + $0x1c8] sm:$0xf0]  ;;  %v2279_v4 = vsel %vm11345_vm9, %v2274_v46, %v2278_v40  ;;  %v6648_v42 = vsel %vm11345_vm9, %v6643_v0, %v13701_v16  ;;  %v6261_v37 = vld [vmem:[#allocation2 + $0x48] sm:$0xf]  ;;  %v13791_v43 = vrot.slane %v7394_v36, 4  ;;  %v7421_v16 = vshll.u32 %v13775_v51, 16 }
 0x330   : > { %v10464_v1 = vor.u32 %v10900_v48, %v10463_v25  ;;  %v2264_v52 = vrot.slane %v2263_v10, 4  ;;  %v5835_v31 = vrot.slane %v5834_v60, 4  ;;  %v13756_v25 = vrot.slane %v7401_v41, 4  ;;  %2343 = vst.msk [vmem:[#allocation3 + $0x274] sm:$0xf] %vm256_vm0, %v2279_v4 }
 0x331   : > { %v5466_v3 = vld [vmem:[#allocation2 + $0xbc] sm:$0x1]  ;;  %v13767_v41 = vrot.slane %v7407_v39, 5  ;;  %v13779_v10 = vld [vmem:[#allocation2 + $0x64] sm:$0xf]  ;;  %v7074_v40 = vrot.slane %v15037_v54, 4 }
 0x332   : > { %9070 = vmatmul.bf16.gmra.mxu1 %v10464_v1  ;;  %v5900_v55 = vpop.permute.xlu1 %5899  ;;  %v5465_v47 = vld [vmem:[#allocation2 + $0xb8] sm:$0xf]  ;;  %v5847_v35 = vshll.u32 %v5466_v3, 16  ;;  %v2269_v62 = vsel %vm11345_vm9, %v2264_v52, %v2268_v15  ;;  %v13773_v15 = vld [vmem:[#allocation2 + $0x24] sm:$0xf] }
 0x333   : > { %5971 = vst.msk [vmem:[#allocation3 + $0x1e0] sm:$0xf] %vm1348_vm11, %v5900_v55  ;;  %v5837_v56 = vshll.u32 %v5465_v47, 16  ;;  %v5841_v63 = vshrl.u32 %v5465_v47, 16  ;;  %v6465_v1 = vld [vmem:[#allocation2 + $0x64] sm:$0xf] }
 0x334   : > { %2342 = vst.msk [vmem:[#allocation3 + $0x260] sm:$0xf] %vm256_vm0, %v2269_v62  ;;  %v6669_v32 = vshll.u32 %v6465_v1, 16  ;;  %v6673_v60 = vshrl.u32 %v6465_v1, 16  ;;  %v5849_v3 = vrot.slane %v5847_v35, 5  ;;  %v6133_v47 = vrot.slane %v13779_v10, 5  ;;  %v13808_v23 = vpop.f32.mrf.mxu1 }
 0x335   : > { %v5839_v7 = vrot.slane %v5837_v56, 5  ;;  %v5843_v49 = vrot.slane %v5841_v63, 4  ;;  %v10201_v56 = vrot.slane %v6003_v21, 9  ;;  %v6956_v63 = vld [vmem:[#allocation2 + $0x50] sm:$0x1]  ;;  %v7412_v52 = vshrl.u32 %v13773_v15, 16 }
 0x336   : > { %7165 = vrot.lane.b32.xlu1 %v7069_v27, %s11121_s10  ;;  %v13782_v55 = vrot.slane %v6669_v32, 5  ;;  %v6675_v27 = vrot.slane %v6673_v60, 4  ;;  %v7415_v38 = vshll.u32 %v13773_v15, 16  ;;  %v6252_v26 = vld [vmem:[#allocation2 + $0x10] sm:$0xf]  ;;  %v7075_v21 = vrot.slane %v6956_v63, 5 }
 0x337   : > { %v5840_v48 = vsel %vm11345_vm9, %v5835_v31, %v5839_v7  ;;  %v5844_v19 = vor.u32 %v5843_v49, %v5839_v7  ;;  %v7425_v31 = vshrl.u32 %v13775_v51, 16  ;;  %v6679_v49 = vshll.u32 %v6466_v22, 16  ;;  %6919 = vst.msk [vmem:[#allocation3 + $0xf8] sm:$0xf] %vm256_vm0, %v6648_v42  ;;  %v10905_v46 = vld [vmem:[#allocation3 + $0x1f0] sm:$0xf0] }
 0x338   : > { %5911 = vrot.lane.b32.xlu2 %v5840_v48, %s11121_s10  ;;  %v6676_v7 = vor.u32 %v6675_v27, %v13782_v55  ;;  %v6134_v62 = vsel %vm11775_vm14, %v10201_v56, %v6133_v47  ;;  %v7915_v36 = vld [vmem:[#allocation2 + $0x58] sm:$0xf]  ;;  %v5979_v48 = vld [vmem:[#allocation2] sm:$0xe]  ;;  %v7289_v4 = vld [vmem:[#allocation2 + $0x6c] sm:$0xf]  ;;  %v7404_v51 = vor.u32 %v13756_v25, %v13744_v17  ;;  %v7038_v25 = vsel %vm11775_vm14, %v10209_v12, %v7037_v9 }
 0x339   : > { %v5845_v24 = vrot.slane %v5844_v19, 4  ;;  %6235 = vst.msk [vmem:[#allocation3 + $0x144] sm:$0xf] %vm256_vm0, %v6134_v62  ;;  %v13810_v19 = vld [vmem:[#allocation2 + $0x4] sm:$0xf]  ;;  %v10193_v1 = vrot.slane %v5979_v48, 9  ;;  %v7076_v57 = vsel %vm11775_vm14, %v7074_v40, %v7075_v21 }
 0x33a   : > { %v10483_v35 = vld [vmem:[#allocation3 + $0x1e0] sm:$0xf]  ;;  %v6077_v0 = vrot.slane %v13810_v19, 5  ;;  %v2711_v32 = vld [vmem:[#allocation2 + $0xcc] sm:$0xf]  ;;  %v7414_v33 = vrot.slane %v7412_v52, 4 }
 0x33b   : > { %v5850_v39 = vsel %vm11345_vm9, %v5845_v24, %v5849_v3  ;;  %v10484_v15 = vor.u32 %v10905_v46, %v10483_v35  ;;  %v7914_v60 = vld [vmem:[#allocation2 + $0x54] sm:$0xe]  ;;  %2743 = vst.msk [vmem:[#allocation3 + $0x264] sm:$0xf] %vm256_vm0, %v2711_v32  ;;  %v6677_v24 = vrot.slane %v6676_v7, 4  ;;  %v6681_v3 = vrot.slane %v6679_v49, 5 }
 0x33c   : > { %v5908_v45 = vpop.permute.xlu2 %5907  ;;  %5913 = vrot.lane.b32.xlu0 %v5850_v39, %s11121_s10  ;;  %v6078_v42 = vsel %vm11775_vm14, %v10193_v1, %v6077_v0  ;;  %7321 = vst.msk [vmem:[#allocation3 + $0x124] sm:$0xf] %vm256_vm0, %v7289_v4  ;;  %v7916_v39 = vld [vmem:[#allocation2 + $0x5c] sm:$0x1]  ;;  %v13833_v56 = vld [vmem:[#allocation2 + $0x30] sm:$0xf] }
 0x33d   : > { %5975 = vst.msk [vmem:[#allocation3 + $0x230] sm:$0xf] %vm1348_vm11, %v5908_v45  ;;  %v8032_v45 = vrot.slane %v7915_v36, 5  ;;  %v6682_v9 = vsel %vm11345_vm9, %v6677_v24, %v6681_v3  ;;  %v10230_v12 = vrot.slane %v7914_v60, 9  ;;  %v7417_v63 = vrot.slane %v7415_v38, 5  ;;  %v13862_v3 = vpop.f32.mrf.mxu1 }
 0x33e   : > { %6335 = vrot.lane.b32.xlu1 %v6261_v37, %s11121_s10  ;;  %v13827_v37 = vld [vmem:[#allocation2 + $0x2c] sm:$0x1]  ;;  %v13840_v35 = vrot.slane %v7421_v16, 5  ;;  %v7405_v49 = vrot.slane %v7404_v51, 4  ;;  %6219 = vst.msk [vmem:[#allocation3 + $0x4] sm:$0xf] %vm256_vm0, %v6078_v42  ;;  %v7400_v16 = vsel %vm11345_vm9, %v13791_v43, %v13744_v17 }
 0x33f   : > { %v8034_v7 = vrot.slane %v8032_v45, 4  ;;  %v6468_v52 = vld [vmem:[#allocation2 + $0x70] sm:$0xf]  ;;  %v8033_v40 = vsel %vm11775_vm14, %v10230_v12, %v8032_v45  ;;  %v8035_v62 = vrot.slane %v7916_v39, 5  ;;  %v7431_v36 = vshll.u32 %v13827_v37, 16 }
 0x340   : > { %6317 = vrot.lane.b32.xlu2 %v6252_v26, %s11121_s10  ;;  %v7427_v26 = vrot.slane %v7425_v31, 4  ;;  %v7436_v48 = vshrl.u32 %v13833_v56, 16  ;;  %6922 = vst.msk [vmem:[#allocation3 + $0x134] sm:$0xf] %vm256_vm0, %v6682_v9  ;;  %v6006_v38 = vld [vmem:[#allocation2 + $0x6c] sm:$0xe]  ;;  %v7418_v32 = vor.u32 %v7417_v63, %v7414_v33  ;;  %v7410_v42 = vsel %vm11345_vm9, %v7405_v49, %v13767_v41 }
 0x341   : > { %v13853_v31 = vld [vmem:[#allocation2 + $0x58] sm:$0xf]  ;;  %v6697_v51 = vshrl.u32 %v6468_v52, 16  ;;  %v8036_v1 = vsel %vm11775_vm14, %v8034_v7, %v8035_v62  ;;  %v6469_v21 = vld [vmem:[#allocation2 + $0x74] sm:$0x1]  ;;  %v7439_v33 = vshll.u32 %v13833_v56, 16 }
 0x342   : > { %9075 = vmatmul.bf16.gmra.mxu1 %v10484_v15  ;;  %v6942_v4 = vld [vmem:[#allocation2 + $0x18] sm:$0xe]  ;;  %v6693_v15 = vshll.u32 %v6468_v52, 16  ;;  %v7428_v60 = vor.u32 %v7427_v26, %v13840_v35  ;;  %v13859_v24 = vld [vmem:[#allocation2 + $0x70] sm:$0xf]  ;;  %v6703_v12 = vshll.u32 %v6469_v21, 16 }
 0x343   : > { %8149 = vst.msk [vmem:[#allocation3 + $0xd8] sm:$0xf] %vm256_vm0, %v8033_v40  ;;  %v10933_v17 = vld [vmem:[%s15031_s3 + $0x50] sm:$0xff]  ;;  %v6699_v45 = vrot.slane %v6697_v51, 4  ;;  %v6959_v63 = vld [vmem:[#allocation2 + $0x5c] sm:$0x1] }
 0x344   : > { %v5904_v22 = vpop.permute.xlu0 %5903  ;;  %v2615_v27 = vpop.permute.xlu2 %2614  ;;  %7147 = vrot.lane.b32.xlu0 %v7038_v25, %s11121_s10  ;;  %v13867_v43 = vrot.slane %v6693_v15, 5  ;;  %v6140_v25 = vrot.slane %v13859_v24, 5  ;;  %v13874_v37 = vld [vmem:[#allocation2 + $0x34] sm:$0xf]  ;;  %8150 = vst.msk [vmem:[#allocation3 + $0xec] sm:$0xf] %vm256_vm0, %v8036_v1  ;;  %9101 = vmatpush.bf16.msra.mxu2 %v10933_v17 }
 0x345   : > { %5973 = vst.msk [vmem:[#allocation3 + $0x208] sm:$0xf] %vm1348_vm11, %v5904_v22  ;;  %v10202_v22 = vrot.slane %v6006_v38, 9  ;;  %v6263_v39 = vld [vmem:[#allocation2 + $0x54] sm:$0xf]  ;;  %v10210_v26 = vrot.slane %v6942_v4, 9 }
 0x346   : > { %7169 = vrot.lane.b32.xlu1 %v7076_v57, %s11121_s10  ;;  %2679 = vst.msk [vmem:[#allocation3 + $0x274] sm:$0xf] %vm1348_vm11, %v2615_v27  ;;  %v15036_v27 = vrot.slane %v13853_v31, 5  ;;  %v10941_v57 = vld [vmem:[%s15031_s3 + $0x90] sm:$0xff]  ;;  %v6700_v9 = vor.u32 %v6699_v45, %v13867_v43  ;;  %v13888_v7 = vrot.slane %v7418_v32, 4  ;;  %v13891_v56 = vrot.slane %v7428_v60, 4 }
 0x347   : > { %v6141_v41 = vsel %vm11775_vm14, %v10202_v22, %v6140_v25  ;;  %v6254_v49 = vld [vmem:[#allocation2 + $0x1c] sm:$0xf]  ;;  %v13893_v52 = vrot.slane %v7431_v36, 5  ;;  %9190 = vmatpush.bf16.msra.mxu3 %v10941_v57  ;;  %v13895_v40 = vrot.slane %v7436_v48, 4  ;;  %v7445_v62 = vshll.u32 %v13874_v37, 16  ;;  %v10948_v24 = vld [vmem:[%s15031_s3 + $0xc8] sm:$0xff] }
 0x348   : > { %v5906_v46 = vpop.permute.xlu1 %5905  ;;  %7771 = vrot.lane.b32.xlu2 %v7400_v16, %s11121_s10  ;;  %6237 = vst.msk [vmem:[#allocation3 + $0x16c] sm:$0xf] %vm256_vm0, %v6141_v41  ;;  %v7081_v4 = vrot.slane %v15036_v27, 4  ;;  %v6701_v15 = vrot.slane %v6700_v9, 4  ;;  %v7082_v1 = vrot.slane %v6959_v63, 5  ;;  %v13901_v32 = vrot.slane %v7439_v33, 5 }
 0x349   : > { %5974 = vst.msk [vmem:[#allocation3 + $0x21c] sm:$0xf] %vm1348_vm11, %v5906_v46  ;;  %v6705_v36 = vrot.slane %v6703_v12, 5  ;;  %v3350_v48 = vld [vmem:[#allocation2 + $0xcc] sm:$0xe]  ;;  %v7045_v33 = vsel %vm11775_vm14, %v10210_v26, %v7044_v8  ;;  %v6135_v61 = vrot.slane %v6133_v47, 4 }
 0x34a   : > { %v3351_v60 = vld [vmem:[#allocation2 + $0xd0] sm:$0xf]  ;;  %v3352_v21 = vld [vmem:[#allocation2 + $0xd4] sm:$0x1]  ;;  %v9712_v17 = vrot.slane %v3350_v48, 9  ;;  %v7083_v57 = vsel %vm11775_vm14, %v7081_v4, %v7082_v1  ;;  %v7424_v48 = vsel %vm11345_vm9, %v13888_v7, %v13840_v35 }
 0x34b   : > { %v3508_v45 = vrot.slane %v3351_v60, 5  ;;  %v3511_v22 = vrot.slane %v3352_v21, 5  ;;  %v7944_v9 = vld [vmem:[#allocation2 + $0xcc] sm:$0xe]  ;;  %v7945_v12 = vld [vmem:[#allocation2 + $0xd0] sm:$0xf]  ;;  %v6706_v41 = vsel %vm11345_vm9, %v6701_v15, %v6705_v36 }
 0x34c   : > { %7773 = vrot.lane.b32.xlu0 %v7410_v42, %s11121_s10  ;;  %v10503_v38 = vld [vmem:[#allocation3 + $0x208] sm:$0xf]  ;;  %v7449_v42 = vshrl.u32 %v13874_v37, 16  ;;  %v6005_v63 = vld [vmem:[#allocation2 + $0x68] sm:$0x1]  ;;  %v13916_v37 = vpop.f32.mrf.mxu1  ;;  %v10240_v15 = vrot.slane %v7944_v9, 9 }
 0x34d   : > { %v10805_v8 = vld [vmem:[#allocation3 + $0x270] sm:$0xf0]  ;;  %v7946_v26 = vld [vmem:[#allocation2 + $0xd4] sm:$0x1]  ;;  %6924 = vst.msk [vmem:[#allocation3 + $0x15c] sm:$0xf] %vm256_vm0, %v6706_v41 }
 0x34e   : > { %6339 = vrot.lane.b32.xlu1 %v6263_v39, %s11121_s10  ;;  %v10949_v39 = vld [vmem:[%s15031_s3 + $0xd0] sm:$0xff]  ;;  %v6136_v1 = vrot.slane %v6005_v63, 5  ;;  %v13937_v21 = vld [vmem:[#allocation2 + $0x24] sm:$0xe]  ;;  %v6472_v35 = vld [vmem:[#allocation2 + $0x80] sm:$0x1] }
 0x34f   : > { %9279 = vmatpush.bf16.msra.mxu0 %v10949_v39  ;;  %v13943_v39 = vld [vmem:[#allocation2 + $0x38] sm:$0x1]  ;;  %v13951_v41 = vld [vmem:[#allocation2 + $0x3c] sm:$0xf]  ;;  %v7288_v63 = vld [vmem:[#allocation2 + $0x64] sm:$0xf] }
 0x350   : > { %v2613_v46 = vpop.permute.xlu1 %2612  ;;  %v10910_v16 = vld [vmem:[#allocation3 + $0x218] sm:$0xf0]  ;;  %6321 = vrot.lane.b32.xlu2 %v6254_v49, %s11121_s10  ;;  %v13918_v49 = vld [vmem:[#allocation2 + $0x64] sm:$0xf]  ;;  %7320 = vst.msk [vmem:[#allocation3 + $0x110] sm:$0xf] %vm256_vm0, %v7288_v63 }
 0x351   : > { %2678 = vst.msk [vmem:[#allocation3 + $0x260] sm:$0xf] %vm1348_vm11, %v2613_v46  ;;  %v10504_v51 = vor.u32 %v10910_v16, %v10503_v38  ;;  %v3509_v46 = vsel %vm11775_vm14, %v9712_v17, %v3508_v45  ;;  %v3510_v38 = vrot.slane %v3508_v45, 4  ;;  %v8102_v16 = vrot.slane %v7945_v12, 5  ;;  %v7352_v54 = vld [vmem:[#allocation2 + $0x4c] sm:$0xf] }
 0x352   : > { %3575 = vst.msk [vmem:[#allocation3 + $0x268] sm:$0xf] %vm256_vm0, %v3509_v46  ;;  %v15035_v60 = vrot.slane %v13918_v49, 5  ;;  %v13940_v17 = vrot.slane %v7449_v42, 4  ;;  %v6265_v42 = vld [vmem:[#allocation2 + $0x60] sm:$0xf] }
 0x353   : > { %9080 = vmatmul.bf16.gmra.mxu1 %v10504_v51  ;;  %v3512_v4 = vsel %vm11775_vm14, %v3510_v38, %v3511_v22  ;;  %v13929_v51 = vrot.slane %v7445_v62, 5  ;;  %v8104_v45 = vrot.slane %v8102_v16, 4  ;;  %v8105_v22 = vrot.slane %v7946_v26, 5  ;;  %v6464_v46 = vld [vmem:[#allocation2 + $0x60] sm:$0xf]  ;;  %9280 = vmatpush.bf16.msra.mxu0 %v10948_v24 }
 0x354   : > { %7151 = vrot.lane.b32.xlu0 %v7045_v33, %s11121_s10  ;;  %3576 = vst.msk [vmem:[#allocation3 + $0x27c] sm:$0xf] %vm256_vm0, %v3512_v4  ;;  %v6137_v33 = vsel %vm11775_vm14, %v6135_v61, %v6136_v1  ;;  %v8103_v12 = vsel %vm11775_vm14, %v10240_v15, %v8102_v16  ;;  %v13955_v61 = vld [vmem:[#allocation2 + $0x7c] sm:$0xf]  ;;  %v7434_v26 = vsel %vm11345_vm9, %v13891_v56, %v13893_v52  ;;  %v10211_v4 = vrot.slane %v13937_v21, 9  ;;  %v13971_v52 = vpop.f32.mrf.mxu1 }
 0x355   : > { %6236 = vst.msk [vmem:[#allocation3 + $0x158] sm:$0xf] %vm256_vm0, %v6137_v33  ;;  %v8106_v16 = vsel %vm11775_vm14, %v8104_v45, %v8105_v22  ;;  %v6727_v15 = vshll.u32 %v6472_v35, 16  ;;  %v7455_v56 = vshll.u32 %v13943_v39, 16  ;;  %v10523_v21 = vld [vmem:[#allocation3 + $0x230] sm:$0xf]  ;;  %v7442_v22 = vor.u32 %v13901_v32, %v13895_v40 }
 0x356   : > { %7173 = vrot.lane.b32.xlu1 %v7083_v57, %s11121_s10  ;;  %v6471_v57 = vld [vmem:[#allocation2 + $0x7c] sm:$0xf]  ;;  %v6147_v33 = vrot.slane %v13955_v61, 5  ;;  %v6660_v35 = vshrl.u32 %v6464_v46, 16  ;;  %v7460_v40 = vshrl.u32 %v13951_v41, 16 }
 0x357   : > { %v6717_v7 = vshll.u32 %v6471_v57, 16  ;;  %v6721_v9 = vshrl.u32 %v6471_v57, 16 }
 0x358   : > { %v3240_v36 = vpop.permute.xlu1 %3239  ;;  %v5910_v10 = vpop.permute.xlu0 %5909  ;;  %v10023_v47 = vld [vmem:[#allocation3 + $0x260] sm:$0xf]  ;;  %7775 = vrot.lane.b32.xlu2 %v7424_v48, %s11121_s10  ;;  %v7088_v48 = vrot.slane %v15035_v60, 4  ;;  %v6729_v60 = vrot.slane %v6727_v15, 5 }
 0x359   : > { %3304 = vst.msk [vmem:[#allocation3 + $0x278] sm:$0xf] %vm1348_vm11, %v3240_v36  ;;  %v10024_v62 = vor.u32 %v10805_v8, %v10023_v47  ;;  %v13953_v38 = vrot.slane %v6717_v7, 5  ;;  %v6723_v8 = vrot.slane %v6721_v9, 4  ;;  %v10031_v1 = vld [vmem:[#allocation3 + $0x268] sm:$0xf] }
 0x35a   : > { %5976 = vst.msk [vmem:[#allocation3 + $0x244] sm:$0xf] %vm1348_vm11, %v5910_v10  ;;  %v6009_v36 = vld [vmem:[#allocation2 + $0x78] sm:$0xe]  ;;  %v7306_v10 = vld [vmem:[#allocation2 + $0xd0] sm:$0xf] }
 0x35b   : > { %4675 = vmatmul.bf16.gmra.mxu2 %v10024_v62  ;;  %v6962_v47 = vld [vmem:[#allocation2 + $0x68] sm:$0x1]  ;;  %8169 = vst.msk [vmem:[#allocation3 + $0x268] sm:$0xf] %vm256_vm0, %v8103_v12  ;;  %v10806_v45 = vld [vmem:[#allocation3 + $0x278] sm:$0xf0]  ;;  %v6724_v57 = vor.u32 %v6723_v8, %v13953_v38  ;;  %v7452_v12 = vor.u32 %v13940_v17, %v13929_v51  ;;  %v7052_v17 = vsel %vm11775_vm14, %v10211_v4, %v7051_v28 }
 0x35c   : > { %7777 = vrot.lane.b32.xlu0 %v7434_v26, %s11121_s10  ;;  %v6256_v62 = vld [vmem:[#allocation2 + $0x28] sm:$0xf]  ;;  %v10032_v39 = vor.u32 %v10806_v45, %v10031_v1  ;;  %8170 = vst.msk [vmem:[#allocation3 + $0x27c] sm:$0xf] %vm256_vm0, %v8106_v16  ;;  %v13983_v26 = vld [vmem:[#allocation2 + $0x30] sm:$0xe] }
 0x35d   : > { %v10203_v32 = vrot.slane %v6009_v36, 9  ;;  %v6725_v63 = vrot.slane %v6724_v57, 4  ;;  %v7349_v1 = vld [vmem:[#allocation2 + $0x40] sm:$0xf]  ;;  %v7463_v16 = vshll.u32 %v13951_v41, 16  ;;  %v6663_v36 = vshll.u32 %v6464_v46, 16 }
 0x35e   : > { %6343 = vrot.lane.b32.xlu1 %v6265_v42, %s11121_s10  ;;  %10192 = vmatmul.msk.bf16.gmra.mxu0 %vm4365_vm15, %v10032_v39  ;;  %v7443_v28 = vrot.slane %v7442_v22, 4  ;;  %v7453_v4 = vrot.slane %v7452_v12, 4  ;;  %v14006_v45 = vrot.slane %v7460_v40, 4  ;;  %v7291_v57 = vld [vmem:[#allocation2 + $0x78] sm:$0xf] }
 0x35f   : > { %v6730_v15 = vsel %vm11345_vm9, %v6725_v63, %v6729_v60  ;;  %v6148_v13 = vsel %vm11775_vm14, %v10203_v32, %v6147_v33  ;;  %v6665_v41 = vrot.slane %v6663_v36, 5  ;;  %v7469_v60 = vshll.u32 %v7349_v1, 16  ;;  %v6474_v22 = vld [vmem:[#allocation2 + $0x88] sm:$0xf]  ;;  %v14018_v40 = vld [vmem:[#allocation2 + $0x70] sm:$0xf] }
 0x360   : > { %v13978_v7 = vld [vmem:[#allocation3 + $0x274] sm:$0xf0]  ;;  %v6316_v9 = vpop.permute.xlu1 %6315  ;;  %v3238_v42 = vpop.permute.xlu0 %3237  ;;  %6325 = vrot.lane.b32.xlu2 %v6256_v62, %s11121_s10  ;;  %v7457_v62 = vrot.slane %v7455_v56, 5  ;;  %6926 = vst.msk [vmem:[#allocation3 + $0x184] sm:$0xf] %vm256_vm0, %v6730_v15  ;;  %v7473_v56 = vshrl.u32 %v7349_v1, 16  ;;  %v7448_v12 = vsel %vm11345_vm9, %v7443_v28, %v13929_v51 }
 0x361   : > { %7338 = vst.msk [vmem:[#allocation3 + $0x278] sm:$0xf] %vm256_vm0, %v7306_v10  ;;  %v10915_v8 = vld [vmem:[#allocation3 + $0x240] sm:$0xf0]  ;;  %v7089_v10 = vrot.slane %v6962_v47, 5  ;;  %v10212_v47 = vrot.slane %v13983_v26, 9 }
 0x362   : > { %6411 = vst.msk [vmem:[#allocation3 + $0x4] sm:$0xf] %vm1348_vm11, %v6316_v9  ;;  %v10524_v27 = vor.u32 %v10915_v8, %v10523_v21  ;;  %v6662_v21 = vrot.slane %v6660_v35, 4  ;;  %v7305_v9 = vld [vmem:[#allocation2 + $0xcc] sm:$0xf]  ;;  %v14024_v1 = vrot.slane %v7469_v60, 5 }
 0x363   : > { %3303 = vst.msk [vmem:[#allocation3 + $0x264] sm:$0xf] %vm1348_vm11, %v3238_v42  ;;  %v7090_v46 = vsel %vm11775_vm14, %v7088_v48, %v7089_v10  ;;  %v6012_v35 = vld [vmem:[#allocation2 + $0x84] sm:$0xe]  ;;  %v14013_v42 = vld [vmem:[#allocation2 + $0x88] sm:$0xf] }
 0x364   : > { %9085 = vmatmul.bf16.gmra.mxu1 %v10524_v27  ;;  %7155 = vrot.lane.b32.xlu0 %v7052_v17, %s11121_s10  ;;  %v14010_v27 = vrot.slane %v7463_v16, 5  ;;  %6239 = vst.msk [vmem:[#allocation3 + $0x194] sm:$0xf] %vm256_vm0, %v6148_v13  ;;  %v6666_v48 = vor.u32 %v6665_v41, %v6662_v21  ;;  %v6475_v32 = vld [vmem:[#allocation2 + $0x8c] sm:$0x1]  ;;  %v14021_v17 = vpop.f32.mrf.mxu1  ;;  %v6741_v36 = vshll.u32 %v6474_v22, 16 }
 0x365   : > { %7323 = vst.msk [vmem:[#allocation3 + $0x14c] sm:$0xf] %vm256_vm0, %v7291_v57  ;;  %v7917_v8 = vld [vmem:[#allocation2 + $0x60] sm:$0xe]  ;;  %v7918_v63 = vld [vmem:[#allocation2 + $0x64] sm:$0xf] }
 0x366   : > { %7177 = vrot.lane.b32.xlu1 %v7090_v46, %s11121_s10  ;;  %v14026_v16 = vld [vmem:[#allocation2 + $0x48] sm:$0xf]  ;;  %v6745_v10 = vshrl.u32 %v6474_v22, 16  ;;  %v6154_v15 = vrot.slane %v14013_v42, 5  ;;  %v10204_v28 = vrot.slane %v6012_v35, 9  ;;  %v6667_v41 = vrot.slane %v6666_v48, 4 }
 0x367   : > { %v10932_v13 = vld [vmem:[%s15031_s3 + $0x48] sm:$0xff]  ;;  %v14038_v60 = vrot.slane %v6741_v36, 5  ;;  %v6751_v22 = vshll.u32 %v6475_v32, 16  ;;  %v15038_v48 = vrot.slane %v14018_v40, 5  ;;  %v6273_v42 = vld [vmem:[#allocation2 + $0x90] sm:$0xf] }
 0x368   : > { %v7150_v39 = vpop.permute.xlu1 %7149  ;;  %7779 = vrot.lane.b32.xlu2 %v7448_v12, %s11121_s10  ;;  %v10940_v21 = vld [vmem:[%s15031_s3 + $0x88] sm:$0xff]  ;;  %v6747_v57 = vrot.slane %v6745_v10, 4  ;;  %v14040_v12 = vrot.slane %v7473_v56, 4  ;;  %9102 = vmatpush.bf16.msra.mxu2 %v10932_v13  ;;  %v6155_v35 = vsel %vm11775_vm14, %v10204_v28, %v6154_v15  ;;  %v7458_v56 = vsel %vm11345_vm9, %v7453_v4, %v7457_v62  ;;  %v6008_v13 = vld [vmem:[#allocation2 + $0x74] sm:$0x1] }
 0x369   : > { %7244 = vst.msk [vmem:[#allocation3 + $0x1c] sm:$0xf] %vm1348_vm11, %v7150_v39  ;;  %v6267_v39 = vld [vmem:[#allocation2 + $0x6c] sm:$0xf]  ;;  %9191 = vmatpush.bf16.msra.mxu3 %v10940_v21  ;;  %v7919_v36 = vld [vmem:[#allocation2 + $0x68] sm:$0x1] }
 0x36a   : > { %v10803_v51 = vld [vmem:[#allocation3 + $0x264] sm:$0xf]  ;;  %v6748_v32 = vor.u32 %v6747_v57, %v14038_v60  ;;  %6241 = vst.msk [vmem:[#allocation3 + $0x1bc] sm:$0xf] %vm256_vm0, %v6155_v35  ;;  %v10231_v10 = vrot.slane %v7917_v8, 9  ;;  %v6753_v4 = vrot.slane %v6751_v22, 5 }
 0x36b   : > { %7337 = vst.msk [vmem:[#allocation3 + $0x264] sm:$0xf] %vm256_vm0, %v7305_v9  ;;  %v10028_v46 = vor.u32 %v10803_v51, %v13978_v7  ;;  %v6672_v9 = vsel %vm11345_vm9, %v6667_v41, %v13782_v55  ;;  %v8039_v7 = vrot.slane %v7918_v63, 5  ;;  %v6965_v51 = vld [vmem:[#allocation2 + $0x74] sm:$0x1]  ;;  %v7484_v55 = vshrl.u32 %v14026_v16, 16 }
 0x36c   : > { %7781 = vrot.lane.b32.xlu0 %v7458_v56, %s11121_s10  ;;  %v7487_v63 = vshll.u32 %v14026_v16, 16  ;;  %v6258_v21 = vld [vmem:[#allocation2 + $0x34] sm:$0xf]  ;;  %v7350_v28 = vld [vmem:[#allocation2 + $0x44] sm:$0x1]  ;;  %v6749_v41 = vrot.slane %v6748_v32, 4 }
 0x36d   : > { %4764 = vmatmul.bf16.gmra.mxu3 %v10028_v46  ;;  %6921 = vst.msk [vmem:[#allocation3 + $0x120] sm:$0xf] %vm256_vm0, %v6672_v9  ;;  %v8040_v62 = vsel %vm11775_vm14, %v10231_v10, %v8039_v7  ;;  %v8041_v8 = vrot.slane %v8039_v7, 4  ;;  %v14061_v57 = vld [vmem:[#allocation2 + $0x3c] sm:$0xe]  ;;  %v7497_v35 = vshrl.u32 %v7352_v54, 16  ;;  %v7466_v9 = vor.u32 %v14010_v27, %v14006_v45 }
 0x36e   : > { %6347 = vrot.lane.b32.xlu1 %v6267_v39, %s11121_s10  ;;  %v7493_v39 = vshll.u32 %v7352_v54, 16  ;;  %v8042_v56 = vrot.slane %v7919_v36, 5  ;;  %8151 = vst.msk [vmem:[#allocation3 + $0x100] sm:$0xf] %vm256_vm0, %v8040_v62  ;;  %v6142_v16 = vrot.slane %v6140_v25, 4  ;;  %v7095_v22 = vrot.slane %v15038_v48, 4  ;;  %v14083_v36 = vpop.f32.mrf.mxu1 }
 0x36f   : > { %v6754_v7 = vsel %vm11345_vm9, %v6749_v41, %v6753_v4  ;;  %v6143_v32 = vrot.slane %v6008_v13, 5  ;;  %v6467_v10 = vld [vmem:[#allocation2 + $0x6c] sm:$0xf]  ;;  %v7486_v54 = vrot.slane %v7484_v55, 4  ;;  %v10955_v25 = vld [vmem:[%s15031_s3 + $0x100] sm:$0xff]  ;;  %v7096_v13 = vrot.slane %v6965_v51, 5 }
 0x370   : > { %v6320_v46 = vpop.permute.xlu1 %6319  ;;  %6329 = vrot.lane.b32.xlu2 %v6258_v21, %s11121_s10  ;;  %6928 = vst.msk [vmem:[#allocation3 + $0x1ac] sm:$0xf] %vm256_vm0, %v6754_v7  ;;  %v8043_v45 = vsel %vm11775_vm14, %v8041_v8, %v8042_v56  ;;  %v6684_v27 = vshrl.u32 %v6467_v10, 16  ;;  %v7489_v41 = vrot.slane %v7487_v63, 5  ;;  %v6687_v21 = vshll.u32 %v6467_v10, 16  ;;  %9370 = vmatpush.bf16.msra.mxu1 %v10955_v25 }
 0x371   : > { %6413 = vst.msk [vmem:[#allocation3 + $0x2c] sm:$0xf] %vm1348_vm11, %v6320_v46  ;;  %v6144_v55 = vsel %vm11775_vm14, %v6142_v16, %v6143_v32  ;;  %v7476_v4 = vor.u32 %v14040_v12, %v14024_v1  ;;  %v7479_v62 = vshll.u32 %v7350_v28, 16  ;;  %v14090_v46 = vrot.slane %v7493_v39, 5  ;;  %v14102_v28 = vld [vmem:[#allocation2 + $0x54] sm:$0xf] }
 0x372   : > { %8152 = vst.msk [vmem:[#allocation3 + $0x114] sm:$0xf] %vm256_vm0, %v8043_v45  ;;  %v7499_v8 = vrot.slane %v7497_v35, 4  ;;  %v7097_v51 = vsel %vm11775_vm14, %v7095_v22, %v7096_v13  ;;  %v7059_v63 = vsel %vm11775_vm14, %v10212_v47, %v7058_v14  ;;  %v7467_v56 = vrot.slane %v7466_v9, 4  ;;  %v6477_v39 = vld [vmem:[#allocation2 + $0x94] sm:$0xf] }
 0x373   : > { %6238 = vst.msk [vmem:[#allocation3 + $0x180] sm:$0xf] %vm256_vm0, %v6144_v55  ;;  %v10213_v12 = vrot.slane %v14061_v57, 9  ;;  %v6015_v35 = vld [vmem:[#allocation2 + $0x90] sm:$0xe]  ;;  %v6686_v16 = vrot.slane %v6684_v27, 4  ;;  %v7490_v7 = vor.u32 %v7489_v41, %v7486_v54 }
 0x374   : > { %7159 = vrot.lane.b32.xlu0 %v7059_v63, %s11121_s10  ;;  %v6689_v22 = vrot.slane %v6687_v21, 5  ;;  %v6765_v32 = vshll.u32 %v6477_v39, 16  ;;  %v6769_v26 = vshrl.u32 %v6477_v39, 16  ;;  %v14106_v10 = vld [vmem:[#allocation2 + $0x94] sm:$0xf]  ;;  %v7472_v47 = vsel %vm11345_vm9, %v7467_v56, %v14024_v1 }
 0x375   : > { %v7477_v9 = vrot.slane %v7476_v4, 4  ;;  %v7481_v24 = vrot.slane %v7479_v62, 5  ;;  %v14111_v25 = vld [vmem:[#allocation2 + $0x50] sm:$0x1]  ;;  %v7500_v45 = vor.u32 %v7499_v8, %v14090_v46  ;;  %v6775_v41 = vshll.u32 %v6478_v30, 16 }
 0x376   : > { %7181 = vrot.lane.b32.xlu1 %v7097_v51, %s11121_s10  ;;  %v7290_v13 = vld [vmem:[#allocation2 + $0x70] sm:$0xf]  ;;  %v14115_v54 = vrot.slane %v6765_v32, 5  ;;  %v6771_v27 = vrot.slane %v6769_v26, 4  ;;  %v15041_v55 = vrot.slane %v14106_v10, 5  ;;  %v7508_v4 = vshrl.u32 %v14102_v28, 16 }
 0x377   : > { %v14119_v21 = vld [vmem:[#allocation2 + $0x7c] sm:$0xf]  ;;  %v5385_v1 = vld [vmem:[#allocation2 + $0xb4] sm:$0xf]  ;;  %v10205_v62 = vrot.slane %v6015_v35, 9  ;;  %v14122_v51 = vrot.slane %v7490_v7, 4  ;;  %v6690_v56 = vor.u32 %v6689_v22, %v6686_v16  ;;  %v7482_v30 = vsel %vm11345_vm9, %v7477_v9, %v7481_v24  ;;  %v14134_v35 = vpop.f32.mrf.mxu1 }
 0x378   : > { %v7154_v14 = vpop.permute.xlu1 %7153  ;;  %7783 = vrot.lane.b32.xlu2 %v7472_v47, %s11121_s10  ;;  %v7503_v8 = vshll.u32 %v14111_v25, 16  ;;  %5417 = vst.msk [vmem:[#allocation3 + $0x258] sm:$0xf] %vm256_vm0, %v5385_v1  ;;  %v6772_v63 = vor.u32 %v6771_v27, %v14115_v54  ;;  %v6269_v39 = vld [vmem:[#allocation2 + $0x78] sm:$0xf]  ;;  %v15040_v7 = vrot.slane %v14119_v21, 5 }
 0x379   : > { %7246 = vst.msk [vmem:[#allocation3 + $0x44] sm:$0xf] %vm1348_vm11, %v7154_v14  ;;  %v7355_v32 = vld [vmem:[#allocation2 + $0x58] sm:$0xf]  ;;  %v6162_v26 = vsel %vm11775_vm14, %v10205_v62, %v15041_v55  ;;  %v14137_v14 = vrot.slane %v7500_v45, 4  ;;  %v6777_v16 = vrot.slane %v6775_v41, 5 }
 0x37a   : > { %7322 = vst.msk [vmem:[#allocation3 + $0x138] sm:$0xf] %vm256_vm0, %v7290_v13  ;;  %v6773_v47 = vrot.slane %v6772_v63, 4  ;;  %v7921_v22 = vld [vmem:[#allocation2 + $0x70] sm:$0xf]  ;;  %v14141_v24 = vrot.slane %v7508_v4, 4 }
 0x37b   : > { %v6968_v9 = vld [vmem:[#allocation2 + $0x80] sm:$0x1]  ;;  %v7511_v25 = vshll.u32 %v14102_v28, 16  ;;  %6243 = vst.msk [vmem:[#allocation3 + $0x1e4] sm:$0xf] %vm256_vm0, %v6162_v26  ;;  %v7517_v27 = vshll.u32 %v7355_v32, 16 }
 0x37c   : > { %7785 = vrot.lane.b32.xlu0 %v7482_v30, %s11121_s10  ;;  %v6260_v13 = vld [vmem:[#allocation2 + $0x40] sm:$0xf]  ;;  %v6778_v45 = vsel %vm11345_vm9, %v6773_v47, %v6777_v16  ;;  %v7293_v1 = vld [vmem:[#allocation2 + $0x84] sm:$0xf]  ;;  %v6691_v62 = vrot.slane %v6690_v56, 4  ;;  %v7521_v48 = vshrl.u32 %v7355_v32, 16  ;;  %v7066_v56 = vsel %vm11775_vm14, %v10213_v12, %v7065_v2 }
 0x37d   : > { %v7920_v41 = vld [vmem:[#allocation2 + $0x6c] sm:$0xe]  ;;  %6930 = vst.msk [vmem:[#allocation3 + $0x1d4] sm:$0xf] %vm256_vm0, %v6778_v45  ;;  %v8046_v30 = vrot.slane %v7921_v22, 5  ;;  %v7102_v28 = vrot.slane %v15040_v7, 4 }
 0x37e   : > { %6351 = vrot.lane.b32.xlu1 %v6269_v39, %s11121_s10  ;;  %v7922_v39 = vld [vmem:[#allocation2 + $0x74] sm:$0x1]  ;;  %v7103_v4 = vrot.slane %v6968_v9, 5  ;;  %v14151_v26 = vld [vmem:[#allocation2 + $0x5c] sm:$0x1]  ;;  %v6696_v47 = vsel %vm11345_vm9, %v6691_v62, %v13867_v43  ;;  %v6079_v16 = vrot.slane %v6077_v0, 4 }
 0x37f   : > { %v5981_v32 = vld [vmem:[#allocation2 + $0x8] sm:$0x1]  ;;  %v10232_v22 = vrot.slane %v7920_v41, 9  ;;  %v6011_v9 = vld [vmem:[#allocation2 + $0x80] sm:$0x1]  ;;  %v8049_v43 = vrot.slane %v7922_v39, 5  ;;  %v14185_v41 = vpop.f32.mrf.mxu1 }
 0x380   : > { %v6324_v63 = vpop.permute.xlu1 %6323  ;;  %6333 = vrot.lane.b32.xlu2 %v6260_v13, %s11121_s10  ;;  %v6080_v45 = vrot.slane %v5981_v32, 5  ;;  %7325 = vst.msk [vmem:[#allocation3 + $0x174] sm:$0xf] %vm256_vm0, %v7293_v1  ;;  %v6149_v13 = vrot.slane %v6147_v33, 4  ;;  %v7513_v20 = vrot.slane %v7511_v25, 5  ;;  %v14168_v62 = vrot.slane %v7517_v27, 5 }
 0x381   : > { %6415 = vst.msk [vmem:[#allocation3 + $0x54] sm:$0xf] %vm1348_vm11, %v6324_v63  ;;  %v8048_v63 = vrot.slane %v8046_v30, 4  ;;  %v7523_v57 = vrot.slane %v7521_v48, 4  ;;  %v8047_v2 = vsel %vm11775_vm14, %v10232_v22, %v8046_v30  ;;  %v7104_v19 = vsel %vm11775_vm14, %v7102_v28, %v7103_v4  ;;  %v7357_v12 = vld [vmem:[#allocation2 + $0x60] sm:$0xf] }
 0x382   : > { %6923 = vst.msk [vmem:[#allocation3 + $0x148] sm:$0xf] %vm256_vm0, %v6696_v47  ;;  %v6081_v0 = vsel %vm11775_vm14, %v6079_v16, %v6080_v45  ;;  %v6150_v33 = vrot.slane %v6011_v9, 5  ;;  %v7505_v48 = vrot.slane %v7503_v8, 5  ;;  %v14181_v25 = vld [vmem:[#allocation2 + $0x48] sm:$0xe]  ;;  %v7496_v47 = vsel %vm11345_vm9, %v14122_v51, %v14090_v46 }
 0x383   : > { %v8050_v61 = vsel %vm11775_vm14, %v8048_v63, %v8049_v43  ;;  %6220 = vst.msk [vmem:[#allocation3 + $0x18] sm:$0xf] %vm256_vm0, %v6081_v0  ;;  %v7527_v27 = vshll.u32 %v14151_v26, 16  ;;  %v7358_v1 = vld [vmem:[#allocation2 + $0x64] sm:$0xf]  ;;  %v7514_v26 = vor.u32 %v7513_v20, %v14141_v24  ;;  %v7535_v32 = vshll.u32 %v7357_v12, 16 }
 0x384   : > { %7163 = vrot.lane.b32.xlu0 %v7066_v56, %s11121_s10  ;;  %v14187_v39 = vld [vmem:[#allocation2 + $0x88] sm:$0xf]  ;;  %v14189_v30 = vld [vmem:[#allocation2 + $0x54] sm:$0xe]  ;;  %8153 = vst.msk [vmem:[#allocation3 + $0x128] sm:$0xf] %vm256_vm0, %v8047_v2  ;;  %v6151_v28 = vsel %vm11775_vm14, %v6149_v13, %v6150_v33  ;;  %v7524_v22 = vor.u32 %v7523_v57, %v14168_v62  ;;  %v7506_v2 = vsel %vm11345_vm9, %v14137_v14, %v7505_v48 }
 0x385   : > { %v6470_v4 = vld [vmem:[#allocation2 + $0x78] sm:$0xf]  ;;  %v7532_v56 = vshrl.u32 %v7357_v12, 16  ;;  %8154 = vst.msk [vmem:[#allocation3 + $0x13c] sm:$0xf] %vm256_vm0, %v8050_v61  ;;  %v7541_v9 = vshll.u32 %v7358_v1, 16 }
 0x386   : > { %7185 = vrot.lane.b32.xlu1 %v7104_v19, %s11121_s10  ;;  %v7292_v16 = vld [vmem:[#allocation2 + $0x7c] sm:$0xf]  ;;  %v6708_v45 = vshrl.u32 %v6470_v4, 16  ;;  %v6711_v63 = vshll.u32 %v6470_v4, 16  ;;  %v15039_v43 = vrot.slane %v14187_v39, 5  ;;  %v10931_v46 = vld [vmem:[%s15031_s3 + $0x40] sm:$0xff] }
 0x387   : > { %v10939_v51 = vld [vmem:[%s15031_s3 + $0x80] sm:$0xff]  ;;  %v7545_v24 = vshrl.u32 %v7358_v1, 16  ;;  %6240 = vst.msk [vmem:[#allocation3 + $0x1a8] sm:$0xf] %vm256_vm0, %v6151_v28  ;;  %v10214_v13 = vrot.slane %v14181_v25, 9  ;;  %9103 = vmatpush.bf16.msra.mxu2 %v10931_v46  ;;  %v7534_v0 = vrot.slane %v7532_v56, 4 }
 0x388   : > { %v7158_v8 = vpop.permute.xlu1 %7157  ;;  %7787 = vrot.lane.b32.xlu2 %v7496_v47, %s11121_s10  ;;  %7324 = vst.msk [vmem:[#allocation3 + $0x160] sm:$0xf] %vm256_vm0, %v7292_v16  ;;  %v6710_v20 = vrot.slane %v6708_v45, 4  ;;  %v6713_v57 = vrot.slane %v6711_v63, 5  ;;  %9192 = vmatpush.bf16.msra.mxu3 %v10939_v51  ;;  %v7537_v12 = vrot.slane %v7535_v32, 5  ;;  %v14217_v33 = vrot.slane %v7514_v26, 4  ;;  %v14233_v51 = vpop.f32.mrf.mxu1 }
 0x389   : > { %7248 = vst.msk [vmem:[#allocation3 + $0x6c] sm:$0xf] %vm1348_vm11, %v7158_v8  ;;  %v6271_v61 = vld [vmem:[#allocation2 + $0x84] sm:$0xf]  ;;  %v14219_v1 = vrot.slane %v7524_v22, 4  ;;  %v14221_v25 = vrot.slane %v7527_v27, 5 }
 0x38a   : > { %v14223_v28 = vrot.slane %v7541_v9, 5  ;;  %v6971_v4 = vld [vmem:[#allocation2 + $0x8c] sm:$0x1]  ;;  %v7109_v14 = vrot.slane %v15039_v43, 4  ;;  %v7547_v48 = vrot.slane %v7545_v24, 4  ;;  %v6714_v27 = vor.u32 %v6713_v57, %v6710_v20  ;;  %v10947_v20 = vld [vmem:[%s15031_s3 + $0xc0] sm:$0xff] }
 0x38b   : > { %v6018_v8 = vld [vmem:[#allocation2 + $0x9c] sm:$0xe]  ;;  %v6262_v47 = vld [vmem:[#allocation2 + $0x4c] sm:$0xf]  ;;  %v14229_v56 = vld [vmem:[#allocation2 + $0x68] sm:$0x1]  ;;  %v7538_v22 = vor.u32 %v7537_v12, %v7534_v0  ;;  %9281 = vmatpush.bf16.msra.mxu0 %v10947_v20 }
 0x38c   : > { %7789 = vrot.lane.b32.xlu0 %v7506_v2, %s11121_s10  ;;  %v6480_v26 = vld [vmem:[#allocation2 + $0xa0] sm:$0xf]  ;;  %v6481_v9 = vld [vmem:[#allocation2 + $0xa4] sm:$0x1]  ;;  %v7924_v46 = vld [vmem:[#allocation2 + $0x7c] sm:$0xf]  ;;  %v7548_v57 = vor.u32 %v7547_v48, %v14223_v28 }
 0x38d   : > { %v14231_v32 = vld [vmem:[#allocation2 + $0xa0] sm:$0xf]  ;;  %v6789_v45 = vshll.u32 %v6480_v26, 16  ;;  %v6793_v63 = vshrl.u32 %v6480_v26, 16  ;;  %v10206_v2 = vrot.slane %v6018_v8, 9  ;;  %v7110_v43 = vrot.slane %v6971_v4, 5 }
 0x38e   : > { %6355 = vrot.lane.b32.xlu1 %v6271_v61, %s11121_s10  ;;  %v6168_v24 = vrot.slane %v14231_v32, 5  ;;  %v7295_v61 = vld [vmem:[#allocation2 + $0x90] sm:$0xf]  ;;  %v14238_v7 = vld [vmem:[#allocation2 + $0x94] sm:$0xf]  ;;  %v6799_v26 = vshll.u32 %v6481_v9, 16 }
 0x38f   : > { %v14244_v0 = vrot.slane %v6789_v45, 5  ;;  %v6795_v12 = vrot.slane %v6793_v63, 4  ;;  %7327 = vst.msk [vmem:[#allocation3 + $0x19c] sm:$0xf] %vm256_vm0, %v7295_v61  ;;  %v6715_v4 = vrot.slane %v6714_v27, 4  ;;  %v14251_v19 = vrot.slane %v7538_v22, 4 }
 0x390   : > { %v6328_v16 = vpop.permute.xlu1 %6327  ;;  %6337 = vrot.lane.b32.xlu2 %v6262_v47, %s11121_s10  ;;  %v6169_v8 = vsel %vm11775_vm14, %v10206_v2, %v6168_v24  ;;  %v8053_v47 = vrot.slane %v7924_v46, 5  ;;  %v7551_v55 = vshll.u32 %v14229_v56, 16  ;;  %v7923_v9 = vld [vmem:[#allocation2 + $0x78] sm:$0xe]  ;;  %v7111_v45 = vsel %vm11775_vm14, %v7109_v14, %v7110_v43  ;;  %v14263_v22 = vld [vmem:[#allocation2 + $0x98] sm:$0x1] }
 0x391   : > { %6417 = vst.msk [vmem:[#allocation3 + $0x7c] sm:$0xf] %vm1348_vm11, %v6328_v16  ;;  %v6796_v48 = vor.u32 %v6795_v12, %v14244_v0  ;;  %v15065_v63 = vrot.slane %v13738_v34, 5  ;;  %v14265_v46 = vld [vmem:[#allocation2 + $0x6c] sm:$0xf]  ;;  %v6720_v2 = vsel %vm11345_vm9, %v6715_v4, %v13953_v38  ;;  %v7520_v34 = vsel %vm11345_vm9, %v14217_v33, %v14168_v62 }
 0x392   : > { %v5912_v16 = vpop.permute.xlu2 %5911  ;;  %6245 = vst.msk [vmem:[#allocation3 + $0x20c] sm:$0xf] %vm256_vm0, %v6169_v8  ;;  %v15042_v43 = vrot.slane %v14238_v7, 5  ;;  %v7925_v14 = vld [vmem:[#allocation2 + $0x80] sm:$0x1]  ;;  %v6801_v12 = vrot.slane %v6799_v26, 5 }
 0x393   : > { %5977 = vst.msk [vmem:[#allocation3 + $0x258] sm:$0xf] %vm1348_vm11, %v5912_v16  ;;  %v7073_v27 = vsel %vm11775_vm14, %v10214_v13, %v15065_v63  ;;  %v14277_v13 = vrot.slane %v7548_v57, 4  ;;  %v6014_v61 = vld [vmem:[#allocation2 + $0x8c] sm:$0x1]  ;;  %v6797_v20 = vrot.slane %v6796_v48, 4 }
 0x394   : > { %7167 = vrot.lane.b32.xlu0 %v7073_v27, %s11121_s10  ;;  %v10233_v8 = vrot.slane %v7923_v9, 9  ;;  %v8055_v16 = vrot.slane %v8053_v47, 4  ;;  %v7117_v4 = vrot.slane %v14263_v22, 5  ;;  %v7559_v63 = vshll.u32 %v14265_v46, 16  ;;  %6925 = vst.msk [vmem:[#allocation3 + $0x170] sm:$0xf] %vm256_vm0, %v6720_v2  ;;  %v14292_v2 = vpop.f32.mrf.mxu1 }
 0x395   : > { %v6156_v62 = vrot.slane %v6154_v15, 4  ;;  %v7361_v33 = vld [vmem:[#allocation2 + $0x70] sm:$0xf]  ;;  %v6802_v57 = vsel %vm11345_vm9, %v6797_v20, %v6801_v12  ;;  %v8056_v48 = vrot.slane %v7925_v14, 5  ;;  %v6157_v9 = vrot.slane %v6014_v61, 5 }
 0x396   : > { %7189 = vrot.lane.b32.xlu1 %v7111_v45, %s11121_s10  ;;  %v7556_v45 = vshrl.u32 %v14265_v46, 16  ;;  %v8054_v26 = vsel %vm11775_vm14, %v10233_v8, %v8053_v47  ;;  %v5386_v27 = vld [vmem:[#allocation2 + $0xb8] sm:$0xf]  ;;  %6932 = vst.msk [vmem:[#allocation3 + $0x1fc] sm:$0xf] %vm256_vm0, %v6802_v57  ;;  %v7565_v14 = vshll.u32 %v7361_v33, 16  ;;  %v7530_v57 = vsel %vm11345_vm9, %v14219_v1, %v14221_v25 }
 0x397   : > { %v6473_v46 = vld [vmem:[#allocation2 + $0x84] sm:$0xf]  ;;  %5418 = vst.msk [vmem:[#allocation3 + $0x26c] sm:$0xf] %vm256_vm0, %v5386_v27  ;;  %v8057_v15 = vsel %vm11775_vm14, %v8055_v16, %v8056_v48  ;;  %v7569_v61 = vshrl.u32 %v7361_v33, 16 }
 0x398   : > { %v7162_v38 = vpop.permute.xlu1 %7161  ;;  %7791 = vrot.lane.b32.xlu2 %v7520_v34, %s11121_s10  ;;  %v6732_v20 = vshrl.u32 %v6473_v46, 16  ;;  %v6735_v12 = vshll.u32 %v6473_v46, 16  ;;  %8155 = vst.msk [vmem:[#allocation3 + $0x150] sm:$0xf] %vm256_vm0, %v8054_v26  ;;  %v6158_v34 = vsel %vm11775_vm14, %v6156_v62, %v6157_v9  ;;  %v7927_v8 = vld [vmem:[#allocation2 + $0x88] sm:$0xf] }
 0x399   : > { %7250 = vst.msk [vmem:[#allocation3 + $0x94] sm:$0xf] %vm1348_vm11, %v7162_v38  ;;  %v7926_v38 = vld [vmem:[#allocation2 + $0x84] sm:$0xe]  ;;  %v7294_v16 = vld [vmem:[#allocation2 + $0x88] sm:$0xf] }
 0x39a   : > { %v6318_v47 = vpop.permute.xlu2 %6317  ;;  %v6734_v48 = vrot.slane %v6732_v20, 4  ;;  %v6737_v27 = vrot.slane %v6735_v12, 5  ;;  %8156 = vst.msk [vmem:[#allocation3 + $0x164] sm:$0xf] %vm256_vm0, %v8057_v15  ;;  %v7928_v33 = vld [vmem:[#allocation2 + $0x8c] sm:$0x1] }
 0x39b   : > { %6412 = vst.msk [vmem:[#allocation3 + $0x18] sm:$0xf] %vm1348_vm11, %v6318_v47  ;;  %v10234_v26 = vrot.slane %v7926_v38, 9  ;;  %v8060_v62 = vrot.slane %v7927_v8, 5  ;;  %v7116_v9 = vrot.slane %v15042_v43, 4  ;;  %v14310_v47 = vrot.slane %v7556_v45, 4 }
 0x39c   : > { %7793 = vrot.lane.b32.xlu0 %v7530_v57, %s11121_s10  ;;  %v6264_v46 = vld [vmem:[#allocation2 + $0x58] sm:$0xf]  ;;  %6242 = vst.msk [vmem:[#allocation3 + $0x1d0] sm:$0xf] %vm256_vm0, %v6158_v34  ;;  %v6738_v1 = vor.u32 %v6737_v27, %v6734_v48  ;;  %v15066_v38 = vrot.slane %v14106_v10, 5  ;;  %v8063_v45 = vrot.slane %v7928_v33, 5 }
 0x39d   : > { %v6017_v25 = vld [vmem:[#allocation2 + $0x98] sm:$0x1]  ;;  %7326 = vst.msk [vmem:[#allocation3 + $0x188] sm:$0xf] %vm256_vm0, %v7294_v16  ;;  %v8061_v15 = vsel %vm11775_vm14, %v10234_v26, %v8060_v62  ;;  %v8062_v12 = vrot.slane %v8060_v62, 4  ;;  %v7561_v34 = vrot.slane %v7559_v63, 5 }
 0x39e   : > { %6359 = vrot.lane.b32.xlu1 %v6273_v42, %s11121_s10  ;;  %v7297_v42 = vld [vmem:[#allocation2 + $0x9c] sm:$0xf]  ;;  %v6163_v8 = vrot.slane %v15066_v38, 4  ;;  %v6739_v57 = vrot.slane %v6738_v1, 4  ;;  %v6476_v43 = vld [vmem:[#allocation2 + $0x90] sm:$0xf] }
 0x39f   : > { %v14320_v48 = vrot.slane %v7565_v14, 5  ;;  %v7362_v27 = vld [vmem:[#allocation2 + $0x74] sm:$0x1]  ;;  %v14322_v16 = vrot.slane %v7569_v61, 4  ;;  %7329 = vst.msk [vmem:[#allocation3 + $0x1c4] sm:$0xf] %vm256_vm0, %v7297_v42  ;;  %v8064_v33 = vsel %vm11775_vm14, %v8062_v12, %v8063_v45  ;;  %v14340_v12 = vpop.f32.mrf.mxu1 }
 0x3a0   : > { %v6332_v20 = vpop.permute.xlu1 %6331  ;;  %6341 = vrot.lane.b32.xlu2 %v6264_v46, %s11121_s10  ;;  %v6164_v26 = vrot.slane %v6017_v25, 5  ;;  %v10843_v62 = vld [vmem:[#allocation3 + $0x4] sm:$0xf]  ;;  %v6744_v10 = vsel %vm11345_vm9, %v6739_v57, %v14038_v60  ;;  %8157 = vst.msk [vmem:[#allocation3 + $0x178] sm:$0xf] %vm256_vm0, %v8061_v15  ;;  %v6756_v46 = vshrl.u32 %v6476_v43, 16 }
 0x3a1   : > { %6419 = vst.msk [vmem:[#allocation3 + $0xa4] sm:$0xf] %vm1348_vm11, %v6332_v20  ;;  %v6759_v63 = vshll.u32 %v6476_v43, 16  ;;  %v15067_v1 = vrot.slane %v13853_v31, 5  ;;  %v15068_v61 = vrot.slane %v14189_v30, 9  ;;  %v7118_v43 = vsel %vm11775_vm14, %v7116_v9, %v7117_v4 }
 0x3a2   : > { %v7772_v14 = vpop.permute.xlu2 %7771  ;;  %v10245_v20 = vld [vmem:[#allocation3 + $0x14] sm:$0xf0]  ;;  %6927 = vst.msk [vmem:[#allocation3 + $0x198] sm:$0xf] %vm256_vm0, %v6744_v10  ;;  %v6165_v60 = vsel %vm11775_vm14, %v6163_v8, %v6164_v26  ;;  %v14347_v30 = vld [vmem:[#allocation2 + $0x60] sm:$0xe]  ;;  %v7562_v8 = vor.u32 %v7561_v34, %v14310_v47 }
 0x3a3   : > { %v7080_v25 = vsel %vm11775_vm14, %v15068_v61, %v15067_v1  ;;  %v7929_v42 = vld [vmem:[#allocation2 + $0x90] sm:$0xe]  ;;  %7867 = vst.msk [vmem:[#allocation3 + $0xc] sm:$0xf] %vm1348_vm11, %v7772_v14  ;;  %v10248_v31 = vor.u32 %v10843_v62, %v10245_v20  ;;  %v7296_v15 = vld [vmem:[#allocation2 + $0x94] sm:$0xf]  ;;  %v7572_v61 = vor.u32 %v14322_v16, %v14320_v48 }
 0x3a4   : > { %v6758_v38 = vrot.slane %v6756_v46, 4  ;;  %v6761_v57 = vrot.slane %v6759_v63, 5  ;;  %7171 = vrot.lane.b32.xlu0 %v7080_v25, %s11121_s10  ;;  %8158 = vst.msk [vmem:[#allocation3 + $0x18c] sm:$0xf] %vm256_vm0, %v8064_v33  ;;  %v7930_v22 = vld [vmem:[#allocation2 + $0x94] sm:$0xf]  ;;  %v7544_v46 = vsel %vm11345_vm9, %v14251_v19, %v14223_v28 }
 0x3a5   : > { %v7931_v45 = vld [vmem:[#allocation2 + $0x98] sm:$0x1]  ;;  %9104 = vmatmul.bf16.vlgmr.msra.gmra.mxu2 %v10248_v31  ;;  %v7575_v4 = vshll.u32 %v7362_v27, 16  ;;  %6244 = vst.msk [vmem:[#allocation3 + $0x1f8] sm:$0xf] %vm256_vm0, %v6165_v60  ;;  %v10235_v26 = vrot.slane %v7929_v42, 9 }
 0x3a6   : > { %7193 = vrot.lane.b32.xlu1 %v7118_v43, %s11121_s10  ;;  %v6762_v9 = vor.u32 %v6761_v57, %v6758_v38  ;;  %v8067_v62 = vrot.slane %v7930_v22, 5  ;;  %v14358_v63 = vld [vmem:[#allocation2 + $0xa0] sm:$0xf]  ;;  %7328 = vst.msk [vmem:[#allocation3 + $0x1b0] sm:$0xf] %vm256_vm0, %v7296_v15  ;;  %v8070_v14 = vrot.slane %v7931_v45, 5 }
 0x3a7   : > { %v6020_v47 = vld [vmem:[#allocation2 + $0xa4] sm:$0x1]  ;;  %v7553_v1 = vrot.slane %v7551_v55, 5  ;;  %v10216_v19 = vrot.slane %v14347_v30, 9  ;;  %v14368_v28 = vrot.slane %v7562_v8, 4  ;;  %v6170_v55 = vrot.slane %v6168_v24, 4 }
 0x3a8   : > { %v7166_v10 = vpop.permute.xlu1 %7165  ;;  %v6763_v34 = vrot.slane %v6762_v9, 4  ;;  %v8068_v27 = vsel %vm11775_vm14, %v10235_v26, %v8067_v62  ;;  %v8069_v33 = vrot.slane %v8067_v62, 4  ;;  %7795 = vrot.lane.b32.xlu2 %v7544_v46, %s11121_s10  ;;  %v14372_v25 = vld [vmem:[#allocation2 + $0x78] sm:$0xf]  ;;  %v6275_v20 = vld [vmem:[#allocation2 + $0x9c] sm:$0xf] }
 0x3a9   : > { %7252 = vst.msk [vmem:[#allocation3 + $0xbc] sm:$0xf] %vm1348_vm11, %v7166_v10  ;;  %v6977_v60 = vld [vmem:[#allocation2 + $0xa4] sm:$0x1]  ;;  %v6171_v56 = vrot.slane %v6020_v47, 5  ;;  %v7121_v16 = vrot.slane %v14358_v63, 5 }
 0x3aa   : > { %v6768_v42 = vsel %vm11345_vm9, %v6763_v34, %v14115_v54  ;;  %v8071_v43 = vsel %vm11775_vm14, %v8069_v33, %v8070_v14  ;;  %8159 = vst.msk [vmem:[#allocation3 + $0x1a0] sm:$0xf] %vm256_vm0, %v8068_v27  ;;  %v6322_v31 = vpop.permute.xlu2 %6321  ;;  %v14383_v30 = vrot.slane %v7575_v4, 5  ;;  %v6479_v15 = vld [vmem:[#allocation2 + $0x9c] sm:$0xf]  ;;  %v7554_v54 = vsel %vm11345_vm9, %v14277_v13, %v7553_v1  ;;  %v14398_v4 = vpop.f32.mrf.mxu1 }
 0x3ab   : > { %6929 = vst.msk [vmem:[#allocation3 + $0x1c0] sm:$0xf] %vm256_vm0, %v6768_v42  ;;  %v6172_v38 = vsel %vm11775_vm14, %v6170_v55, %v6171_v56  ;;  %v7298_v32 = vld [vmem:[#allocation2 + $0xa0] sm:$0xf]  ;;  %v6780_v24 = vshrl.u32 %v6479_v15, 16  ;;  %v6783_v57 = vshll.u32 %v6479_v15, 16 }
 0x3ac   : > { %6414 = vst.msk [vmem:[#allocation3 + $0x40] sm:$0xf] %vm1348_vm11, %v6322_v31  ;;  %7797 = vrot.lane.b32.xlu0 %v7554_v54, %s11121_s10  ;;  %v14394_v8 = vrot.slane %v7572_v61, 4  ;;  %v7580_v22 = vshrl.u32 %v14372_v25, 16  ;;  %v7933_v45 = vld [vmem:[#allocation2 + $0xa0] sm:$0xf] }
 0x3ad   : > { %8160 = vst.msk [vmem:[#allocation3 + $0x1b4] sm:$0xf] %vm256_vm0, %v8071_v43  ;;  %v7124_v13 = vrot.slane %v6977_v60, 5  ;;  %v6266_v9 = vld [vmem:[#allocation2 + $0x64] sm:$0xf]  ;;  %v7583_v26 = vshll.u32 %v14372_v25, 16 }
 0x3ae   : > { %6363 = vrot.lane.b32.xlu1 %v6275_v20, %s11121_s10  ;;  %6246 = vst.msk [vmem:[#allocation3 + $0x220] sm:$0xf] %vm256_vm0, %v6172_v38  ;;  %v6782_v62 = vrot.slane %v6780_v24, 4  ;;  %v6785_v10 = vrot.slane %v6783_v57, 5  ;;  %v7123_v47 = vrot.slane %v7121_v16, 4  ;;  %v5914_v34 = vpop.permute.xlu0 %5913  ;;  %v8074_v33 = vrot.slane %v7933_v45, 5 }
 0x3af   : > { %7330 = vst.msk [vmem:[#allocation3 + $0x1d8] sm:$0xf] %vm256_vm0, %v7298_v32  ;;  %v7932_v27 = vld [vmem:[#allocation2 + $0x9c] sm:$0xe]  ;;  %v6483_v14 = vld [vmem:[#allocation2 + $0xac] sm:$0xf] }
 0x3b0   : > { %v6336_v46 = vpop.permute.xlu1 %6335  ;;  %v6484_v1 = vld [vmem:[#allocation2 + $0xb0] sm:$0x1]  ;;  %v6786_v61 = vor.u32 %v6785_v10, %v6782_v62  ;;  %5978 = vst.msk [vmem:[#allocation3 + $0x26c] sm:$0xf] %vm1348_vm11, %v5914_v34  ;;  %6345 = vrot.lane.b32.xlu2 %v6266_v9, %s11121_s10  ;;  %v10848_v20 = vld [vmem:[#allocation3 + $0x2c] sm:$0xf]  ;;  %v7125_v15 = vsel %vm11775_vm14, %v7123_v47, %v7124_v13 }
 0x3b1   : > { %6421 = vst.msk [vmem:[#allocation3 + $0xcc] sm:$0xf] %vm1348_vm11, %v6336_v46  ;;  %v6021_v60 = vld [vmem:[#allocation2 + $0xa8] sm:$0xe]  ;;  %v14408_v42 = vrot.slane %v7580_v22, 4  ;;  %v6813_v43 = vshll.u32 %v6483_v14, 16 }
 0x3b2   : > { %v6817_v55 = vshrl.u32 %v6483_v14, 16  ;;  %v7299_v56 = vld [vmem:[#allocation2 + $0xa8] sm:$0xf]  ;;  %v10236_v31 = vrot.slane %v7932_v27, 9  ;;  %v7776_v54 = vpop.permute.xlu2 %7775  ;;  %v15069_v38 = vrot.slane %v13918_v49, 5  ;;  %v6823_v57 = vshll.u32 %v6484_v1, 16 }
 0x3b3   : > { %v10265_v24 = vld [vmem:[#allocation3 + $0x3c] sm:$0xf0]  ;;  %v6787_v45 = vrot.slane %v6786_v61, 4  ;;  %v7934_v9 = vld [vmem:[#allocation2 + $0xa4] sm:$0x1]  ;;  %v14417_v62 = vrot.slane %v6813_v43, 5 }
 0x3b4   : > { %v7087_v32 = vsel %vm11775_vm14, %v10216_v19, %v15069_v38  ;;  %7869 = vst.msk [vmem:[#allocation3 + $0x34] sm:$0xf] %vm1348_vm11, %v7776_v54  ;;  %v10268_v22 = vor.u32 %v10848_v20, %v10265_v24  ;;  %v6819_v10 = vrot.slane %v6817_v55, 4  ;;  %v6022_v46 = vld [vmem:[#allocation2 + $0xac] sm:$0xf]  ;;  %v8075_v13 = vsel %vm11775_vm14, %v10236_v31, %v8074_v33  ;;  %v14434_v31 = vpop.f32.mrf.mxu1 }
 0x3b5   : > { %7175 = vrot.lane.b32.xlu0 %v7087_v32, %s11121_s10  ;;  %v7364_v49 = vld [vmem:[#allocation2 + $0x7c] sm:$0xf]  ;;  %v10207_v19 = vrot.slane %v6021_v60, 9  ;;  %v6175_v47 = vrot.slane %v6022_v46, 5  ;;  %7331 = vst.msk [vmem:[#allocation3 + $0x1ec] sm:$0xf] %vm256_vm0, %v7299_v56  ;;  %v6792_v34 = vsel %vm11345_vm9, %v6787_v45, %v14244_v0  ;;  %v7568_v0 = vsel %vm11345_vm9, %v14368_v28, %v14320_v48 }
 0x3b6   : > { %7197 = vrot.lane.b32.xlu1 %v7125_v15, %s11121_s10  ;;  %9109 = vmatmul.bf16.gmra.mxu2 %v10268_v22  ;;  %v10543_v27 = vld [vmem:[#allocation3 + $0x258] sm:$0xf]  ;;  %v14427_v14 = vld [vmem:[#allocation2 + $0xac] sm:$0xf]  ;;  %v6820_v1 = vor.u32 %v6819_v10, %v14417_v62  ;;  %6931 = vst.msk [vmem:[#allocation3 + $0x1e8] sm:$0xf] %vm256_vm0, %v6792_v34  ;;  %v7148_v20 = vpop.permute.xlu0 %7147 }
 0x3b7   : > { %v6176_v60 = vsel %vm11775_vm14, %v10207_v19, %v6175_v47  ;;  %v8076_v43 = vrot.slane %v8074_v33, 4  ;;  %v8077_v55 = vrot.slane %v7934_v9, 5  ;;  %8161 = vst.msk [vmem:[#allocation3 + $0x1c8] sm:$0xf] %vm256_vm0, %v8075_v13  ;;  %v6023_v56 = vld [vmem:[#allocation2 + $0xb0] sm:$0x1] }
 0x3b8   : > { %v7170_v61 = vpop.permute.xlu1 %7169  ;;  %v10920_v15 = vld [vmem:[#allocation3 + $0x268] sm:$0xf0]  ;;  %v6821_v54 = vrot.slane %v6820_v1, 4  ;;  %v6825_v38 = vrot.slane %v6823_v57, 5  ;;  %7243 = vst.msk [vmem:[#allocation3 + $0x8] sm:$0xf] %vm1348_vm11, %v7148_v20  ;;  %7799 = vrot.lane.b32.xlu2 %v7568_v0, %s11121_s10 }
 0x3b9   : > { %7254 = vst.msk [vmem:[#allocation3 + $0xe4] sm:$0xf] %vm1348_vm11, %v7170_v61  ;;  %v10544_v33 = vor.u32 %v10920_v15, %v10543_v27  ;;  %v7128_v32 = vrot.slane %v14427_v14, 5  ;;  %v7589_v24 = vshll.u32 %v7364_v49, 16  ;;  %v7593_v45 = vshrl.u32 %v7364_v49, 16 }
 0x3ba   : > { %v6277_v9 = vld [vmem:[#allocation2 + $0xa8] sm:$0xf]  ;;  %v6826_v22 = vsel %vm11345_vm9, %v6821_v54, %v6825_v38  ;;  %6247 = vst.msk [vmem:[#allocation3 + $0x234] sm:$0xf] %vm256_vm0, %v6176_v60  ;;  %v8078_v48 = vsel %vm11775_vm14, %v8076_v43, %v8077_v55  ;;  %v6177_v28 = vrot.slane %v6175_v47, 4  ;;  %v6178_v57 = vrot.slane %v6023_v56, 5  ;;  %v6326_v13 = vpop.permute.xlu2 %6325 }
 0x3bb   : > { %v7300_v10 = vld [vmem:[#allocation2 + $0xac] sm:$0xf]  ;;  %v6482_v46 = vld [vmem:[#allocation2 + $0xa8] sm:$0xf]  ;;  %9090 = vmatmul.bf16.gmra.mxu1 %v10544_v33  ;;  %6934 = vst.msk [vmem:[#allocation3 + $0x224] sm:$0xf] %vm256_vm0, %v6826_v22  ;;  %v7578_v27 = vsel %vm11345_vm9, %v14394_v8, %v14383_v30 }
 0x3bc   : > { %v6804_v19 = vshrl.u32 %v6482_v46, 16  ;;  %v6807_v34 = vshll.u32 %v6482_v46, 16  ;;  %v7935_v49 = vld [vmem:[#allocation2 + $0xa8] sm:$0xe]  ;;  %6416 = vst.msk [vmem:[#allocation3 + $0x68] sm:$0xf] %vm1348_vm11, %v6326_v13  ;;  %v6179_v47 = vsel %vm11775_vm14, %v6177_v28, %v6178_v57 }
 0x3bd   : > { %v6963_v1 = vld [vmem:[#allocation2 + $0x6c] sm:$0xe]  ;;  %v7937_v20 = vld [vmem:[#allocation2 + $0xb0] sm:$0x1]  ;;  %7801 = vrot.lane.b32.xlu0 %v7578_v27, %s11121_s10  ;;  %8162 = vst.msk [vmem:[#allocation3 + $0x1dc] sm:$0xf] %vm256_vm0, %v8078_v48 }
 0x3be   : > { %v7936_v61 = vld [vmem:[#allocation2 + $0xac] sm:$0xf]  ;;  %6367 = vrot.lane.b32.xlu1 %v6277_v9, %s11121_s10  ;;  %v6806_v60 = vrot.slane %v6804_v19, 4  ;;  %v6809_v43 = vrot.slane %v6807_v34, 5  ;;  %v10237_v55 = vrot.slane %v7935_v49, 9  ;;  %v7130_v0 = vrot.slane %v7128_v32, 4  ;;  %v7774_v9 = vpop.permute.xlu0 %7773 }
 0x3bf   : > { %v8081_v56 = vrot.slane %v7936_v61, 5  ;;  %v6268_v30 = vld [vmem:[#allocation2 + $0x70] sm:$0xf]  ;;  %v7585_v8 = vrot.slane %v7583_v26, 5  ;;  %v7591_v15 = vrot.slane %v7589_v24, 5  ;;  %v7595_v54 = vrot.slane %v7593_v45, 4 }
 0x3c0   : > { %6248 = vst.msk [vmem:[#allocation3 + $0x248] sm:$0xf] %vm256_vm0, %v6179_v47  ;;  %v6340_v38 = vpop.permute.xlu1 %6339  ;;  %v6980_v33 = vld [vmem:[#allocation2 + $0xb0] sm:$0x1]  ;;  %v6810_v22 = vor.u32 %v6809_v43, %v6806_v60  ;;  %v8084_v57 = vrot.slane %v7937_v20, 5  ;;  %6349 = vrot.lane.b32.xlu2 %v6268_v30, %s11121_s10  ;;  %v10217_v24 = vrot.slane %v6963_v1, 9 }
 0x3c1   : > { %7332 = vst.msk [vmem:[#allocation3 + $0x200] sm:$0xf] %vm256_vm0, %v7300_v10  ;;  %v8082_v48 = vsel %vm11775_vm14, %v10237_v55, %v8081_v56  ;;  %v8083_v28 = vrot.slane %v8081_v56, 4  ;;  %v10251_v46 = vld [vmem:[#allocation3 + $0x8] sm:$0xf]  ;;  %v14473_v10 = vpop.f32.mrf.mxu1  ;;  %v7131_v13 = vrot.slane %v6980_v33, 5  ;;  %v7586_v19 = vor.u32 %v7585_v8, %v14408_v42 }
 0x3c2   : > { %6423 = vst.msk [vmem:[#allocation3 + $0xf4] sm:$0xf] %vm1348_vm11, %v6340_v38  ;;  %v10846_v25 = vld [vmem:[#allocation3 + $0x18] sm:$0xf0]  ;;  %v7365_v34 = vld [vmem:[#allocation2 + $0x80] sm:$0x1]  ;;  %v7596_v49 = vor.u32 %v7595_v54, %v7591_v15  ;;  %v7780_v47 = vpop.permute.xlu2 %7779 }
 0x3c3   : > { %7868 = vst.msk [vmem:[#allocation3 + $0x20] sm:$0xf] %vm1348_vm11, %v7774_v9  ;;  %v10252_v26 = vor.u32 %v10846_v25, %v10251_v46  ;;  %v8085_v45 = vsel %vm11775_vm14, %v8083_v28, %v8084_v57  ;;  %v6811_v27 = vrot.slane %v6810_v22, 4  ;;  %v10853_v61 = vld [vmem:[#allocation3 + $0x54] sm:$0xf]  ;;  %v7132_v1 = vsel %vm11775_vm14, %v7130_v0, %v7131_v13 }
 0x3c4   : > { %8163 = vst.msk [vmem:[#allocation3 + $0x1f0] sm:$0xf] %vm256_vm0, %v8082_v48  ;;  %v10285_v20 = vld [vmem:[#allocation3 + $0x64] sm:$0xf0]  ;;  %v15070_v60 = vrot.slane %v14018_v40, 5  ;;  %v7587_v56 = vrot.slane %v7586_v19, 4 }
 0x3c5   : > { %9193 = vmatmul.bf16.vlgmr.msra.gmra.mxu3 %v10252_v26  ;;  %8164 = vst.msk [vmem:[#allocation3 + $0x204] sm:$0xf] %vm256_vm0, %v8085_v45  ;;  %v10288_v43 = vor.u32 %v10853_v61, %v10285_v20  ;;  %v6816_v55 = vsel %vm11345_vm9, %v6811_v27, %v14417_v62  ;;  %v10259_v0 = vld [vmem:[#allocation3 + $0x10] sm:$0xf]  ;;  %v10847_v30 = vld [vmem:[#allocation3 + $0x20] sm:$0xf0] }
 0x3c6   : > { %7871 = vst.msk [vmem:[#allocation3 + $0x5c] sm:$0xf] %vm1348_vm11, %v7780_v47  ;;  %v7094_v42 = vsel %vm11775_vm14, %v10217_v24, %v15070_v60  ;;  %7201 = vrot.lane.b32.xlu1 %v7132_v1, %s11121_s10  ;;  %v7597_v8 = vrot.slane %v7596_v49, 4  ;;  %v7599_v40 = vshll.u32 %v7365_v34, 16  ;;  %v7152_v38 = vpop.permute.xlu0 %7151  ;;  %v10844_v33 = vld [vmem:[#allocation3 + $0xc] sm:$0xf]  ;;  %v7592_v62 = vsel %vm11345_vm9, %v7587_v56, %v7591_v15 }
 0x3c7   : > { %7179 = vrot.lane.b32.xlu0 %v7094_v42, %s11121_s10  ;;  %6933 = vst.msk [vmem:[#allocation3 + $0x210] sm:$0xf] %vm256_vm0, %v6816_v55  ;;  %9114 = vmatmul.bf16.gmra.mxu2 %v10288_v43  ;;  %v7366_v9 = vld [vmem:[#allocation2 + $0x84] sm:$0xf]  ;;  %v7367_v22 = vld [vmem:[#allocation2 + $0x88] sm:$0xf]  ;;  %v10260_v46 = vor.u32 %v10847_v30, %v10259_v0 }
 0x3c8   : > { %v7174_v54 = vpop.permute.xlu1 %7173  ;;  %v14494_v28 = vld [vmem:[#allocation2 + $0xb8] sm:$0xf]  ;;  %7245 = vst.msk [vmem:[#allocation3 + $0x30] sm:$0xf] %vm1348_vm11, %v7152_v38  ;;  %7803 = vrot.lane.b32.xlu2 %v7592_v62, %s11121_s10  ;;  %v7601_v25 = vrot.slane %v7599_v40, 5  ;;  %v7604_v26 = vshrl.u32 %v7366_v9, 16 }
 0x3c9   : > { %7256 = vst.msk [vmem:[#allocation3 + $0x10c] sm:$0xf] %vm1348_vm11, %v7174_v54  ;;  %v7607_v24 = vshll.u32 %v7366_v9, 16  ;;  %v7135_v13 = vrot.slane %v14494_v28, 5  ;;  %v7613_v19 = vshll.u32 %v7367_v22, 16  ;;  %v7617_v15 = vshrl.u32 %v7367_v22, 16  ;;  %v14500_v34 = vpop.f32.mrf.mxu1 }
 0x3ca   : > { %v10253_v48 = vld [vmem:[#allocation3 + $0x1c] sm:$0xf0]  ;;  %v6330_v45 = vpop.permute.xlu2 %6329  ;;  %v6279_v49 = vld [vmem:[#allocation2 + $0xb4] sm:$0xf]  ;;  %v7602_v27 = vsel %vm11345_vm9, %v7597_v8, %v7601_v25  ;;  %v6270_v47 = vld [vmem:[#allocation2 + $0x7c] sm:$0xf] }
 0x3cb   : > { %v10256_v57 = vor.u32 %v10844_v33, %v10253_v48  ;;  %10705 = vmatmul.msk.bf16.vlgmr.msra.gmra.mxu1 %vm4365_vm15, %v10260_v46  ;;  %6418 = vst.msk [vmem:[#allocation3 + $0x90] sm:$0xf] %vm1348_vm11, %v6330_v45  ;;  %v6966_v61 = vld [vmem:[#allocation2 + $0x78] sm:$0xe]  ;;  %v7606_v20 = vrot.slane %v7604_v26, 4  ;;  %v7609_v1 = vrot.slane %v7607_v24, 5 }
 0x3cc   : > { %v6983_v42 = vld [vmem:[#allocation2 + $0xbc] sm:$0x1]  ;;  %v7137_v43 = vrot.slane %v7135_v13, 4  ;;  %v7615_v56 = vrot.slane %v7613_v19, 5  ;;  %v7619_v0 = vrot.slane %v7617_v15, 4  ;;  %v10218_v38 = vrot.slane %v6966_v61, 9 }
 0x3cd   : > { %9282 = vmatmul.bf16.vlgmr.msra.gmra.mxu0 %v10256_v57  ;;  %v10851_v8 = vld [vmem:[#allocation3 + $0x40] sm:$0xf0]  ;;  %v7138_v54 = vrot.slane %v6983_v42, 5  ;;  %v7610_v33 = vor.u32 %v7609_v1, %v7606_v20  ;;  %v10858_v22 = vld [vmem:[#allocation3 + $0x7c] sm:$0xf]  ;;  %v15071_v25 = vrot.slane %v14119_v21, 5 }
 0x3ce   : > { %6371 = vrot.lane.b32.xlu1 %v6279_v49, %s11121_s10  ;;  %v7778_v55 = vpop.permute.xlu0 %7777  ;;  %v7368_v48 = vld [vmem:[#allocation2 + $0x8c] sm:$0x1]  ;;  %v7620_v57 = vor.u32 %v7619_v0, %v7615_v56  ;;  %v10279_v15 = vld [vmem:[#allocation3 + $0x38] sm:$0xf]  ;;  %v10852_v49 = vld [vmem:[#allocation3 + $0x48] sm:$0xf0] }
 0x3cf   : > { %7805 = vrot.lane.b32.xlu0 %v7602_v27, %s11121_s10  ;;  %v10271_v30 = vld [vmem:[#allocation3 + $0x30] sm:$0xf]  ;;  %7870 = vst.msk [vmem:[#allocation3 + $0x48] sm:$0xf] %vm1348_vm11, %v7778_v55  ;;  %v7139_v46 = vsel %vm11775_vm14, %v7137_v43, %v7138_v54  ;;  %v7101_v26 = vsel %vm11775_vm14, %v10218_v38, %v15071_v25  ;;  %v7611_v19 = vrot.slane %v7610_v33, 4  ;;  %v7623_v27 = vshll.u32 %v7368_v48, 16 }
 0x3d0   : > { %v6344_v60 = vpop.permute.xlu1 %6343  ;;  %6353 = vrot.lane.b32.xlu2 %v6270_v47, %s11121_s10  ;;  %v10272_v40 = vor.u32 %v10851_v8, %v10271_v30  ;;  %v7621_v20 = vrot.slane %v7620_v57, 4  ;;  %v7369_v1 = vld [vmem:[#allocation2 + $0x90] sm:$0xf]  ;;  %v7370_v21 = vld [vmem:[#allocation2 + $0x94] sm:$0xf]  ;;  %v10280_v0 = vor.u32 %v10852_v49, %v10279_v15 }
 0x3d1   : > { %6425 = vst.msk [vmem:[#allocation3 + $0x11c] sm:$0xf] %vm1348_vm11, %v6344_v60  ;;  %v14521_v45 = vpop.f32.mrf.mxu1  ;;  %v7616_v60 = vsel %vm11345_vm9, %v7611_v19, %v7615_v56  ;;  %v10849_v42 = vld [vmem:[#allocation3 + $0x34] sm:$0xf]  ;;  %v7625_v30 = vrot.slane %v7623_v27, 5  ;;  %v7628_v8 = vshrl.u32 %v7369_v1, 16 }
 0x3d2   : > { %v7784_v9 = vpop.permute.xlu2 %7783  ;;  %v10305_v62 = vld [vmem:[#allocation3 + $0x8c] sm:$0xf0]  ;;  %v7637_v38 = vshll.u32 %v7370_v21, 16  ;;  %v7641_v33 = vshrl.u32 %v7370_v21, 16  ;;  %v10856_v15 = vld [vmem:[#allocation3 + $0x68] sm:$0xf0] }
 0x3d3   : > { %7873 = vst.msk [vmem:[#allocation3 + $0x84] sm:$0xf] %vm1348_vm11, %v7784_v9  ;;  %v10308_v24 = vor.u32 %v10858_v22, %v10305_v62  ;;  %v7626_v56 = vsel %vm11345_vm9, %v7621_v20, %v7625_v30  ;;  %v7630_v9 = vrot.slane %v7628_v8, 4  ;;  %v6272_v57 = vld [vmem:[#allocation2 + $0x88] sm:$0xf] }
 0x3d4   : > { %v7639_v25 = vrot.slane %v7637_v38, 5  ;;  %v10863_v20 = vld [vmem:[#allocation3 + $0xa4] sm:$0xf]  ;;  %v7371_v21 = vld [vmem:[#allocation2 + $0x98] sm:$0x1] }
 0x3d5   : > { %9198 = vmatmul.bf16.gmra.mxu3 %v10272_v40  ;;  %v7631_v40 = vshll.u32 %v7369_v1, 16  ;;  %v10299_v30 = vld [vmem:[#allocation3 + $0x60] sm:$0xf]  ;;  %v10857_v8 = vld [vmem:[#allocation3 + $0x70] sm:$0xf0] }
 0x3d6   : > { %7205 = vrot.lane.b32.xlu1 %v7139_v46, %s11121_s10  ;;  %v7156_v61 = vpop.permute.xlu0 %7155  ;;  %v10273_v43 = vld [vmem:[#allocation3 + $0x44] sm:$0xf0]  ;;  %v6969_v46 = vld [vmem:[#allocation2 + $0x84] sm:$0xe] }
 0x3d7   : > { %7183 = vrot.lane.b32.xlu0 %v7101_v26, %s11121_s10  ;;  %9119 = vmatmul.bf16.gmra.mxu2 %v10308_v24  ;;  %7247 = vst.msk [vmem:[#allocation3 + $0x58] sm:$0xf] %vm1348_vm11, %v7156_v61  ;;  %v10276_v55 = vor.u32 %v10849_v42, %v10273_v43  ;;  %v7633_v22 = vrot.slane %v7631_v40, 5  ;;  %v7643_v26 = vrot.slane %v7641_v33, 4  ;;  %v10219_v27 = vrot.slane %v6969_v46, 9 }
 0x3d8   : > { %v7178_v47 = vpop.permute.xlu1 %7177  ;;  %7807 = vrot.lane.b32.xlu2 %v7616_v60, %s11121_s10  ;;  %v15072_v42 = vrot.slane %v14187_v39, 5  ;;  %v7647_v40 = vshll.u32 %v7371_v21, 16  ;;  %v10300_v46 = vor.u32 %v10857_v8, %v10299_v30  ;;  %v6274_v30 = vld [vmem:[#allocation2 + $0x94] sm:$0xf] }
 0x3d9   : > { %7258 = vst.msk [vmem:[#allocation3 + $0x134] sm:$0xf] %vm1348_vm11, %v7178_v47  ;;  %v14533_v24 = vpop.f32.mrf.mxu1  ;;  %v7634_v47 = vor.u32 %v7633_v22, %v7630_v9  ;;  %v7644_v60 = vor.u32 %v7643_v26, %v7639_v25  ;;  %v7373_v9 = vld [vmem:[#allocation2 + $0xa0] sm:$0xf]  ;;  %v10854_v22 = vld [vmem:[#allocation3 + $0x5c] sm:$0xf] }
 0x3da   : > { %v6334_v54 = vpop.permute.xlu2 %6333  ;;  %v7108_v43 = vsel %vm11775_vm14, %v10219_v27, %v15072_v42 }
 0x3db   : > { %10706 = vmatmul.msk.bf16.gmra.mxu1 %vm4365_vm15, %v10280_v0  ;;  %6420 = vst.msk [vmem:[#allocation3 + $0xb8] sm:$0xf] %vm1348_vm11, %v6334_v54  ;;  %v7635_v0 = vrot.slane %v7634_v47, 4  ;;  %v7645_v33 = vrot.slane %v7644_v60, 4  ;;  %v7661_v47 = vshll.u32 %v7373_v9, 16 }
 0x3dc   : > { %v6972_v60 = vld [vmem:[#allocation2 + $0x90] sm:$0xe] }
 0x3dd   : > { %9287 = vmatmul.bf16.gmra.mxu0 %v10276_v55  ;;  %v7640_v39 = vsel %vm11345_vm9, %v7635_v0, %v7639_v25  ;;  %v7665_v25 = vshrl.u32 %v7373_v9, 16  ;;  %v7663_v8 = vrot.slane %v7661_v47, 5 }
 0x3de   : > { %v7782_v48 = vpop.permute.xlu0 %7781  ;;  %v10291_v19 = vld [vmem:[#allocation3 + $0x58] sm:$0xf] }
 0x3df   : > { %7809 = vrot.lane.b32.xlu0 %v7626_v56, %s11121_s10  ;;  %7872 = vst.msk [vmem:[#allocation3 + $0x70] sm:$0xf] %vm1348_vm11, %v7782_v48  ;;  %v10292_v49 = vor.u32 %v10856_v15, %v10291_v19  ;;  %v7372_v56 = vld [vmem:[#allocation2 + $0x9c] sm:$0xf]  ;;  %v4676_v48 = vpop.f32.mrf.mxu2  ;;  %v7649_v19 = vrot.slane %v7647_v40, 5 }
 0x3e0   : > { %v6348_v62 = vpop.permute.xlu1 %6347  ;;  %6357 = vrot.lane.b32.xlu2 %v6272_v57, %s11121_s10  ;;  %v7652_v15 = vshrl.u32 %v7372_v56, 16  ;;  %v7374_v40 = vld [vmem:[#allocation2 + $0xa4] sm:$0x1] }
 0x3e1   : > { %6427 = vst.msk [vmem:[#allocation3 + $0x144] sm:$0xf] %vm1348_vm11, %v6348_v62  ;;  %v14549_v26 = vpop.f32.mrf.mxu1 }
 0x3e2   : > { %v7788_v61 = vpop.permute.xlu2 %7787  ;;  %v10325_v1 = vld [vmem:[#allocation3 + $0xb4] sm:$0xf0]  ;;  %v7654_v42 = vrot.slane %v7652_v15, 4 }
 0x3e3   : > { %7875 = vst.msk [vmem:[#allocation3 + $0xac] sm:$0xf] %vm1348_vm11, %v7788_v61  ;;  %v10328_v55 = vor.u32 %v10863_v20, %v10325_v1  ;;  %v4854_v61 = vpop.f32.mrf.mxu0  ;;  %v7650_v20 = vsel %vm11345_vm9, %v7645_v33, %v7649_v19  ;;  %v15073_v1 = vld [vmem:[#allocation10_spill] sm:$0xff]  ;;  %v10868_v19 = vld [vmem:[#allocation3 + $0xcc] sm:$0xf] }
 0x3e4   : > { %v4677_v21 = vadd.f32 %v4676_v48, %v15073_v1 }
 0x3e5   : > { %9203 = vmatmul.bf16.gmra.mxu3 %v10292_v49  ;;  %v7655_v49 = vshll.u32 %v7372_v56, 16 }
 0x3e6   : > { %v7160_v38 = vpop.permute.xlu0 %7159  ;;  %v10293_v62 = vld [vmem:[#allocation3 + $0x6c] sm:$0xf0] }
 0x3e7   : > { %7187 = vrot.lane.b32.xlu0 %v7108_v43, %s11121_s10  ;;  %9124 = vmatmul.bf16.gmra.mxu2 %v10328_v55  ;;  %7249 = vst.msk [vmem:[#allocation3 + $0x80] sm:$0xf] %vm1348_vm11, %v7160_v38  ;;  %v10296_v57 = vor.u32 %v10854_v22, %v10293_v62  ;;  %v7657_v43 = vrot.slane %v7655_v49, 5  ;;  %v10220_v62 = vrot.slane %v6972_v60, 9  ;;  %v7671_v49 = vshll.u32 %v7374_v40, 16 }
 0x3e8   : > { %v7182_v54 = vpop.permute.xlu1 %7181  ;;  %7811 = vrot.lane.b32.xlu2 %v7640_v39, %s11121_s10  ;;  %v10861_v39 = vld [vmem:[#allocation3 + $0x90] sm:$0xf0]  ;;  %v10319_v60 = vld [vmem:[#allocation3 + $0x88] sm:$0xf]  ;;  %v7375_v40 = vld [vmem:[#allocation2 + $0xa8] sm:$0xf] }
 0x3e9   : > { %7260 = vst.msk [vmem:[#allocation3 + $0x15c] sm:$0xf] %vm1348_vm11, %v7182_v54  ;;  %v7667_v54 = vrot.slane %v7665_v25, 4  ;;  %v7658_v48 = vor.u32 %v7657_v43, %v7654_v42  ;;  %v15074_v25 = vrot.slane %v14238_v7, 5  ;;  %v15075_v42 = vld [vmem:[#allocation11_spill] sm:$0xff] }
 0x3ea   : > { %v6338_v27 = vpop.permute.xlu2 %6337  ;;  %v10859_v7 = vld [vmem:[#allocation3 + $0x84] sm:$0xf] }
 0x3eb   : > { %10707 = vmatmul.msk.bf16.gmra.mxu1 %vm4365_vm15, %v10300_v46  ;;  %6422 = vst.msk [vmem:[#allocation3 + $0xe0] sm:$0xf] %vm1348_vm11, %v6338_v27  ;;  %v14560_v27 = vpop.f32.mrf.mxu1 }
 0x3ed   : > { %9292 = vmatmul.bf16.gmra.mxu0 %v10296_v57  ;;  %v4678_v57 = vpop.f32.mrf.mxu2 }
 0x3ee   : > { %v7786_v56 = vpop.permute.xlu0 %7785  ;;  %v10311_v9 = vld [vmem:[#allocation3 + $0x80] sm:$0xf]  ;;  %v4679_v43 = vadd.f32 %v4678_v57, %v15075_v42 }
 0x3ef   : > { %7813 = vrot.lane.b32.xlu0 %v7650_v20, %s11121_s10  ;;  %7874 = vst.msk [vmem:[#allocation3 + $0x98] sm:$0xf] %vm1348_vm11, %v7786_v56  ;;  %v10312_v33 = vor.u32 %v10861_v39, %v10311_v9  ;;  %v7115_v20 = vsel %vm11775_vm14, %v10220_v62, %v15074_v25 }
 0x3f0   : > { %v4765_v55 = vpop.f32.mrf.mxu3  ;;  %v6352_v0 = vpop.permute.xlu1 %6351  ;;  %6361 = vrot.lane.b32.xlu2 %v6274_v30, %s11121_s10  ;;  %v7659_v30 = vrot.slane %v7658_v48, 4 }
 0x3f1   : > { %v4766_v38 = vadd.f32 %v4765_v55, %v4677_v21  ;;  %6429 = vst.msk [vmem:[#allocation3 + $0x16c] sm:$0xf] %vm1348_vm11, %v6352_v0  ;;  %v7668_v21 = vor.u32 %v7667_v54, %v7663_v8  ;;  %v4856_v0 = vpop.f32.mrf.mxu0 }
 0x3f2   : > { %v7792_v46 = vpop.permute.xlu2 %7791  ;;  %v10345_v15 = vld [vmem:[#allocation3 + $0xdc] sm:$0xf0] }
 0x3f3   : > { %v4855_v22 = vadd.f32 %v4854_v61, %v4766_v38  ;;  %7877 = vst.msk [vmem:[#allocation3 + $0xd4] sm:$0xf] %vm1348_vm11, %v7792_v46  ;;  %v10348_v1 = vor.u32 %v10868_v19, %v10345_v15  ;;  %v10862_v61 = vld [vmem:[#allocation3 + $0x98] sm:$0xf0]  ;;  %v7376_v38 = vld [vmem:[#allocation2 + $0xac] sm:$0xf]  ;;  %v7664_v46 = vsel %vm11345_vm9, %v7659_v30, %v7663_v8 }
 0x3f4   : > { %v10320_v39 = vor.u32 %v10862_v61, %v10319_v60  ;;  %v7669_v19 = vrot.slane %v7668_v21, 4  ;;  %v7676_v15 = vshrl.u32 %v7375_v40, 16  ;;  %v7685_v25 = vshll.u32 %v7376_v38, 16  ;;  %v5348_v60 = vld [vmem:[#allocation2 + $0xc0] sm:$0xf] }
 0x3f5   : > { %9208 = vmatmul.bf16.gmra.mxu3 %v10312_v33  ;;  %v4889_v47 = vmax.f32 %v4855_v22, 0.0  ;;  %v7673_v33 = vrot.slane %v7671_v49, 5  ;;  %v7689_v61 = vshrl.u32 %v7376_v38, 16  ;;  %v6975_v38 = vld [vmem:[#allocation2 + $0x9c] sm:$0xe] }
 0x3f6   : > { %v7164_v54 = vpop.permute.xlu0 %7163  ;;  %v10313_v57 = vld [vmem:[#allocation3 + $0x94] sm:$0xf0]  ;;  %v7678_v30 = vrot.slane %v7676_v15, 4  ;;  %v10221_v5 = vrot.slane %v6975_v38, 9  ;;  %v10867_v38 = vld [vmem:[#allocation3 + $0xc0] sm:$0xf0] }
 0x3f7   : > { %7191 = vrot.lane.b32.xlu0 %v7115_v20, %s11121_s10  ;;  %v4921_v55 = vpack.c.bf16 %v4889_v47, %v4889_v47  ;;  %9129 = vmatmul.bf16.gmra.mxu2 %v10348_v1  ;;  %7251 = vst.msk [vmem:[#allocation3 + $0xa8] sm:$0xf] %vm1348_vm11, %v7164_v54  ;;  %v10316_v48 = vor.u32 %v10859_v7, %v10313_v57  ;;  %v7679_v47 = vshll.u32 %v7375_v40, 16  ;;  %v7691_v7 = vrot.slane %v7689_v61, 4 }
 0x3f8   : > { %v4767_v56 = vpop.f32.mrf.mxu3  ;;  %v7186_v9 = vpop.permute.xlu1 %7185  ;;  %7815 = vrot.lane.b32.xlu2 %v7664_v46, %s11121_s10  ;;  %v7674_v21 = vsel %vm11345_vm9, %v7669_v19, %v7673_v33  ;;  %v7122_v61 = vsel %vm11775_vm14, %v10221_v5, %v7121_v16  ;;  %v10339_v16 = vld [vmem:[#allocation3 + $0xb0] sm:$0xf] }
 0x3f9   : > { %v5179_v22 = vshrl.u32 %v4921_v55, 16  ;;  %v4768_v62 = vadd.f32 %v4767_v56, %v4679_v43  ;;  %7262 = vst.msk [vmem:[#allocation3 + $0x184] sm:$0xf] %vm1348_vm11, %v7186_v9  ;;  %v5182_v49 = vshll.u32 %v4921_v55, 16  ;;  %v7681_v40 = vrot.slane %v7679_v47, 5  ;;  %v14579_v56 = vpop.f32.mrf.mxu1 }
 0x3fa   : > { %v6342_v42 = vpop.permute.xlu2 %6341  ;;  %v7687_v9 = vrot.slane %v7685_v25, 5  ;;  %v7377_v47 = vld [vmem:[#allocation2 + $0xb0] sm:$0x1]  ;;  %v10340_v5 = vor.u32 %v10867_v38, %v10339_v16 }
 0x3fb   : > { %v5181_v20 = vrot.slane %v5179_v22, 7  ;;  %v4857_v1 = vadd.f32 %v4856_v0, %v4768_v62  ;;  %10708 = vmatmul.msk.bf16.gmra.mxu1 %vm4365_vm15, %v10320_v39  ;;  %6424 = vst.msk [vmem:[#allocation3 + $0x108] sm:$0xf] %vm1348_vm11, %v6342_v42  ;;  %v6276_v22 = vld [vmem:[#allocation2 + $0xa0] sm:$0xf]  ;;  %v7682_v19 = vor.u32 %v7681_v40, %v7678_v30 }
 0x3fc   : > { %v10866_v62 = vld [vmem:[#allocation3 + $0xb8] sm:$0xf0]  ;;  %v7692_v25 = vor.u32 %v7691_v7, %v7687_v9 }
 0x3fd   : > { %9297 = vmatmul.bf16.gmra.mxu0 %v10316_v48  ;;  %v5184_v8 = vor.u32 %v5182_v49, %v5181_v20  ;;  %v4890_v43 = vmax.f32 %v4857_v1, 0.0  ;;  %v5352_v49 = vld [vmem:[#allocation2 + $0xc8] sm:$0x1]  ;;  %v7683_v40 = vrot.slane %v7682_v19, 4 }
 0x3fe   : > { %v7790_v33 = vpop.permute.xlu0 %7789  ;;  %v10331_v46 = vld [vmem:[#allocation3 + $0xa8] sm:$0xf]  ;;  %v7693_v7 = vrot.slane %v7692_v25, 4 }
 0x3ff   : > { %7817 = vrot.lane.b32.xlu0 %v7674_v21, %s11121_s10  ;;  %v5349_v55 = vsel %vm11229_vm2, %v5184_v8, %v5348_v60  ;;  %v4922_v0 = vpack.c.bf16 %v4890_v43, %v4890_v43  ;;  %7876 = vst.msk [vmem:[#allocation3 + $0xc0] sm:$0xf] %vm1348_vm11, %v7790_v33  ;;  %v10332_v57 = vor.u32 %v10866_v62, %v10331_v46  ;;  %v10873_v60 = vld [vmem:[#allocation3 + $0xf4] sm:$0xf]  ;;  %v5185_v8 = vrot.slane %v5181_v20, 4 }
 0x400   : > { %5350 = vst [vmem:[#allocation2 + $0xc0] sm:$0xf] %v5349_v55  ;;  %v6356_v39 = vpop.permute.xlu1 %6355  ;;  %6365 = vrot.lane.b32.xlu2 %v6276_v22, %s11121_s10  ;;  %v7695_v20 = vshll.u32 %v7377_v47, 16  ;;  %v10864_v22 = vld [vmem:[#allocation3 + $0xac] sm:$0xf]  ;;  %v7688_v6 = vsel %vm11345_vm9, %v7683_v40, %v7687_v9 }
 0x401   : > { %v5187_v54 = vshrl.u32 %v4922_v0, 16  ;;  %6431 = vst.msk [vmem:[#allocation3 + $0x194] sm:$0xf] %vm1348_vm11, %v6356_v39  ;;  %v5190_v15 = vshll.u32 %v4922_v0, 16  ;;  %v7378_v62 = vld [vmem:[#allocation2 + $0xb4] sm:$0xf] }
 0x402   : > { %v7796_v1 = vpop.permute.xlu2 %7795  ;;  %v10365_v42 = vld [vmem:[#allocation3 + $0x104] sm:$0xf0]  ;;  %v7379_v46 = vld [vmem:[#allocation2 + $0xb8] sm:$0xf]  ;;  %v7697_v19 = vrot.slane %v7695_v20, 5 }
 0x403   : > { %v5189_v48 = vrot.slane %v5187_v54, 7  ;;  %7879 = vst.msk [vmem:[#allocation3 + $0xfc] sm:$0xf] %vm1348_vm11, %v7796_v1  ;;  %v10368_v30 = vor.u32 %v10873_v60, %v10365_v42  ;;  %v14598_v54 = vpop.f32.mrf.mxu1  ;;  %v7709_v25 = vshll.u32 %v7379_v46, 16 }
 0x404   : > { %v7698_v9 = vsel %vm11345_vm9, %v7693_v7, %v7697_v19 }
 0x405   : > { %9213 = vmatmul.bf16.gmra.mxu3 %v10332_v57  ;;  %v5192_v43 = vor.u32 %v5190_v15, %v5189_v48  ;;  %v5194_v21 = vrot.slane %v5189_v48, 4  ;;  %v7700_v48 = vshrl.u32 %v7378_v62, 16  ;;  %v7703_v15 = vshll.u32 %v7378_v62, 16 }
 0x406   : > { %v7168_v29 = vpop.permute.xlu0 %7167  ;;  %v10333_v33 = vld [vmem:[#allocation3 + $0xbc] sm:$0xf0] }
 0x407   : > { %7195 = vrot.lane.b32.xlu0 %v7122_v61, %s11121_s10  ;;  %v5193_v55 = vsel %vm11297_vm5, %v5185_v8, %v5192_v43  ;;  %v5353_v63 = vsel %vm11362_vm10, %v5194_v21, %v5352_v49  ;;  %v6281_v0 = vld [vmem:[#allocation2 + $0xc0] sm:$0xf]  ;;  %9134 = vmatmul.bf16.gmra.mxu2 %v10368_v30  ;;  %v10336_v57 = vor.u32 %v10864_v22, %v10333_v33  ;;  %v7713_v49 = vshrl.u32 %v7379_v46, 16  ;;  %v6978_v61 = vld [vmem:[#allocation2 + $0xa8] sm:$0xe] }
 0x408   : > { %5351 = vst.msk [vmem:[#allocation2 + $0xc4] sm:$0xf] %vm256_vm0, %v5193_v55  ;;  %6375 = vrot.lane.b32.xlu1 %v6281_v0, %s11121_s10  ;;  %v7190_v39 = vpop.permute.xlu1 %7189  ;;  %7819 = vrot.lane.b32.xlu2 %v7688_v6, %s11121_s10  ;;  %v7702_v60 = vrot.slane %v7700_v48, 4  ;;  %v7705_v42 = vrot.slane %v7703_v15, 5  ;;  %v7711_v30 = vrot.slane %v7709_v25, 5  ;;  %v10222_v22 = vrot.slane %v6978_v61, 9 }
 0x409   : > { %5354 = vst [vmem:[#allocation2 + $0xc8] sm:$0x1] %v5353_v63  ;;  %v7715_v40 = vrot.slane %v7713_v49, 4  ;;  %v6278_v63 = vld [vmem:[#allocation2 + $0xac] sm:$0xf] }
 0x40a   : > { %7264 = vst.msk [vmem:[#allocation3 + $0x1ac] sm:$0xf] %vm1348_vm11, %v7190_v39  ;;  %v6346_v47 = vpop.permute.xlu2 %6345  ;;  %v10871_v0 = vld [vmem:[#allocation3 + $0xe0] sm:$0xf0]  ;;  %v7706_v62 = vor.u32 %v7705_v42, %v7702_v60  ;;  %v10878_v33 = vld [vmem:[#allocation3 + $0x11c] sm:$0xf]  ;;  %v7129_v19 = vsel %vm11775_vm14, %v10222_v22, %v7128_v32 }
 0x40b   : > { %7253 = vst.msk [vmem:[#allocation3 + $0xd0] sm:$0xf] %vm1348_vm11, %v7168_v29  ;;  %10709 = vmatmul.msk.bf16.gmra.mxu1 %vm4365_vm15, %v10340_v5  ;;  %v14618_v20 = vpop.f32.mrf.mxu1  ;;  %v7716_v5 = vor.u32 %v7715_v40, %v7711_v30  ;;  %v7381_v15 = vld [vmem:[#allocation2 + $0xc0] sm:$0xf]  ;;  %v10869_v49 = vld [vmem:[#allocation3 + $0xd4] sm:$0xf] }
 0x40c   : > { %6426 = vst.msk [vmem:[#allocation3 + $0x130] sm:$0xf] %vm1348_vm11, %v6346_v47  ;;  %v10872_v47 = vld [vmem:[#allocation3 + $0xe8] sm:$0xf0]  ;;  %v7707_v25 = vrot.slane %v7706_v62, 4  ;;  %v7724_v40 = vshrl.u32 %v7381_v15, 16 }
 0x40d   : > { %9302 = vmatmul.bf16.gmra.mxu0 %v10336_v57  ;;  %v7380_v57 = vld [vmem:[#allocation2 + $0xbc] sm:$0x1]  ;;  %v6486_v42 = vld [vmem:[#allocation2 + $0xb8] sm:$0xf]  ;;  %v7727_v22 = vshll.u32 %v7381_v15, 16 }
 0x40e   : > { %v7794_v55 = vpop.permute.xlu0 %7793  ;;  %v7719_v61 = vshll.u32 %v7380_v57, 16  ;;  %v6837_v14 = vshll.u32 %v6486_v42, 16 }
 0x40f   : > { %7821 = vrot.lane.b32.xlu0 %v7698_v9, %s11121_s10  ;;  %v14610_v1 = vld [vmem:[#allocation2 + $0xc4] sm:$0xf]  ;;  %7878 = vst.msk [vmem:[#allocation3 + $0xe8] sm:$0xf] %vm1348_vm11, %v7794_v55  ;;  %v10359_v9 = vld [vmem:[#allocation3 + $0xd8] sm:$0xf] }
 0x410   : > { %v6360_v8 = vpop.permute.xlu1 %6359  ;;  %v6986_v43 = vld [vmem:[#allocation2 + $0xc8] sm:$0x1]  ;;  %v7142_v21 = vrot.slane %v14610_v1, 5  ;;  %6369 = vrot.lane.b32.xlu2 %v6278_v63, %s11121_s10  ;;  %v7382_v60 = vld [vmem:[#allocation2 + $0xc4] sm:$0xf]  ;;  %v6841_v63 = vshrl.u32 %v6486_v42, 16 }
 0x411   : > { %6433 = vst.msk [vmem:[#allocation3 + $0x1bc] sm:$0xf] %vm1348_vm11, %v6360_v8  ;;  %v7145_v38 = vrot.slane %v6986_v43, 5  ;;  %v7717_v43 = vrot.slane %v7716_v5, 4  ;;  %v6487_v55 = vld [vmem:[#allocation2 + $0xbc] sm:$0x1] }
 0x412   : > { %v7144_v16 = vrot.slane %v7142_v21, 4  ;;  %v10351_v7 = vld [vmem:[#allocation3 + $0xd0] sm:$0xf]  ;;  %v7800_v6 = vpop.permute.xlu2 %7799  ;;  %v14634_v62 = vrot.slane %v6837_v14, 5  ;;  %v6847_v57 = vshll.u32 %v6487_v55, 16  ;;  %v7726_v5 = vrot.slane %v7724_v40, 4 }
 0x413   : > { %v10352_v39 = vor.u32 %v10871_v0, %v10351_v7  ;;  %v10385_v46 = vld [vmem:[#allocation3 + $0x12c] sm:$0xf0]  ;;  %7881 = vst.msk [vmem:[#allocation3 + $0x124] sm:$0xf] %vm1348_vm11, %v7800_v6  ;;  %v7712_v0 = vsel %vm11345_vm9, %v7707_v25, %v7711_v30  ;;  %v7721_v6 = vrot.slane %v7719_v61, 5  ;;  %v14638_v25 = vpop.f32.mrf.mxu1 }
 0x414   : > { %v7146_v29 = vsel %vm11775_vm14, %v7144_v16, %v7145_v38  ;;  %v10388_v48 = vor.u32 %v10878_v33, %v10385_v46  ;;  %v7301_v38 = vld [vmem:[#allocation2 + $0xb4] sm:$0xf]  ;;  %v7733_v33 = vshll.u32 %v7382_v60, 16  ;;  %v6843_v46 = vrot.slane %v6841_v63, 4  ;;  %v6026_v42 = vld [vmem:[#allocation2 + $0xbc] sm:$0x1] }
 0x415   : > { %7209 = vrot.lane.b32.xlu1 %v7146_v29, %s11121_s10  ;;  %9218 = vmatmul.bf16.gmra.mxu3 %v10352_v39  ;;  %v10360_v39 = vor.u32 %v10872_v47, %v10359_v9  ;;  %v6024_v29 = vld [vmem:[#allocation2 + $0xb4] sm:$0xe]  ;;  %7333 = vst.msk [vmem:[#allocation3 + $0x214] sm:$0xf] %vm256_vm0, %v7301_v38  ;;  %v7722_v15 = vsel %vm11345_vm9, %v7717_v43, %v7721_v6  ;;  %v7302_v40 = vld [vmem:[#allocation2 + $0xb8] sm:$0xf] }
 0x416   : > { %v7172_v32 = vpop.permute.xlu0 %7171  ;;  %v10353_v16 = vld [vmem:[#allocation3 + $0xe4] sm:$0xf0]  ;;  %v6981_v47 = vld [vmem:[#allocation2 + $0xb4] sm:$0xe]  ;;  %v10208_v9 = vrot.slane %v6024_v29, 9 }
 0x417   : > { %7199 = vrot.lane.b32.xlu0 %v7129_v19, %s11121_s10  ;;  %9139 = vmatmul.bf16.gmra.mxu2 %v10388_v48  ;;  %7255 = vst.msk [vmem:[#allocation3 + $0xf8] sm:$0xf] %vm1348_vm11, %v7172_v32  ;;  %v10356_v7 = vor.u32 %v10869_v49, %v10353_v16  ;;  %v7737_v19 = vshrl.u32 %v7382_v60, 16  ;;  %v6025_v48 = vld [vmem:[#allocation2 + $0xb8] sm:$0xf]  ;;  %v6844_v49 = vor.u32 %v6843_v46, %v14634_v62  ;;  %v6849_v60 = vrot.slane %v6847_v57, 5 }
 0x418   : > { %v7194_v8 = vpop.permute.xlu1 %7193  ;;  %7823 = vrot.lane.b32.xlu2 %v7712_v0, %s11121_s10  ;;  %v6182_v61 = vrot.slane %v6025_v48, 5  ;;  %v6485_v55 = vld [vmem:[#allocation2 + $0xb4] sm:$0xf]  ;;  %v6280_v14 = vld [vmem:[#allocation2 + $0xb8] sm:$0xf]  ;;  %v6185_v16 = vrot.slane %v6026_v42, 5 }
 0x419   : > { %7266 = vst.msk [vmem:[#allocation3 + $0x1d4] sm:$0xf] %vm1348_vm11, %v7194_v8  ;;  %v7729_v8 = vrot.slane %v7727_v22, 5  ;;  %v6845_v63 = vrot.slane %v6844_v49, 4  ;;  %v10876_v38 = vld [vmem:[#allocation3 + $0x108] sm:$0xf0] }
 0x41a   : > { %v6350_v30 = vpop.permute.xlu2 %6349  ;;  %v6183_v32 = vsel %vm11775_vm14, %v10208_v9, %v6182_v61  ;;  %v6184_v0 = vrot.slane %v6182_v61, 4  ;;  %7334 = vst.msk [vmem:[#allocation3 + $0x228] sm:$0xf] %vm256_vm0, %v7302_v40  ;;  %v7739_v6 = vrot.slane %v7737_v19, 4  ;;  %v10223_v48 = vrot.slane %v6981_v47, 9 }
 0x41b   : > { %10710 = vmatmul.msk.bf16.gmra.mxu1 %vm4365_vm15, %v10360_v39  ;;  %6428 = vst.msk [vmem:[#allocation3 + $0x158] sm:$0xf] %vm1348_vm11, %v6350_v30  ;;  %v6828_v39 = vshrl.u32 %v6485_v55, 16  ;;  %v6850_v46 = vsel %vm11345_vm9, %v6845_v63, %v6849_v60  ;;  %v6831_v30 = vshll.u32 %v6485_v55, 16  ;;  %v7730_v49 = vor.u32 %v7729_v8, %v7726_v5  ;;  %v7383_v9 = vld [vmem:[#allocation2 + $0xc8] sm:$0x1] }
 0x41c   : > { %6249 = vst.msk [vmem:[#allocation3 + $0x25c] sm:$0xf] %vm256_vm0, %v6183_v32  ;;  %v6186_v57 = vsel %vm11775_vm14, %v6184_v0, %v6185_v16  ;;  %v7938_v61 = vld [vmem:[#allocation2 + $0xb4] sm:$0xe]  ;;  %v7136_v40 = vsel %vm11775_vm14, %v10223_v48, %v7135_v13  ;;  %v10877_v8 = vld [vmem:[#allocation3 + $0x110] sm:$0xf0]  ;;  %v14664_v32 = vpop.f32.mrf.mxu1 }
 0x41d   : > { %9307 = vmatmul.bf16.gmra.mxu0 %v10356_v7  ;;  %v7735_v7 = vrot.slane %v7733_v33, 5  ;;  %6936 = vst.msk [vmem:[#allocation3 + $0x24c] sm:$0xf] %vm256_vm0, %v6850_v46  ;;  %v6830_v60 = vrot.slane %v6828_v39, 4  ;;  %v6833_v5 = vrot.slane %v6831_v30, 5  ;;  %v7731_v0 = vrot.slane %v7730_v49, 4 }
 0x41e   : > { %v7798_v22 = vpop.permute.xlu0 %7797  ;;  %v10371_v29 = vld [vmem:[#allocation3 + $0xf8] sm:$0xf]  ;;  %6250 = vst.msk [vmem:[#allocation3 + $0x270] sm:$0xf] %vm256_vm0, %v6186_v57  ;;  %v7939_v63 = vld [vmem:[#allocation2 + $0xb8] sm:$0xf] }
 0x41f   : > { %7825 = vrot.lane.b32.xlu0 %v7722_v15, %s11121_s10  ;;  %7880 = vst.msk [vmem:[#allocation3 + $0x110] sm:$0xf] %vm1348_vm11, %v7798_v22  ;;  %v10372_v33 = vor.u32 %v10876_v38, %v10371_v29  ;;  %v10883_v15 = vld [vmem:[#allocation3 + $0x144] sm:$0xf]  ;;  %v7740_v55 = vor.u32 %v7739_v6, %v7735_v7  ;;  %v7385_v16 = vld [vmem:[#allocation2 + $0xd0] sm:$0xf]  ;;  %v7736_v46 = vsel %vm11345_vm9, %v7731_v0, %v7735_v7 }
 0x420   : > { %v6364_v43 = vpop.permute.xlu1 %6363  ;;  %6373 = vrot.lane.b32.xlu2 %v6280_v14, %s11121_s10  ;;  %v7743_v14 = vshll.u32 %v7383_v9, 16  ;;  %v10238_v38 = vrot.slane %v7938_v61, 9  ;;  %v8088_v39 = vrot.slane %v7939_v63, 5  ;;  %v10874_v22 = vld [vmem:[#allocation3 + $0xfc] sm:$0xf] }
 0x421   : > { %6435 = vst.msk [vmem:[#allocation3 + $0x1e4] sm:$0xf] %vm1348_vm11, %v6364_v43  ;;  %v6834_v43 = vor.u32 %v6833_v5, %v6830_v60  ;;  %v10379_v29 = vld [vmem:[#allocation3 + $0x100] sm:$0xf]  ;;  %v7940_v13 = vld [vmem:[#allocation2 + $0xbc] sm:$0x1] }
 0x422   : > { %v7804_v19 = vpop.permute.xlu2 %7803  ;;  %v10405_v42 = vld [vmem:[#allocation3 + $0x154] sm:$0xf0]  ;;  %v7741_v30 = vrot.slane %v7740_v55, 4  ;;  %v8089_v48 = vsel %vm11775_vm14, %v10238_v38, %v8088_v39  ;;  %v10380_v9 = vor.u32 %v10877_v8, %v10379_v29  ;;  %v7745_v61 = vrot.slane %v7743_v14, 5  ;;  %v6282_v63 = vld [vmem:[#allocation2 + $0xc4] sm:$0xf] }
 0x423   : > { %7883 = vst.msk [vmem:[#allocation3 + $0x14c] sm:$0xf] %vm1348_vm11, %v7804_v19  ;;  %v10408_v47 = vor.u32 %v10883_v15, %v10405_v42  ;;  %v7757_v19 = vshll.u32 %v7385_v16, 16  ;;  %v7761_v42 = vshrl.u32 %v7385_v16, 16  ;;  %v8090_v60 = vrot.slane %v8088_v39, 4 }
 0x424   : > { %8165 = vst.msk [vmem:[#allocation3 + $0x218] sm:$0xf] %vm256_vm0, %v8089_v48  ;;  %v7746_v55 = vsel %vm11345_vm9, %v7741_v30, %v7745_v61  ;;  %v6984_v0 = vld [vmem:[#allocation2 + $0xc0] sm:$0xe]  ;;  %v7386_v16 = vld [vmem:[#allocation2 + $0xd4] sm:$0x1] }
 0x425   : > { %9223 = vmatmul.bf16.gmra.mxu3 %v10372_v33  ;;  %v6835_v33 = vrot.slane %v6834_v43, 4  ;;  %v7763_v8 = vrot.slane %v7761_v42, 4  ;;  %v14690_v43 = vpop.f32.mrf.mxu1  ;;  %v10888_v30 = vld [vmem:[#allocation3 + $0x16c] sm:$0xf] }
 0x426   : > { %v10373_v57 = vld [vmem:[#allocation3 + $0x10c] sm:$0xf0] }
 0x427   : > { %7203 = vrot.lane.b32.xlu0 %v7136_v40, %s11121_s10  ;;  %9144 = vmatmul.bf16.gmra.mxu2 %v10408_v47  ;;  %v7176_v6 = vpop.permute.xlu0 %7175  ;;  %v10376_v49 = vor.u32 %v10874_v22, %v10373_v57  ;;  %v6840_v7 = vsel %vm11345_vm9, %v6835_v33, %v14634_v62  ;;  %v8091_v40 = vrot.slane %v7940_v13, 5  ;;  %v14688_v62 = vrot.slane %v7757_v19, 5 }
 0x428   : > { %v7198_v28 = vpop.permute.xlu1 %7197  ;;  %7257 = vst.msk [vmem:[#allocation3 + $0x120] sm:$0xf] %vm1348_vm11, %v7176_v6  ;;  %7827 = vrot.lane.b32.xlu2 %v7736_v46, %s11121_s10  ;;  %v14673_v15 = vpop.f32.mrf.mxu2  ;;  %v10224_v13 = vrot.slane %v6984_v0, 9  ;;  %v7767_v46 = vshll.u32 %v7386_v16, 16 }
 0x429   : > { %7268 = vst.msk [vmem:[#allocation3 + $0x1fc] sm:$0xf] %vm1348_vm11, %v7198_v28  ;;  %v8092_v5 = vsel %vm11775_vm14, %v8090_v60, %v8091_v40  ;;  %v10881_v28 = vld [vmem:[#allocation3 + $0x130] sm:$0xf0]  ;;  %v7764_v6 = vor.u32 %v7763_v8, %v14688_v62 }
 0x42a   : > { %v6354_v47 = vpop.permute.xlu2 %6353  ;;  %6935 = vst.msk [vmem:[#allocation3 + $0x238] sm:$0xf] %vm256_vm0, %v6840_v7  ;;  %v7143_v48 = vsel %vm11775_vm14, %v10224_v13, %v7142_v21  ;;  %v7769_v19 = vrot.slane %v7767_v46, 5  ;;  %v10399_v7 = vld [vmem:[#allocation3 + $0x128] sm:$0xf] }
 0x42b   : > { %10711 = vmatmul.msk.bf16.gmra.mxu1 %vm4365_vm15, %v10380_v9  ;;  %6430 = vst.msk [vmem:[#allocation3 + $0x180] sm:$0xf] %vm1348_vm11, %v6354_v47  ;;  %v10882_v9 = vld [vmem:[#allocation3 + $0x138] sm:$0xf0]  ;;  %v7765_v61 = vrot.slane %v7764_v6, 4 }
 0x42c   : > { %8166 = vst.msk [vmem:[#allocation3 + $0x22c] sm:$0xf] %vm256_vm0, %v8092_v5  ;;  %v10879_v47 = vld [vmem:[#allocation3 + $0x124] sm:$0xf]  ;;  %v10400_v5 = vor.u32 %v10882_v9, %v10399_v7  ;;  %v7384_v8 = vld [vmem:[#allocation2 + $0xcc] sm:$0xf] }
 0x42d   : > { %9312 = vmatmul.bf16.gmra.mxu0 %v10376_v49  ;;  %v7751_v0 = vshll.u32 %v7384_v8, 16  ;;  %v10886_v6 = vld [vmem:[#allocation3 + $0x158] sm:$0xf0] }
 0x42f   : > { %7829 = vrot.lane.b32.xlu0 %v7746_v55, %s11121_s10  ;;  %v7802_v38 = vpop.permute.xlu0 %7801  ;;  %v10391_v39 = vld [vmem:[#allocation3 + $0x120] sm:$0xf] }
 0x430   : > { %v6368_v14 = vpop.permute.xlu1 %6367  ;;  %7882 = vst.msk [vmem:[#allocation3 + $0x138] sm:$0xf] %vm1348_vm11, %v7802_v38  ;;  %6377 = vrot.lane.b32.xlu2 %v6282_v63, %s11121_s10  ;;  %v14695_v22 = vpop.f32.mrf.mxu2  ;;  %v10392_v29 = vor.u32 %v10881_v28, %v10391_v39  ;;  %v7748_v63 = vshrl.u32 %v7384_v8, 16  ;;  %v7753_v39 = vrot.slane %v7751_v0, 5 }
 0x431   : > { %6437 = vst.msk [vmem:[#allocation3 + $0x20c] sm:$0xf] %vm1348_vm11, %v6368_v14  ;;  %v7770_v14 = vsel %vm11345_vm9, %v7765_v61, %v7769_v19 }
 0x432   : > { %v7808_v57 = vpop.permute.xlu2 %7807  ;;  %v10425_v33 = vld [vmem:[#allocation3 + $0x17c] sm:$0xf0]  ;;  %v7750_v38 = vrot.slane %v7748_v63, 4  ;;  %v10884_v63 = vld [vmem:[#allocation3 + $0x14c] sm:$0xf] }
 0x433   : > { %7885 = vst.msk [vmem:[#allocation3 + $0x174] sm:$0xf] %vm1348_vm11, %v7808_v57  ;;  %v10428_v49 = vor.u32 %v10888_v30, %v10425_v33 }
 0x434   : > { %v7754_v28 = vor.u32 %v7753_v39, %v7750_v38 }
 0x435   : > { %9228 = vmatmul.bf16.gmra.mxu3 %v10392_v29  ;;  %v14718_v29 = vld [vmem:[%s15032_s4] ss:$0 sm:$0xff] }
 0x436   : > { %v7755_v33 = vrot.slane %v7754_v28, 4  ;;  %v9017_v61 = vadd.f32 %v14718_v29, %v13637_v50  ;;  %v10419_v50 = vld [vmem:[#allocation3 + $0x150] sm:$0xf]  ;;  %v9044_v53 = vadd.f32 %v14718_v29, %v14134_v35 }
 0x437   : > { %7207 = vrot.lane.b32.xlu0 %v7143_v48, %s11121_s10  ;;  %9149 = vmatmul.bf16.gmra.mxu2 %v10428_v49  ;;  %v10393_v55 = vld [vmem:[#allocation3 + $0x134] sm:$0xf0] }
 0x438   : > { %v7202_v42 = vpop.permute.xlu1 %7201  ;;  %v14705_v40 = vpop.f32.mrf.mxu1  ;;  %v10396_v21 = vor.u32 %v10879_v47, %v10393_v55  ;;  %v7760_v9 = vsel %vm11345_vm9, %v7755_v33, %v14688_v62  ;;  %v9106_v47 = vadd.f32 %v14673_v15, %v9017_v61  ;;  %v11023_v15 = vld [vmem:[%s11215_s9] sm:$0xf] }
 0x439   : > { %7270 = vst.msk [vmem:[#allocation3 + $0x224] sm:$0xf] %vm1348_vm11, %v7202_v42  ;;  %v7180_v60 = vpop.permute.xlu0 %7179  ;;  %v14708_v1 = vpop.f32.mrf.mxu2  ;;  %v10893_v42 = vld [vmem:[#allocation3 + $0x194] sm:$0xf]  ;;  %7831 = vrot.lane.b32.xlu2 %v7760_v9, %s11121_s10  ;;  %v9452_v39 = vunpack.c.l.bf16 %v11023_v15 }
 0x43a   : > { %7259 = vst.msk [vmem:[#allocation3 + $0x148] sm:$0xf] %vm1348_vm11, %v7180_v60  ;;  %v6358_v16 = vpop.permute.xlu2 %6357 }
 0x43b   : > { %10712 = vmatmul.msk.bf16.gmra.mxu1 %vm4365_vm15, %v10400_v5  ;;  %6432 = vst.msk [vmem:[#allocation3 + $0x1a8] sm:$0xf] %vm1348_vm11, %v6358_v16 }
 0x43d   : > { %9317 = vmatmul.bf16.gmra.mxu0 %v10396_v21  ;;  %v10887_v21 = vld [vmem:[#allocation3 + $0x160] sm:$0xf0] }
 0x43f   : > { %7833 = vrot.lane.b32.xlu0 %v7770_v14, %s11121_s10  ;;  %s9662_s10 = sshll.u32 %s215_s7, 8 }
 0x440   : > { %v6372_v13 = vpop.permute.xlu1 %6371  ;;  %v14721_v57 = vpop.f32.mrf.mxu1  ;;  %s14747_s8 = scalar_lea.vmem [#allocation4], %s9662_s10 }
 0x441   : > { %6439 = vst.msk [vmem:[#allocation3 + $0x234] sm:$0xf] %vm1348_vm11, %v6372_v13  ;;  %v7806_v46 = vpop.permute.xlu0 %7805  ;;  %v10411_v30 = vld [vmem:[#allocation3 + $0x148] sm:$0xf]  ;;  %v14724_v48 = vpop.f32.mrf.mxu2  ;;  %s9593_s17 = sshll.u32 %s14747_s8, 4  ;;  %s9594_s17 = int_to_ptr.vmem [resolvable:$true] %s9593_s17 }
 0x442   : > { %7884 = vst.msk [vmem:[#allocation3 + $0x160] sm:$0xf] %vm1348_vm11, %v7806_v46  ;;  %v10412_v49 = vor.u32 %v10886_v6, %v10411_v30  ;;  %v7812_v19 = vpop.permute.xlu2 %7811  ;;  %v10445_v7 = vld [vmem:[#allocation3 + $0x1a4] sm:$0xf0]  ;;  %v10420_v6 = vor.u32 %v10887_v21, %v10419_v50  ;;  %v9019_v46 = vadd.f32 %v14718_v29, %v13665_v58  ;;  %v10891_v58 = vld [vmem:[#allocation3 + $0x180] sm:$0xf0] }
 0x443   : > { %7887 = vst.msk [vmem:[#allocation3 + $0x19c] sm:$0xf] %vm1348_vm11, %v7812_v19  ;;  %v10448_v60 = vor.u32 %v10893_v42, %v10445_v7 }
 0x445   : > { %9233 = vmatmul.bf16.gmra.mxu3 %v10412_v49  ;;  %v9108_v49 = vadd.f32 %v14695_v22, %v9019_v46 }
 0x447   : > { %9154 = vmatmul.bf16.gmra.mxu2 %v10448_v60 }
 0x448   : > { %v9194_v55 = vpop.f32.mrf.mxu3  ;;  %v7206_v5 = vpop.permute.xlu1 %7205 }
 0x449   : > { %v9195_v62 = vadd.f32 %v9194_v55, %v9106_v47  ;;  %7272 = vst.msk [vmem:[#allocation3 + $0x24c] sm:$0xf] %vm1348_vm11, %v7206_v5  ;;  %v7184_v8 = vpop.permute.xlu0 %7183  ;;  %v10413_v0 = vld [vmem:[#allocation3 + $0x15c] sm:$0xf0]  ;;  %v9372_v38 = vpop.f32.mrf.mxu1  ;;  %v11024_v5 = vld [vmem:[%s11215_s9 + $0x4] sm:$0xf] }
 0x44a   : > { %v9283_v14 = vpop.f32.mrf.mxu0  ;;  %7261 = vst.msk [vmem:[#allocation3 + $0x170] sm:$0xf] %vm1348_vm11, %v7184_v8  ;;  %v14738_v28 = vpop.f32.mrf.mxu2  ;;  %v10416_v13 = vor.u32 %v10884_v63, %v10413_v0  ;;  %v9022_v8 = vadd.f32 %v14718_v29, %v13688_v11  ;;  %v10898_v0 = vld [vmem:[#allocation3 + $0x1bc] sm:$0xf] }
 0x44b   : > { %v9284_v16 = vadd.f32 %v9283_v14, %v9195_v62  ;;  %10713 = vmatmul.msk.bf16.gmra.mxu1 %vm4365_vm15, %v10420_v6  ;;  %v6362_v33 = vpop.permute.xlu2 %6361  ;;  %v9453_v62 = vunpack.c.l.bf16 %v11024_v5  ;;  %v10892_v6 = vld [vmem:[#allocation3 + $0x188] sm:$0xf0] }
 0x44c   : > { %6434 = vst.msk [vmem:[#allocation3 + $0x1d0] sm:$0xf] %vm1348_vm11, %v6362_v33  ;;  %v9111_v15 = vadd.f32 %v14708_v1, %v9022_v8 }
 0x44d   : > { %v9373_v30 = vadd.f32 %v9372_v38, %v9284_v16  ;;  %9322 = vmatmul.bf16.gmra.mxu0 %v10416_v13 }
 0x44f   : > { %v9484_v9 = vadd.f32 %v9452_v39, %v9373_v30 }
 0x450   : > { %v9196_v61 = vpop.f32.mrf.mxu3  ;;  %v10916_v35 = vld [vmem:[#allocation3 + $0x248] sm:$0xf0] }
 0x451   : > { %v9516_v19 = vmax.f32 %v9484_v9, 0.0  ;;  %v9197_v42 = vadd.f32 %v9196_v61, %v9108_v49  ;;  %v7810_v7 = vpop.permute.xlu0 %7809  ;;  %v10431_v47 = vld [vmem:[#allocation3 + $0x170] sm:$0xf]  ;;  %v9374_v21 = vpop.f32.mrf.mxu1  ;;  %v10439_v49 = vld [vmem:[#allocation3 + $0x178] sm:$0xf] }
 0x452   : > { %v9285_v60 = vpop.f32.mrf.mxu0  ;;  %v14752_v50 = vpop.f32.mrf.mxu2  ;;  %v10432_v22 = vor.u32 %v10891_v58, %v10431_v47  ;;  %7886 = vst.msk [vmem:[#allocation3 + $0x188] sm:$0xf] %vm1348_vm11, %v7810_v7  ;;  %v10440_v1 = vor.u32 %v10892_v6, %v10439_v49 }
 0x453   : > { %9548 = vst.msk [vmem:[%s14747_s8] sm:$0xff] %vm4365_vm15, %v9516_v19  ;;  %v9286_v55 = vadd.f32 %v9285_v60, %v9197_v42  ;;  %v7816_v63 = vpop.permute.xlu2 %7815  ;;  %v10465_v16 = vld [vmem:[#allocation3 + $0x1cc] sm:$0xf0]  ;;  %v10889_v60 = vld [vmem:[#allocation3 + $0x174] sm:$0xf] }
 0x454   : > { %7889 = vst.msk [vmem:[#allocation3 + $0x1c4] sm:$0xf] %vm1348_vm11, %v7816_v63  ;;  %v10468_v38 = vor.u32 %v10898_v0, %v10465_v16  ;;  %v11025_v19 = vld [vmem:[%s11215_s9 + $0x8] sm:$0xf] }
 0x455   : > { %v9375_v14 = vadd.f32 %v9374_v21, %v9286_v55  ;;  %9238 = vmatmul.bf16.gmra.mxu3 %v10432_v22  ;;  %v9454_v42 = vunpack.c.l.bf16 %v11025_v19  ;;  %v9024_v55 = vadd.f32 %v14718_v29, %v13721_v44 }
 0x457   : > { %v9485_v39 = vadd.f32 %v9453_v62, %v9375_v14  ;;  %9159 = vmatmul.bf16.gmra.mxu2 %v10468_v38  ;;  %v9113_v62 = vadd.f32 %v14724_v48, %v9024_v55 }
 0x458   : > { %v9199_v13 = vpop.f32.mrf.mxu3 }
 0x459   : > { %v9517_v46 = vmax.f32 %v9485_v39, 0.0  ;;  %v9200_v30 = vadd.f32 %v9199_v13, %v9111_v15  ;;  %v7188_v33 = vpop.permute.xlu0 %7187  ;;  %v9377_v61 = vpop.f32.mrf.mxu1  ;;  %v10433_v47 = vld [vmem:[#allocation3 + $0x184] sm:$0xf0]  ;;  %v11026_v15 = vld [vmem:[%s11215_s9 + $0xc] sm:$0xf] }
 0x45a   : > { %v9288_v11 = vpop.f32.mrf.mxu0  ;;  %v14762_v7 = vpop.f32.mrf.mxu2  ;;  %7263 = vst.msk [vmem:[#allocation3 + $0x198] sm:$0xf] %vm1348_vm11, %v7188_v33  ;;  %v10436_v58 = vor.u32 %v10889_v60, %v10433_v47  ;;  %v9455_v39 = vunpack.c.l.bf16 %v11026_v15  ;;  %v6489_v33 = vld [vmem:[#allocation2 + $0xc4] sm:$0xf] }
 0x45b   : > { %9549 = vst.msk [vmem:[%s14747_s8 + $0x8] sm:$0xff] %vm4365_vm15, %v9517_v46  ;;  %v9289_v9 = vadd.f32 %v9288_v11, %v9200_v30  ;;  %10714 = vmatmul.msk.bf16.gmra.mxu1 %vm4365_vm15, %v10440_v1  ;;  %v6366_v5 = vpop.permute.xlu2 %6365  ;;  %v10896_v46 = vld [vmem:[#allocation3 + $0x1a8] sm:$0xf0]  ;;  %v9027_v30 = vadd.f32 %v14718_v29, %v13758_v18  ;;  %v6490_v11 = vld [vmem:[#allocation2 + $0xc8] sm:$0x1]  ;;  %v6865_v60 = vshrl.u32 %v6489_v33, 16 }
 0x45c   : > { %6436 = vst.msk [vmem:[#allocation3 + $0x1f8] sm:$0xf] %vm1348_vm11, %v6366_v5  ;;  %v10897_v18 = vld [vmem:[#allocation3 + $0x1b0] sm:$0xf0]  ;;  %v6871_v5 = vshll.u32 %v6490_v11, 16 }
 0x45d   : > { %v9378_v21 = vadd.f32 %v9377_v61, %v9289_v9  ;;  %9327 = vmatmul.bf16.gmra.mxu0 %v10436_v58  ;;  %v10903_v61 = vld [vmem:[#allocation3 + $0x1e4] sm:$0xf]  ;;  %v9116_v47 = vadd.f32 %v14738_v28, %v9027_v30 }
 0x45f   : > { %v9486_v22 = vadd.f32 %v9454_v42, %v9378_v21  ;;  %v6861_v42 = vshll.u32 %v6489_v33, 16  ;;  %v6867_v21 = vrot.slane %v6865_v60, 4  ;;  %v6873_v33 = vrot.slane %v6871_v5, 5 }
 0x460   : > { %v9201_v8 = vpop.f32.mrf.mxu3 }
 0x461   : > { %v9518_v14 = vmax.f32 %v9486_v22, 0.0  ;;  %v9202_v63 = vadd.f32 %v9201_v8, %v9113_v62  ;;  %v7814_v0 = vpop.permute.xlu0 %7813  ;;  %v9379_v44 = vpop.f32.mrf.mxu1  ;;  %v10451_v6 = vld [vmem:[#allocation3 + $0x198] sm:$0xf]  ;;  %v14780_v55 = vrot.slane %v6861_v42, 5 }
 0x462   : > { %v9290_v16 = vpop.f32.mrf.mxu0  ;;  %v14773_v13 = vpop.f32.mrf.mxu2  ;;  %7888 = vst.msk [vmem:[#allocation3 + $0x1b0] sm:$0xf] %vm1348_vm11, %v7814_v0  ;;  %v10452_v48 = vor.u32 %v10896_v46, %v10451_v6 }
 0x463   : > { %9550 = vst.msk [vmem:[%s14747_s8 + $0x10] sm:$0xff] %vm4365_vm15, %v9518_v14  ;;  %v9291_v38 = vadd.f32 %v9290_v16, %v9202_v63  ;;  %v7820_v9 = vpop.permute.xlu2 %7819  ;;  %v10485_v19 = vld [vmem:[#allocation3 + $0x1f4] sm:$0xf0]  ;;  %v10459_v14 = vld [vmem:[#allocation3 + $0x1a0] sm:$0xf]  ;;  %v6868_v63 = vor.u32 %v6867_v21, %v14780_v55 }
 0x464   : > { %7891 = vst.msk [vmem:[#allocation3 + $0x1ec] sm:$0xf] %vm1348_vm11, %v7820_v9  ;;  %v10488_v1 = vor.u32 %v10903_v61, %v10485_v19  ;;  %v10894_v16 = vld [vmem:[#allocation3 + $0x19c] sm:$0xf]  ;;  %v9029_v9 = vadd.f32 %v14718_v29, %v13808_v23 }
 0x465   : > { %v9380_v49 = vadd.f32 %v9379_v44, %v9291_v38  ;;  %9243 = vmatmul.bf16.gmra.mxu3 %v10452_v48  ;;  %v10460_v38 = vor.u32 %v10897_v18, %v10459_v14  ;;  %v6869_v48 = vrot.slane %v6868_v63, 4 }
 0x466   : > { %v9118_v60 = vadd.f32 %v14752_v50, %v9029_v9 }
 0x467   : > { %v9487_v58 = vadd.f32 %v9455_v39, %v9380_v49  ;;  %9164 = vmatmul.bf16.gmra.mxu2 %v10488_v1  ;;  %v11027_v39 = vld [vmem:[%s11215_s9 + $0x10] sm:$0xf]  ;;  %v7303_v49 = vld [vmem:[#allocation2 + $0xc0] sm:$0xf]  ;;  %v6874_v42 = vsel %vm11345_vm9, %v6869_v48, %v6873_v33  ;;  %v10902_v33 = vld [vmem:[#allocation3 + $0x1d8] sm:$0xf0] }
 0x468   : > { %v9204_v62 = vpop.f32.mrf.mxu3  ;;  %v9456_v6 = vunpack.c.l.bf16 %v11027_v39  ;;  %7335 = vst.msk [vmem:[#allocation3 + $0x23c] sm:$0xf] %vm256_vm0, %v7303_v49 }
 0x469   : > { %v9519_v22 = vmax.f32 %v9487_v58, 0.0  ;;  %v9205_v8 = vadd.f32 %v9204_v62, %v9116_v47  ;;  %v7192_v28 = vpop.permute.xlu0 %7191  ;;  %v9382_v15 = vpop.f32.mrf.mxu1  ;;  %v10453_v30 = vld [vmem:[#allocation3 + $0x1ac] sm:$0xf0]  ;;  %6938 = vst.msk [vmem:[#allocation3 + $0x274] sm:$0xf] %vm256_vm0, %v6874_v42 }
 0x46a   : > { %v9293_v0 = vpop.f32.mrf.mxu0  ;;  %v14786_v46 = vpop.f32.mrf.mxu2  ;;  %7265 = vst.msk [vmem:[#allocation3 + $0x1c0] sm:$0xf] %vm1348_vm11, %v7192_v28  ;;  %v10456_v11 = vor.u32 %v10894_v16, %v10453_v30  ;;  %v10901_v28 = vld [vmem:[#allocation3 + $0x1d0] sm:$0xf0] }
 0x46b   : > { %9551 = vst.msk [vmem:[%s14747_s8 + $0x18] sm:$0xff] %vm4365_vm15, %v9519_v22  ;;  %v9294_v44 = vadd.f32 %v9293_v0, %v9205_v8  ;;  %10715 = vmatmul.msk.bf16.gmra.mxu1 %vm4365_vm15, %v10460_v38  ;;  %v6370_v19 = vpop.permute.xlu2 %6369  ;;  %v11028_v22 = vld [vmem:[%s11215_s9 + $0x14] sm:$0xf]  ;;  %v9032_v0 = vadd.f32 %v14718_v29, %v13862_v3 }
 0x46c   : > { %6438 = vst.msk [vmem:[#allocation3 + $0x220] sm:$0xf] %vm1348_vm11, %v6370_v19  ;;  %v9457_v8 = vunpack.c.l.bf16 %v11028_v22 }
 0x46d   : > { %v9383_v61 = vadd.f32 %v9382_v15, %v9294_v44  ;;  %9332 = vmatmul.bf16.gmra.mxu0 %v10456_v11  ;;  %v10908_v44 = vld [vmem:[#allocation3 + $0x20c] sm:$0xf] }
 0x46f   : > { %v9488_v47 = vadd.f32 %v9456_v6, %v9383_v61  ;;  %v9121_v6 = vadd.f32 %v14762_v7, %v9032_v0  ;;  %v10479_v61 = vld [vmem:[#allocation3 + $0x1c8] sm:$0xf] }
 0x470   : > { %v9206_v23 = vpop.f32.mrf.mxu3 }
 0x471   : > { %v9520_v1 = vmax.f32 %v9488_v47, 0.0  ;;  %v9207_v58 = vadd.f32 %v9206_v23, %v9118_v60  ;;  %v7818_v18 = vpop.permute.xlu0 %7817  ;;  %v9384_v62 = vpop.f32.mrf.mxu1  ;;  %v10471_v63 = vld [vmem:[#allocation3 + $0x1c0] sm:$0xf] }
 0x472   : > { %v9295_v21 = vpop.f32.mrf.mxu0  ;;  %v14801_v14 = vpop.f32.mrf.mxu2  ;;  %7890 = vst.msk [vmem:[#allocation3 + $0x1d8] sm:$0xf] %vm1348_vm11, %v7818_v18  ;;  %v10472_v50 = vor.u32 %v10901_v28, %v10471_v63  ;;  %v11029_v47 = vld [vmem:[%s11215_s9 + $0x18] sm:$0xf]  ;;  %v10480_v18 = vor.u32 %v10902_v33, %v10479_v61  ;;  %v7304_v61 = vld [vmem:[#allocation2 + $0xc4] sm:$0xf] }
 0x473   : > { %9552 = vst.msk [vmem:[%s14747_s8 + $0x20] sm:$0xff] %vm4365_vm15, %v9520_v1  ;;  %v9296_v5 = vadd.f32 %v9295_v21, %v9207_v58  ;;  %v7824_v38 = vpop.permute.xlu2 %7823  ;;  %v10505_v15 = vld [vmem:[#allocation3 + $0x21c] sm:$0xf0]  ;;  %v9458_v23 = vunpack.c.l.bf16 %v11029_v47  ;;  %v10899_v1 = vld [vmem:[#allocation3 + $0x1c4] sm:$0xf] }
 0x474   : > { %7893 = vst.msk [vmem:[#allocation3 + $0x214] sm:$0xf] %vm1348_vm11, %v7824_v38  ;;  %v10508_v39 = vor.u32 %v10908_v44, %v10505_v15  ;;  %v11030_v15 = vld [vmem:[%s11215_s9 + $0x1c] sm:$0xf] }
 0x475   : > { %v9385_v16 = vadd.f32 %v9384_v62, %v9296_v5  ;;  %9248 = vmatmul.bf16.gmra.mxu3 %v10472_v50  ;;  %v9034_v5 = vadd.f32 %v14718_v29, %v13916_v37  ;;  %7336 = vst.msk [vmem:[#allocation3 + $0x250] sm:$0xf] %vm256_vm0, %v7304_v61 }
 0x477   : > { %v9489_v30 = vadd.f32 %v9457_v8, %v9385_v16  ;;  %9169 = vmatmul.bf16.gmra.mxu2 %v10508_v39  ;;  %v9123_v8 = vadd.f32 %v14773_v13, %v9034_v5  ;;  %v9459_v39 = vunpack.c.l.bf16 %v11030_v15  ;;  %v9037_v13 = vadd.f32 %v14718_v29, %v13971_v52  ;;  %v10907_v52 = vld [vmem:[#allocation3 + $0x200] sm:$0xf0]  ;;  %v10499_v5 = vld [vmem:[#allocation3 + $0x1f0] sm:$0xf] }
 0x478   : > { %v9209_v48 = vpop.f32.mrf.mxu3 }
 0x479   : > { %v9521_v11 = vmax.f32 %v9489_v30, 0.0  ;;  %v9210_v49 = vadd.f32 %v9209_v48, %v9121_v6  ;;  %v7196_v9 = vpop.permute.xlu0 %7195  ;;  %v9387_v60 = vpop.f32.mrf.mxu1  ;;  %v10473_v58 = vld [vmem:[#allocation3 + $0x1d4] sm:$0xf0]  ;;  %v10906_v48 = vld [vmem:[#allocation3 + $0x1f8] sm:$0xf0] }
 0x47a   : > { %v9298_v3 = vpop.f32.mrf.mxu0  ;;  %v6376_v19 = vpop.permute.xlu1 %6375  ;;  %v10476_v21 = vor.u32 %v10899_v1, %v10473_v58  ;;  %7267 = vst.msk [vmem:[#allocation3 + $0x1e8] sm:$0xf] %vm1348_vm11, %v7196_v9  ;;  %v10913_v9 = vld [vmem:[#allocation3 + $0x234] sm:$0xf] }
 0x47b   : > { %9553 = vst.msk [vmem:[%s14747_s8 + $0x28] sm:$0xff] %vm4365_vm15, %v9521_v11  ;;  %v9299_v42 = vadd.f32 %v9298_v3, %v9210_v49  ;;  %v14812_v7 = vpop.f32.mrf.mxu2  ;;  %10716 = vmatmul.msk.bf16.gmra.mxu1 %vm4365_vm15, %v10480_v18  ;;  %v6374_v22 = vpop.permute.xlu2 %6373 }
 0x47c   : > { %6441 = vst.msk [vmem:[#allocation3 + $0x25c] sm:$0xf] %vm1348_vm11, %v6376_v19 }
 0x47d   : > { %v9388_v62 = vadd.f32 %v9387_v60, %v9299_v42  ;;  %9337 = vmatmul.bf16.gmra.mxu0 %v10476_v21  ;;  %6440 = vst.msk [vmem:[#allocation3 + $0x248] sm:$0xf] %vm1348_vm11, %v6374_v22  ;;  %v9126_v42 = vadd.f32 %v14786_v46, %v9037_v13  ;;  %v11031_v22 = vld [vmem:[%s11215_s9 + $0x20] sm:$0xf] }
 0x47f   : > { %v9490_v63 = vadd.f32 %v9458_v23, %v9388_v62 }
 0x480   : > { %v9211_v28 = vpop.f32.mrf.mxu3 }
 0x481   : > { %v9522_v50 = vmax.f32 %v9490_v63, 0.0  ;;  %v9212_v0 = vadd.f32 %v9211_v28, %v9123_v8  ;;  %v7822_v16 = vpop.permute.xlu0 %7821  ;;  %v9389_v44 = vpop.f32.mrf.mxu1  ;;  %v10491_v30 = vld [vmem:[#allocation3 + $0x1e8] sm:$0xf]  ;;  %v9460_v8 = vunpack.c.l.bf16 %v11031_v22  ;;  %v10904_v63 = vld [vmem:[#allocation3 + $0x1ec] sm:$0xf] }
 0x482   : > { %v9300_v38 = vpop.f32.mrf.mxu0  ;;  %7892 = vst.msk [vmem:[#allocation3 + $0x200] sm:$0xf] %vm1348_vm11, %v7822_v16  ;;  %v10492_v11 = vor.u32 %v10906_v48, %v10491_v30 }
 0x483   : > { %9554 = vst.msk [vmem:[%s14747_s8 + $0x30] sm:$0xff] %vm4365_vm15, %v9522_v50  ;;  %v9301_v37 = vadd.f32 %v9300_v38, %v9212_v0  ;;  %v14824_v6 = vpop.f32.mrf.mxu2  ;;  %v7828_v49 = vpop.permute.xlu2 %7827  ;;  %v10500_v50 = vor.u32 %v10907_v52, %v10499_v5  ;;  %v6488_v38 = vld [vmem:[#allocation2 + $0xc0] sm:$0xf] }
 0x484   : > { %v10525_v3 = vld [vmem:[#allocation3 + $0x244] sm:$0xf0]  ;;  %7895 = vst.msk [vmem:[#allocation3 + $0x23c] sm:$0xf] %vm1348_vm11, %v7828_v49  ;;  %v6855_v30 = vshll.u32 %v6488_v38, 16 }
 0x485   : > { %v9390_v33 = vadd.f32 %v9389_v44, %v9301_v37  ;;  %v10528_v19 = vor.u32 %v10913_v9, %v10525_v3  ;;  %9253 = vmatmul.bf16.gmra.mxu3 %v10492_v11  ;;  %v9039_v37 = vadd.f32 %v14718_v29, %v14021_v17  ;;  %v7941_v5 = vld [vmem:[#allocation2 + $0xc0] sm:$0xe] }
 0x486   : > { %v6857_v11 = vrot.slane %v6855_v30, 5 }
 0x487   : > { %v9491_v60 = vadd.f32 %v9459_v39, %v9390_v33  ;;  %v7210_v47 = vpop.permute.xlu1 %7209  ;;  %9174 = vmatmul.bf16.gmra.mxu2 %v10528_v19  ;;  %v6852_v39 = vshrl.u32 %v6488_v38, 16  ;;  %v9128_v48 = vadd.f32 %v14801_v14, %v9039_v37 }
 0x488   : > { %v9214_v23 = vpop.f32.mrf.mxu3  ;;  %7274 = vst.msk [vmem:[#allocation3 + $0x274] sm:$0xf] %vm1348_vm11, %v7210_v47  ;;  %v11032_v47 = vld [vmem:[%s11215_s9 + $0x24] sm:$0xf] }
 0x489   : > { %v9523_v1 = vmax.f32 %v9491_v60, 0.0  ;;  %v9215_v58 = vadd.f32 %v9214_v23, %v9126_v42  ;;  %v7200_v18 = vpop.permute.xlu0 %7199  ;;  %v9392_v46 = vpop.f32.mrf.mxu1  ;;  %v10493_v28 = vld [vmem:[#allocation3 + $0x1fc] sm:$0xf0]  ;;  %v6854_v33 = vrot.slane %v6852_v39, 4  ;;  %v9461_v23 = vunpack.c.l.bf16 %v11032_v47 }
 0x48a   : > { %v9303_v21 = vpop.f32.mrf.mxu0  ;;  %7269 = vst.msk [vmem:[#allocation3 + $0x210] sm:$0xf] %vm1348_vm11, %v7200_v18  ;;  %v10496_v16 = vor.u32 %v10904_v63, %v10493_v28  ;;  %v7943_v63 = vld [vmem:[#allocation2 + $0xc8] sm:$0x1]  ;;  %v9042_v28 = vadd.f32 %v14718_v29, %v14083_v36 }
 0x48b   : > { %9555 = vst.msk [vmem:[%s14747_s8 + $0x38] sm:$0xff] %vm4365_vm15, %v9523_v1  ;;  %v9304_v62 = vadd.f32 %v9303_v21, %v9215_v58  ;;  %v14836_v0 = vpop.f32.mrf.mxu2  ;;  %10717 = vmatmul.msk.bf16.gmra.mxu1 %vm4365_vm15, %v10500_v50  ;;  %v6378_v15 = vpop.permute.xlu2 %6377  ;;  %v6858_v17 = vor.u32 %v6857_v11, %v6854_v33  ;;  %v10911_v1 = vld [vmem:[#allocation3 + $0x220] sm:$0xf0]  ;;  %v10918_v21 = vld [vmem:[#allocation3 + $0x25c] sm:$0xf]  ;;  %v8098_v39 = vrot.slane %v7943_v63, 5 }
 0x48c   : > { %6442 = vst.msk [vmem:[#allocation3 + $0x270] sm:$0xf] %vm1348_vm11, %v6378_v15  ;;  %v10912_v15 = vld [vmem:[#allocation3 + $0x228] sm:$0xf0]  ;;  %v10519_v11 = vld [vmem:[#allocation3 + $0x218] sm:$0xf] }
 0x48d   : > { %v9393_v44 = vadd.f32 %v9392_v46, %v9304_v62  ;;  %9342 = vmatmul.bf16.gmra.mxu0 %v10496_v16  ;;  %v6859_v58 = vrot.slane %v6858_v17, 4  ;;  %v10239_v16 = vrot.slane %v7941_v5, 9  ;;  %v10520_v17 = vor.u32 %v10912_v15, %v10519_v11 }
 0x48f   : > { %v9492_v13 = vadd.f32 %v9460_v8, %v9393_v44  ;;  %v6864_v22 = vsel %vm11345_vm9, %v6859_v58, %v14780_v55  ;;  %v7942_v8 = vld [vmem:[#allocation2 + $0xc4] sm:$0xf]  ;;  %v9131_v44 = vadd.f32 %v14812_v7, %v9042_v28  ;;  %v11034_v28 = vld [vmem:[%s11215_s9 + $0x2c] sm:$0xf] }
 0x490   : > { %v9216_v49 = vpop.f32.mrf.mxu3  ;;  %6937 = vst.msk [vmem:[#allocation3 + $0x260] sm:$0xf] %vm256_vm0, %v6864_v22  ;;  %v8095_v38 = vrot.slane %v7942_v8, 5 }
 0x491   : > { %v9524_v9 = vmax.f32 %v9492_v13, 0.0  ;;  %v9217_v3 = vadd.f32 %v9216_v49, %v9128_v48  ;;  %v7826_v61 = vpop.permute.xlu0 %7825  ;;  %v9394_v60 = vpop.f32.mrf.mxu1  ;;  %v10511_v52 = vld [vmem:[#allocation3 + $0x210] sm:$0xf] }
 0x492   : > { %v9305_v19 = vpop.f32.mrf.mxu0  ;;  %7894 = vst.msk [vmem:[#allocation3 + $0x228] sm:$0xf] %vm1348_vm11, %v7826_v61  ;;  %v10512_v18 = vor.u32 %v10911_v1, %v10511_v52  ;;  %v8096_v59 = vsel %vm11775_vm14, %v10239_v16, %v8095_v38  ;;  %v8097_v55 = vrot.slane %v8095_v38, 4  ;;  %v9133_v1 = vadd.f32 %v14824_v6, %v9044_v53 }
 0x493   : > { %9556 = vst.msk [vmem:[%s14747_s8 + $0x40] sm:$0xff] %vm4365_vm15, %v9524_v9  ;;  %v9306_v42 = vadd.f32 %v9305_v19, %v9217_v3  ;;  %v14847_v14 = vpop.f32.mrf.mxu2  ;;  %v10545_v46 = vld [vmem:[#allocation3 + $0x26c] sm:$0xf0]  ;;  %v10909_v9 = vld [vmem:[#allocation3 + $0x214] sm:$0xf]  ;;  %v7832_v52 = vpop.permute.xlu2 %7831  ;;  %v9047_v38 = vadd.f32 %v14718_v29, %v14185_v41 }
 0x494   : > { %v10548_v50 = vor.u32 %v10918_v21, %v10545_v46  ;;  %8167 = vst.msk [vmem:[#allocation3 + $0x240] sm:$0xf] %vm256_vm0, %v8096_v59  ;;  %v8099_v49 = vsel %vm11775_vm14, %v8097_v55, %v8098_v39  ;;  %v11033_v19 = vld [vmem:[%s11215_s9 + $0x28] sm:$0xf]  ;;  %v10914_v39 = vld [vmem:[#allocation3 + $0x23c] sm:$0xf] }
 0x495   : > { %v9395_v62 = vadd.f32 %v9394_v60, %v9306_v42  ;;  %9258 = vmatmul.bf16.gmra.mxu3 %v10512_v18  ;;  %v9462_v42 = vunpack.c.l.bf16 %v11033_v19  ;;  %8168 = vst.msk [vmem:[#allocation3 + $0x254] sm:$0xf] %vm256_vm0, %v8099_v49 }
 0x496   : > { %7897 = vst.msk [vmem:[#allocation3 + $0x264] sm:$0xf] %vm1348_vm11, %v7832_v52 }
 0x497   : > { %v9493_v37 = vadd.f32 %v9461_v23, %v9395_v62  ;;  %9179 = vmatmul.bf16.gmra.mxu2 %v10548_v50  ;;  %v9463_v50 = vunpack.c.l.bf16 %v11034_v28  ;;  %v10922_v28 = vld [vmem:[#allocation3 + $0x278] sm:$0xf0] }
 0x498   : > { %v9219_v36 = vpop.f32.mrf.mxu3 }
 0x499   : > { %v9525_v30 = vmax.f32 %v9493_v37, 0.0  ;;  %v9220_v48 = vadd.f32 %v9219_v36, %v9131_v44  ;;  %v7204_v13 = vpop.permute.xlu0 %7203  ;;  %v9397_v7 = vpop.f32.mrf.mxu1  ;;  %v10513_v3 = vld [vmem:[#allocation3 + $0x224] sm:$0xf0]  ;;  %v9136_v44 = vadd.f32 %v14836_v0, %v9047_v38  ;;  %v11035_v0 = vld [vmem:[%s11215_s9 + $0x30] sm:$0xf] }
 0x49a   : > { %v9308_v33 = vpop.f32.mrf.mxu0  ;;  %7271 = vst.msk [vmem:[#allocation3 + $0x238] sm:$0xf] %vm1348_vm11, %v7204_v13  ;;  %v10516_v47 = vor.u32 %v10909_v9, %v10513_v3  ;;  %v9464_v3 = vunpack.c.l.bf16 %v11035_v0 }
 0x49b   : > { %9557 = vst.msk [vmem:[%s14747_s8 + $0x48] sm:$0xff] %vm4365_vm15, %v9525_v30  ;;  %v9309_v61 = vadd.f32 %v9308_v33, %v9220_v48  ;;  %v14865_v60 = vpop.f32.mrf.mxu2  ;;  %10718 = vmatmul.msk.bf16.gmra.mxu1 %vm4365_vm15, %v10520_v17  ;;  %v10539_v11 = vld [vmem:[#allocation3 + $0x240] sm:$0xf] }
 0x49c   : > { %v10917_v59 = vld [vmem:[#allocation3 + $0x250] sm:$0xf0] }
 0x49d   : > { %v9398_v23 = vadd.f32 %v9397_v7, %v9309_v61  ;;  %9347 = vmatmul.bf16.gmra.mxu0 %v10516_v47  ;;  %v10540_v7 = vor.u32 %v10917_v59, %v10539_v11  ;;  %v9049_v61 = vadd.f32 %v14718_v29, %v14233_v51  ;;  %v10919_v38 = vld [vmem:[#allocation3 + $0x264] sm:$0xf] }
 0x49f   : > { %v9494_v58 = vadd.f32 %v9462_v42, %v9398_v23  ;;  %v9138_v42 = vadd.f32 %v14847_v14, %v9049_v61  ;;  %v9052_v14 = vadd.f32 %v14718_v29, %v14292_v2 }
 0x4a0   : > { %v9221_v18 = vpop.f32.mrf.mxu3 }
 0x4a1   : > { %v9526_v21 = vmax.f32 %v9494_v58, 0.0  ;;  %v9222_v5 = vadd.f32 %v9221_v18, %v9133_v1  ;;  %v7830_v62 = vpop.permute.xlu0 %7829  ;;  %v9399_v22 = vpop.f32.mrf.mxu1  ;;  %v10531_v8 = vld [vmem:[#allocation3 + $0x238] sm:$0xf] }
 0x4a2   : > { %v9310_v46 = vpop.f32.mrf.mxu0  ;;  %7896 = vst.msk [vmem:[#allocation3 + $0x250] sm:$0xf] %vm1348_vm11, %v7830_v62  ;;  %v10532_v6 = vor.u32 %v10916_v35, %v10531_v8 }
 0x4a3   : > { %9558 = vst.msk [vmem:[%s14747_s8 + $0x50] sm:$0xff] %vm4365_vm15, %v9526_v21  ;;  %v9311_v63 = vadd.f32 %v9310_v46, %v9222_v5  ;;  %v14877_v16 = vpop.f32.mrf.mxu2  ;;  %v10921_v21 = vld [vmem:[#allocation3 + $0x270] sm:$0xf0]  ;;  %v11036_v46 = vld [vmem:[%s11215_s9 + $0x34] sm:$0xf] }
 0x4a5   : > { %v9400_v37 = vadd.f32 %v9399_v22, %v9311_v63  ;;  %9263 = vmatmul.bf16.gmra.mxu3 %v10532_v6  ;;  %v9465_v22 = vunpack.c.l.bf16 %v11036_v46  ;;  %v10559_v63 = vld [vmem:[#allocation3 + $0x268] sm:$0xf] }
 0x4a7   : > { %v9495_v15 = vadd.f32 %v9463_v50, %v9400_v37  ;;  %v9141_v50 = vadd.f32 %v14865_v60, %v9052_v14  ;;  %v9054_v60 = vadd.f32 %v14718_v29, %v14340_v12  ;;  %v9057_v12 = vadd.f32 %v14718_v29, %v14398_v4 }
 0x4a8   : > { %v9224_v55 = vpop.f32.mrf.mxu3 }
 0x4a9   : > { %v9527_v30 = vmax.f32 %v9495_v15, 0.0  ;;  %v9225_v36 = vadd.f32 %v9224_v55, %v9136_v44  ;;  %v7208_v48 = vpop.permute.xlu0 %7207  ;;  %v10533_v33 = vld [vmem:[#allocation3 + $0x24c] sm:$0xf0]  ;;  %v9402_v49 = vpop.f32.mrf.mxu1  ;;  %v10560_v44 = vor.u32 %v10922_v28, %v10559_v63 }
 0x4aa   : > { %v9313_v13 = vpop.f32.mrf.mxu0  ;;  %7273 = vst.msk [vmem:[#allocation3 + $0x260] sm:$0xf] %vm1348_vm11, %v7208_v48  ;;  %v10536_v41 = vor.u32 %v10914_v39, %v10533_v33  ;;  %v11037_v48 = vld [vmem:[%s11215_s9 + $0x38] sm:$0xf] }
 0x4ab   : > { %9559 = vst.msk [vmem:[%s14747_s8 + $0x58] sm:$0xff] %vm4365_vm15, %v9527_v30  ;;  %v9314_v9 = vadd.f32 %v9313_v13, %v9225_v36  ;;  %v9145_v17 = vpop.f32.mrf.mxu2  ;;  %10719 = vmatmul.msk.bf16.gmra.mxu1 %vm4365_vm15, %v10540_v7  ;;  %v9466_v13 = vunpack.c.l.bf16 %v11037_v48 }
 0x4ad   : > { %v9403_v19 = vadd.f32 %v9402_v49, %v9314_v9  ;;  %9352 = vmatmul.bf16.gmra.mxu0 %v10536_v41  ;;  %v9143_v49 = vadd.f32 %v14877_v16, %v9054_v60 }
 0x4af   : > { %v9496_v47 = vadd.f32 %v9464_v3, %v9403_v19 }
 0x4b0   : > { %v9226_v53 = vpop.f32.mrf.mxu3 }
 0x4b1   : > { %v9528_v23 = vmax.f32 %v9496_v47, 0.0  ;;  %v9227_v52 = vadd.f32 %v9226_v53, %v9138_v42  ;;  %v7834_v1 = vpop.permute.xlu0 %7833  ;;  %v10551_v18 = vld [vmem:[#allocation3 + $0x260] sm:$0xf]  ;;  %v9404_v5 = vpop.f32.mrf.mxu1  ;;  %v11038_v42 = vld [vmem:[%s11215_s9 + $0x3c] sm:$0xf] }
 0x4b2   : > { %v9315_v58 = vpop.f32.mrf.mxu0  ;;  %7898 = vst.msk [vmem:[#allocation3 + $0x278] sm:$0xf] %vm1348_vm11, %v7834_v1  ;;  %v10552_v62 = vor.u32 %v10921_v21, %v10551_v18  ;;  %v9467_v47 = vunpack.c.l.bf16 %v11038_v42 }
 0x4b3   : > { %9560 = vst.msk [vmem:[%s14747_s8 + $0x60] sm:$0xff] %vm4365_vm15, %v9528_v23  ;;  %v9316_v51 = vadd.f32 %v9315_v58, %v9227_v52  ;;  %v9147_v8 = vpop.f32.mrf.mxu2  ;;  %v9146_v52 = vadd.f32 %v9145_v17, %v9057_v12  ;;  %v11042_v12 = vld [vmem:[%s11215_s9 + $0x4c] sm:$0xf] }
 0x4b5   : > { %v9405_v35 = vadd.f32 %v9404_v5, %v9316_v51  ;;  %9268 = vmatmul.bf16.gmra.mxu3 %v10552_v62  ;;  %v11039_v51 = vld [vmem:[%s11215_s9 + $0x40] sm:$0xf] }
 0x4b6   : > { %v9468_v46 = vunpack.c.l.bf16 %v11039_v51  ;;  %v11043_v51 = vld [vmem:[%s11215_s9 + $0x50] sm:$0xf] }
 0x4b7   : > { %v9497_v6 = vadd.f32 %v9465_v22, %v9405_v35  ;;  %v9059_v22 = vadd.f32 %v14718_v29, %v14434_v31 }
 0x4b8   : > { %v9229_v37 = vpop.f32.mrf.mxu3 }
 0x4b9   : > { %v9529_v15 = vmax.f32 %v9497_v6, 0.0  ;;  %v9230_v59 = vadd.f32 %v9229_v37, %v9141_v50  ;;  %v10553_v39 = vld [vmem:[#allocation3 + $0x274] sm:$0xf0]  ;;  %v9407_v30 = vpop.f32.mrf.mxu1  ;;  %v9148_v14 = vadd.f32 %v9147_v8, %v9059_v22  ;;  %v9069_v22 = vadd.f32 %v14718_v29, %v14533_v24 }
 0x4ba   : > { %v9318_v55 = vpop.f32.mrf.mxu0  ;;  %v10556_v36 = vor.u32 %v10919_v38, %v10553_v39 }
 0x4bb   : > { %9561 = vst.msk [vmem:[%s14747_s8 + $0x68] sm:$0xff] %vm4365_vm15, %v9529_v15  ;;  %v9319_v2 = vadd.f32 %v9318_v55, %v9230_v59  ;;  %v9150_v33 = vpop.f32.mrf.mxu2  ;;  %10720 = vmatmul.msk.bf16.gmra.mxu1 %vm4365_vm15, %v10560_v44  ;;  %v11040_v44 = vld [vmem:[%s11215_s9 + $0x44] sm:$0xf]  ;;  %v9062_v59 = vadd.f32 %v14718_v29, %v14473_v10 }
 0x4bc   : > { %v9469_v15 = vunpack.c.l.bf16 %v11040_v44 }
 0x4bd   : > { %v9408_v11 = vadd.f32 %v9407_v30, %v9319_v2  ;;  %9357 = vmatmul.bf16.gmra.mxu0 %v10556_v36  ;;  %v9151_v55 = vadd.f32 %v9150_v33, %v9062_v59 }
 0x4bf   : > { %v9498_v41 = vadd.f32 %v9466_v13, %v9408_v11  ;;  %v11041_v11 = vld [vmem:[%s11215_s9 + $0x48] sm:$0xf] }
 0x4c0   : > { %v9231_v7 = vpop.f32.mrf.mxu3 }
 0x4c1   : > { %v9530_v9 = vmax.f32 %v9498_v41, 0.0  ;;  %v9232_v0 = vadd.f32 %v9231_v7, %v9143_v49  ;;  %v9409_v61 = vpop.f32.mrf.mxu1  ;;  %v9470_v49 = vunpack.c.l.bf16 %v11041_v11  ;;  %v9064_v41 = vadd.f32 %v14718_v29, %v14500_v34 }
 0x4c2   : > { %v9320_v3 = vpop.f32.mrf.mxu0 }
 0x4c3   : > { %9562 = vst.msk [vmem:[%s14747_s8 + $0x70] sm:$0xff] %vm4365_vm15, %v9530_v9  ;;  %v9321_v19 = vadd.f32 %v9320_v3, %v9232_v0  ;;  %v9152_v23 = vpop.f32.mrf.mxu2 }
 0x4c4   : > { %v9153_v7 = vadd.f32 %v9152_v23, %v9064_v41 }
 0x4c5   : > { %v9410_v53 = vadd.f32 %v9409_v61, %v9321_v19 }
 0x4c7   : > { %v9499_v16 = vadd.f32 %v9467_v47, %v9410_v53  ;;  %v9471_v53 = vunpack.c.l.bf16 %v11042_v12 }
 0x4c8   : > { %v9234_v1 = vpop.f32.mrf.mxu3 }
 0x4c9   : > { %v9531_v58 = vmax.f32 %v9499_v16, 0.0  ;;  %v9235_v18 = vadd.f32 %v9234_v1, %v9146_v52  ;;  %v9412_v5 = vpop.f32.mrf.mxu1  ;;  %v9067_v52 = vadd.f32 %v14718_v29, %v14521_v45 }
 0x4ca   : > { %v9323_v21 = vpop.f32.mrf.mxu0 }
 0x4cb   : > { %9563 = vst.msk [vmem:[%s14747_s8 + $0x78] sm:$0xff] %vm4365_vm15, %v9531_v58  ;;  %v9324_v62 = vadd.f32 %v9323_v21, %v9235_v18  ;;  %v9155_v17 = vpop.f32.mrf.mxu2 }
 0x4cc   : > { %v9156_v16 = vadd.f32 %v9155_v17, %v9067_v52 }
 0x4cd   : > { %v9413_v4 = vadd.f32 %v9412_v5, %v9324_v62 }
 0x4cf   : > { %v9500_v35 = vadd.f32 %v9468_v46, %v9413_v4  ;;  %v9472_v46 = vunpack.c.l.bf16 %v11043_v51 }
 0x4d0   : > { %v9236_v63 = vpop.f32.mrf.mxu3 }
 0x4d1   : > { %v9532_v28 = vmax.f32 %v9500_v35, 0.0  ;;  %v9237_v50 = vadd.f32 %v9236_v63, %v9148_v14  ;;  %v9414_v38 = vpop.f32.mrf.mxu1 }
 0x4d2   : > { %v9325_v6 = vpop.f32.mrf.mxu0 }
 0x4d3   : > { %9564 = vst.msk [vmem:[%s14747_s8 + $0x80] sm:$0xff] %vm4365_vm15, %v9532_v28  ;;  %v9326_v37 = vadd.f32 %v9325_v6, %v9237_v50  ;;  %v9157_v36 = vpop.f32.mrf.mxu2 }
 0x4d4   : > { %v9158_v14 = vadd.f32 %v9157_v36, %v9069_v22 }
 0x4d5   : > { %v9415_v31 = vadd.f32 %v9414_v38, %v9326_v37  ;;  %v11044_v37 = vld [vmem:[%s11215_s9 + $0x54] sm:$0xf] }
 0x4d6   : > { %v9473_v44 = vunpack.c.l.bf16 %v11044_v37 }
 0x4d7   : > { %v9501_v8 = vadd.f32 %v9469_v15, %v9415_v31  ;;  %v9072_v15 = vadd.f32 %v14718_v29, %v14549_v26  ;;  %v14945_v26 = vld [vmem:[%s15032_s4] ss:$0 sm:$0xff] }
 0x4d8   : > { %v9239_v39 = vpop.f32.mrf.mxu3  ;;  %v9074_v29 = vadd.f32 %v14945_v26, %v14560_v27  ;;  %v9077_v27 = vadd.f32 %v14945_v26, %v14579_v56 }
 0x4d9   : > { %v9533_v30 = vmax.f32 %v9501_v8, 0.0  ;;  %v9240_v2 = vadd.f32 %v9239_v39, %v9151_v55  ;;  %v9417_v13 = vpop.f32.mrf.mxu1 }
 0x4da   : > { %v9328_v48 = vpop.f32.mrf.mxu0 }
 0x4db   : > { %9565 = vst.msk [vmem:[%s14747_s8 + $0x88] sm:$0xff] %vm4365_vm15, %v9533_v30  ;;  %v9329_v60 = vadd.f32 %v9328_v48, %v9240_v2  ;;  %v9160_v42 = vpop.f32.mrf.mxu2 }
 0x4dc   : > { %v9161_v59 = vadd.f32 %v9160_v42, %v9072_v15 }
 0x4dd   : > { %v9418_v10 = vadd.f32 %v9417_v13, %v9329_v60  ;;  %v11045_v13 = vld [vmem:[%s11215_s9 + $0x58] sm:$0xf] }
 0x4de   : > { %v9474_v60 = vunpack.c.l.bf16 %v11045_v13 }
 0x4df   : > { %v9502_v33 = vadd.f32 %v9470_v49, %v9418_v10 }
 0x4e0   : > { %v9241_v9 = vpop.f32.mrf.mxu3 }
 0x4e1   : > { %v9534_v0 = vmax.f32 %v9502_v33, 0.0  ;;  %v9242_v3 = vadd.f32 %v9241_v9, %v9153_v7  ;;  %v9419_v19 = vpop.f32.mrf.mxu1 }
 0x4e2   : > { %v9330_v61 = vpop.f32.mrf.mxu0 }
 0x4e3   : > { %9566 = vst.msk [vmem:[%s14747_s8 + $0x90] sm:$0xff] %vm4365_vm15, %v9534_v0  ;;  %v9331_v47 = vadd.f32 %v9330_v61, %v9242_v3  ;;  %v9162_v4 = vpop.f32.mrf.mxu2 }
 0x4e4   : > { %v9163_v49 = vadd.f32 %v9162_v4, %v9074_v29 }
 0x4e5   : > { %v9420_v34 = vadd.f32 %v9419_v19, %v9331_v47  ;;  %v11047_v19 = vld [vmem:[%s11215_s9 + $0x5c] sm:$0xf] }
 0x4e6   : > { %v9475_v42 = vunpack.c.l.bf16 %v11047_v19 }
 0x4e7   : > { %v9503_v23 = vadd.f32 %v9471_v53, %v9420_v34 }
 0x4e8   : > { %v9244_v1 = vpop.f32.mrf.mxu3 }
 0x4e9   : > { %v9535_v58 = vmax.f32 %v9503_v23, 0.0  ;;  %v9245_v18 = vadd.f32 %v9244_v1, %v9156_v16  ;;  %v9422_v5 = vpop.f32.mrf.mxu1 }
 0x4ea   : > { %v9333_v21 = vpop.f32.mrf.mxu0 }
 0x4eb   : > { %9567 = vst.msk [vmem:[%s14747_s8 + $0x98] sm:$0xff] %vm4365_vm15, %v9535_v58  ;;  %v9334_v62 = vadd.f32 %v9333_v21, %v9245_v18  ;;  %v9165_v31 = vpop.f32.mrf.mxu2  ;;  %v11048_v21 = vld [vmem:[%s11215_s9 + $0x60] sm:$0xf] }
 0x4ec   : > { %v9166_v53 = vadd.f32 %v9165_v31, %v9077_v27 }
 0x4ed   : > { %v9423_v45 = vadd.f32 %v9422_v5, %v9334_v62  ;;  %v9476_v5 = vunpack.c.l.bf16 %v11048_v21  ;;  %v9079_v62 = vadd.f32 %v14945_v26, %v14598_v54 }
 0x4ef   : > { %v9504_v35 = vadd.f32 %v9472_v46, %v9423_v45 }
 0x4f0   : > { %v9246_v17 = vpop.f32.mrf.mxu3 }
 0x4f1   : > { %v9536_v63 = vmax.f32 %v9504_v35, 0.0  ;;  %v9247_v28 = vadd.f32 %v9246_v17, %v9158_v14  ;;  %v9424_v6 = vpop.f32.mrf.mxu1 }
 0x4f2   : > { %v9335_v50 = vpop.f32.mrf.mxu0 }
 0x4f3   : > { %9568 = vst.msk [vmem:[%s14747_s8 + $0xa0] sm:$0xff] %vm4365_vm15, %v9536_v63  ;;  %v9336_v38 = vadd.f32 %v9335_v50, %v9247_v28  ;;  %v9167_v7 = vpop.f32.mrf.mxu2  ;;  %v11049_v63 = vld [vmem:[%s11215_s9 + $0x64] sm:$0xf] }
 0x4f4   : > { %v9168_v56 = vadd.f32 %v9167_v7, %v9079_v62  ;;  %v9477_v28 = vunpack.c.l.bf16 %v11049_v63 }
 0x4f5   : > { %v9425_v24 = vadd.f32 %v9424_v6, %v9336_v38  ;;  %v9082_v6 = vadd.f32 %v14945_v26, %v14618_v20 }
 0x4f7   : > { %v9505_v55 = vadd.f32 %v9473_v44, %v9425_v24 }
 0x4f8   : > { %v9249_v8 = vpop.f32.mrf.mxu3 }
 0x4f9   : > { %v9537_v39 = vmax.f32 %v9505_v55, 0.0  ;;  %v9250_v30 = vadd.f32 %v9249_v8, %v9161_v59  ;;  %v9427_v2 = vpop.f32.mrf.mxu1  ;;  %v11050_v8 = vld [vmem:[%s11215_s9 + $0x68] sm:$0xf] }
 0x4fa   : > { %v9338_v36 = vpop.f32.mrf.mxu0 }
 0x4fb   : > { %9569 = vst.msk [vmem:[%s14747_s8 + $0xa8] sm:$0xff] %vm4365_vm15, %v9537_v39  ;;  %v9339_v48 = vadd.f32 %v9338_v36, %v9250_v30  ;;  %v9170_v58 = vpop.f32.mrf.mxu2  ;;  %v9478_v39 = vunpack.c.l.bf16 %v11050_v8  ;;  %v9084_v30 = vadd.f32 %v14945_v26, %v14638_v25 }
 0x4fc   : > { %v9171_v38 = vadd.f32 %v9170_v58, %v9082_v6  ;;  %v11054_v6 = vld [vmem:[%s11215_s9 + $0x78] sm:$0xf] }
 0x4fd   : > { %v9428_v11 = vadd.f32 %v9427_v2, %v9339_v48 }
 0x4ff   : > { %v9506_v41 = vadd.f32 %v9474_v60, %v9428_v11 }
 0x500   : > { %v9251_v10 = vpop.f32.mrf.mxu3 }
 0x501   : > { %v9538_v33 = vmax.f32 %v9506_v41, 0.0  ;;  %v9252_v9 = vadd.f32 %v9251_v10, %v9163_v49  ;;  %v9429_v3 = vpop.f32.mrf.mxu1  ;;  %v11051_v10 = vld [vmem:[%s11215_s9 + $0x6c] sm:$0xf] }
 0x502   : > { %v9340_v0 = vpop.f32.mrf.mxu0  ;;  %v9479_v7 = vunpack.c.l.bf16 %v11051_v10 }
 0x503   : > { %9570 = vst.msk [vmem:[%s14747_s8 + $0xb0] sm:$0xff] %vm4365_vm15, %v9538_v33  ;;  %v9341_v61 = vadd.f32 %v9340_v0, %v9252_v9  ;;  %v9172_v50 = vpop.f32.mrf.mxu2  ;;  %v9087_v33 = vadd.f32 %v14945_v26, %v14664_v32 }
 0x504   : > { %v9173_v2 = vadd.f32 %v9172_v50, %v9084_v30 }
 0x505   : > { %v9430_v47 = vadd.f32 %v9429_v3, %v9341_v61 }
 0x507   : > { %v9507_v12 = vadd.f32 %v9475_v42, %v9430_v47 }
 0x508   : > { %v9254_v34 = vpop.f32.mrf.mxu3 }
 0x509   : > { %v9539_v52 = vmax.f32 %v9507_v12, 0.0  ;;  %v9255_v16 = vadd.f32 %v9254_v34, %v9166_v53  ;;  %v9432_v1 = vpop.f32.mrf.mxu1  ;;  %v11052_v53 = vld [vmem:[%s11215_s9 + $0x70] sm:$0xf]  ;;  %v9089_v34 = vadd.f32 %v14945_v26, %v14690_v43 }
 0x50a   : > { %v9343_v23 = vpop.f32.mrf.mxu0 }
 0x50b   : > { %9571 = vst.msk [vmem:[%s14747_s8 + $0xb8] sm:$0xff] %vm4365_vm15, %v9539_v52  ;;  %v9344_v18 = vadd.f32 %v9343_v23, %v9255_v16  ;;  %v9175_v20 = vpop.f32.mrf.mxu2  ;;  %v9480_v52 = vunpack.c.l.bf16 %v11052_v53 }
 0x50c   : > { %v9176_v9 = vadd.f32 %v9175_v20, %v9087_v33 }
 0x50d   : > { %v9433_v51 = vadd.f32 %v9432_v1, %v9344_v18 }
 0x50f   : > { %v9508_v46 = vadd.f32 %v9476_v5, %v9433_v51 }
 0x510   : > { %v9256_v22 = vpop.f32.mrf.mxu3 }
 0x511   : > { %v9540_v4 = vmax.f32 %v9508_v46, 0.0  ;;  %v9257_v45 = vadd.f32 %v9256_v22, %v9168_v56  ;;  %v9434_v35 = vpop.f32.mrf.mxu1  ;;  %v11053_v56 = vld [vmem:[%s11215_s9 + $0x74] sm:$0xf]  ;;  %v9092_v22 = vadd.f32 %v14945_v26, %v14705_v40  ;;  %v9094_v40 = vadd.f32 %v14945_v26, %v14721_v57 }
 0x512   : > { %v9345_v14 = vpop.f32.mrf.mxu0  ;;  %v9481_v46 = vunpack.c.l.bf16 %v11053_v56 }
 0x513   : > { %9572 = vst.msk [vmem:[%s14747_s8 + $0xc0] sm:$0xff] %vm4365_vm15, %v9540_v4  ;;  %v9346_v17 = vadd.f32 %v9345_v14, %v9257_v45  ;;  %v9177_v3 = vpop.f32.mrf.mxu2 }
 0x514   : > { %v9178_v16 = vadd.f32 %v9177_v3, %v9089_v34 }
 0x515   : > { %v9435_v54 = vadd.f32 %v9434_v35, %v9346_v17 }
 0x517   : > { %v9509_v37 = vadd.f32 %v9477_v28, %v9435_v54  ;;  %v9482_v54 = vunpack.c.l.bf16 %v11054_v6 }
 0x518   : > { %v9259_v44 = vpop.f32.mrf.mxu3 }
 0x519   : > { %v9541_v15 = vmax.f32 %v9509_v37, 0.0  ;;  %v9260_v24 = vadd.f32 %v9259_v44, %v9171_v38  ;;  %v9437_v31 = vpop.f32.mrf.mxu1 }
 0x51a   : > { %v9348_v59 = vpop.f32.mrf.mxu0 }
 0x51b   : > { %9573 = vst.msk [vmem:[%s14747_s8 + $0xc8] sm:$0xff] %vm4365_vm15, %v9541_v15  ;;  %v9349_v55 = vadd.f32 %v9348_v59, %v9260_v24  ;;  %v9180_v62 = vpop.f32.mrf.mxu2 }
 0x51c   : > { %v9181_v4 = vadd.f32 %v9180_v62, %v9092_v22 }
 0x51d   : > { %v9438_v36 = vadd.f32 %v9437_v31, %v9349_v55 }
 0x51f   : > { %v9510_v48 = vadd.f32 %v9478_v39, %v9438_v36  ;;  %v11055_v39 = vld [vmem:[%s11215_s9 + $0x7c] sm:$0xf] }
 0x520   : > { %v9261_v13 = vpop.f32.mrf.mxu3  ;;  %v9483_v57 = vunpack.c.l.bf16 %v11055_v39 }
 0x521   : > { %v9542_v60 = vmax.f32 %v9510_v48, 0.0  ;;  %v9262_v29 = vadd.f32 %v9261_v13, %v9173_v2  ;;  %v9439_v49 = vpop.f32.mrf.mxu1 }
 0x522   : > { %v9350_v11 = vpop.f32.mrf.mxu0 }
 0x523   : > { %9574 = vst.msk [vmem:[%s14747_s8 + $0xd0] sm:$0xff] %vm4365_vm15, %v9542_v60  ;;  %v9351_v41 = vadd.f32 %v9350_v11, %v9262_v29  ;;  %v9182_v38 = vpop.f32.mrf.mxu2 }
 0x524   : > { %v9183_v44 = vadd.f32 %v9182_v38, %v9094_v40 }
 0x525   : > { %v9440_v25 = vadd.f32 %v9439_v49, %v9351_v41 }
 0x527   : > { %v9511_v0 = vadd.f32 %v9479_v7, %v9440_v25 }
 0x528   : > { %v9264_v61 = vpop.f32.mrf.mxu3 }
 0x529   : > { %v9543_v19 = vmax.f32 %v9511_v0, 0.0  ;;  %v9265_v42 = vadd.f32 %v9264_v61, %v9176_v9  ;;  %v9442_v27 = vpop.f32.mrf.mxu1 }
 0x52a   : > { %v9353_v47 = vpop.f32.mrf.mxu0 }
 0x52b   : > { %9575 = vst.msk [vmem:[%s14747_s8 + $0xd8] sm:$0xff] %vm4365_vm15, %v9543_v19  ;;  %v9354_v12 = vadd.f32 %v9353_v47, %v9265_v42 }
 0x52d   : > { %v9443_v32 = vadd.f32 %v9442_v27, %v9354_v12 }
 0x52f   : > { %v9512_v23 = vadd.f32 %v9480_v52, %v9443_v32 }
 0x530   : > { %v9266_v1 = vpop.f32.mrf.mxu3 }
 0x531   : > { %v9544_v58 = vmax.f32 %v9512_v23, 0.0  ;;  %v9267_v18 = vadd.f32 %v9266_v1, %v9178_v16  ;;  %v9444_v5 = vpop.f32.mrf.mxu1 }
 0x532   : > { %v9355_v21 = vpop.f32.mrf.mxu0 }
 0x533   : > { %9576 = vst.msk [vmem:[%s14747_s8 + $0xe0] sm:$0xff] %vm4365_vm15, %v9544_v58  ;;  %v9356_v51 = vadd.f32 %v9355_v21, %v9267_v18 }
 0x535   : > { %v9445_v43 = vadd.f32 %v9444_v5, %v9356_v51 }
 0x537   : > { %v9513_v45 = vadd.f32 %v9481_v46, %v9445_v43 }
 0x538   : > { %v9269_v14 = vpop.f32.mrf.mxu3 }
 0x539   : > { %v9545_v35 = vmax.f32 %v9513_v45, 0.0  ;;  %v9270_v17 = vadd.f32 %v9269_v14, %v9181_v4  ;;  %v9447_v28 = vpop.f32.mrf.mxu1 }
 0x53a   : > { %v9358_v63 = vpop.f32.mrf.mxu0 }
 0x53b   : > { %9577 = vst.msk [vmem:[%s14747_s8 + $0xe8] sm:$0xff] %vm4365_vm15, %v9545_v35  ;;  %v9359_v50 = vadd.f32 %v9358_v63, %v9270_v17 }
 0x53d   : > { %v9448_v37 = vadd.f32 %v9447_v28, %v9359_v50 }
 0x53f   : > { %v9514_v15 = vadd.f32 %v9482_v54, %v9448_v37 }
 0x540   : > { %v9271_v24 = vpop.f32.mrf.mxu3 }
 0x541   : > { %v9546_v59 = vmax.f32 %v9514_v15, 0.0  ;;  %v9272_v31 = vadd.f32 %v9271_v24, %v9183_v44  ;;  %v9449_v26 = vpop.f32.mrf.mxu1 }
 0x542   : > { %v9360_v55 = vpop.f32.mrf.mxu0 }
 0x543   : > { %9578 = vst.msk [vmem:[%s14747_s8 + $0xf0] sm:$0xff] %vm4365_vm15, %v9546_v59  ;;  %v9361_v8 = vadd.f32 %v9360_v55, %v9272_v31 }
 0x545   : > { %v9450_v30 = vadd.f32 %v9449_v26, %v9361_v8 }
 0x547   : > { %v9515_v36 = vadd.f32 %v9483_v57, %v9450_v30 }
 0x549   : > { %v9547_v20 = vmax.f32 %v9515_v36, 0.0 }
 0x54b   : > { %9579 = vst.msk [vmem:[%s14747_s8 + $0xf8] sm:$0xff] %vm4365_vm15, %v9547_v20 }
 0x54c   : > { %11083 = shalt.err (!%p11080_p3)
}
 0x54d   : > { %s11122_s7 = smov 128   ;;  %s11123_s8 = smov 8  }
 0x54e   : > { %10976 = dma.vmem_to_hbm [thread:$0]  (%p11192_p5), %s9594_s17, 4096, %s9596_s22, %s9581_s23, %s11122_s7, %s11122_s7, %s11123_s8  }
 0x54f PF: > { %p10982_p4 = scmp.ge.s32.totalorder %s11118_s21, 2  ;;  %s9610_s12 = sand.u32 1, %s11106_s18  }
 0x550   : > { %s9611_s13 = scalar_lea.sflag [#allocation5], %s9610_s12 }
 0x551   : > { %p10979_p7 = pnand %p10982_p4, %p11196_p6 }
 0x553   : > { %p10980_p8 = pneg %p10979_p7 }
 0x555   : > { %11101 = dma.done.wait (%p10980_p8), %s9611_s13, 4096  }
 0x556   : > { %11103 = vsyncadd (%p10980_p8), %s9611_s13, 4294963200  ;;  %p15_p9 = scmp.ge.s32.totalorder %s11179_s24, 4   ;;  %s15076_s18 = smov %s11110_s19 }
 0x557   : > { %s15077_s19 = smov %s11114_s20  ;;  %s15078_s20 = smov %s11190_s27 }
 0x558   : > { %s15079_s21 = smov %s11179_s24  ;;  %17 = sbr.rel (!%p15_p9) target bundleno = 3 (0x3), region = 77 }
 0x55d   :  { %9617 = vsyncpa [#allocation5], 1 }
 0x55e   :  { %9619 = vsyncpa [#allocation5 + $0x1], 1 }

</bundles_post_ra>
